<compile_context>
chip_gen: v5e
topology: v5e:2x2
jax: 0.10.0
libtpu: 0.0.40
codegen_flags: <defaults>
</compile_context>

<pallas_src>
import functools

import numpy as np

import jax
import jax.numpy as jnp
from jax.experimental import pallas as pl
from jax.experimental.pallas import tpu as pltpu

EPS = 1e-5


def _pad128(n):
    return ((n + 127) // 128) * 128


# ----------------------------------------------------------------------------
# Single fused kernel for the whole bottleneck block
# ----------------------------------------------------------------------------
def _bottleneck_kernel(*refs, s, n, hq, wq, ho, wo, m1, m2, pp, cop, cin, cout,
                       has_proj, cdtype):
    if has_proj:
        (x_ref, mask_ref, w1_ref, g1_ref, b1_ref, w2_ref, g2_ref, b2_ref,
         w3_ref, g3_ref, b3_ref, ws_ref, gs_ref, bs_ref, o_ref) = refs
    else:
        (x_ref, mask_ref, w1_ref, g1_ref, b1_ref, w2_ref, g2_ref, b2_ref,
         w3_ref, g3_ref, b3_ref, o_ref) = refs
        ws_ref = gs_ref = bs_ref = None

    def bn(y, g_ref, b_ref, count, relu, mask=None):
        # train-mode BatchNorm2d over the `count` valid rows: two-pass
        # (mean, then centered sum of squares), biased variance, all in f32.
        inv_n = 1.0 / count
        mean = jnp.sum(y, axis=0, keepdims=True) * inv_n
        c = y - mean
        c2 = c * c if mask is None else (c * c) * mask
        var = jnp.sum(c2, axis=0, keepdims=True) * inv_n
        out = g_ref[...] * (c * jax.lax.rsqrt(var + EPS)) + b_ref[...]
        return jnp.maximum(out, 0.0) if relu else out

    x = x_ref[...]                 # (Mrows, Cin)  compute dtype, phase layout
    mask = mask_ref[...]           # (Mrows, 1)    1.0 on real pixels, else 0.0

    # ---- conv1 (1x1) + bn1 + relu ------------------------------------------
    # Padding rows of x are zero and conv1 is linear (no bias), so they add
    # nothing to the BN sums; stats divide by the true pixel count m1 and the
    # mask re-zeroes the padding rows afterwards (== conv2's zero padding).
    y1 = jnp.dot(x, w1_ref[...], preferred_element_type=jnp.float32)
    y1 = (bn(y1, g1_ref, b1_ref, m1, relu=True, mask=mask) * mask).astype(cdtype)

    # ---- conv2 (3x3, stride, pad=1) + bn2 + relu ------------------------------
    # Each tap is a static slice of the stride-phase grid; the 9 slabs are
    # concatenated along lanes and contracted in a single K = 9*Pp MXU dot.
    y1_4d = y1.reshape(s * s * n, hq, wq, pp)
    taps = []
    for kh in range(3):
        for kw in range(3):
            p, oi = kh % s, kh // s
            q, oj = kw % s, kw // s
            b0 = (p * s + q) * n
            taps.append(y1_4d[b0:b0 + n, oi:oi + ho, oj:oj + wo, :])
    im2col = jnp.concatenate(taps, axis=-1).reshape(m2, 9 * pp)
    y2 = jnp.dot(im2col, w2_ref[...], preferred_element_type=jnp.float32)
    y2 = bn(y2, g2_ref, b2_ref, m2, relu=True).astype(cdtype)

    # ---- conv3 (1x1) + bn3 (no relu yet) ---------------------------------------
    y3 = jnp.dot(y2, w3_ref[...], preferred_element_type=jnp.float32)
    y3 = bn(y3, g3_ref, b3_ref, m2, relu=False)

    # ---- shortcut: center-tap (kh=kw=1) slice == stride-s subsample of x -------
    pc, oc = 1 % s, 1 // s
    b0 = (pc * s + pc) * n
    xs = x.reshape(s * s * n, hq, wq, cin)[b0:b0 + n, oc:oc + ho, oc:oc + wo, :]
    xs = xs.reshape(m2, cin)
    if has_proj:
        sc = jnp.dot(xs, ws_ref[...], preferred_element_type=jnp.float32)
        sc = bn(sc, gs_ref, bs_ref, m2, relu=False)
    else:
        sc = xs.astype(jnp.float32)
        if cop > cout:
            sc = jnp.concatenate(
                [sc, jnp.zeros((m2, cop - cout), jnp.float32)], axis=-1)

    # ---- residual add + relu, lane-dense store in the compute dtype ------------
    o_ref[...] = jnp.maximum(y3 + sc, 0.0).astype(o_ref.dtype)


# ----------------------------------------------------------------------------
# Bottleneck block wrapper
# ----------------------------------------------------------------------------
class BottleneckPallas:
    expansion = 4

    def __init__(self, in_planes, planes, stride=1, key=None,
                 compute_dtype=jnp.bfloat16):
        self.in_planes = in_planes
        self.planes = planes
        self.stride = stride
        self.cout = self.expansion * planes
        self.has_proj = (stride != 1) or (in_planes != self.cout)
        self.cd = compute_dtype

        keys = jax.random.split(key, 12)

        def w(k, shape):
            return 0.1 * jax.random.normal(k, shape, dtype=jnp.float32)

        def bn_params(kg, kb, c):
            g = 1.0 + 0.1 * jax.random.normal(kg, (c,), dtype=jnp.float32)
            b = 0.1 * jax.random.normal(kb, (c,), dtype=jnp.float32)
            return g, b

        # raw parameters in PyTorch OIHW layout (used by the pure-JAX reference)
        self.w1 = w(keys[0], (planes, in_planes, 1, 1))
        self.w2 = w(keys[1], (planes, planes, 3, 3))
        self.w3 = w(keys[2], (self.cout, planes, 1, 1))
        self.g1, self.b1 = bn_params(keys[3], keys[4], planes)
        self.g2, self.b2 = bn_params(keys[5], keys[6], planes)
        self.g3, self.b3 = bn_params(keys[7], keys[8], self.cout)
        if self.has_proj:
            self.ws = w(keys[9], (self.cout, in_planes, 1, 1))
            self.gs, self.bs = bn_params(keys[10], keys[11], self.cout)

        # ---- one-time re-layout into lane-padded matmul panels ----------------
        p_p, co_p = _pad128(planes), _pad128(self.cout)
        self.p_p, self.co_p = p_p, co_p

        def pad2(a, r, c):
            return jnp.pad(a, ((0, r - a.shape[0]), (0, c - a.shape[1])))

        def pad_row(v, c):
            return jnp.pad(v, (0, c - v.shape[0])).reshape(1, c).astype(jnp.float32)

        cd = compute_dtype
        # conv1 / conv3 / projection keep the REAL Cin contraction (no padding
        # of x in HBM); only the output-lane dims are padded to 128 multiples.
        self.w1_p = pad2(self.w1.reshape(planes, in_planes).T,
                         in_planes, p_p).astype(cd)                 # (Cin, Pp)
        taps = [pad2(self.w2[:, :, kh, kw].T, p_p, p_p)
                for kh in range(3) for kw in range(3)]
        self.w2_p = jnp.concatenate(taps, axis=0).astype(cd)        # (9*Pp, Pp)
        self.w3_p = pad2(self.w3.reshape(self.cout, planes).T,
                         p_p, co_p).astype(cd)                      # (Pp, Co_p)
        self.g1_p, self.b1_p = pad_row(self.g1, p_p), pad_row(self.b1, p_p)
        self.g2_p, self.b2_p = pad_row(self.g2, p_p), pad_row(self.b2, p_p)
        self.g3_p, self.b3_p = pad_row(self.g3, co_p), pad_row(self.b3, co_p)
        if self.has_proj:
            self.ws_p = pad2(self.ws.reshape(self.cout, in_planes).T,
                             in_planes, co_p).astype(cd)            # (Cin, Co_p)
            self.gs_p, self.bs_p = pad_row(self.gs, co_p), pad_row(self.bs, co_p)

        self._cache = {}   # per-(N, H, W): geometry + cached validity mask

    # shape-dependent geometry + validity mask, built once per input shape
    def _geometry(self, N, H, W):
        key = (N, H, W)
        if key not in self._cache:
            s = self.stride
            Ho, Wo = (H - 1) // s + 1, (W - 1) // s + 1
            Hq = -(-(H + 2) // s)
            Wq = ((-(-(W + 2) // s) + 7) // 8) * 8   # align 4-D second-minor dim
            hp, wp = np.arange(s * Hq), np.arange(s * Wq)
            valid = ((hp[:, None] >= 1) & (hp[:, None] <= H) &
                     (wp[None, :] >= 1) & (wp[None, :] <= W)).astype(np.float32)
            v = valid.reshape(Hq, s, Wq, s).transpose(1, 3, 0, 2)   # (s,s,Hq,Wq)
            v = np.ascontiguousarray(
                np.broadcast_to(v[:, :, None], (s, s, N, Hq, Wq))).reshape(-1, 1)
            self._cache[key] = dict(Ho=Ho, Wo=Wo, Hq=Hq, Wq=Wq,
                                    mask=jnp.asarray(v))
        return self._cache[key]

    def __call__(self, x_nchw):
        N, Cin, H, W = x_nchw.shape
        assert Cin == self.in_planes
        s = self.stride
        geo = self._geometry(N, H, W)
        Ho, Wo, Hq, Wq = geo["Ho"], geo["Wo"], geo["Hq"], geo["Wq"]
        M1, M2 = N * H * W, N * Ho * Wo

        # NHWC + spatial pad-by-1 (plus alignment pad) + stride-phase split,
        # flattened to (Mrows, Cin) with the REAL channel count.
        x_nhwc = jnp.transpose(x_nchw, (0, 2, 3, 1))
        x_pad = jnp.pad(x_nhwc, ((0, 0), (1, s * Hq - H - 1),
                                 (1, s * Wq - W - 1), (0, 0)))
        x_ph = jnp.transpose(x_pad.reshape(N, Hq, s, Wq, s, Cin),
                             (2, 4, 0, 1, 3, 5))          # (s, s, N, Hq, Wq, C)
        x2d = x_ph.reshape(s * s * N * Hq * Wq, Cin).astype(self.cd)

        inputs = [x2d, geo["mask"],
                  self.w1_p, self.g1_p, self.b1_p,
                  self.w2_p, self.g2_p, self.b2_p,
                  self.w3_p, self.g3_p, self.b3_p]
        if self.has_proj:
            inputs += [self.ws_p, self.gs_p, self.bs_p]

        kernel = functools.partial(
            _bottleneck_kernel, s=s, n=N, hq=Hq, wq=Wq, ho=Ho, wo=Wo,
            m1=M1, m2=M2, pp=self.p_p, cop=self.co_p, cin=Cin, cout=self.cout,
            has_proj=self.has_proj, cdtype=self.cd)

        out2d = pl.pallas_call(
            kernel,
            out_shape=jax.ShapeDtypeStruct((M2, self.co_p), self.cd),
            grid=(1,),
            in_specs=[pl.BlockSpec(a.shape, lambda i, nd=a.ndim: (0,) * nd)
                      for a in inputs],
            out_specs=pl.BlockSpec((M2, self.co_p), lambda i: (0, 0)),
            compiler_params=pltpu.CompilerParams(
                dimension_semantics=("arbitrary",)),
        )(*inputs)

        # TODO(synk): a full ResNet should keep this padded (M2, co_p) bf16
        # NHWC layout between consecutive blocks instead of round-tripping
        # through NCHW at every block boundary.
        out = out2d[:, :self.cout].reshape(N, Ho, Wo, self.cout)
        return jnp.transpose(out, (0, 3, 1, 2))   # NCHW, compute dtype


# ----------------------------------------------------------------------------
# Pure-JAX reference (same train-mode BN semantics).  `operand_dtype` emulates
# the kernel's bf16 MXU operands (f32 accumulation) for a tight check.
# ----------------------------------------------------------------------------
def reference_forward(block, x, operand_dtype=jnp.float32):
    def q(a):
        return a.astype(operand_dtype).astype(jnp.float32)

    def conv(x, w, stride, pad):
        return jax.lax.conv_general_dilated(
            q(x), q(w), (stride, stride), [(pad, pad), (pad, pad)],
            dimension_numbers=("NCHW", "OIHW", "NCHW"),
            preferred_element_type=jnp.float32)

    def bn(y, g, b):
        mean = jnp.mean(y, axis=(0, 2, 3), keepdims=True)
        var = jnp.var(y, axis=(0, 2, 3), keepdims=True)  # biased, like PyTorch
        return (g.reshape(1, -1, 1, 1) * (y - mean) / jnp.sqrt(var + EPS)
                + b.reshape(1, -1, 1, 1))

    out = jax.nn.relu(bn(conv(x, block.w1, 1, 0), block.g1, block.b1))
    out = jax.nn.relu(bn(conv(out, block.w2, block.stride, 1), block.g2, block.b2))
    out = bn(conv(out, block.w3, 1, 0), block.g3, block.b3)
    if block.has_proj:
        sc = bn(conv(x, block.ws, block.stride, 0), block.gs, block.bs)
    else:
        sc = q(x)
    return jax.nn.relu(out + sc)


if __name__ == "__main__":
    key = jax.random.PRNGKey(0)
    kx, kp, kx2, kp2 = jax.random.split(key, 4)

    # ---- config 1: projection shortcut (stride=2, channel expansion) ---------
    in_planes, planes, stride = 4, 4, 2
    x = jax.random.normal(kx, (2, in_planes, 16, 16), dtype=jnp.float32)

    # bf16 MXU operands + bf16 output (performance mode) vs bf16-emulating ref
    blk_bf16 = BottleneckPallas(in_planes, planes, stride, key=kp,
                                compute_dtype=jnp.bfloat16)
    out_bf16 = jax.block_until_ready(blk_bf16(x)).astype(jnp.float32)
    ref_bf16 = reference_forward(blk_bf16, x, operand_dtype=jnp.bfloat16)
    ref_bf16 = jax.block_until_ready(
        ref_bf16.astype(jnp.bfloat16)).astype(jnp.float32)
    assert out_bf16.shape == ref_bf16.shape == (2, 4 * planes, 8, 8)
    assert jnp.allclose(out_bf16, ref_bf16, atol=3e-2, rtol=3e-2), (
        float(jnp.max(jnp.abs(out_bf16 - ref_bf16))))

    # f32 operands: tight numerical check of the fused kernel
    blk_f32 = BottleneckPallas(in_planes, planes, stride, key=kp,
                               compute_dtype=jnp.float32)
    out_f32 = jax.block_until_ready(blk_f32(x))
    ref_f32 = jax.block_until_ready(reference_forward(blk_f32, x))
    assert jnp.allclose(out_f32, ref_f32, atol=2e-3, rtol=2e-3), (
        float(jnp.max(jnp.abs(out_f32 - ref_f32))))

    # ---- config 2: identity shortcut (stride=1, in_planes == expansion*planes)
    x2 = jax.random.normal(kx2, (2, 16, 8, 8), dtype=jnp.float32)
    blk_id = BottleneckPallas(16, 4, 1, key=kp2, compute_dtype=jnp.float32)
    out_id = jax.block_until_ready(blk_id(x2))
    ref_id = jax.block_until_ready(reference_forward(blk_id, x2))
    assert out_id.shape == ref_id.shape == (2, 16, 8, 8)
    assert jnp.allclose(out_id, ref_id, atol=2e-3, rtol=2e-3), (
        float(jnp.max(jnp.abs(out_id - ref_id))))

    print("KERNEL_OK")
</pallas_src>

<mosaic_0001>
module attributes {stable_mosaic.version = 11 : i64} {
  func.func @_bottleneck_kernel(%arg0: i32, %arg1: memref<1152x4xbf16, #tpu.memory_space<vmem>>, %arg2: memref<1152x1xf32, #tpu.memory_space<vmem>>, %arg3: memref<4x128xbf16, #tpu.memory_space<vmem>>, %arg4: memref<1x128xf32, #tpu.memory_space<vmem>>, %arg5: memref<1x128xf32, #tpu.memory_space<vmem>>, %arg6: memref<1152x128xbf16, #tpu.memory_space<vmem>>, %arg7: memref<1x128xf32, #tpu.memory_space<vmem>>, %arg8: memref<1x128xf32, #tpu.memory_space<vmem>>, %arg9: memref<128x128xbf16, #tpu.memory_space<vmem>>, %arg10: memref<1x128xf32, #tpu.memory_space<vmem>>, %arg11: memref<1x128xf32, #tpu.memory_space<vmem>>, %arg12: memref<4x128xbf16, #tpu.memory_space<vmem>>, %arg13: memref<1x128xf32, #tpu.memory_space<vmem>>, %arg14: memref<1x128xf32, #tpu.memory_space<vmem>>, %arg15: memref<128x128xbf16, #tpu.memory_space<vmem>>) attributes {dimension_semantics = [#tpu.dimension_semantics<arbitrary>], iteration_bounds = array<i64: 1>, scalar_prefetch = 0 : i64, scratch_operands = 0 : i64, tpu.core_type = #tpu.core_type<tc>, window_params = [{pipeline_mode = #tpu.pipeline_mode<synchronous>, transform_indices = @transform_0, window_bounds = array<i64: 1152, 4>}, {pipeline_mode = #tpu.pipeline_mode<synchronous>, transform_indices = @transform_1, window_bounds = array<i64: 1152, 1>}, {pipeline_mode = #tpu.pipeline_mode<synchronous>, transform_indices = @transform_2, window_bounds = array<i64: 4, 128>}, {pipeline_mode = #tpu.pipeline_mode<synchronous>, transform_indices = @transform_3, window_bounds = array<i64: 1, 128>}, {pipeline_mode = #tpu.pipeline_mode<synchronous>, transform_indices = @transform_4, window_bounds = array<i64: 1, 128>}, {pipeline_mode = #tpu.pipeline_mode<synchronous>, transform_indices = @transform_5, window_bounds = array<i64: 1152, 128>}, {pipeline_mode = #tpu.pipeline_mode<synchronous>, transform_indices = @transform_6, window_bounds = array<i64: 1, 128>}, {pipeline_mode = #tpu.pipeline_mode<synchronous>, transform_indices = @transform_7, window_bounds = array<i64: 1, 128>}, {pipeline_mode = #tpu.pipeline_mode<synchronous>, transform_indices = @transform_8, window_bounds = array<i64: 128, 128>}, {pipeline_mode = #tpu.pipeline_mode<synchronous>, transform_indices = @transform_9, window_bounds = array<i64: 1, 128>}, {pipeline_mode = #tpu.pipeline_mode<synchronous>, transform_indices = @transform_10, window_bounds = array<i64: 1, 128>}, {pipeline_mode = #tpu.pipeline_mode<synchronous>, transform_indices = @transform_11, window_bounds = array<i64: 4, 128>}, {pipeline_mode = #tpu.pipeline_mode<synchronous>, transform_indices = @transform_12, window_bounds = array<i64: 1, 128>}, {pipeline_mode = #tpu.pipeline_mode<synchronous>, transform_indices = @transform_13, window_bounds = array<i64: 1, 128>}, {pipeline_mode = #tpu.pipeline_mode<synchronous>, transform_indices = @transform_14, window_bounds = array<i64: 128, 128>}]} {
    %c0 = arith.constant 0 : index
    %c0_0 = arith.constant 0 : index
    %0 = vector.load %arg1[%c0, %c0_0] : memref<1152x4xbf16, #tpu.memory_space<vmem>>, vector<1152x4xbf16>
    %c0_1 = arith.constant 0 : index
    %c0_2 = arith.constant 0 : index
    %1 = vector.load %arg2[%c0_1, %c0_2] : memref<1152x1xf32, #tpu.memory_space<vmem>>, vector<1152x1xf32>
    %c0_3 = arith.constant 0 : index
    %c0_4 = arith.constant 0 : index
    %2 = vector.load %arg3[%c0_3, %c0_4] : memref<4x128xbf16, #tpu.memory_space<vmem>>, vector<4x128xbf16>
    %cst = arith.constant dense<0.000000e+00> : vector<1152x128xf32>
    %3 = tpu.matmul %0, %2, %cst {dimension_numbers = #tpu.dot_dimension_numbers<[1], [0], [0], [1], [0, 0, 1, 1], [], []>} : vector<1152x4xbf16>, vector<4x128xbf16>, vector<1152x128xf32> -> vector<1152x128xf32>
    %cst_5 = arith.constant dense<0.000000e+00> : vector<128xf32>
    %4 = vector.multi_reduction <add>, %3, %cst_5 [0] : vector<1152x128xf32> to vector<128xf32>
    %5 = vector.shape_cast %4 : vector<128xf32> to vector<1x128xf32>
    %cst_6 = arith.constant 0.001953125 : f32
    %6 = vector.broadcast %cst_6 : f32 to vector<1x128xf32>
    %7 = arith.mulf %5, %6 : vector<1x128xf32>
    %8 = vector.broadcast %7 : vector<1x128xf32> to vector<1152x128xf32>
    %9 = arith.subf %3, %8 : vector<1152x128xf32>
    %10 = arith.mulf %9, %9 : vector<1152x128xf32>
    %11 = vector.broadcast %1 : vector<1152x1xf32> to vector<1152x128xf32>
    %12 = arith.mulf %10, %11 : vector<1152x128xf32>
    %cst_7 = arith.constant dense<0.000000e+00> : vector<128xf32>
    %13 = vector.multi_reduction <add>, %12, %cst_7 [0] : vector<1152x128xf32> to vector<128xf32>
    %14 = vector.shape_cast %13 : vector<128xf32> to vector<1x128xf32>
    %cst_8 = arith.constant 0.001953125 : f32
    %15 = vector.broadcast %cst_8 : f32 to vector<1x128xf32>
    %16 = arith.mulf %14, %15 : vector<1x128xf32>
    %c0_9 = arith.constant 0 : index
    %c0_10 = arith.constant 0 : index
    %17 = vector.load %arg4[%c0_9, %c0_10] : memref<1x128xf32, #tpu.memory_space<vmem>>, vector<1x128xf32>
    %cst_11 = arith.constant 9.99999974E-6 : f32
    %18 = vector.broadcast %cst_11 : f32 to vector<1x128xf32>
    %19 = arith.addf %16, %18 : vector<1x128xf32>
    %20 = math.rsqrt %19 : vector<1x128xf32>
    %21 = vector.broadcast %20 : vector<1x128xf32> to vector<1152x128xf32>
    %22 = arith.mulf %9, %21 : vector<1152x128xf32>
    %23 = vector.broadcast %17 : vector<1x128xf32> to vector<1152x128xf32>
    %24 = arith.mulf %23, %22 : vector<1152x128xf32>
    %c0_12 = arith.constant 0 : index
    %c0_13 = arith.constant 0 : index
    %25 = vector.load %arg5[%c0_12, %c0_13] : memref<1x128xf32, #tpu.memory_space<vmem>>, vector<1x128xf32>
    %26 = vector.broadcast %25 : vector<1x128xf32> to vector<1152x128xf32>
    %27 = arith.addf %24, %26 : vector<1152x128xf32>
    %cst_14 = arith.constant 0.000000e+00 : f32
    %28 = vector.broadcast %cst_14 : f32 to vector<1152x128xf32>
    %29 = arith.maximumf %27, %28 : vector<1152x128xf32>
    %30 = vector.broadcast %1 : vector<1152x1xf32> to vector<1152x128xf32>
    %31 = arith.mulf %29, %30 : vector<1152x128xf32>
    %32 = arith.truncf %31 : vector<1152x128xf32> to vector<1152x128xbf16>
    %33 = vector.shape_cast %32 : vector<1152x128xbf16> to vector<8x9x16x128xbf16>
    %34 = vector.extract_strided_slice %33 {offsets = [0, 0, 0, 0], sizes = [2, 8, 8, 128], strides = [1, 1, 1, 1]} : vector<8x9x16x128xbf16> to vector<2x8x8x128xbf16>
    %35 = vector.extract_strided_slice %33 {offsets = [2, 0, 0, 0], sizes = [2, 8, 8, 128], strides = [1, 1, 1, 1]} : vector<8x9x16x128xbf16> to vector<2x8x8x128xbf16>
    %36 = vector.extract_strided_slice %33 {offsets = [0, 0, 1, 0], sizes = [2, 8, 8, 128], strides = [1, 1, 1, 1]} : vector<8x9x16x128xbf16> to vector<2x8x8x128xbf16>
    %37 = vector.extract_strided_slice %33 {offsets = [4, 0, 0, 0], sizes = [2, 8, 8, 128], strides = [1, 1, 1, 1]} : vector<8x9x16x128xbf16> to vector<2x8x8x128xbf16>
    %38 = vector.extract_strided_slice %33 {offsets = [6, 0, 0, 0], sizes = [2, 8, 8, 128], strides = [1, 1, 1, 1]} : vector<8x9x16x128xbf16> to vector<2x8x8x128xbf16>
    %39 = vector.extract_strided_slice %33 {offsets = [4, 0, 1, 0], sizes = [2, 8, 8, 128], strides = [1, 1, 1, 1]} : vector<8x9x16x128xbf16> to vector<2x8x8x128xbf16>
    %40 = vector.extract_strided_slice %33 {offsets = [0, 1, 0, 0], sizes = [2, 8, 8, 128], strides = [1, 1, 1, 1]} : vector<8x9x16x128xbf16> to vector<2x8x8x128xbf16>
    %41 = vector.extract_strided_slice %33 {offsets = [2, 1, 0, 0], sizes = [2, 8, 8, 128], strides = [1, 1, 1, 1]} : vector<8x9x16x128xbf16> to vector<2x8x8x128xbf16>
    %42 = vector.extract_strided_slice %33 {offsets = [0, 1, 1, 0], sizes = [2, 8, 8, 128], strides = [1, 1, 1, 1]} : vector<8x9x16x128xbf16> to vector<2x8x8x128xbf16>
    %43 = tpu.concatenate %34, %35, %36, %37, %38, %39, %40, %41, %42 in 3 : vector<2x8x8x128xbf16>, vector<2x8x8x128xbf16>, vector<2x8x8x128xbf16>, vector<2x8x8x128xbf16>, vector<2x8x8x128xbf16>, vector<2x8x8x128xbf16>, vector<2x8x8x128xbf16>, vector<2x8x8x128xbf16>, vector<2x8x8x128xbf16> -> vector<2x8x8x1152xbf16>
    %44 = vector.shape_cast %43 : vector<2x8x8x1152xbf16> to vector<128x1152xbf16>
    %c0_15 = arith.constant 0 : index
    %c0_16 = arith.constant 0 : index
    %45 = vector.load %arg6[%c0_15, %c0_16] : memref<1152x128xbf16, #tpu.memory_space<vmem>>, vector<1152x128xbf16>
    %cst_17 = arith.constant dense<0.000000e+00> : vector<128x128xf32>
    %46 = tpu.matmul %44, %45, %cst_17 {dimension_numbers = #tpu.dot_dimension_numbers<[1], [0], [0], [1], [0, 0, 1, 1], [], []>} : vector<128x1152xbf16>, vector<1152x128xbf16>, vector<128x128xf32> -> vector<128x128xf32>
    %cst_18 = arith.constant dense<0.000000e+00> : vector<128xf32>
    %47 = vector.multi_reduction <add>, %46, %cst_18 [0] : vector<128x128xf32> to vector<128xf32>
    %48 = vector.shape_cast %47 : vector<128xf32> to vector<1x128xf32>
    %cst_19 = arith.constant 7.812500e-03 : f32
    %49 = vector.broadcast %cst_19 : f32 to vector<1x128xf32>
    %50 = arith.mulf %48, %49 : vector<1x128xf32>
    %51 = vector.broadcast %50 : vector<1x128xf32> to vector<128x128xf32>
    %52 = arith.subf %46, %51 : vector<128x128xf32>
    %53 = arith.mulf %52, %52 : vector<128x128xf32>
    %cst_20 = arith.constant dense<0.000000e+00> : vector<128xf32>
    %54 = vector.multi_reduction <add>, %53, %cst_20 [0] : vector<128x128xf32> to vector<128xf32>
    %55 = vector.shape_cast %54 : vector<128xf32> to vector<1x128xf32>
    %cst_21 = arith.constant 7.812500e-03 : f32
    %56 = vector.broadcast %cst_21 : f32 to vector<1x128xf32>
    %57 = arith.mulf %55, %56 : vector<1x128xf32>
    %c0_22 = arith.constant 0 : index
    %c0_23 = arith.constant 0 : index
    %58 = vector.load %arg7[%c0_22, %c0_23] : memref<1x128xf32, #tpu.memory_space<vmem>>, vector<1x128xf32>
    %cst_24 = arith.constant 9.99999974E-6 : f32
    %59 = vector.broadcast %cst_24 : f32 to vector<1x128xf32>
    %60 = arith.addf %57, %59 : vector<1x128xf32>
    %61 = math.rsqrt %60 : vector<1x128xf32>
    %62 = vector.broadcast %61 : vector<1x128xf32> to vector<128x128xf32>
    %63 = arith.mulf %52, %62 : vector<128x128xf32>
    %64 = vector.broadcast %58 : vector<1x128xf32> to vector<128x128xf32>
    %65 = arith.mulf %64, %63 : vector<128x128xf32>
    %c0_25 = arith.constant 0 : index
    %c0_26 = arith.constant 0 : index
    %66 = vector.load %arg8[%c0_25, %c0_26] : memref<1x128xf32, #tpu.memory_space<vmem>>, vector<1x128xf32>
    %67 = vector.broadcast %66 : vector<1x128xf32> to vector<128x128xf32>
    %68 = arith.addf %65, %67 : vector<128x128xf32>
    %cst_27 = arith.constant 0.000000e+00 : f32
    %69 = vector.broadcast %cst_27 : f32 to vector<128x128xf32>
    %70 = arith.maximumf %68, %69 : vector<128x128xf32>
    %71 = arith.truncf %70 : vector<128x128xf32> to vector<128x128xbf16>
    %c0_28 = arith.constant 0 : index
    %c0_29 = arith.constant 0 : index
    %72 = vector.load %arg9[%c0_28, %c0_29] : memref<128x128xbf16, #tpu.memory_space<vmem>>, vector<128x128xbf16>
    %cst_30 = arith.constant dense<0.000000e+00> : vector<128x128xf32>
    %73 = tpu.matmul %71, %72, %cst_30 {dimension_numbers = #tpu.dot_dimension_numbers<[1], [0], [0], [1], [0, 0, 1, 1], [], []>} : vector<128x128xbf16>, vector<128x128xbf16>, vector<128x128xf32> -> vector<128x128xf32>
    %cst_31 = arith.constant dense<0.000000e+00> : vector<128xf32>
    %74 = vector.multi_reduction <add>, %73, %cst_31 [0] : vector<128x128xf32> to vector<128xf32>
    %75 = vector.shape_cast %74 : vector<128xf32> to vector<1x128xf32>
    %cst_32 = arith.constant 7.812500e-03 : f32
    %76 = vector.broadcast %cst_32 : f32 to vector<1x128xf32>
    %77 = arith.mulf %75, %76 : vector<1x128xf32>
    %78 = vector.broadcast %77 : vector<1x128xf32> to vector<128x128xf32>
    %79 = arith.subf %73, %78 : vector<128x128xf32>
    %80 = arith.mulf %79, %79 : vector<128x128xf32>
    %cst_33 = arith.constant dense<0.000000e+00> : vector<128xf32>
    %81 = vector.multi_reduction <add>, %80, %cst_33 [0] : vector<128x128xf32> to vector<128xf32>
    %82 = vector.shape_cast %81 : vector<128xf32> to vector<1x128xf32>
    %cst_34 = arith.constant 7.812500e-03 : f32
    %83 = vector.broadcast %cst_34 : f32 to vector<1x128xf32>
    %84 = arith.mulf %82, %83 : vector<1x128xf32>
    %c0_35 = arith.constant 0 : index
    %c0_36 = arith.constant 0 : index
    %85 = vector.load %arg10[%c0_35, %c0_36] : memref<1x128xf32, #tpu.memory_space<vmem>>, vector<1x128xf32>
    %cst_37 = arith.constant 9.99999974E-6 : f32
    %86 = vector.broadcast %cst_37 : f32 to vector<1x128xf32>
    %87 = arith.addf %84, %86 : vector<1x128xf32>
    %88 = math.rsqrt %87 : vector<1x128xf32>
    %89 = vector.broadcast %88 : vector<1x128xf32> to vector<128x128xf32>
    %90 = arith.mulf %79, %89 : vector<128x128xf32>
    %91 = vector.broadcast %85 : vector<1x128xf32> to vector<128x128xf32>
    %92 = arith.mulf %91, %90 : vector<128x128xf32>
    %c0_38 = arith.constant 0 : index
    %c0_39 = arith.constant 0 : index
    %93 = vector.load %arg11[%c0_38, %c0_39] : memref<1x128xf32, #tpu.memory_space<vmem>>, vector<1x128xf32>
    %94 = vector.broadcast %93 : vector<1x128xf32> to vector<128x128xf32>
    %95 = arith.addf %92, %94 : vector<128x128xf32>
    %96 = vector.shape_cast %0 : vector<1152x4xbf16> to vector<8x9x16x4xbf16>
    %97 = vector.extract_strided_slice %96 {offsets = [6, 0, 0, 0], sizes = [2, 8, 8, 4], strides = [1, 1, 1, 1]} : vector<8x9x16x4xbf16> to vector<2x8x8x4xbf16>
    %98 = vector.shape_cast %97 : vector<2x8x8x4xbf16> to vector<128x4xbf16>
    %c0_40 = arith.constant 0 : index
    %c0_41 = arith.constant 0 : index
    %99 = vector.load %arg12[%c0_40, %c0_41] : memref<4x128xbf16, #tpu.memory_space<vmem>>, vector<4x128xbf16>
    %cst_42 = arith.constant dense<0.000000e+00> : vector<128x128xf32>
    %100 = tpu.matmul %98, %99, %cst_42 {dimension_numbers = #tpu.dot_dimension_numbers<[1], [0], [0], [1], [0, 0, 1, 1], [], []>} : vector<128x4xbf16>, vector<4x128xbf16>, vector<128x128xf32> -> vector<128x128xf32>
    %cst_43 = arith.constant dense<0.000000e+00> : vector<128xf32>
    %101 = vector.multi_reduction <add>, %100, %cst_43 [0] : vector<128x128xf32> to vector<128xf32>
    %102 = vector.shape_cast %101 : vector<128xf32> to vector<1x128xf32>
    %cst_44 = arith.constant 7.812500e-03 : f32
    %103 = vector.broadcast %cst_44 : f32 to vector<1x128xf32>
    %104 = arith.mulf %102, %103 : vector<1x128xf32>
    %105 = vector.broadcast %104 : vector<1x128xf32> to vector<128x128xf32>
    %106 = arith.subf %100, %105 : vector<128x128xf32>
    %107 = arith.mulf %106, %106 : vector<128x128xf32>
    %cst_45 = arith.constant dense<0.000000e+00> : vector<128xf32>
    %108 = vector.multi_reduction <add>, %107, %cst_45 [0] : vector<128x128xf32> to vector<128xf32>
    %109 = vector.shape_cast %108 : vector<128xf32> to vector<1x128xf32>
    %cst_46 = arith.constant 7.812500e-03 : f32
    %110 = vector.broadcast %cst_46 : f32 to vector<1x128xf32>
    %111 = arith.mulf %109, %110 : vector<1x128xf32>
    %c0_47 = arith.constant 0 : index
    %c0_48 = arith.constant 0 : index
    %112 = vector.load %arg13[%c0_47, %c0_48] : memref<1x128xf32, #tpu.memory_space<vmem>>, vector<1x128xf32>
    %cst_49 = arith.constant 9.99999974E-6 : f32
    %113 = vector.broadcast %cst_49 : f32 to vector<1x128xf32>
    %114 = arith.addf %111, %113 : vector<1x128xf32>
    %115 = math.rsqrt %114 : vector<1x128xf32>
    %116 = vector.broadcast %115 : vector<1x128xf32> to vector<128x128xf32>
    %117 = arith.mulf %106, %116 : vector<128x128xf32>
    %118 = vector.broadcast %112 : vector<1x128xf32> to vector<128x128xf32>
    %119 = arith.mulf %118, %117 : vector<128x128xf32>
    %c0_50 = arith.constant 0 : index
    %c0_51 = arith.constant 0 : index
    %120 = vector.load %arg14[%c0_50, %c0_51] : memref<1x128xf32, #tpu.memory_space<vmem>>, vector<1x128xf32>
    %121 = vector.broadcast %120 : vector<1x128xf32> to vector<128x128xf32>
    %122 = arith.addf %119, %121 : vector<128x128xf32>
    %123 = arith.addf %95, %122 : vector<128x128xf32>
    %cst_52 = arith.constant 0.000000e+00 : f32
    %124 = vector.broadcast %cst_52 : f32 to vector<128x128xf32>
    %125 = arith.maximumf %123, %124 : vector<128x128xf32>
    %126 = arith.truncf %125 : vector<128x128xf32> to vector<128x128xbf16>
    %c0_53 = arith.constant 0 : index
    %c0_54 = arith.constant 0 : index
    %127 = vector.load %arg15[%c0_53, %c0_54] : memref<128x128xbf16, #tpu.memory_space<vmem>>, vector<128x128xbf16>
    tpu.vector_store %arg15[%c0_53, %c0_54], %126 {strides = array<i32>} : memref<128x128xbf16, #tpu.memory_space<vmem>>, vector<128x128xbf16>,
    return
  }
  func.func @transform_0(%arg0: i32) -> (i32, i32) {
    %c0_i32 = arith.constant 0 : i32
    %c0_i32_0 = arith.constant 0 : i32
    %c0_i32_1 = arith.constant 0 : i32
    return %c0_i32, %c0_i32_0 : i32, i32
  }
  func.func @transform_1(%arg0: i32) -> (i32, i32) {
    %c0_i32 = arith.constant 0 : i32
    %c0_i32_0 = arith.constant 0 : i32
    %c0_i32_1 = arith.constant 0 : i32
    return %c0_i32, %c0_i32_0 : i32, i32
  }
  func.func @transform_2(%arg0: i32) -> (i32, i32) {
    %c0_i32 = arith.constant 0 : i32
    %c0_i32_0 = arith.constant 0 : i32
    %c0_i32_1 = arith.constant 0 : i32
    return %c0_i32, %c0_i32_0 : i32, i32
  }
  func.func @transform_3(%arg0: i32) -> (i32, i32) {
    %c0_i32 = arith.constant 0 : i32
    %c0_i32_0 = arith.constant 0 : i32
    %c0_i32_1 = arith.constant 0 : i32
    return %c0_i32, %c0_i32_0 : i32, i32
  }
  func.func @transform_4(%arg0: i32) -> (i32, i32) {
    %c0_i32 = arith.constant 0 : i32
    %c0_i32_0 = arith.constant 0 : i32
    %c0_i32_1 = arith.constant 0 : i32
    return %c0_i32, %c0_i32_0 : i32, i32
  }
  func.func @transform_5(%arg0: i32) -> (i32, i32) {
    %c0_i32 = arith.constant 0 : i32
    %c0_i32_0 = arith.constant 0 : i32
    %c0_i32_1 = arith.constant 0 : i32
    return %c0_i32, %c0_i32_0 : i32, i32
  }
  func.func @transform_6(%arg0: i32) -> (i32, i32) {
    %c0_i32 = arith.constant 0 : i32
    %c0_i32_0 = arith.constant 0 : i32
    %c0_i32_1 = arith.constant 0 : i32
    return %c0_i32, %c0_i32_0 : i32, i32
  }
  func.func @transform_7(%arg0: i32) -> (i32, i32) {
    %c0_i32 = arith.constant 0 : i32
    %c0_i32_0 = arith.constant 0 : i32
    %c0_i32_1 = arith.constant 0 : i32
    return %c0_i32, %c0_i32_0 : i32, i32
  }
  func.func @transform_8(%arg0: i32) -> (i32, i32) {
    %c0_i32 = arith.constant 0 : i32
    %c0_i32_0 = arith.constant 0 : i32
    %c0_i32_1 = arith.constant 0 : i32
    return %c0_i32, %c0_i32_0 : i32, i32
  }
  func.func @transform_9(%arg0: i32) -> (i32, i32) {
    %c0_i32 = arith.constant 0 : i32
    %c0_i32_0 = arith.constant 0 : i32
    %c0_i32_1 = arith.constant 0 : i32
    return %c0_i32, %c0_i32_0 : i32, i32
  }
  func.func @transform_10(%arg0: i32) -> (i32, i32) {
    %c0_i32 = arith.constant 0 : i32
    %c0_i32_0 = arith.constant 0 : i32
    %c0_i32_1 = arith.constant 0 : i32
    return %c0_i32, %c0_i32_0 : i32, i32
  }
  func.func @transform_11(%arg0: i32) -> (i32, i32) {
    %c0_i32 = arith.constant 0 : i32
    %c0_i32_0 = arith.constant 0 : i32
    %c0_i32_1 = arith.constant 0 : i32
    return %c0_i32, %c0_i32_0 : i32, i32
  }
  func.func @transform_12(%arg0: i32) -> (i32, i32) {
    %c0_i32 = arith.constant 0 : i32
    %c0_i32_0 = arith.constant 0 : i32
    %c0_i32_1 = arith.constant 0 : i32
    return %c0_i32, %c0_i32_0 : i32, i32
  }
  func.func @transform_13(%arg0: i32) -> (i32, i32) {
    %c0_i32 = arith.constant 0 : i32
    %c0_i32_0 = arith.constant 0 : i32
    %c0_i32_1 = arith.constant 0 : i32
    return %c0_i32, %c0_i32_0 : i32, i32
  }
  func.func @transform_14(%arg0: i32) -> (i32, i32) {
    %c0_i32 = arith.constant 0 : i32
    %c0_i32_0 = arith.constant 0 : i32
    %c0_i32_1 = arith.constant 0 : i32
    return %c0_i32, %c0_i32_0 : i32, i32
  }
}

</mosaic_0001>

<bundles_post_ra>
// kernel: tpu_custom_call.1
= control target key start
LH: loop header
LB: loop body
LE: loop exit
PB: predicated region body
PF: predicated region fallthrough
CT: control target
= control target key end

     0   :  { %vm915_vm0 = vcmask 1041408   ;;  %vm698_vm1 = vcmask 31744   ;;  %s12669_s0 = inlined_call_operand.vmem [shape: bf16[1152,4], index: 0, kind: input, shape index: {}]   ;;  %s12670_s1 = inlined_call_operand.vmem [shape: f32[1152,1], index: 1, kind: input, shape index: {}]   ;;  %s12671_s2 = inlined_call_operand.vmem [shape: bf16[4,128], index: 2, kind: input, shape index: {}]   ;;  %s12672_s3 = inlined_call_operand.vmem [shape: f32[1,128], index: 3, kind: input, shape index: {}]   ;;  %s12673_s4 = inlined_call_operand.vmem [shape: f32[1,128], index: 4, kind: input, shape index: {}]   ;;  %s12674_s5 = inlined_call_operand.vmem [shape: bf16[1152,128], index: 5, kind: input, shape index: {}]   ;;  %s12675_s6 = inlined_call_operand.vmem [shape: f32[1,128], index: 6, kind: input, shape index: {}]   ;;  %s12676_s7 = inlined_call_operand.vmem [shape: f32[1,128], index: 7, kind: input, shape index: {}]   ;;  %s12677_s8 = inlined_call_operand.vmem [shape: bf16[128,128], index: 8, kind: input, shape index: {}]   ;;  %s12678_s9 = inlined_call_operand.vmem [shape: f32[1,128], index: 9, kind: input, shape index: {}]   ;;  %s12679_s10 = inlined_call_operand.vmem [shape: f32[1,128], index: 10, kind: input, shape index: {}]   ;;  %s12680_s11 = inlined_call_operand.vmem [shape: bf16[4,128], index: 11, kind: input, shape index: {}]   ;;  %s12681_s12 = inlined_call_operand.vmem [shape: f32[1,128], index: 12, kind: input, shape index: {}]   ;;  %s12682_s13 = inlined_call_operand.vmem [shape: f32[1,128], index: 13, kind: input, shape index: {}]   ;;  %s12683_s14 = inlined_call_operand.hbm [shape: bf16[128,128], index: 14, kind: output, shape index: {}]  }
   0x1   :  { %v337_v0 = vld [vmem:[%s12671_s2] sm:$0x3] }
   0x2   :  { %v6399_v1 = vld [vmem:[%s12669_s0] sm:$0xff]  ;;  %v917_v2 = vsel %vm915_vm0, %v337_v0, 0 }
   0x3   :  { %926 = vmatpush.bf16.msra.mxu0 %v917_v2  ;;  %6704 = vmatpush.bf16.msra.mxu3 %v917_v2 }
   0x4   :  { %6702 = vmatpush.bf16.msra.mxu1 %v917_v2  ;;  %6703 = vmatpush.bf16.msra.mxu2 %v917_v2 }
   0x5   :  { %19 = vsyncpa [#allocation3], 0  ;;  %v6400_v3 = vld [vmem:[%s12669_s0 + $0x8] sm:$0xff]  ;;  %v6401_v4 = vld [vmem:[%s12669_s0 + $0x10] sm:$0xff]  ;;  %v6755_v45 = vmov 0   ;;  %s5763_s25 = sshll.u32 %s12683_s14, 4  ;;  %s5764_s25 = int_to_ptr.hbm [resolvable:$true] %s5763_s25 }
   0x6   :  { %5999 = vmatmul.msk.bf16.vlgmr.msra.gmra.mxu0 %vm698_vm1, %v6399_v1  ;;  %v6402_v5 = vld [vmem:[%s12669_s0 + $0x18] sm:$0xff]  ;;  %v6403_v6 = vld [vmem:[%s12669_s0 + $0x20] sm:$0xff]  ;;  %v6404_v7 = vld [vmem:[%s12669_s0 + $0x28] sm:$0xff]  ;;  %6709 = vset.pattern.permute.xlu0 %v6755_v45  ;;  %s6758_s26 = smov 4  }
   0x7   :  { %v6405_v8 = vld [vmem:[%s12669_s0 + $0x30] sm:$0xff]  ;;  %v6406_v9 = vld [vmem:[%s12669_s0 + $0x38] sm:$0xff]  ;;  %v6407_v10 = vld [vmem:[%s12669_s0 + $0x40] sm:$0xff]  ;;  %6710 = vset.pattern.permute.xlu1 %v6755_v45  ;;  %6711 = vset.pattern.permute.xlu2 %v6755_v45 }
   0x8   :  { %v6408_v13 = vld [vmem:[%s12669_s0 + $0x48] sm:$0xff]  ;;  %v6409_v16 = vld [vmem:[%s12669_s0 + $0x50] sm:$0xff]  ;;  %v6410_v19 = vld [vmem:[%s12669_s0 + $0x58] sm:$0xff] }
   0x9   :  { %v6411_v22 = vld [vmem:[%s12669_s0 + $0x60] sm:$0xff]  ;;  %v6412_v25 = vld [vmem:[%s12669_s0 + $0x68] sm:$0xff]  ;;  %v6413_v28 = vld [vmem:[%s12669_s0 + $0x70] sm:$0xff] }
   0xa   :  { %v6414_v31 = vld [vmem:[%s12669_s0 + $0x78] sm:$0xff]  ;;  %v6415_v34 = vld [vmem:[%s12669_s0 + $0x80] sm:$0xff]  ;;  %v6416_v37 = vld [vmem:[%s12669_s0 + $0x88] sm:$0xff] }
   0xb   :  { %v6417_v40 = vld [vmem:[%s12669_s0 + $0x90] sm:$0xff]  ;;  %v193_v43 = vld [vmem:[%s12670_s1] sm:$0xff]  ;;  %v6418_v46 = vld [vmem:[%s12669_s0 + $0x98] sm:$0xff] }
   0xc   :  { %v195_v44 = vld [vmem:[%s12670_s1 + $0x10] sm:$0xff]  ;;  %1728 = vperm.xlu0 %6709, %v193_v43   ;;  %v194_v48 = vld [vmem:[%s12670_s1 + $0x8] sm:$0xff]  ;;  %v196_v49 = vld [vmem:[%s12670_s1 + $0x18] sm:$0xff] }
   0xd   :  { %1738 = vperm.xlu1 %6710, %v195_v44   ;;  %v199_v51 = vld [vmem:[%s12670_s1 + $0x30] sm:$0xff]  ;;  %v200_v52 = vld [vmem:[%s12670_s1 + $0x38] sm:$0xff]  ;;  %v6419_v53 = vld [vmem:[%s12669_s0 + $0xa0] sm:$0xff] }
   0xe   :  { %v202_v55 = vld [vmem:[%s12670_s1 + $0x48] sm:$0xff]  ;;  %v203_v56 = vld [vmem:[%s12670_s1 + $0x50] sm:$0xff]  ;;  %v197_v58 = vld [vmem:[%s12670_s1 + $0x20] sm:$0xff] }
   0xf   :  { %v205_v59 = vld [vmem:[%s12670_s1 + $0x60] sm:$0xff]  ;;  %v206_v60 = vld [vmem:[%s12670_s1 + $0x68] sm:$0xff]  ;;  %1748 = vperm.xlu2 %6711, %v197_v58   ;;  %v208_v0 = vld [vmem:[%s12670_s1 + $0x78] sm:$0xff] }
  0x10   :  { %v6420_v61 = vld [vmem:[%s12669_s0 + $0xa8] sm:$0xff]  ;;  %v209_v1 = vld [vmem:[%s12670_s1 + $0x80] sm:$0xff]  ;;  %v223_v44 = vld [vmem:[%s12670_s1 + $0xf0] sm:$0xff] }
  0x11   :  { %v198_v63 = vld [vmem:[%s12670_s1 + $0x28] sm:$0xff]  ;;  %v213_v43 = vld [vmem:[%s12670_s1 + $0xa0] sm:$0xff]  ;;  %v224_v45 = vld [vmem:[%s12670_s1 + $0xf8] sm:$0xff] }
  0x12   :  { %v230_v58 = vld [vmem:[%s12670_s1 + $0x128] sm:$0xff] }
  0x14   :  { %1733 = vperm.xlu0 %6709, %v194_v48  }
  0x15   :  { %1743 = vperm.xlu1 %6710, %v196_v49   ;;  %v216_v49 = vld [vmem:[%s12670_s1 + $0xb8] sm:$0xff] }
  0x16   :  { %6000 = vmatmul.msk.bf16.gmra.mxu0 %vm698_vm1, %v6400_v3  ;;  %v201_v3 = vld [vmem:[%s12670_s1 + $0x40] sm:$0xff] }
  0x17   :  { %1753 = vperm.xlu2 %6711, %v198_v63   ;;  %v232_v63 = vld [vmem:[%s12670_s1 + $0x138] sm:$0xff] }
  0x1c   :  { %1758 = vperm.xlu0 %6709, %v199_v51   ;;  %v226_v51 = vld [vmem:[%s12670_s1 + $0x108] sm:$0xff] }
  0x1d   :  { %1763 = vperm.xlu1 %6710, %v200_v52   ;;  %v227_v52 = vld [vmem:[%s12670_s1 + $0x110] sm:$0xff] }
  0x1f   :  { %1768 = vperm.xlu2 %6711, %v201_v3   ;;  %v225_v3 = vld [vmem:[%s12670_s1 + $0x100] sm:$0xff] }
  0x24   :  { %1773 = vperm.xlu0 %6709, %v202_v55   ;;  %v219_v55 = vld [vmem:[%s12670_s1 + $0xd0] sm:$0xff] }
  0x25   :  { %1778 = vperm.xlu1 %6710, %v203_v56   ;;  %v229_v56 = vld [vmem:[%s12670_s1 + $0x120] sm:$0xff] }
  0x26   :  { %6001 = vmatmul.msk.bf16.gmra.mxu0 %vm698_vm1, %v6401_v4  ;;  %v211_v4 = vld [vmem:[%s12670_s1 + $0x90] sm:$0xff] }
  0x2c   :  { %1788 = vperm.xlu0 %6709, %v205_v59   ;;  %v6424_v59 = vld [vmem:[%s12669_s0 + $0xc8] sm:$0xff] }
  0x2d   :  { %1793 = vperm.xlu1 %6710, %v206_v60  }
  0x34   :  { %1803 = vperm.xlu0 %6709, %v208_v0   ;;  %v233_v0 = vld [vmem:[%s12670_s1 + $0x140] sm:$0xff] }
  0x35   :  { %1808 = vperm.xlu1 %6710, %v209_v1  }
  0x36   :  { %6002 = vmatmul.msk.bf16.gmra.mxu0 %vm698_vm1, %v6402_v5  ;;  %v212_v5 = vld [vmem:[%s12670_s1 + $0x98] sm:$0xff] }
  0x3c   :  { %1818 = vperm.xlu0 %6709, %v211_v4   ;;  %v235_v4 = vld [vmem:[%s12670_s1 + $0x150] sm:$0xff] }
  0x3d   :  { %1823 = vperm.xlu1 %6710, %v212_v5   ;;  %v236_v5 = vld [vmem:[%s12670_s1 + $0x158] sm:$0xff] }
  0x46   :  { %6003 = vmatmul.msk.bf16.gmra.mxu0 %vm698_vm1, %v6403_v6  ;;  %v6421_v6 = vld [vmem:[%s12669_s0 + $0xb0] sm:$0xff] }
  0x56   :  { %6004 = vmatmul.msk.bf16.gmra.mxu0 %vm698_vm1, %v6404_v7 }
  0x66   :  { %6005 = vmatmul.msk.bf16.gmra.mxu0 %vm698_vm1, %v6405_v8  ;;  %v204_v8 = vld [vmem:[%s12670_s1 + $0x58] sm:$0xff] }
  0x67   :  { %1783 = vperm.xlu2 %6711, %v204_v8  }
  0x76   :  { %6006 = vmatmul.msk.bf16.gmra.mxu0 %vm698_vm1, %v6406_v9  ;;  %v214_v9 = vld [vmem:[%s12670_s1 + $0xa8] sm:$0xff] }
  0x77   :  { %1833 = vperm.xlu0 %6709, %v214_v9   ;;  %v228_v9 = vld [vmem:[%s12670_s1 + $0x118] sm:$0xff] }
  0x83   :  { %v6873_v11 = vpop.f32.mrf.mxu0 }
  0x84   :  { %13146 = vst [vmem:[#allocation5_spill] sm:$0xff] %v6873_v11 }
  0x86   :  { %6007 = vmatmul.msk.bf16.gmra.mxu0 %vm698_vm1, %v6407_v10  ;;  %v215_v10 = vld [vmem:[%s12670_s1 + $0xb0] sm:$0xff] }
  0x87   :  { %1838 = vperm.xlu1 %6710, %v215_v10   ;;  %v238_v10 = vld [vmem:[%s12670_s1 + $0x168] sm:$0xff] }
  0x8b   :  { %v6876_v12 = vpop.f32.mrf.mxu0 }
  0x8c   :  { %13147 = vst [vmem:[#allocation6_spill] sm:$0xff] %v6876_v12 }
  0x93   :  { %v6881_v14 = vpop.f32.mrf.mxu0 }
  0x96   :  { %6008 = vmatmul.msk.bf16.gmra.mxu0 %vm698_vm1, %v6408_v13 }
  0x9b   :  { %v6884_v15 = vpop.f32.mrf.mxu0 }
  0xa3   :  { %v6889_v17 = vpop.f32.mrf.mxu0 }
  0xa4   :  { %13148 = vst [vmem:[#allocation7_spill] sm:$0xff] %v6889_v17 }
  0xa6   :  { %6009 = vmatmul.msk.bf16.gmra.mxu0 %vm698_vm1, %v6409_v16  ;;  %v207_v16 = vld [vmem:[%s12670_s1 + $0x70] sm:$0xff] }
  0xa7   :  { %1798 = vperm.xlu2 %6711, %v207_v16   ;;  %v239_v16 = vld [vmem:[%s12670_s1 + $0x170] sm:$0xff] }
  0xab   :  { %v6892_v18 = vpop.f32.mrf.mxu0 }
  0xac   :  { %13149 = vst [vmem:[#allocation8_spill] sm:$0xff] %v6892_v18 }
  0xb3   :  { %v6897_v20 = vpop.f32.mrf.mxu0 }
  0xb6   :  { %6010 = vmatmul.msk.bf16.gmra.mxu0 %vm698_vm1, %v6410_v19  ;;  %v217_v19 = vld [vmem:[%s12670_s1 + $0xc0] sm:$0xff] }
  0xb7   :  { %1848 = vperm.xlu0 %6709, %v217_v19  }
  0xbb   :  { %v6900_v21 = vpop.f32.mrf.mxu0 }
  0xc3   :  { %v6905_v23 = vpop.f32.mrf.mxu0 }
  0xc4   :  { %13150 = vst [vmem:[#allocation9_spill] sm:$0xff] %v6905_v23 }
  0xc6   :  { %6011 = vmatmul.msk.bf16.gmra.mxu0 %vm698_vm1, %v6411_v22  ;;  %v218_v22 = vld [vmem:[%s12670_s1 + $0xc8] sm:$0xff] }
  0xc7   :  { %1853 = vperm.xlu1 %6710, %v218_v22   ;;  %v231_v22 = vld [vmem:[%s12670_s1 + $0x130] sm:$0xff] }
  0xcb   :  { %v6908_v24 = vpop.f32.mrf.mxu0 }
  0xcc   :  { %13151 = vst [vmem:[#allocation10_spill] sm:$0xff] %v6908_v24 }
  0xd3   :  { %v6913_v26 = vpop.f32.mrf.mxu0 }
  0xd6   :  { %6012 = vmatmul.msk.bf16.gmra.mxu0 %vm698_vm1, %v6412_v25  ;;  %v6422_v25 = vld [vmem:[%s12669_s0 + $0xb8] sm:$0xff] }
  0xdb   :  { %v6916_v27 = vpop.f32.mrf.mxu0 }
  0xe3   :  { %v6921_v29 = vpop.f32.mrf.mxu0 }
  0xe4   :  { %13152 = vst [vmem:[#allocation11_spill] sm:$0xff] %v6921_v29 }
  0xe6   :  { %6013 = vmatmul.msk.bf16.gmra.mxu0 %vm698_vm1, %v6413_v28 }
  0xeb   :  { %v6924_v30 = vpop.f32.mrf.mxu0 }
  0xec   :  { %13153 = vst [vmem:[#allocation12_spill] sm:$0xff] %v6924_v30 }
  0xf3   :  { %v6929_v32 = vpop.f32.mrf.mxu0 }
  0xf6   :  { %6014 = vmatmul.msk.bf16.gmra.mxu0 %vm698_vm1, %v6414_v31  ;;  %v210_v31 = vld [vmem:[%s12670_s1 + $0x88] sm:$0xff] }
  0xf7   :  { %1813 = vperm.xlu2 %6711, %v210_v31   ;;  %v242_v31 = vld [vmem:[%s12670_s1 + $0x188] sm:$0xff] }
  0xfb   :  { %v6932_v33 = vpop.f32.mrf.mxu0 }
  0xff   :  { %1828 = vperm.xlu2 %6711, %v213_v43   ;;  %v234_v43 = vld [vmem:[%s12670_s1 + $0x148] sm:$0xff] }
 0x103   :  { %v6937_v35 = vpop.f32.mrf.mxu0 }
 0x104   :  { %13154 = vst [vmem:[#allocation13_spill] sm:$0xff] %v6937_v35 }
 0x106   :  { %6015 = vmatmul.msk.bf16.gmra.mxu0 %vm698_vm1, %v6415_v34  ;;  %v220_v34 = vld [vmem:[%s12670_s1 + $0xd8] sm:$0xff] }
 0x107   :  { %1863 = vperm.xlu0 %6709, %v220_v34   ;;  %1843 = vperm.xlu2 %6711, %v216_v49   ;;  %v6426_v34 = vld [vmem:[%s12669_s0 + $0xd8] sm:$0xff]  ;;  %v237_v49 = vld [vmem:[%s12670_s1 + $0x160] sm:$0xff] }
 0x10b   :  { %v6940_v36 = vpop.f32.mrf.mxu0 }
 0x10c   :  { %13155 = vst [vmem:[#allocation14_spill] sm:$0xff] %v6940_v36 }
 0x10f   :  { %1878 = vperm.xlu0 %6709, %v223_v44   ;;  %1858 = vperm.xlu2 %6711, %v219_v55   ;;  %v244_v44 = vld [vmem:[%s12670_s1 + $0x198] sm:$0xff]  ;;  %v6427_v55 = vld [vmem:[%s12669_s0 + $0xe0] sm:$0xff] }
 0x113   :  { %v6945_v38 = vpop.f32.mrf.mxu0 }
 0x114   :  { %13156 = vst [vmem:[#allocation15_spill] sm:$0xff] %v6945_v38 }
 0x116   :  { %6016 = vmatmul.msk.bf16.gmra.mxu0 %vm698_vm1, %v6416_v37  ;;  %v221_v37 = vld [vmem:[%s12670_s1 + $0xe0] sm:$0xff] }
 0x117   :  { %1868 = vperm.xlu1 %6710, %v221_v37   ;;  %1893 = vperm.xlu0 %6709, %v226_v51   ;;  %v247_v51 = vld [vmem:[%s12670_s1 + $0x1b0] sm:$0xff] }
 0x11b   :  { %v6948_v39 = vpop.f32.mrf.mxu0 }
 0x11c   :  { %13157 = vst [vmem:[#allocation16_spill] sm:$0xff] %v6948_v39 }
 0x11f   :  { %1883 = vperm.xlu1 %6710, %v224_v45   ;;  %1908 = vperm.xlu0 %6709, %v229_v56   ;;  %v245_v45 = vld [vmem:[%s12670_s1 + $0x1a0] sm:$0xff] }
 0x123   :  { %v6953_v41 = vpop.f32.mrf.mxu0 }
 0x124   :  { %13158 = vst [vmem:[#allocation17_spill] sm:$0xff] %v6953_v41 }
 0x126   :  { %6017 = vmatmul.msk.bf16.gmra.mxu0 %vm698_vm1, %v6417_v40 }
 0x127   :  { %1898 = vperm.xlu1 %6710, %v227_v52   ;;  %1923 = vperm.xlu0 %6709, %v232_v63   ;;  %v248_v52 = vld [vmem:[%s12670_s1 + $0x1b8] sm:$0xff] }
 0x12b   :  { %v6956_v42 = vpop.f32.mrf.mxu0 }
 0x12c   :  { %13159 = vst [vmem:[#allocation18_spill] sm:$0xff] %v6956_v42 }
 0x12f   :  { %1913 = vperm.xlu1 %6710, %v230_v58   ;;  %1938 = vperm.xlu0 %6709, %v235_v4   ;;  %v240_v58 = vld [vmem:[%s12670_s1 + $0x178] sm:$0xff]  ;;  %v254_v4 = vld [vmem:[%s12670_s1 + $0x1e8] sm:$0xff] }
 0x133   :  { %v6967_v47 = vpop.f32.mrf.mxu0 }
 0x134   :  { %13160 = vst [vmem:[#allocation19_spill] sm:$0xff] %v6967_v47 }
 0x136   :  { %6018 = vmatmul.msk.bf16.gmra.mxu0 %vm698_vm1, %v6418_v46  ;;  %v6423_v46 = vld [vmem:[%s12669_s0 + $0xc0] sm:$0xff] }
 0x137   :  { %1928 = vperm.xlu1 %6710, %v233_v0   ;;  %1953 = vperm.xlu0 %6709, %v238_v10   ;;  %v243_v0 = vld [vmem:[%s12670_s1 + $0x190] sm:$0xff]  ;;  %v246_v10 = vld [vmem:[%s12670_s1 + $0x1a8] sm:$0xff] }
 0x13b   :  { %v6976_v50 = vpop.f32.mrf.mxu0 }
 0x13c   :  { %13161 = vst [vmem:[#allocation20_spill] sm:$0xff] %v6976_v50 }
 0x13f   :  { %1943 = vperm.xlu1 %6710, %v236_v5   ;;  %v6428_v5 = vld [vmem:[%s12669_s0 + $0xe8] sm:$0xff] }
 0x143   :  { %v6987_v54 = vpop.f32.mrf.mxu0 }
 0x144   :  { %13162 = vst [vmem:[#allocation21_spill] sm:$0xff] %v6987_v54 }
 0x146   :  { %6019 = vmatmul.msk.bf16.gmra.mxu0 %vm698_vm1, %v6419_v53 }
 0x147   :  { %1958 = vperm.xlu1 %6710, %v239_v16   ;;  %v256_v16 = vld [vmem:[%s12670_s1 + $0x1f8] sm:$0xff] }
 0x14b   :  { %v6996_v57 = vpop.f32.mrf.mxu0 }
 0x14c   :  { %13163 = vst [vmem:[#allocation22_spill] sm:$0xff] %v6996_v57 }
 0x14f   :  { %1973 = vperm.xlu1 %6710, %v242_v31   ;;  %v249_v31 = vld [vmem:[%s12670_s1 + $0x1c0] sm:$0xff] }
 0x153   :  { %v7010_v62 = vpop.f32.mrf.mxu0 }
 0x154   :  { %13164 = vst [vmem:[#allocation23_spill] sm:$0xff] %v7010_v62 }
 0x156   :  { %6020 = vmatmul.msk.bf16.gmra.mxu0 %vm698_vm1, %v6420_v61  ;;  %v222_v61 = vld [vmem:[%s12670_s1 + $0xe8] sm:$0xff] }
 0x157   :  { %1873 = vperm.xlu2 %6711, %v222_v61   ;;  %1988 = vperm.xlu1 %6710, %v245_v45   ;;  %v251_v61 = vld [vmem:[%s12670_s1 + $0x1d0] sm:$0xff] }
 0x15b   :  { %v7022_v2 = vpop.f32.mrf.mxu0 }
 0x15c   :  { %13165 = vst [vmem:[#allocation24_spill] sm:$0xff] %v7022_v2 }
 0x15f   :  { %1888 = vperm.xlu2 %6711, %v225_v3   ;;  %2003 = vperm.xlu1 %6710, %v248_v52   ;;  %v253_v3 = vld [vmem:[%s12670_s1 + $0x1e0] sm:$0xff]  ;;  %v262_v52 = vld [vmem:[%s12670_s1 + $0x228] sm:$0xff] }
 0x163   :  { %v7036_v7 = vpop.f32.mrf.mxu0 }
 0x164   :  { %13166 = vst [vmem:[#allocation25_spill] sm:$0xff] %v7036_v7 }
 0x166   :  { %6021 = vmatmul.msk.bf16.gmra.mxu0 %vm698_vm1, %v6421_v6  ;;  %v6425_v6 = vld [vmem:[%s12669_s0 + $0xd0] sm:$0xff] }
 0x167   :  { %1903 = vperm.xlu2 %6711, %v228_v9   ;;  %2018 = vperm.xlu1 %6710, %v251_v61   ;;  %v6640_v9 = vld [vmem:[%s12669_s0 + $0x1b8] sm:$0xff]   ;;  %v265_v61 = vld [vmem:[%s12670_s1 + $0x240] sm:$0xff] }
 0x168   :  { %6054 = vmatmul.msk.bf16.vlgmr.msra.gmra.mxu3 %vm698_vm1, %v6640_v9  ;;  %v258_v9 = vld [vmem:[%s12670_s1 + $0x208] sm:$0xff] }
 0x16b   :  { %v7048_v13 = vpop.f32.mrf.mxu0 }
 0x16c   :  { %13167 = vst [vmem:[#allocation26_spill] sm:$0xff] %v7048_v13 }
 0x16f   :  { %1918 = vperm.xlu2 %6711, %v231_v22   ;;  %2033 = vperm.xlu1 %6710, %v254_v4   ;;  %v257_v22 = vld [vmem:[%s12670_s1 + $0x200] sm:$0xff] }
 0x173   :  { %v7062_v28 = vpop.f32.mrf.mxu0 }
 0x174   :  { %13168 = vst [vmem:[#allocation27_spill] sm:$0xff] %v7062_v28 }
 0x176   :  { %6022 = vmatmul.msk.bf16.gmra.mxu0 %vm698_vm1, %v6422_v25  ;;  %v241_v25 = vld [vmem:[%s12670_s1 + $0x180] sm:$0xff] }
 0x177   :  { %1968 = vperm.xlu0 %6709, %v241_v25   ;;  %1933 = vperm.xlu2 %6711, %v234_v43   ;;  %v260_v43 = vld [vmem:[%s12670_s1 + $0x218] sm:$0xff] }
 0x178   :  { %2048 = vperm.xlu1 %6710, %v257_v22  }
 0x17b   :  { %v7074_v40 = vpop.f32.mrf.mxu0 }
 0x17c   :  { %13169 = vst [vmem:[#allocation28_spill] sm:$0xff] %v7074_v40 }
 0x17f   :  { %1983 = vperm.xlu0 %6709, %v244_v44   ;;  %1948 = vperm.xlu2 %6711, %v237_v49   ;;  %v6429_v44 = vld [vmem:[%s12669_s0 + $0xf0] sm:$0xff]  ;;  %v6641_v49 = vld [vmem:[%s12669_s0 + $0x1c0] sm:$0xff]  }
 0x180   :  { %2063 = vperm.xlu1 %6710, %v260_v43   ;;  %6055 = vmatmul.msk.bf16.gmra.mxu3 %vm698_vm1, %v6641_v49  ;;  %v272_v43 = vld [vmem:[%s12670_s1 + $0x278] sm:$0xff] }
 0x183   :  { %v7088_v48 = vpop.f32.mrf.mxu0 }
 0x184   :  { %13170 = vst [vmem:[#allocation29_spill] sm:$0xff] %v7088_v48 }
 0x186   :  { %6023 = vmatmul.msk.bf16.gmra.mxu0 %vm698_vm1, %v6423_v46 }
 0x187   :  { %1998 = vperm.xlu0 %6709, %v247_v51   ;;  %1963 = vperm.xlu2 %6711, %v240_v58   ;;  %v252_v51 = vld [vmem:[%s12670_s1 + $0x1d8] sm:$0xff] }
 0x18b   :  { %v7100_v53 = vpop.f32.mrf.mxu0 }
 0x18c   :  { %13171 = vst [vmem:[#allocation30_spill] sm:$0xff] %v7100_v53 }
 0x18f   :  { %1978 = vperm.xlu2 %6711, %v243_v0   ;;  %v266_v0 = vld [vmem:[%s12670_s1 + $0x248] sm:$0xff] }
 0x193   :  { %v7114_v60 = vpop.f32.mrf.mxu0 }
 0x194   :  { %13172 = vst [vmem:[#allocation31_spill] sm:$0xff] %v7114_v60 }
 0x196   :  { %6024 = vmatmul.msk.bf16.gmra.mxu0 %vm698_vm1, %v6424_v59  ;;  %v250_v59 = vld [vmem:[%s12670_s1 + $0x1c8] sm:$0xff] }
 0x197   :  { %2013 = vperm.xlu0 %6709, %v250_v59   ;;  %1993 = vperm.xlu2 %6711, %v246_v10   ;;  %v255_v59 = vld [vmem:[%s12670_s1 + $0x1f0] sm:$0xff]  ;;  %v268_v10 = vld [vmem:[%s12670_s1 + $0x258] sm:$0xff] }
 0x19b   :  { %v7126_v1 = vpop.f32.mrf.mxu0 }
 0x19c   :  { %13173 = vst [vmem:[#allocation32_spill] sm:$0xff] %v7126_v1 }
 0x19f   :  { %2028 = vperm.xlu0 %6709, %v253_v3   ;;  %2008 = vperm.xlu2 %6711, %v249_v31   ;;  %v6430_v3 = vld [vmem:[%s12669_s0 + $0xf8] sm:$0xff]  ;;  %v261_v31 = vld [vmem:[%s12670_s1 + $0x220] sm:$0xff] }
 0x1a3   :  { %v7140_v8 = vpop.f32.mrf.mxu0 }
 0x1a4   :  { %13174 = vst [vmem:[#allocation33_spill] sm:$0xff] %v7140_v8 }
 0x1a6   :  { %6025 = vmatmul.msk.bf16.gmra.mxu0 %vm698_vm1, %v6425_v6 }
 0x1a7   :  { %2043 = vperm.xlu0 %6709, %v256_v16   ;;  %2023 = vperm.xlu2 %6711, %v252_v51   ;;  %v269_v16 = vld [vmem:[%s12670_s1 + $0x260] sm:$0xff]  ;;  %v6643_v51 = vld [vmem:[%s12669_s0 + $0x1d0] sm:$0xff]  }
 0x1ab   :  { %v7152_v19 = vpop.f32.mrf.mxu0 }
 0x1af   :  { %2038 = vperm.xlu2 %6711, %v255_v59   ;;  %v275_v59 = vld [vmem:[%s12670_s1 + $0x290] sm:$0xff] }
 0x1b3   :  { %v7166_v37 = vpop.f32.mrf.mxu0 }
 0x1b4   :  { %13175 = vst [vmem:[#allocation34_spill] sm:$0xff] %v7166_v37 }
 0x1b6   :  { %6026 = vmatmul.msk.bf16.gmra.mxu0 %vm698_vm1, %v6426_v34  ;;  %v259_v34 = vld [vmem:[%s12670_s1 + $0x210] sm:$0xff] }
 0x1b7   :  { %2058 = vperm.xlu0 %6709, %v259_v34   ;;  %2053 = vperm.xlu2 %6711, %v258_v9   ;;  %v271_v34 = vld [vmem:[%s12670_s1 + $0x270] sm:$0xff]  ;;  %v278_v9 = vld [vmem:[%s12670_s1 + $0x2a8] sm:$0xff] }
 0x1bb   :  { %v7178_v46 = vpop.f32.mrf.mxu0 }
 0x1bf   :  { %2073 = vperm.xlu0 %6709, %v262_v52   ;;  %2068 = vperm.xlu2 %6711, %v261_v31   ;;  %v264_v52 = vld [vmem:[%s12670_s1 + $0x238] sm:$0xff] }
 0x1c0   :  { %v6644_v31 = vld [vmem:[%s12669_s0 + $0x1d8] sm:$0xff]  }
 0x1c3   :  { %v7192_v56 = vpop.f32.mrf.mxu0 }
 0x1c4   :  { %13176 = vst [vmem:[#allocation35_spill] sm:$0xff] %v7192_v56 }
 0x1c6   :  { %6027 = vmatmul.msk.bf16.gmra.mxu0 %vm698_vm1, %v6427_v55  ;;  %v263_v55 = vld [vmem:[%s12670_s1 + $0x230] sm:$0xff] }
 0x1c7   :  { %2078 = vperm.xlu1 %6710, %v263_v55   ;;  %2088 = vperm.xlu0 %6709, %v265_v61   ;;  %v274_v55 = vld [vmem:[%s12670_s1 + $0x288] sm:$0xff] }
 0x1c8   :  { %2083 = vperm.xlu2 %6711, %v264_v52   ;;  %v273_v52 = vld [vmem:[%s12670_s1 + $0x280] sm:$0xff] }
 0x1cb   :  { %v7204_v63 = vpop.f32.mrf.mxu0 }
 0x1cf   :  { %2093 = vperm.xlu1 %6710, %v266_v0   ;;  %2103 = vperm.xlu0 %6709, %v268_v10   ;;  %v267_v0 = vld [vmem:[%s12670_s1 + $0x250] sm:$0xff]  ;;  %v6432_v10 = vld [vmem:[%s12669_s0 + $0x108] sm:$0xff] }
 0x1d0   :  { %2098 = vperm.xlu2 %6711, %v267_v0   ;;  %v284_v0 = vld [vmem:[%s12670_s1 + $0x2d8] sm:$0xff] }
 0x1d3   :  { %v7218_v6 = vpop.f32.mrf.mxu0 }
 0x1d4   :  { %13177 = vst [vmem:[#allocation36_spill] sm:$0xff] %v7218_v6 }
 0x1d6   :  { %6028 = vmatmul.msk.bf16.gmra.mxu0 %vm698_vm1, %v6428_v5  ;;  %v6642_v5 = vld [vmem:[%s12669_s0 + $0x1c8] sm:$0xff]  }
 0x1d7   :  { %6056 = vmatmul.msk.bf16.gmra.mxu3 %vm698_vm1, %v6642_v5  ;;  %2108 = vperm.xlu1 %6710, %v269_v16   ;;  %v277_v5 = vld [vmem:[%s12670_s1 + $0x2a0] sm:$0xff] }
 0x1d8   :  { %2118 = vperm.xlu0 %6709, %v271_v34   ;;  %v270_v34 = vld [vmem:[%s12670_s1 + $0x268] sm:$0xff] }
 0x1d9   :  { %2113 = vperm.xlu2 %6711, %v270_v34   ;;  %v287_v34 = vld [vmem:[%s12670_s1 + $0x2f0] sm:$0xff] }
 0x1db   :  { %v7234_v25 = vpop.f32.mrf.mxu0 }
 0x1df   :  { %2123 = vperm.xlu1 %6710, %v272_v43   ;;  %v280_v43 = vld [vmem:[%s12670_s1 + $0x2b8] sm:$0xff] }
 0x1e0   :  { %2133 = vperm.xlu0 %6709, %v274_v55   ;;  %v6441_v55 = vld [vmem:[%s12669_s0 + $0x150] sm:$0xff] }
 0x1e1   :  { %2128 = vperm.xlu2 %6711, %v273_v52   ;;  %v6442_v52 = vld [vmem:[%s12669_s0 + $0x158] sm:$0xff] }
 0x1e3   :  { %v7248_v45 = vpop.f32.mrf.mxu0 }
 0x1e4   :  { %13178 = vst [vmem:[#allocation37_spill] sm:$0xff] %v7248_v45 }
 0x1e6   :  { %6029 = vmatmul.msk.bf16.gmra.mxu0 %vm698_vm1, %v6429_v44  ;;  %v6431_v44 = vld [vmem:[%s12669_s0 + $0x100] sm:$0xff] }
 0x1e7   :  { %6057 = vmatmul.msk.bf16.gmra.mxu3 %vm698_vm1, %v6643_v51  ;;  %2138 = vperm.xlu1 %6710, %v275_v59   ;;  %v283_v59 = vld [vmem:[%s12670_s1 + $0x2d0] sm:$0xff] }
 0x1e8   :  { %2148 = vperm.xlu0 %6709, %v277_v5  }
 0x1eb   :  { %v7264_v58 = vpop.f32.mrf.mxu0 }
 0x1ef   :  { %2153 = vperm.xlu1 %6710, %v278_v9   ;;  %v6645_v9 = vld [vmem:[%s12669_s0 + $0x1e0] sm:$0xff]  }
 0x1f0   :  { %2163 = vperm.xlu0 %6709, %v280_v43  }
 0x1f3   :  { %v7278_v4 = vpop.f32.mrf.mxu0 }
 0x1f4   :  { %13179 = vst [vmem:[#allocation38_spill] sm:$0xff] %v7278_v4 }
 0x1f6   :  { %6030 = vmatmul.msk.bf16.gmra.mxu0 %vm698_vm1, %v6430_v3  ;;  %v6440_v3 = vld [vmem:[%s12669_s0 + $0x148] sm:$0xff] }
 0x1f7   :  { %6040 = vmatmul.msk.bf16.vlgmr.msra.gmra.mxu1 %vm698_vm1, %v6440_v3  ;;  %6058 = vmatmul.msk.bf16.gmra.mxu3 %vm698_vm1, %v6644_v31  ;;  %v6433_v3 = vld [vmem:[%s12669_s0 + $0x110] sm:$0xff]  ;;  %v286_v31 = vld [vmem:[%s12670_s1 + $0x2e8] sm:$0xff] }
 0x1f8   :  { %2178 = vperm.xlu0 %6709, %v283_v59   ;;  %v290_v59 = vld [vmem:[%s12670_s1 + $0x308] sm:$0xff] }
 0x1fb   :  { %v7294_v22 = vpop.f32.mrf.mxu0 }
 0x200   :  { %2193 = vperm.xlu0 %6709, %v286_v31   ;;  %v292_v31 = vld [vmem:[%s12670_s1 + $0x318] sm:$0xff] }
 0x203   :  { %v7308_v49 = vpop.f32.mrf.mxu0 }
 0x204   :  { %13180 = vst [vmem:[#allocation39_spill] sm:$0xff] %v7308_v49 }
 0x206   :  { %6031 = vmatmul.msk.bf16.gmra.mxu0 %vm698_vm1, %v6431_v44  ;;  %v281_v44 = vld [vmem:[%s12670_s1 + $0x2c0] sm:$0xff] }
 0x207   :  { %2168 = vperm.xlu1 %6710, %v281_v44   ;;  %6041 = vmatmul.msk.bf16.gmra.mxu1 %vm698_vm1, %v6441_v55  ;;  %v279_v44 = vld [vmem:[%s12670_s1 + $0x2b0] sm:$0xff]  ;;  %v289_v55 = vld [vmem:[%s12670_s1 + $0x300] sm:$0xff] }
 0x208   :  { %6059 = vmatmul.msk.bf16.gmra.mxu3 %vm698_vm1, %v6645_v9  ;;  %2208 = vperm.xlu0 %6709, %v289_v55   ;;  %v6646_v9 = vld [vmem:[%s12669_s0 + $0x1e8] sm:$0xff]   ;;  %v6443_v55 = vld [vmem:[%s12669_s0 + $0x160] sm:$0xff] }
 0x20b   :  { %v7324_v61 = vpop.f32.mrf.mxu0 }
 0x20c   :  { %13181 = vst [vmem:[#allocation40_spill] sm:$0xff] %v7324_v61 }
 0x20f   :  { %2183 = vperm.xlu1 %6710, %v284_v0   ;;  %v6434_v0 = vld [vmem:[%s12669_s0 + $0x118] sm:$0xff] }
 0x210   :  { %2223 = vperm.xlu0 %6709, %v292_v31   ;;  %v6453_v31 = vld [vmem:[%s12669_s0 + $0x1f0] sm:$0xff] }
 0x213   :  { %v7342_v16 = vpop.f32.mrf.mxu0 }
 0x214   :  { %13182 = vst [vmem:[#allocation41_spill] sm:$0xff] %v7342_v16 }
 0x216   :  { %6032 = vmatmul.msk.bf16.gmra.mxu0 %vm698_vm1, %v6432_v10  ;;  %v276_v10 = vld [vmem:[%s12670_s1 + $0x298] sm:$0xff] }
 0x217   :  { %2143 = vperm.xlu2 %6711, %v276_v10   ;;  %2198 = vperm.xlu1 %6710, %v287_v34   ;;  %v282_v10 = vld [vmem:[%s12670_s1 + $0x2c8] sm:$0xff]  ;;  %v293_v34 = vld [vmem:[%s12670_s1 + $0x320] sm:$0xff] }
 0x218   :  { %6042 = vmatmul.msk.bf16.gmra.mxu1 %vm698_vm1, %v6442_v52  ;;  %6060 = vmatmul.msk.bf16.gmra.mxu3 %vm698_vm1, %v6646_v9  ;;  %v285_v52 = vld [vmem:[%s12670_s1 + $0x2e0] sm:$0xff]  ;;  %v296_v9 = vld [vmem:[%s12670_s1 + $0x338] sm:$0xff] }
 0x21b   :  { %v7358_v51 = vpop.f32.mrf.mxu0 }
 0x21c   :  { %13183 = vst [vmem:[#allocation42_spill] sm:$0xff] %v7358_v51 }
 0x21f   :  { %2158 = vperm.xlu2 %6711, %v279_v44   ;;  %2213 = vperm.xlu1 %6710, %v290_v59   ;;  %v6448_v59 = vld [vmem:[%s12669_s0 + $0x188] sm:$0xff] }
 0x220   :  { %6048 = vmatmul.msk.bf16.vlgmr.msra.gmra.mxu2 %vm698_vm1, %v6448_v59  ;;  %v299_v59 = vld [vmem:[%s12670_s1 + $0x350] sm:$0xff] }
 0x223   :  { %v7376_v5 = vpop.f32.mrf.mxu0 }
 0x224   :  { %13184 = vst [vmem:[#allocation43_spill] sm:$0xff] %v7376_v5 }
 0x226   :  { %6033 = vmatmul.msk.bf16.gmra.mxu0 %vm698_vm1, %v6433_v3 }
 0x227   :  { %2173 = vperm.xlu2 %6711, %v282_v10   ;;  %2228 = vperm.xlu1 %6710, %v293_v34   ;;  %v6435_v10 = vld [vmem:[%s12669_s0 + $0x120] sm:$0xff] }
 0x228   :  { %6043 = vmatmul.msk.bf16.gmra.mxu1 %vm698_vm1, %v6443_v55  ;;  %6061 = vmatmul.msk.bf16.gmra.mxu3 %vm698_vm1, %v6453_v31  ;;  %v298_v55 = vld [vmem:[%s12670_s1 + $0x348] sm:$0xff]  ;;  %v6449_v31 = vld [vmem:[%s12669_s0 + $0x190] sm:$0xff] }
 0x22b   :  { %v7392_v43 = vpop.f32.mrf.mxu0 }
 0x22c   :  { %13185 = vst [vmem:[#allocation44_spill] sm:$0xff] %v7392_v43 }
 0x22f   :  { %2188 = vperm.xlu2 %6711, %v285_v52   ;;  %2243 = vperm.xlu1 %6710, %v296_v9   ;;  %v288_v52 = vld [vmem:[%s12670_s1 + $0x2f8] sm:$0xff]  ;;  %v291_v9 = vld [vmem:[%s12670_s1 + $0x310] sm:$0xff] }
 0x230   :  { %6049 = vmatmul.msk.bf16.gmra.mxu2 %vm698_vm1, %v6449_v31  ;;  %v304_v31 = vld [vmem:[%s12670_s1 + $0x378] sm:$0xff] }
 0x233   :  { %v7410_v3 = vpop.f32.mrf.mxu0 }
 0x234   :  { %13186 = vst [vmem:[#allocation45_spill] sm:$0xff] %v7410_v3 }
 0x236   :  { %6034 = vmatmul.msk.bf16.gmra.mxu0 %vm698_vm1, %v6434_v0  ;;  %v295_v0 = vld [vmem:[%s12670_s1 + $0x330] sm:$0xff] }
 0x237   :  { %2238 = vperm.xlu0 %6709, %v295_v0   ;;  %2203 = vperm.xlu2 %6711, %v288_v52   ;;  %v301_v52 = vld [vmem:[%s12670_s1 + $0x360] sm:$0xff] }
 0x238   :  { %2258 = vperm.xlu1 %6710, %v299_v59   ;;  %v6436_v59 = vld [vmem:[%s12669_s0 + $0x128] sm:$0xff] }
 0x23b   :  { %v7426_v44 = vpop.f32.mrf.mxu0 }
 0x23c   :  { %13187 = vst [vmem:[#allocation46_spill] sm:$0xff] %v7426_v44 }
 0x23f   :  { %2253 = vperm.xlu0 %6709, %v298_v55   ;;  %2218 = vperm.xlu2 %6711, %v291_v9   ;;  %v302_v55 = vld [vmem:[%s12670_s1 + $0x368] sm:$0xff]  ;;  %v6647_v9 = vld [vmem:[%s12669_s0 + $0x1f8] sm:$0xff]  }
 0x240   :  { %2273 = vperm.xlu1 %6710, %v302_v55   ;;  %6062 = vmatmul.msk.bf16.gmra.mxu3 %vm698_vm1, %v6647_v9  ;;  %v297_v9 = vld [vmem:[%s12670_s1 + $0x340] sm:$0xff] }
 0x243   :  { %v7451_v34 = vpop.f32.mrf.mxu0 }
 0x244   :  { %13188 = vst [vmem:[#allocation47_spill] sm:$0xff] %v7451_v34 }
 0x246   :  { %6035 = vmatmul.msk.bf16.gmra.mxu0 %vm698_vm1, %v6435_v10  ;;  %v6444_v10 = vld [vmem:[%s12669_s0 + $0x168] sm:$0xff] }
 0x247   :  { %6044 = vmatmul.msk.bf16.gmra.mxu1 %vm698_vm1, %v6444_v10  ;;  %2268 = vperm.xlu0 %6709, %v301_v52   ;;  %v294_v10 = vld [vmem:[%s12670_s1 + $0x328] sm:$0xff]  ;;  %v305_v52 = vld [vmem:[%s12670_s1 + $0x380] sm:$0xff] }
 0x248   :  { %2233 = vperm.xlu2 %6711, %v294_v10   ;;  %2288 = vperm.xlu1 %6710, %v305_v52   ;;  %v6450_v10 = vld [vmem:[%s12669_s0 + $0x198] sm:$0xff] }
 0x249   :  { %v308_v52 = vld [vmem:[%s12670_s1 + $0x398] sm:$0xff]  ;;  %6050 = vmatmul.msk.bf16.gmra.mxu2 %vm698_vm1, %v6450_v10  ;;  %v310_v10 = vld [vmem:[%s12670_s1 + $0x3a8] sm:$0xff] }
 0x24b   :  { %v7464_v0 = vpop.f32.mrf.mxu0 }
 0x24c   :  { %13189 = vst [vmem:[#allocation48_spill] sm:$0xff] %v7464_v0 }
 0x24f   :  { %2283 = vperm.xlu0 %6709, %v304_v31   ;;  %v307_v31 = vld [vmem:[%s12670_s1 + $0x390] sm:$0xff] }
 0x250   :  { %2248 = vperm.xlu2 %6711, %v297_v9   ;;  %2303 = vperm.xlu1 %6710, %v308_v52   ;;  %v6648_v9 = vld [vmem:[%s12669_s0 + $0x200] sm:$0xff]  }
 0x251   :  { %6063 = vmatmul.msk.bf16.gmra.mxu3 %vm698_vm1, %v6648_v9  ;;  %v1288_v9 = vadd.f32 %v6876_v12, %v6873_v11 }
 0x253   :  { %v7486_v0 = vpop.f32.mrf.mxu0  ;;  %v1289_v12 = vadd.f32 %v1288_v9, %v6881_v14  ;;  %v6649_v9 = vld [vmem:[%s12669_s0 + $0x208] sm:$0xff]  }
 0x254   :  { %13190 = vst [vmem:[#allocation49_spill] sm:$0xff] %v7486_v0 }
 0x255   :  { %v1290_v11 = vadd.f32 %v1289_v12, %v6884_v15  ;;  %v306_v12 = vld [vmem:[%s12670_s1 + $0x388] sm:$0xff] }
 0x256   :  { %6036 = vmatmul.msk.bf16.gmra.mxu0 %vm698_vm1, %v6436_v59  ;;  %v6445_v59 = vld [vmem:[%s12669_s0 + $0x170] sm:$0xff] }
 0x257   :  { %6045 = vmatmul.msk.bf16.gmra.mxu1 %vm698_vm1, %v6445_v59  ;;  %2298 = vperm.xlu0 %6709, %v307_v31   ;;  %v300_v59 = vld [vmem:[%s12670_s1 + $0x358] sm:$0xff]  ;;  %v311_v31 = vld [vmem:[%s12670_s1 + $0x3b0] sm:$0xff] }
 0x258   :  { %2263 = vperm.xlu2 %6711, %v300_v59   ;;  %2318 = vperm.xlu1 %6710, %v311_v31   ;;  %v303_v59 = vld [vmem:[%s12670_s1 + $0x370] sm:$0xff]  ;;  %v314_v31 = vld [vmem:[%s12670_s1 + $0x3c8] sm:$0xff] }
 0x25b   :  { %v7502_v55 = vpop.f32.mrf.mxu0 }
 0x25c   :  { %13191 = vst [vmem:[#allocation50_spill] sm:$0xff] %v7502_v55  ;;  %v6437_v55 = vld [vmem:[%s12669_s0 + $0x130] sm:$0xff] }
 0x25f   :  { %2313 = vperm.xlu0 %6709, %v310_v10   ;;  %v313_v10 = vld [vmem:[%s12670_s1 + $0x3c0] sm:$0xff] }
 0x260   :  { %2278 = vperm.xlu2 %6711, %v303_v59   ;;  %2333 = vperm.xlu1 %6710, %v314_v31   ;;  %v1291_v59 = vadd.f32 %v1290_v11, %v6889_v17  ;;  %v316_v11 = vld [vmem:[%s12670_s1 + $0x3d8] sm:$0xff]  ;;  %v7585_v31 = vpop.f32.mrf.mxu3 }
 0x261   :  { %6064 = vmatmul.msk.bf16.gmra.mxu3 %vm698_vm1, %v6649_v9  ;;  %13195 = vst [vmem:[#allocation54_spill] sm:$0xff] %v7585_v31 }
 0x263   :  { %v7524_v0 = vpop.f32.mrf.mxu0 }
 0x264   :  { %13192 = vst [vmem:[#allocation51_spill] sm:$0xff] %v7524_v0  ;;  %v6451_v0 = vld [vmem:[%s12669_s0 + $0x1a0] sm:$0xff] }
 0x265   :  { %6051 = vmatmul.msk.bf16.gmra.mxu2 %vm698_vm1, %v6451_v0  ;;  %v317_v0 = vld [vmem:[%s12670_s1 + $0x3e0] sm:$0xff] }
 0x266   :  { %6037 = vmatmul.msk.bf16.gmra.mxu0 %vm698_vm1, %v6437_v55  ;;  %v6446_v55 = vld [vmem:[%s12669_s0 + $0x178] sm:$0xff] }
 0x267   :  { %6046 = vmatmul.msk.bf16.gmra.mxu1 %vm698_vm1, %v6446_v55  ;;  %2328 = vperm.xlu0 %6709, %v313_v10   ;;  %v1292_v55 = vadd.f32 %v1291_v59, %v6892_v18 }
 0x268   :  { %2293 = vperm.xlu2 %6711, %v306_v12   ;;  %2348 = vperm.xlu1 %6710, %v317_v0   ;;  %v309_v12 = vld [vmem:[%s12670_s1 + $0x3a0] sm:$0xff]  ;;  %v320_v0 = vld [vmem:[%s12670_s1 + $0x3f8] sm:$0xff] }
 0x269   :  { %v1293_v10 = vadd.f32 %v1292_v55, %v6897_v20  ;;  %v6452_v55 = vld [vmem:[%s12669_s0 + $0x1a8] sm:$0xff] }
 0x26b   :  { %v7540_v52 = vpop.f32.mrf.mxu0  ;;  %v1294_v59 = vadd.f32 %v1293_v10, %v6900_v21 }
 0x26c   :  { %13193 = vst [vmem:[#allocation52_spill] sm:$0xff] %v7540_v52  ;;  %v6438_v52 = vld [vmem:[%s12669_s0 + $0x138] sm:$0xff] }
 0x26d   :  { %v1295_v9 = vadd.f32 %v1294_v59, %v6905_v23 }
 0x26f   :  { %2343 = vperm.xlu0 %6709, %v316_v11   ;;  %v1296_v17 = vadd.f32 %v1295_v9, %v6908_v24  ;;  %v319_v11 = vld [vmem:[%s12670_s1 + $0x3f0] sm:$0xff]  ;;  %v7611_v9 = vpop.f32.mrf.mxu3  ;;  %v6439_v24 = vld [vmem:[%s12669_s0 + $0x140] sm:$0xff] }
 0x270   :  { %2308 = vperm.xlu2 %6711, %v309_v12   ;;  %2363 = vperm.xlu1 %6710, %v320_v0   ;;  %13197 = vst [vmem:[#allocation56_spill] sm:$0xff] %v7611_v9  ;;  %v323_v0 = vld [vmem:[%s12670_s1 + $0x410] sm:$0xff] }
 0x271   :  { %v1297_v10 = vadd.f32 %v1296_v17, %v6913_v26  ;;  %v6650_v17 = vld [vmem:[%s12669_s0 + $0x210] sm:$0xff]  }
 0x272   :  { %6065 = vmatmul.msk.bf16.gmra.mxu3 %vm698_vm1, %v6650_v17 }
 0x273   :  { %v7567_v34 = vpop.f32.mrf.mxu0  ;;  %v1298_v59 = vadd.f32 %v1297_v10, %v6916_v27 }
 0x274   :  { %13194 = vst [vmem:[#allocation53_spill] sm:$0xff] %v7567_v34 }
 0x275   :  { %6052 = vmatmul.msk.bf16.gmra.mxu2 %vm698_vm1, %v6452_v55  ;;  %v1299_v12 = vadd.f32 %v1298_v59, %v6921_v29  ;;  %v312_v55 = vld [vmem:[%s12670_s1 + $0x3b8] sm:$0xff] }
 0x276   :  { %6038 = vmatmul.msk.bf16.gmra.mxu0 %vm698_vm1, %v6438_v52  ;;  %v6447_v52 = vld [vmem:[%s12669_s0 + $0x180] sm:$0xff] }
 0x277   :  { %6047 = vmatmul.msk.bf16.gmra.mxu1 %vm698_vm1, %v6447_v52  ;;  %2358 = vperm.xlu0 %6709, %v319_v11   ;;  %v1300_v52 = vadd.f32 %v1299_v12, %v6924_v30  ;;  %v322_v11 = vld [vmem:[%s12670_s1 + $0x408] sm:$0xff]  ;;  %v7637_v17 = vpop.f32.mrf.mxu3 }
 0x278   :  { %2323 = vperm.xlu2 %6711, %v312_v55   ;;  %2378 = vperm.xlu1 %6710, %v323_v0   ;;  %13199 = vst [vmem:[#allocation58_spill] sm:$0xff] %v7637_v17  ;;  %v315_v55 = vld [vmem:[%s12670_s1 + $0x3d0] sm:$0xff] }
 0x279   :  { %v1301_v10 = vadd.f32 %v1300_v52, %v6929_v32  ;;  %v325_v52 = vld [vmem:[%s12670_s1 + $0x420] sm:$0xff] }
 0x27b   :  { %v7589_v18 = vpop.f32.mrf.mxu0  ;;  %v1302_v59 = vadd.f32 %v1301_v10, %v6932_v33 }
 0x27c   :  { %13196 = vst [vmem:[#allocation55_spill] sm:$0xff] %v7589_v18 }
 0x27d   :  { %v1303_v12 = vadd.f32 %v1302_v59, %v6937_v35 }
 0x27f   :  { %2373 = vperm.xlu0 %6709, %v322_v11   ;;  %v1304_v29 = vadd.f32 %v1303_v12, %v6940_v36  ;;  %v326_v11 = vld [vmem:[%s12670_s1 + $0x428] sm:$0xff]  ;;  %v7664_v35 = vpop.f32.mrf.mxu3 }
 0x280   :  { %2338 = vperm.xlu2 %6711, %v315_v55   ;;  %2393 = vperm.xlu1 %6710, %v326_v11   ;;  %v6651_v55 = vld [vmem:[%s12669_s0 + $0x218] sm:$0xff]   ;;  %13202 = vst [vmem:[#allocation61_spill] sm:$0xff] %v7664_v35  ;;  %v7676_v11 = vpop.f32.mrf.mxu1 }
 0x281   :  { %v1305_v0 = vadd.f32 %v1304_v29, %v6945_v38  ;;  %v318_v29 = vld [vmem:[%s12670_s1 + $0x3e8] sm:$0xff]  ;;  %13203 = vst [vmem:[#allocation62_spill] sm:$0xff] %v7676_v11 }
 0x282   :  { %6066 = vmatmul.msk.bf16.gmra.mxu3 %vm698_vm1, %v6651_v55 }
 0x283   :  { %v7617_v23 = vpop.f32.mrf.mxu0  ;;  %v1306_v10 = vadd.f32 %v1305_v0, %v6948_v39  ;;  %v13233_v39 = vld [vmem:[#allocation51_spill] sm:$0xff] }
 0x284   :  { %13198 = vst [vmem:[#allocation57_spill] sm:$0xff] %v7617_v23 }
 0x285   :  { %v1307_v59 = vadd.f32 %v1306_v10, %v6953_v41  ;;  %v321_v41 = vld [vmem:[%s12670_s1 + $0x400] sm:$0xff] }
 0x286   :  { %6039 = vmatmul.msk.bf16.gmra.mxu0 %vm698_vm1, %v6439_v24  ;;  %v6639_v24 = vld [vmem:[%s12669_s0 + $0x1b0] sm:$0xff]  }
 0x287   :  { %6053 = vmatmul.msk.bf16.gmra.mxu2 %vm698_vm1, %v6639_v24  ;;  %2388 = vperm.xlu0 %6709, %v325_v52   ;;  %v1308_v36 = vadd.f32 %v1307_v59, %v6956_v42  ;;  %v328_v24 = vld [vmem:[%s12670_s1 + $0x438] sm:$0xff]  ;;  %v329_v52 = vld [vmem:[%s12670_s1 + $0x440] sm:$0xff] }
 0x288   :  { %2353 = vperm.xlu2 %6711, %v318_v29   ;;  %2408 = vperm.xlu1 %6710, %v329_v52   ;;  %v331_v29 = vld [vmem:[%s12670_s1 + $0x450] sm:$0xff]  ;;  %v7694_v52 = vpop.f32.mrf.mxu3 }
 0x289   :  { %v1309_v0 = vadd.f32 %v1308_v36, %v6967_v47  ;;  %v332_v36 = vld [vmem:[%s12670_s1 + $0x458] sm:$0xff]  ;;  %13205 = vst [vmem:[#allocation64_spill] sm:$0xff] %v7694_v52 }
 0x28b   :  { %v7639_v30 = vpop.f32.mrf.mxu0  ;;  %v1310_v10 = vadd.f32 %v1309_v0, %v6976_v50  ;;  %v7696_v0 = vpop.f32.mrf.mxu1  ;;  %v13230_v50 = vld [vmem:[#allocation49_spill] sm:$0xff] }
 0x28c   :  { %13200 = vst [vmem:[#allocation59_spill] sm:$0xff] %v7639_v30 }
 0x28d   :  { %v1311_v59 = vadd.f32 %v1310_v10, %v6987_v54  ;;  %13206 = vst [vmem:[#allocation65_spill] sm:$0xff] %v7696_v0  ;;  %v6652_v54 = vld [vmem:[%s12669_s0 + $0x220] sm:$0xff]  }
 0x28f   :  { %2403 = vperm.xlu0 %6709, %v328_v24   ;;  %v1312_v42 = vadd.f32 %v1311_v59, %v6996_v57 }
 0x290   :  { %2368 = vperm.xlu2 %6711, %v321_v41   ;;  %2423 = vperm.xlu1 %6710, %v332_v36   ;;  %v335_v36 = vld [vmem:[%s12670_s1 + $0x470] sm:$0xff] }
 0x291   :  { %v1313_v24 = vadd.f32 %v1312_v42, %v7010_v62  ;;  %v324_v42 = vld [vmem:[%s12670_s1 + $0x418] sm:$0xff] }
 0x292   :  { %6067 = vmatmul.msk.bf16.gmra.mxu3 %vm698_vm1, %v6652_v54  ;;  %v7718_v54 = vpop.f32.mrf.mxu3 }
 0x293   :  { %v7658_v12 = vpop.f32.mrf.mxu0  ;;  %v1314_v10 = vadd.f32 %v1313_v24, %v7022_v2  ;;  %13208 = vst [vmem:[#allocation67_spill] sm:$0xff] %v7718_v54 }
 0x294   :  { %13201 = vst [vmem:[#allocation60_spill] sm:$0xff] %v7658_v12 }
 0x295   :  { %v1315_v59 = vadd.f32 %v1314_v10, %v7036_v7 }
 0x297   :  { %2418 = vperm.xlu0 %6709, %v331_v29   ;;  %v1316_v41 = vadd.f32 %v1315_v59, %v7048_v13  ;;  %v334_v29 = vld [vmem:[%s12670_s1 + $0x468] sm:$0xff]  ;;  %v7720_v59 = vpop.f32.mrf.mxu1 }
 0x298   :  { %2383 = vperm.xlu2 %6711, %v324_v42   ;;  %2438 = vperm.xlu1 %6710, %v335_v36   ;;  %13209 = vst [vmem:[#allocation68_spill] sm:$0xff] %v7720_v59  ;;  %v327_v42 = vld [vmem:[%s12670_s1 + $0x430] sm:$0xff] }
 0x299   :  { %v1317_v24 = vadd.f32 %v1316_v41, %v7062_v28 }
 0x29b   :  { %v7681_v55 = vpop.f32.mrf.mxu0  ;;  %v1318_v10 = vadd.f32 %v1317_v24, %v7074_v40  ;;  %v7732_v24 = vpop.f32.mrf.mxu3 }
 0x29c   :  { %13204 = vst [vmem:[#allocation63_spill] sm:$0xff] %v7681_v55 }
 0x29d   :  { %v1319_v13 = vadd.f32 %v1318_v10, %v7088_v48  ;;  %13211 = vst [vmem:[#allocation70_spill] sm:$0xff] %v7732_v24 }
 0x29f   :  { %2433 = vperm.xlu0 %6709, %v334_v29   ;;  %v1320_v2 = vadd.f32 %v1319_v13, %v7100_v53  ;;  %v7736_v10 = vpop.f32.mrf.mxu1  ;;  %v6653_v13 = vld [vmem:[%s12669_s0 + $0x228] sm:$0xff]  }
 0x2a0   :  { %2398 = vperm.xlu2 %6711, %v327_v42   ;;  %13213 = vst [vmem:[#allocation72_spill] sm:$0xff] %v7736_v10 }
 0x2a1   :  { %v1321_v41 = vadd.f32 %v1320_v2, %v7114_v60  ;;  %v330_v2 = vld [vmem:[%s12670_s1 + $0x448] sm:$0xff] }
 0x2a2   :  { %6068 = vmatmul.msk.bf16.gmra.mxu3 %vm698_vm1, %v6653_v13 }
 0x2a3   :  { %v7700_v57 = vpop.f32.mrf.mxu0  ;;  %v1322_v29 = vadd.f32 %v1321_v41, %v7126_v1  ;;  %v7752_v60 = vpop.f32.mrf.mxu3 }
 0x2a4   :  { %13207 = vst [vmem:[#allocation66_spill] sm:$0xff] %v7700_v57 }
 0x2a5   :  { %v1323_v36 = vadd.f32 %v1322_v29, %v7140_v8  ;;  %13215 = vst [vmem:[#allocation74_spill] sm:$0xff] %v7752_v60 }
 0x2a7   :  { %v1324_v53 = vadd.f32 %v1323_v36, %v7152_v19  ;;  %v333_v36 = vld [vmem:[%s12670_s1 + $0x460] sm:$0xff]  ;;  %v7757_v13 = vpop.f32.mrf.mxu1 }
 0x2a8   :  { %2413 = vperm.xlu2 %6711, %v330_v2   ;;  %13216 = vst [vmem:[#allocation75_spill] sm:$0xff] %v7757_v13 }
 0x2a9   :  { %v1325_v42 = vadd.f32 %v1324_v53, %v7166_v37 }
 0x2ab   :  { %v7723_v7 = vpop.f32.mrf.mxu0  ;;  %v1326_v41 = vadd.f32 %v1325_v42, %v7178_v46 }
 0x2ac   :  { %13210 = vst [vmem:[#allocation69_spill] sm:$0xff] %v7723_v7 }
 0x2ad   :  { %v1327_v29 = vadd.f32 %v1326_v41, %v7192_v56 }
 0x2af   :  { %v1328_v1 = vadd.f32 %v1327_v29, %v7204_v63  ;;  %v6654_v29 = vld [vmem:[%s12669_s0 + $0x230] sm:$0xff]  }
 0x2b0   :  { %2428 = vperm.xlu2 %6711, %v333_v36   ;;  %v336_v36 = vld [vmem:[%s12670_s1 + $0x478] sm:$0xff] }
 0x2b1   :  { %v1329_v2 = vadd.f32 %v1328_v1, %v7218_v6 }
 0x2b2   :  { %6069 = vmatmul.msk.bf16.gmra.mxu3 %vm698_vm1, %v6654_v29 }
 0x2b3   :  { %v7734_v40 = vpop.f32.mrf.mxu0  ;;  %v1330_v53 = vadd.f32 %v1329_v2, %v7234_v25  ;;  %v7773_v2 = vpop.f32.mrf.mxu3 }
 0x2b4   :  { %13212 = vst [vmem:[#allocation71_spill] sm:$0xff] %v7734_v40 }
 0x2b5   :  { %v1331_v42 = vadd.f32 %v1330_v53, %v7248_v45  ;;  %13218 = vst [vmem:[#allocation77_spill] sm:$0xff] %v7773_v2  ;;  %v7775_v53 = vpop.f32.mrf.mxu1 }
 0x2b6   :  { %13219 = vst [vmem:[#allocation78_spill] sm:$0xff] %v7775_v53 }
 0x2b7   :  { %v1332_v56 = vadd.f32 %v1331_v42, %v7264_v58 }
 0x2b8   :  { %2443 = vperm.xlu2 %6711, %v336_v36  }
 0x2b9   :  { %v1333_v1 = vadd.f32 %v1332_v56, %v7278_v4 }
 0x2bb   :  { %v7749_v8 = vpop.f32.mrf.mxu0  ;;  %v1334_v45 = vadd.f32 %v1333_v1, %v7294_v22  ;;  %v7784_v28 = vpop.f32.mrf.mxu3  ;;  %v6454_v1 = vld [vmem:[%s12669_s0 + $0x238] sm:$0xff] }
 0x2bc   :  { %13214 = vst [vmem:[#allocation73_spill] sm:$0xff] %v7749_v8 }
 0x2bd   :  { %v1335_v6 = vadd.f32 %v1334_v45, %v7308_v49  ;;  %13221 = vst [vmem:[#allocation80_spill] sm:$0xff] %v7784_v28  ;;  %v7786_v36 = vpop.f32.mrf.mxu1  ;;  %v13229_v49 = vld [vmem:[#allocation48_spill] sm:$0xff] }
 0x2be   :  { %13222 = vst [vmem:[#allocation81_spill] sm:$0xff] %v7786_v36 }
 0x2bf   :  { %v1336_v42 = vadd.f32 %v1335_v6, %v7324_v61  ;;  %v7796_v6 = vpop.f32.mrf.mxu2 }
 0x2c0   :  { %13224 = vst [vmem:[#allocation83_spill] sm:$0xff] %v7796_v6 }
 0x2c1   :  { %v1337_v29 = vadd.f32 %v1336_v42, %v7342_v16 }
 0x2c2   :  { %6070 = vmatmul.msk.bf16.gmra.mxu3 %vm698_vm1, %v6454_v1  ;;  %v13232_v1 = vld [vmem:[#allocation50_spill] sm:$0xff] }
 0x2c3   :  { %v7762_v41 = vpop.f32.mrf.mxu0  ;;  %v1338_v48 = vadd.f32 %v1337_v29, %v7358_v51  ;;  %v13225_v51 = vld [vmem:[#allocation47_spill] sm:$0xff]  ;;  %v7801_v61 = vpop.f32.mrf.mxu3 }
 0x2c4   :  { %13217 = vst [vmem:[#allocation76_spill] sm:$0xff] %v7762_v41 }
 0x2c5   :  { %v1339_v56 = vadd.f32 %v1338_v48, %v7376_v5  ;;  %13226 = vst [vmem:[#allocation84_spill] sm:$0xff] %v7801_v61  ;;  %v7805_v5 = vpop.f32.mrf.mxu1 }
 0x2c6   :  { %13228 = vst [vmem:[#allocation86_spill] sm:$0xff] %v7805_v5 }
 0x2c7   :  { %v1340_v45 = vadd.f32 %v1339_v56, %v7392_v43  ;;  %v7809_v43 = vpop.f32.mrf.mxu2 }
 0x2c8   :  { %13231 = vst [vmem:[#allocation87_spill] sm:$0xff] %v7809_v43 }
 0x2c9   :  { %v1341_v42 = vadd.f32 %v1340_v45, %v7410_v3 }
 0x2cb   :  { %v7779_v37 = vpop.f32.mrf.mxu0  ;;  %v1342_v29 = vadd.f32 %v1341_v42, %v7426_v44  ;;  %v13235_v42 = vld [vmem:[#allocation52_spill] sm:$0xff] }
 0x2cc   :  { %13220 = vst [vmem:[#allocation79_spill] sm:$0xff] %v7779_v37 }
 0x2cd   :  { %v1343_v16 = vadd.f32 %v1342_v29, %v13225_v51  ;;  %v7816_v51 = vpop.f32.mrf.mxu3  ;;  %v7818_v44 = vpop.f32.mrf.mxu1 }
 0x2ce   :  { %13236 = vst [vmem:[#allocation89_spill] sm:$0xff] %v7816_v51 }
 0x2cf   :  { %v1344_v62 = vadd.f32 %v1343_v16, %v13229_v49  ;;  %13237 = vst [vmem:[#allocation90_spill] sm:$0xff] %v7818_v44  ;;  %v7822_v49 = vpop.f32.mrf.mxu2 }
 0x2d0   :  { %13238 = vst [vmem:[#allocation91_spill] sm:$0xff] %v7822_v49 }
 0x2d1   :  { %v1345_v56 = vadd.f32 %v1344_v62, %v13230_v50 }
 0x2d3   :  { %v7792_v4 = vpop.f32.mrf.mxu0  ;;  %v1346_v47 = vadd.f32 %v1345_v56, %v13232_v1 }
 0x2d4   :  { %13223 = vst [vmem:[#allocation82_spill] sm:$0xff] %v7792_v4 }
 0x2d5   :  { %v1347_v45 = vadd.f32 %v1346_v47, %v13233_v39  ;;  %v7829_v39 = vpop.f32.mrf.mxu3 }
 0x2d6   :  { %13240 = vst [vmem:[#allocation93_spill] sm:$0xff] %v7829_v39 }
 0x2d7   :  { %v1348_v29 = vadd.f32 %v1347_v45, %v13235_v42  ;;  %v7831_v45 = vpop.f32.mrf.mxu1 }
 0x2d8   :  { %13241 = vst [vmem:[#allocation94_spill] sm:$0xff] %v7831_v45 }
 0x2d9   :  { %v1349_v38 = vadd.f32 %v1348_v29, %v7567_v34 }
 0x2db   :  { %v7803_v48 = vpop.f32.mrf.mxu0  ;;  %v1350_v16 = vadd.f32 %v1349_v38, %v7589_v18  ;;  %v7837_v38 = vpop.f32.mrf.mxu2 }
 0x2dc   :  { %13227 = vst [vmem:[#allocation85_spill] sm:$0xff] %v7803_v48 }
 0x2dd   :  { %v1351_v62 = vadd.f32 %v1350_v16, %v7617_v23  ;;  %13243 = vst [vmem:[#allocation96_spill] sm:$0xff] %v7837_v38 }
 0x2df   :  { %v1352_v47 = vadd.f32 %v1351_v62, %v7639_v30  ;;  %v7842_v30 = vpop.f32.mrf.mxu3 }
 0x2e0   :  { %13244 = vst [vmem:[#allocation97_spill] sm:$0xff] %v7842_v30 }
 0x2e1   :  { %v1353_v56 = vadd.f32 %v1352_v47, %v7658_v12  ;;  %v7844_v47 = vpop.f32.mrf.mxu1 }
 0x2e2   :  { %13245 = vst [vmem:[#allocation98_spill] sm:$0xff] %v7844_v47 }
 0x2e3   :  { %v7813_v3 = vpop.f32.mrf.mxu0  ;;  %v1354_v42 = vadd.f32 %v1353_v56, %v7681_v55  ;;  %v7850_v56 = vpop.f32.mrf.mxu2 }
 0x2e4   :  { %13234 = vst [vmem:[#allocation88_spill] sm:$0xff] %v7813_v3 }
 0x2e5   :  { %v1355_v29 = vadd.f32 %v1354_v42, %v7700_v57  ;;  %13247 = vst [vmem:[#allocation100_spill] sm:$0xff] %v7850_v56 }
 0x2e7   :  { %v1356_v16 = vadd.f32 %v1355_v29, %v7723_v7 }
 0x2e9   :  { %v1357_v23 = vadd.f32 %v1356_v16, %v7734_v40  ;;  %v7855_v40 = vpop.f32.mrf.mxu3 }
 0x2ea   :  { %13248 = vst [vmem:[#allocation101_spill] sm:$0xff] %v7855_v40 }
 0x2eb   :  { %v7825_v50 = vpop.f32.mrf.mxu0  ;;  %v1358_v62 = vadd.f32 %v1357_v23, %v7749_v8  ;;  %v7859_v8 = vpop.f32.mrf.mxu1 }
 0x2ec   :  { %13239 = vst [vmem:[#allocation92_spill] sm:$0xff] %v7825_v50  ;;  %v7863_v7 = vpop.f32.mrf.mxu2 }
 0x2ed   :  { %v1359_v12 = vadd.f32 %v1358_v62, %v7762_v41  ;;  %13250 = vst [vmem:[#allocation103_spill] sm:$0xff] %v7859_v8 }
 0x2ee   :  { %13251 = vst [vmem:[#allocation104_spill] sm:$0xff] %v7863_v7 }
 0x2ef   :  { %v1360_v42 = vadd.f32 %v1359_v12, %v7779_v37 }
 0x2f1   :  { %v1361_v57 = vadd.f32 %v1360_v42, %v7792_v4 }
 0x2f3   :  { %v7835_v34 = vpop.f32.mrf.mxu0  ;;  %v1362_v29 = vadd.f32 %v1361_v57, %v7803_v48  ;;  %v7869_v57 = vpop.f32.mrf.mxu3 }
 0x2f4   :  { %13242 = vst [vmem:[#allocation95_spill] sm:$0xff] %v7835_v34 }
 0x2f5   :  { %v1363_v16 = vadd.f32 %v1362_v29, %v7813_v3  ;;  %13253 = vst [vmem:[#allocation106_spill] sm:$0xff] %v7869_v57  ;;  %v7872_v3 = vpop.f32.mrf.mxu1 }
 0x2f6   :  { %13254 = vst [vmem:[#allocation107_spill] sm:$0xff] %v7872_v3 }
 0x2f7   :  { %v1364_v62 = vadd.f32 %v1363_v16, %v7825_v50  ;;  %v7876_v50 = vpop.f32.mrf.mxu2 }
 0x2f8   :  { %13255 = vst [vmem:[#allocation108_spill] sm:$0xff] %v7876_v50 }
 0x2f9   :  { %v1365_v41 = vadd.f32 %v1364_v62, %v7835_v34 }
 0x2fb   :  { %v7847_v18 = vpop.f32.mrf.mxu0 }
 0x2fc   :  { %13246 = vst [vmem:[#allocation99_spill] sm:$0xff] %v7847_v18  ;;  %v1366_v12 = vadd.f32 %v1365_v41, %v7847_v18  ;;  %v7880_v18 = vpop.f32.mrf.mxu3 }
 0x2fd   :  { %13256 = vst [vmem:[#allocation109_spill] sm:$0xff] %v7880_v18 }
 0x2ff   :  { %v7887_v34 = vpop.f32.mrf.mxu2 }
 0x300   :  { %13258 = vst [vmem:[#allocation111_spill] sm:$0xff] %v7887_v34 }
 0x303   :  { %v7857_v23 = vpop.f32.mrf.mxu0 }
 0x304   :  { %13249 = vst [vmem:[#allocation102_spill] sm:$0xff] %v7857_v23  ;;  %v1367_v42 = vadd.f32 %v1366_v12, %v7857_v23  ;;  %v7883_v23 = vpop.f32.mrf.mxu1 }
 0x305   :  { %13257 = vst [vmem:[#allocation110_spill] sm:$0xff] %v7883_v23 }
 0x30b   :  { %v7867_v4 = vpop.f32.mrf.mxu0 }
 0x30c   :  { %13252 = vst [vmem:[#allocation105_spill] sm:$0xff] %v7867_v4  ;;  %v1368_v29 = vadd.f32 %v1367_v42, %v7867_v4 }
 0x30e   :  { %v1369_v48 = vadd.f32 %v1368_v29, %v7676_v11 }
 0x310   :  { %v1370_v16 = vadd.f32 %v1369_v48, %v7696_v0  ;;  %v7891_v0 = vpop.f32.mrf.mxu3 }
 0x311   :  { %13259 = vst [vmem:[#allocation112_spill] sm:$0xff] %v7891_v0 }
 0x312   :  { %v1371_v62 = vadd.f32 %v1370_v16, %v7720_v59 }
 0x314   :  { %v1372_v41 = vadd.f32 %v1371_v62, %v7736_v10  ;;  %v7894_v62 = vpop.f32.mrf.mxu1  ;;  %v7898_v10 = vpop.f32.mrf.mxu2 }
 0x315   :  { %13260 = vst [vmem:[#allocation113_spill] sm:$0xff] %v7894_v62 }
 0x316   :  { %v1373_v12 = vadd.f32 %v1372_v41, %v7757_v13  ;;  %13261 = vst [vmem:[#allocation114_spill] sm:$0xff] %v7898_v10 }
 0x318   :  { %v1374_v42 = vadd.f32 %v1373_v12, %v7775_v53 }
 0x31a   :  { %v1375_v4 = vadd.f32 %v1374_v42, %v7786_v36  ;;  %v7902_v36 = vpop.f32.mrf.mxu3 }
 0x31b   :  { %13262 = vst [vmem:[#allocation115_spill] sm:$0xff] %v7902_v36 }
 0x31c   :  { %v1376_v48 = vadd.f32 %v1375_v4, %v7805_v5 }
 0x31e   :  { %v1377_v29 = vadd.f32 %v1376_v48, %v7818_v44  ;;  %v7905_v48 = vpop.f32.mrf.mxu1  ;;  %v7909_v44 = vpop.f32.mrf.mxu2 }
 0x31f   :  { %13263 = vst [vmem:[#allocation116_spill] sm:$0xff] %v7905_v48 }
 0x320   :  { %v1378_v16 = vadd.f32 %v1377_v29, %v7831_v45  ;;  %13264 = vst [vmem:[#allocation117_spill] sm:$0xff] %v7909_v44 }
 0x322   :  { %v1379_v41 = vadd.f32 %v1378_v16, %v7844_v47 }
 0x324   :  { %v1380_v13 = vadd.f32 %v1379_v41, %v7859_v8  ;;  %v7913_v8 = vpop.f32.mrf.mxu3 }
 0x325   :  { %13265 = vst [vmem:[#allocation118_spill] sm:$0xff] %v7913_v8 }
 0x326   :  { %v1381_v12 = vadd.f32 %v1380_v13, %v7872_v3 }
 0x328   :  { %v1382_v42 = vadd.f32 %v1381_v12, %v7883_v23 }
 0x32a   :  { %v1383_v4 = vadd.f32 %v1382_v42, %v7894_v62  ;;  %v7918_v62 = vpop.f32.mrf.mxu2 }
 0x32b   :  { %13266 = vst [vmem:[#allocation119_spill] sm:$0xff] %v7918_v62 }
 0x32c   :  { %v1384_v29 = vadd.f32 %v1383_v4, %v7905_v48 }
 0x32e   :  { %v1385_v45 = vadd.f32 %v1384_v29, %v7796_v6  ;;  %v7922_v6 = vpop.f32.mrf.mxu3 }
 0x32f   :  { %13267 = vst [vmem:[#allocation120_spill] sm:$0xff] %v7922_v6 }
 0x330   :  { %v1386_v16 = vadd.f32 %v1385_v45, %v7809_v43  ;;  %v7927_v43 = vpop.permute.xlu0 %1728 }
 0x331   :  { %13268 = vst [vmem:[#allocation121_spill] sm:$0xff] %v7927_v43 }
 0x332   :  { %v1387_v41 = vadd.f32 %v1386_v16, %v7822_v49 }
 0x334   :  { %v1388_v13 = vadd.f32 %v1387_v41, %v7837_v38  ;;  %v7929_v41 = vpop.f32.mrf.mxu2 }
 0x335   :  { %13269 = vst [vmem:[#allocation122_spill] sm:$0xff] %v7929_v41 }
 0x336   :  { %v1389_v12 = vadd.f32 %v1388_v13, %v7850_v56 }
 0x338   :  { %v1390_v42 = vadd.f32 %v1389_v12, %v7863_v7  ;;  %v7932_v12 = vpop.permute.xlu1 %1738 }
 0x339   :  { %13270 = vst [vmem:[#allocation123_spill] sm:$0xff] %v7932_v12 }
 0x33a   :  { %v1391_v4 = vadd.f32 %v1390_v42, %v7876_v50  ;;  %v7935_v50 = vpop.permute.xlu2 %1748 }
 0x33b   :  { %13271 = vst [vmem:[#allocation124_spill] sm:$0xff] %v7935_v50 }
 0x33c   :  { %v1392_v29 = vadd.f32 %v1391_v4, %v7887_v34  ;;  %v7937_v4 = vpop.f32.mrf.mxu3 }
 0x33d   :  { %13272 = vst [vmem:[#allocation125_spill] sm:$0xff] %v7937_v4 }
 0x33e   :  { %v1393_v45 = vadd.f32 %v1392_v29, %v7898_v10 }
 0x340   :  { %v1394_v16 = vadd.f32 %v1393_v45, %v7909_v44  ;;  %v7945_v10 = vpop.permute.xlu1 %1743 }
 0x341   :  { %13274 = vst [vmem:[#allocation127_spill] sm:$0xff] %v7945_v10 }
 0x342   :  { %v1395_v49 = vadd.f32 %v1394_v16, %v7918_v62  ;;  %v7942_v62 = vpop.permute.xlu0 %1733 }
 0x343   :  { %13273 = vst [vmem:[#allocation126_spill] sm:$0xff] %v7942_v62 }
 0x344   :  { %v1396_v13 = vadd.f32 %v1395_v49, %v7929_v41  ;;  %v7947_v49 = vpop.permute.xlu2 %1753 }
 0x345   :  { %13275 = vst [vmem:[#allocation128_spill] sm:$0xff] %v7947_v49 }
 0x346   :  { %v1397_v42 = vadd.f32 %v1396_v13, %v7585_v31  ;;  %v7950_v31 = vpop.f32.mrf.mxu3 }
 0x347   :  { %13276 = vst [vmem:[#allocation129_spill] sm:$0xff] %v7950_v31 }
 0x348   :  { %v1398_v29 = vadd.f32 %v1397_v42, %v7611_v9  ;;  %v7955_v42 = vpop.permute.xlu1 %1763 }
 0x349   :  { %13278 = vst [vmem:[#allocation131_spill] sm:$0xff] %v7955_v42 }
 0x34a   :  { %v1399_v45 = vadd.f32 %v1398_v29, %v7637_v17  ;;  %v7953_v34 = vpop.permute.xlu0 %1758 }
 0x34b   :  { %13277 = vst [vmem:[#allocation130_spill] sm:$0xff] %v7953_v34 }
 0x34c   :  { %v1400_v16 = vadd.f32 %v1399_v45, %v7664_v35  ;;  %v7958_v45 = vpop.permute.xlu2 %1768 }
 0x34d   :  { %13279 = vst [vmem:[#allocation132_spill] sm:$0xff] %v7958_v45 }
 0x34e   :  { %v1401_v44 = vadd.f32 %v1400_v16, %v7694_v52  ;;  %v7960_v35 = vpop.f32.mrf.mxu3 }
 0x34f   :  { %13280 = vst [vmem:[#allocation133_spill] sm:$0xff] %v7960_v35 }
 0x350   :  { %v1402_v13 = vadd.f32 %v1401_v44, %v7718_v54  ;;  %v7966_v54 = vpop.permute.xlu1 %1778 }
 0x351   :  { %13282 = vst [vmem:[#allocation135_spill] sm:$0xff] %v7966_v54 }
 0x352   :  { %v1403_v41 = vadd.f32 %v1402_v13, %v7732_v24  ;;  %v7963_v52 = vpop.permute.xlu0 %1773 }
 0x353   :  { %13281 = vst [vmem:[#allocation134_spill] sm:$0xff] %v7963_v52 }
 0x354   :  { %v1404_v29 = vadd.f32 %v1403_v41, %v7752_v60  ;;  %v7968_v17 = vpop.permute.xlu2 %1783 }
 0x355   :  { %13283 = vst [vmem:[#allocation136_spill] sm:$0xff] %v7968_v17 }
 0x356   :  { %v1405_v16 = vadd.f32 %v1404_v29, %v7773_v2  ;;  %v7971_v24 = vpop.f32.mrf.mxu3 }
 0x357   :  { %13284 = vst [vmem:[#allocation137_spill] sm:$0xff] %v7971_v24 }
 0x358   :  { %v1406_v44 = vadd.f32 %v1405_v16, %v7784_v28  ;;  %v7976_v9 = vpop.permute.xlu1 %1793 }
 0x359   :  { %13286 = vst [vmem:[#allocation139_spill] sm:$0xff] %v7976_v9 }
 0x35a   :  { %v1407_v13 = vadd.f32 %v1406_v44, %v7801_v61  ;;  %v7974_v60 = vpop.permute.xlu0 %1788 }
 0x35b   :  { %13285 = vst [vmem:[#allocation138_spill] sm:$0xff] %v7974_v60 }
 0x35c   :  { %v1408_v41 = vadd.f32 %v1407_v13, %v7816_v51  ;;  %v7979_v2 = vpop.permute.xlu2 %1798 }
 0x35d   :  { %13287 = vst [vmem:[#allocation140_spill] sm:$0xff] %v7979_v2 }
 0x35e   :  { %v1409_v29 = vadd.f32 %v1408_v41, %v7829_v39  ;;  %v7981_v7 = vpop.f32.mrf.mxu3 }
 0x35f   :  { %13288 = vst [vmem:[#allocation141_spill] sm:$0xff] %v7981_v7 }
 0x360   :  { %v1410_v16 = vadd.f32 %v1409_v29, %v7842_v30  ;;  %v7987_v61 = vpop.permute.xlu1 %1808 }
 0x361   :  { %13290 = vst [vmem:[#allocation143_spill] sm:$0xff] %v7987_v61 }
 0x362   :  { %v7984_v28 = vpop.permute.xlu0 %1803  ;;  %v1411_v44 = vadd.f32 %v1410_v16, %v7855_v40 }
 0x363   :  { %13289 = vst [vmem:[#allocation142_spill] sm:$0xff] %v7984_v28 }
 0x364   :  { %v7989_v56 = vpop.permute.xlu2 %1813  ;;  %v1412_v13 = vadd.f32 %v1411_v44, %v7869_v57 }
 0x365   :  { %13291 = vst [vmem:[#allocation144_spill] sm:$0xff] %v7989_v56 }
 0x366   :  { %v7992_v51 = vpop.f32.mrf.mxu3  ;;  %v1413_v41 = vadd.f32 %v1412_v13, %v7880_v18 }
 0x367   :  { %13292 = vst [vmem:[#allocation145_spill] sm:$0xff] %v7992_v51 }
 0x368   :  { %v7997_v38 = vpop.permute.xlu1 %1823  ;;  %v1414_v29 = vadd.f32 %v1413_v41, %v7891_v0 }
 0x369   :  { %13294 = vst [vmem:[#allocation147_spill] sm:$0xff] %v7997_v38 }
 0x36a   :  { %v7995_v39 = vpop.permute.xlu0 %1818  ;;  %v1415_v16 = vadd.f32 %v1414_v29, %v7902_v36 }
 0x36b   :  { %13293 = vst [vmem:[#allocation146_spill] sm:$0xff] %v7995_v39 }
 0x36c   :  { %v8000_v30 = vpop.permute.xlu2 %1828  ;;  %v1416_v44 = vadd.f32 %v1415_v16, %v7913_v8 }
 0x36d   :  { %13295 = vst [vmem:[#allocation148_spill] sm:$0xff] %v8000_v30 }
 0x36e   :  { %v8002_v48 = vpop.f32.mrf.mxu3  ;;  %v1417_v13 = vadd.f32 %v1416_v44, %v7922_v6 }
 0x36f   :  { %13296 = vst [vmem:[#allocation149_spill] sm:$0xff] %v8002_v48 }
 0x370   :  { %v8008_v57 = vpop.permute.xlu1 %1838  ;;  %v1418_v41 = vadd.f32 %v1417_v13, %v7937_v4 }
 0x371   :  { %13298 = vst [vmem:[#allocation151_spill] sm:$0xff] %v8008_v57 }
 0x372   :  { %v8005_v40 = vpop.permute.xlu0 %1833  ;;  %v1419_v29 = vadd.f32 %v1418_v41, %v7950_v31 }
 0x373   :  { %13297 = vst [vmem:[#allocation150_spill] sm:$0xff] %v8005_v40 }
 0x374   :  { %v8010_v23 = vpop.permute.xlu2 %1843  ;;  %v1420_v16 = vadd.f32 %v1419_v29, %v7960_v35 }
 0x375   :  { %13299 = vst [vmem:[#allocation152_spill] sm:$0xff] %v8010_v23 }
 0x376   :  { %v8013_v18 = vpop.f32.mrf.mxu3  ;;  %v1421_v44 = vadd.f32 %v1420_v16, %v7971_v24 }
 0x377   :  { %13300 = vst [vmem:[#allocation153_spill] sm:$0xff] %v8013_v18 }
 0x378   :  { %v8018_v3 = vpop.permute.xlu1 %1853  ;;  %v1422_v13 = vadd.f32 %v1421_v44, %v7981_v7 }
 0x379   :  { %13302 = vst [vmem:[#allocation155_spill] sm:$0xff] %v8018_v3 }
 0x37a   :  { %v8016_v0 = vpop.permute.xlu0 %1848  ;;  %v1423_v41 = vadd.f32 %v1422_v13, %v7992_v51 }
 0x37b   :  { %13301 = vst [vmem:[#allocation154_spill] sm:$0xff] %v8016_v0 }
 0x37c   :  { %v8021_v36 = vpop.permute.xlu2 %1858  ;;  %v1424_v29 = vadd.f32 %v1423_v41, %v8002_v48 }
 0x37d   :  { %13303 = vst [vmem:[#allocation156_spill] sm:$0xff] %v8021_v36 }
 0x37e   :  { %v8023_v47 = vpop.f32.mrf.mxu3  ;;  %v1425_v16 = vadd.f32 %v1424_v29, %v8013_v18 }
 0x37f   :  { %13304 = vst [vmem:[#allocation157_spill] sm:$0xff] %v8023_v47 }
 0x380   :  { %v8029_v6 = vpop.permute.xlu1 %1868  ;;  %v1426_v44 = vadd.f32 %v1425_v16, %v8023_v47 }
 0x381   :  { %13306 = vst [vmem:[#allocation159_spill] sm:$0xff] %v8029_v6 }
 0x382   :  { %v8026_v8 = vpop.permute.xlu0 %1863 }
 0x383   :  { %13305 = vst [vmem:[#allocation158_spill] sm:$0xff] %v8026_v8 }
 0x384   :  { %v8031_v5 = vpop.permute.xlu2 %1873 }
 0x385   :  { %13307 = vst [vmem:[#allocation160_spill] sm:$0xff] %v8031_v5 }
 0x386   :  { %v8034_v4 = vpop.f32.mrf.mxu3 }
 0x387   :  { %13308 = vst [vmem:[#allocation161_spill] sm:$0xff] %v8034_v4  ;;  %v1427_v13 = vadd.f32 %v1426_v44, %v8034_v4 }
 0x388   :  { %v8039_v53 = vpop.permute.xlu1 %1883 }
 0x389   :  { %13310 = vst [vmem:[#allocation163_spill] sm:$0xff] %v8039_v53 }
 0x38a   :  { %v8037_v31 = vpop.permute.xlu0 %1878 }
 0x38b   :  { %13309 = vst [vmem:[#allocation162_spill] sm:$0xff] %v8037_v31 }
 0x38c   :  { %v8042_v35 = vpop.permute.xlu2 %1888 }
 0x38d   :  { %13311 = vst [vmem:[#allocation164_spill] sm:$0xff] %v8042_v35 }
 0x38e   :  { %v8044_v59 = vpop.f32.mrf.mxu3 }
 0x38f   :  { %13312 = vst [vmem:[#allocation165_spill] sm:$0xff] %v8044_v59  ;;  %v1428_v41 = vadd.f32 %v1427_v13, %v8044_v59 }
 0x390   :  { %v8050_v7 = vpop.permute.xlu1 %1898 }
 0x391   :  { %13314 = vst [vmem:[#allocation167_spill] sm:$0xff] %v8050_v7 }
 0x392   :  { %v8047_v24 = vpop.permute.xlu0 %1893 }
 0x393   :  { %13313 = vst [vmem:[#allocation166_spill] sm:$0xff] %v8047_v24 }
 0x394   :  { %v8052_v11 = vpop.permute.xlu2 %1903 }
 0x395   :  { %13315 = vst [vmem:[#allocation168_spill] sm:$0xff] %v8052_v11 }
 0x396   :  { %v8055_v51 = vpop.f32.mrf.mxu3 }
 0x397   :  { %13316 = vst [vmem:[#allocation169_spill] sm:$0xff] %v8055_v51  ;;  %v1429_v55 = vadd.f32 %v1428_v41, %v8055_v51 }
 0x398   :  { %v1914_v37 = vpop.permute.xlu1 %1913 }
 0x39a   :  { %v8058_v48 = vpop.permute.xlu0 %1908 }
 0x39b   :  { %13317 = vst [vmem:[#allocation170_spill] sm:$0xff] %v8058_v48 }
 0x39c   :  { %v8061_v29 = vpop.permute.xlu2 %1918 }
 0x39d   :  { %13318 = vst [vmem:[#allocation171_spill] sm:$0xff] %v8061_v29 }
 0x39e   :  { %v8063_v18 = vpop.f32.mrf.mxu3 }
 0x39f   :  { %13319 = vst [vmem:[#allocation172_spill] sm:$0xff] %v8063_v18  ;;  %v1430_v16 = vadd.f32 %v1429_v55, %v8063_v18 }
 0x3a0   :  { %v8066_v11 = vpop.permute.xlu1 %1928 }
 0x3a1   :  { %v1431_v1 = vrot.slane %v1430_v16, 4  ;;  %13320 = vst [vmem:[#allocation173_spill] sm:$0xff] %v8066_v11 }
 0x3a2   :  { %v1924_v47 = vpop.permute.xlu0 %1923 }
 0x3a3   :  { %v1432_v4 = vadd.f32 %v1431_v1, %v1430_v16 }
 0x3a4   :  { %v1934_v44 = vpop.permute.xlu2 %1933 }
 0x3a5   :  { %v1433_v7 = vrot.slane %v1432_v4, 2 }
 0x3a7   :  { %v1434_v59 = vadd.f32 %v1433_v7, %v1432_v4 }
 0x3a8   :  { %v1944_v13 = vpop.permute.xlu1 %1943 }
 0x3a9   :  { %v1435_v41 = vrot.slane %v1434_v59, 1 }
 0x3aa   :  { %v8068_v24 = vpop.permute.xlu0 %1938 }
 0x3ab   :  { %13321 = vst [vmem:[#allocation174_spill] sm:$0xff] %v8068_v24  ;;  %v1436_v29 = vadd.f32 %v1435_v41, %v1434_v59 }
 0x3ac   :  { %v8070_v48 = vpop.permute.xlu2 %1948 }
 0x3ad   :  { %13322 = vst [vmem:[#allocation175_spill] sm:$0xff] %v8070_v48  ;;  %v8074_v55 = vmul.f32 0.001953125, %v1436_v29 }
 0x3af   :  { %v1475_v18 = vsub.f32 %v7152_v19, %v8074_v55  ;;  %v1477_v1 = vsub.f32 %v7178_v46, %v8074_v55  ;;  %v1479_v16 = vsub.f32 %v7204_v63, %v8074_v55  ;;  %v1481_v7 = vsub.f32 %v7234_v25, %v8074_v55 }
 0x3b0   :  { %v8072_v35 = vpop.permute.xlu1 %1958  ;;  %v1483_v59 = vsub.f32 %v7264_v58, %v8074_v55  ;;  %v1485_v29 = vsub.f32 %v7294_v22, %v8074_v55 }
 0x3b1   :  { %13323 = vst [vmem:[#allocation176_spill] sm:$0xff] %v8072_v35  ;;  %v1619_v19 = vmul.f32 %v1475_v18, %v1475_v18  ;;  %v1621_v35 = vmul.f32 %v1477_v1, %v1477_v1  ;;  %v1623_v48 = vmul.f32 %v1479_v16, %v1479_v16  ;;  %v1625_v46 = vmul.f32 %v1481_v7, %v1481_v7 }
 0x3b2   :  { %v1954_v51 = vpop.permute.xlu0 %1953  ;;  %v1627_v63 = vmul.f32 %v1483_v59, %v1483_v59  ;;  %v1629_v11 = vmul.f32 %v1485_v29, %v1485_v29  ;;  %v8136_v59 = vsub.f32 %v6884_v15, %v8074_v55  ;;  %v13335_v29 = vld [vmem:[#allocation7_spill] sm:$0xff] }
 0x3b3   :  { %v8094_v31 = vmul.f32 %v1914_v37, %v1619_v19  ;;  %v8096_v25 = vmul.f32 %v1924_v47, %v1621_v35  ;;  %v8100_v58 = vmul.f32 %v1944_v13, %v1625_v46  ;;  %v13328_v37 = vld [vmem:[#allocation5_spill] sm:$0xff]  ;;  %v13330_v47 = vld [vmem:[#allocation6_spill] sm:$0xff]  ;;  %v8140_v19 = vsub.f32 %v13335_v29, %v8074_v55 }
 0x3b4   :  { %v1964_v53 = vpop.permute.xlu2 %1963  ;;  %v8102_v5 = vmul.f32 %v1954_v51, %v1627_v63  ;;  %v8116_v35 = vsub.f32 %v13328_v37, %v8074_v55  ;;  %13334 = vst [vmem:[#allocation183_spill] sm:$0xff] %v8136_v59  ;;  %v1585_v15 = vmul.f32 %v8136_v59, %v8136_v59  ;;  %v8158_v29 = vsub.f32 %v6897_v20, %v8074_v55  ;;  %v13340_v20 = vld [vmem:[#allocation9_spill] sm:$0xff] }
 0x3b5   :  { %v8104_v22 = vmul.f32 %v1964_v53, %v1629_v11  ;;  %v8128_v53 = vsub.f32 %v6881_v14, %v8074_v55 }
 0x3b6   :  { %13329 = vst [vmem:[#allocation5_spill] sm:$0xff] %v8116_v35 }
 0x3b7   :  { %13333 = vst [vmem:[#allocation182_spill] sm:$0xff] %v8128_v53  ;;  %v1584_v46 = vmul.f32 %v8128_v53, %v8128_v53  ;;  %v2449_v53 = vmul.f32 %v7945_v10, %v1585_v15 }
 0x3b8   :  { %v8090_v41 = vpop.permute.xlu1 %1973 }
 0x3ba   :  { %v8084_v4 = vpop.permute.xlu0 %1968 }
 0x3bb   :  { %13324 = vst [vmem:[#allocation177_spill] sm:$0xff] %v8084_v4  ;;  %v8098_v4 = vmul.f32 %v1934_v44, %v1623_v48  ;;  %v8120_v48 = vsub.f32 %v13330_v47, %v8074_v55  ;;  %v1582_v44 = vmul.f32 %v8116_v35, %v8116_v35  ;;  %v13337_v47 = vld [vmem:[#allocation8_spill] sm:$0xff] }
 0x3bc   :  { %v8092_v24 = vpop.permute.xlu2 %1978 }
 0x3bd   :  { %13325 = vst [vmem:[#allocation178_spill] sm:$0xff] %v8092_v24  ;;  %v1583_v13 = vmul.f32 %v8120_v48, %v8120_v48  ;;  %v2446_v14 = vmul.f32 %v7927_v43, %v1582_v44  ;;  %v1586_v44 = vmul.f32 %v8140_v19, %v8140_v19 }
 0x3be   :  { %13331 = vst [vmem:[#allocation6_spill] sm:$0xff] %v8120_v48  ;;  %v8150_v48 = vsub.f32 %v13337_v47, %v8074_v55  ;;  %v8167_v47 = vsub.f32 %v6900_v21, %v8074_v55 }
 0x3bf   :  { %v2447_v63 = vmul.f32 %v7942_v62, %v1583_v13  ;;  %v2448_v13 = vmul.f32 %v7932_v12, %v1584_v46  ;;  %v1588_v46 = vmul.f32 %v8158_v29, %v8158_v29  ;;  %v13341_v12 = vld [vmem:[#allocation10_spill] sm:$0xff] }
 0x3c0   :  { %v8108_v1 = vpop.permute.xlu1 %1988  ;;  %13338 = vst [vmem:[#allocation8_spill] sm:$0xff] %v8150_v48  ;;  %v1587_v59 = vmul.f32 %v8150_v48, %v8150_v48  ;;  %v8181_v21 = vsub.f32 %v13341_v12, %v8074_v55  ;;  %v1589_v48 = vmul.f32 %v8167_v47, %v8167_v47 }
 0x3c1   :  { %13326 = vst [vmem:[#allocation179_spill] sm:$0xff] %v8108_v1  ;;  %v2590_v62 = vadd.f32 %v2447_v63, %v2446_v14  ;;  %v2450_v14 = vmul.f32 %v7935_v50, %v1586_v44  ;;  %v8199_v50 = vsub.f32 %v6916_v27, %v8074_v55  ;;  %v13346_v27 = vld [vmem:[#allocation12_spill] sm:$0xff] }
 0x3c2   :  { %v8106_v18 = vpop.permute.xlu0 %1983  ;;  %v2451_v15 = vmul.f32 %v7947_v49, %v1587_v59  ;;  %v1591_v59 = vmul.f32 %v8181_v21, %v8181_v21  ;;  %v13344_v49 = vld [vmem:[#allocation11_spill] sm:$0xff] }
 0x3c3   :  { %v8208_v10 = vsub.f32 %v13344_v49, %v8074_v55  ;;  %v8222_v49 = vsub.f32 %v6929_v32, %v8074_v55 }
 0x3c4   :  { %v8110_v16 = vpop.permute.xlu2 %1993 }
 0x3c5   :  { %13345 = vst [vmem:[#allocation11_spill] sm:$0xff] %v8208_v10 }
 0x3c6   :  { %13348 = vst [vmem:[#allocation185_spill] sm:$0xff] %v8222_v49 }
 0x3c8   :  { %v8122_v51 = vpop.permute.xlu1 %2003 }
 0x3ca   :  { %v8112_v7 = vpop.permute.xlu0 %1998 }
 0x3cb   :  { %13327 = vst [vmem:[#allocation180_spill] sm:$0xff] %v8112_v7 }
 0x3cc   :  { %v8124_v11 = vpop.permute.xlu2 %2008 }
 0x3cd   :  { %13332 = vst [vmem:[#allocation181_spill] sm:$0xff] %v8124_v11 }
 0x3d0   :  { %v8154_v35 = vpop.permute.xlu1 %2018 }
 0x3d1   :  { %13339 = vst [vmem:[#allocation184_spill] sm:$0xff] %v8154_v35  ;;  %v2591_v35 = vadd.f32 %v2590_v62, %v2448_v13 }
 0x3d2   :  { %v8146_v37 = vpop.permute.xlu0 %2013 }
 0x3d3   :  { %13336 = vst [vmem:[#allocation7_spill] sm:$0xff] %v8146_v37  ;;  %v8174_v37 = vsub.f32 %v13340_v20, %v8074_v55  ;;  %v2592_v63 = vadd.f32 %v2591_v35, %v2449_v53  ;;  %v8190_v20 = vsub.f32 %v6913_v26, %v8074_v55  ;;  %v2452_v35 = vmul.f32 %v7953_v34, %v1588_v46 }
 0x3d4   :  { %v8163_v43 = vpop.permute.xlu2 %2023  ;;  %v8215_v34 = vsub.f32 %v13346_v27, %v8074_v55  ;;  %v8231_v27 = vsub.f32 %v6932_v33, %v8074_v55 }
 0x3d5   :  { %v2593_v62 = vadd.f32 %v2592_v63, %v2450_v14  ;;  %v1590_v44 = vmul.f32 %v8174_v37, %v8174_v37  ;;  %v2453_v14 = vmul.f32 %v7955_v42, %v1589_v48  ;;  %v1592_v46 = vmul.f32 %v8190_v20, %v8190_v20 }
 0x3d6   :  { %13347 = vst [vmem:[#allocation12_spill] sm:$0xff] %v8215_v34  ;;  %v1593_v48 = vmul.f32 %v8199_v50, %v8199_v50  ;;  %v1594_v42 = vmul.f32 %v8208_v10, %v8208_v10 }
 0x3d7   :  { %v2594_v53 = vadd.f32 %v2593_v62, %v2451_v15  ;;  %v2454_v15 = vmul.f32 %v7958_v45, %v1590_v44  ;;  %v2456_v44 = vmul.f32 %v7966_v54, %v1592_v46  ;;  %13349 = vst [vmem:[#allocation186_spill] sm:$0xff] %v8231_v27  ;;  %v1596_v46 = vmul.f32 %v8222_v49, %v8222_v49  ;;  %v13353_v54 = vld [vmem:[#allocation14_spill] sm:$0xff] }
 0x3d8   :  { %v8195_v12 = vpop.permute.xlu1 %2033 }
 0x3d9   :  { %v2595_v63 = vadd.f32 %v2594_v53, %v2452_v35  ;;  %v2455_v35 = vmul.f32 %v7963_v52, %v1591_v59  ;;  %v1595_v59 = vmul.f32 %v8215_v34, %v8215_v34  ;;  %v13351_v52 = vld [vmem:[#allocation13_spill] sm:$0xff]  ;;  %v8249_v34 = vsub.f32 %v13353_v54, %v8074_v55 }
 0x3da   :  { %v8186_v13 = vpop.permute.xlu0 %2028  ;;  %v8240_v45 = vsub.f32 %v13351_v52, %v8074_v55  ;;  %v13355_v52 = vld [vmem:[#allocation15_spill] sm:$0xff] }
 0x3db   :  { %13342 = vst [vmem:[#allocation9_spill] sm:$0xff] %v8186_v13  ;;  %v2596_v62 = vadd.f32 %v2595_v63, %v2453_v14 }
 0x3dc   :  { %v8204_v26 = vpop.permute.xlu2 %2038  ;;  %13352 = vst [vmem:[#allocation13_spill] sm:$0xff] %v8240_v45 }
 0x3dd   :  { %13343 = vst [vmem:[#allocation10_spill] sm:$0xff] %v8204_v26  ;;  %v2597_v53 = vadd.f32 %v2596_v62, %v2454_v15  ;;  %v2457_v15 = vmul.f32 %v7968_v17, %v1593_v48  ;;  %v1597_v48 = vmul.f32 %v8231_v27, %v8231_v27  ;;  %v8256_v17 = vsub.f32 %v13355_v52, %v8074_v55  ;;  %v13360_v52 = vld [vmem:[#allocation17_spill] sm:$0xff] }
 0x3de   :  { %13354 = vst [vmem:[#allocation14_spill] sm:$0xff] %v8249_v34  ;;  %v1599_v27 = vmul.f32 %v8249_v34, %v8249_v34 }
 0x3df   :  { %v2598_v14 = vadd.f32 %v2597_v53, %v2455_v35  ;;  %v2458_v35 = vmul.f32 %v7974_v60, %v1594_v42  ;;  %13356 = vst [vmem:[#allocation15_spill] sm:$0xff] %v8256_v17  ;;  %v1598_v42 = vmul.f32 %v8240_v45, %v8240_v45  ;;  %v13357_v60 = vld [vmem:[#allocation16_spill] sm:$0xff] }
 0x3e0   :  { %v8236_v32 = vpop.permute.xlu1 %2048  ;;  %v8263_v54 = vsub.f32 %v13357_v60, %v8074_v55 }
 0x3e1   :  { %v2599_v62 = vadd.f32 %v2598_v14, %v2456_v44  ;;  %13350 = vst [vmem:[#allocation187_spill] sm:$0xff] %v8236_v32  ;;  %v2459_v44 = vmul.f32 %v7976_v9, %v1595_v59  ;;  %v2461_v59 = vmul.f32 %v7984_v28, %v1597_v48  ;;  %v8272_v9 = vsub.f32 %v13360_v52, %v8074_v55  ;;  %v13365_v28 = vld [vmem:[#allocation19_spill] sm:$0xff] }
 0x3e2   :  { %v8227_v63 = vpop.permute.xlu0 %2043  ;;  %13358 = vst [vmem:[#allocation16_spill] sm:$0xff] %v8263_v54  ;;  %v1601_v48 = vmul.f32 %v8263_v54, %v8263_v54 }
 0x3e3   :  { %v2600_v53 = vadd.f32 %v2599_v62, %v2457_v15  ;;  %v2460_v15 = vmul.f32 %v7979_v2, %v1596_v46  ;;  %13361 = vst [vmem:[#allocation17_spill] sm:$0xff] %v8272_v9  ;;  %v1600_v46 = vmul.f32 %v8256_v17, %v8256_v17  ;;  %v13362_v2 = vld [vmem:[#allocation18_spill] sm:$0xff]  ;;  %v8290_v17 = vsub.f32 %v13365_v28, %v8074_v55 }
 0x3e4   :  { %v8245_v33 = vpop.permute.xlu2 %2053  ;;  %v8281_v34 = vsub.f32 %v13362_v2, %v8074_v55  ;;  %v13367_v2 = vld [vmem:[#allocation20_spill] sm:$0xff] }
 0x3e5   :  { %v2601_v14 = vadd.f32 %v2600_v53, %v2458_v35  ;;  %13366 = vst [vmem:[#allocation19_spill] sm:$0xff] %v8290_v17 }
 0x3e6   :  { %13363 = vst [vmem:[#allocation18_spill] sm:$0xff] %v8281_v34 }
 0x3e7   :  { %v2602_v62 = vadd.f32 %v2601_v14, %v2459_v44  ;;  %v2462_v44 = vmul.f32 %v7987_v61, %v1598_v42  ;;  %v1602_v42 = vmul.f32 %v8272_v9, %v8272_v9  ;;  %v8297_v61 = vsub.f32 %v13367_v2, %v8074_v55  ;;  %v13371_v2 = vld [vmem:[#allocation22_spill] sm:$0xff] }
 0x3e8   :  { %v8277_v60 = vpop.permute.xlu1 %2063  ;;  %v1604_v9 = vmul.f32 %v8290_v17, %v8290_v17 }
 0x3e9   :  { %v2603_v35 = vadd.f32 %v2602_v62, %v2460_v15  ;;  %v2463_v15 = vmul.f32 %v7989_v56, %v1599_v27  ;;  %13368 = vst [vmem:[#allocation20_spill] sm:$0xff] %v8297_v61  ;;  %v1603_v27 = vmul.f32 %v8281_v34, %v8281_v34  ;;  %v13369_v56 = vld [vmem:[#allocation21_spill] sm:$0xff]  ;;  %v13409_v34 = vld [vmem:[#allocation167_spill] sm:$0xff] }
 0x3ea   :  { %v8268_v53 = vpop.permute.xlu0 %2058  ;;  %v8304_v28 = vsub.f32 %v13369_v56, %v8074_v55 }
 0x3eb   :  { %13359 = vst [vmem:[#allocation188_spill] sm:$0xff] %v8268_v53  ;;  %v2604_v14 = vadd.f32 %v2603_v35, %v2461_v59  ;;  %v2464_v59 = vmul.f32 %v7995_v39, %v1600_v46  ;;  %v2466_v46 = vmul.f32 %v8000_v30, %v1602_v42  ;;  %v8313_v39 = vsub.f32 %v13371_v2, %v8074_v55  ;;  %v13376_v30 = vld [vmem:[#allocation24_spill] sm:$0xff] }
 0x3ec   :  { %v8286_v52 = vpop.permute.xlu2 %2068  ;;  %13370 = vst [vmem:[#allocation21_spill] sm:$0xff] %v8304_v28  ;;  %v1606_v42 = vmul.f32 %v8304_v28, %v8304_v28  ;;  %v13406_v28 = vld [vmem:[#allocation166_spill] sm:$0xff] }
 0x3ed   :  { %v2605_v62 = vadd.f32 %v2604_v14, %v2462_v44  ;;  %13364 = vst [vmem:[#allocation189_spill] sm:$0xff] %v8286_v52  ;;  %v2465_v44 = vmul.f32 %v7997_v38, %v1601_v48  ;;  %v1605_v48 = vmul.f32 %v8297_v61, %v8297_v61  ;;  %v13374_v38 = vld [vmem:[#allocation23_spill] sm:$0xff]  ;;  %v8331_v61 = vsub.f32 %v13376_v30, %v8074_v55 }
 0x3ee   :  { %13372 = vst [vmem:[#allocation22_spill] sm:$0xff] %v8313_v39  ;;  %v8322_v17 = vsub.f32 %v13374_v38, %v8074_v55  ;;  %v13378_v38 = vld [vmem:[#allocation25_spill] sm:$0xff] }
 0x3ef   :  { %v2606_v35 = vadd.f32 %v2605_v62, %v2463_v15  ;;  %13377 = vst [vmem:[#allocation24_spill] sm:$0xff] %v8331_v61 }
 0x3f0   :  { %v8318_v56 = vpop.permute.xlu1 %2078  ;;  %13375 = vst [vmem:[#allocation23_spill] sm:$0xff] %v8322_v17 }
 0x3f1   :  { %v2607_v14 = vadd.f32 %v2606_v35, %v2464_v59  ;;  %v2467_v59 = vmul.f32 %v8005_v40, %v1603_v27  ;;  %13373 = vst [vmem:[#allocation190_spill] sm:$0xff] %v8318_v56  ;;  %v1607_v27 = vmul.f32 %v8313_v39, %v8313_v39  ;;  %v8338_v40 = vsub.f32 %v13378_v38, %v8074_v55  ;;  %v13383_v38 = vld [vmem:[#allocation27_spill] sm:$0xff] }
 0x3f2   :  { %v8309_v62 = vpop.permute.xlu0 %2073  ;;  %v1609_v39 = vmul.f32 %v8331_v61, %v8331_v61 }
 0x3f3   :  { %v2608_v15 = vadd.f32 %v2607_v14, %v2465_v44  ;;  %v2468_v44 = vmul.f32 %v8008_v57, %v1604_v9  ;;  %13379 = vst [vmem:[#allocation25_spill] sm:$0xff] %v8338_v40  ;;  %v1608_v9 = vmul.f32 %v8322_v17, %v8322_v17  ;;  %v13380_v57 = vld [vmem:[#allocation26_spill] sm:$0xff] }
 0x3f4   :  { %v8327_v2 = vpop.permute.xlu2 %2083  ;;  %v8345_v30 = vsub.f32 %v13380_v57, %v8074_v55  ;;  %v13396_v17 = vld [vmem:[#allocation162_spill] sm:$0xff] }
 0x3f5   :  { %v2609_v35 = vadd.f32 %v2608_v15, %v2466_v46  ;;  %v2469_v46 = vmul.f32 %v8010_v23, %v1605_v48  ;;  %v2471_v48 = vmul.f32 %v8018_v3, %v1607_v27  ;;  %v8354_v23 = vsub.f32 %v13383_v38, %v8074_v55  ;;  %v13389_v3 = vld [vmem:[#allocation29_spill] sm:$0xff] }
 0x3f6   :  { %13381 = vst [vmem:[#allocation26_spill] sm:$0xff] %v8345_v30  ;;  %v1611_v27 = vmul.f32 %v8345_v30, %v8345_v30  ;;  %v13394_v30 = vld [vmem:[#allocation31_spill] sm:$0xff] }
 0x3f7   :  { %v2610_v14 = vadd.f32 %v2609_v35, %v2467_v59  ;;  %v2470_v59 = vmul.f32 %v8016_v0, %v1606_v42  ;;  %13384 = vst [vmem:[#allocation27_spill] sm:$0xff] %v8354_v23  ;;  %v1610_v42 = vmul.f32 %v8338_v40, %v8338_v40  ;;  %v13386_v0 = vld [vmem:[#allocation28_spill] sm:$0xff]  ;;  %v8372_v40 = vsub.f32 %v13389_v3, %v8074_v55 }
 0x3f8   :  { %v8359_v57 = vpop.permute.xlu1 %2093  ;;  %v8363_v61 = vsub.f32 %v13386_v0, %v8074_v55  ;;  %v13391_v0 = vld [vmem:[#allocation30_spill] sm:$0xff]  ;;  %v8386_v3 = vsub.f32 %v13394_v30, %v8074_v55 }
 0x3f9   :  { %v2611_v15 = vadd.f32 %v2610_v14, %v2468_v44  ;;  %13385 = vst [vmem:[#allocation192_spill] sm:$0xff] %v8359_v57 }
 0x3fa   :  { %v8350_v14 = vpop.permute.xlu0 %2088  ;;  %13387 = vst [vmem:[#allocation28_spill] sm:$0xff] %v8363_v61 }
 0x3fb   :  { %v2612_v35 = vadd.f32 %v2611_v15, %v2469_v46  ;;  %13382 = vst [vmem:[#allocation191_spill] sm:$0xff] %v8350_v14  ;;  %v2472_v46 = vmul.f32 %v8021_v36, %v1608_v9  ;;  %v1612_v9 = vmul.f32 %v8354_v23, %v8354_v23  ;;  %v8379_v36 = vsub.f32 %v13391_v0, %v8074_v55  ;;  %v13398_v0 = vld [vmem:[#allocation32_spill] sm:$0xff] }
 0x3fc   :  { %v8368_v38 = vpop.permute.xlu2 %2098  ;;  %13390 = vst [vmem:[#allocation29_spill] sm:$0xff] %v8372_v40  ;;  %v1614_v23 = vmul.f32 %v8372_v40, %v8372_v40 }
 0x3fd   :  { %v2613_v44 = vadd.f32 %v2612_v35, %v2470_v59  ;;  %v2473_v59 = vmul.f32 %v8026_v8, %v1609_v39  ;;  %13388 = vst [vmem:[#allocation193_spill] sm:$0xff] %v8368_v38  ;;  %v1613_v39 = vmul.f32 %v8363_v61, %v8363_v61  ;;  %v13402_v61 = vld [vmem:[#allocation33_spill] sm:$0xff] }
 0x3fe   :  { %13392 = vst [vmem:[#allocation30_spill] sm:$0xff] %v8379_v36  ;;  %v8404_v40 = vsub.f32 %v13402_v61, %v8074_v55 }
 0x3ff   :  { %v2614_v15 = vadd.f32 %v2613_v44, %v2471_v48  ;;  %v2474_v48 = vmul.f32 %v8029_v6, %v1610_v42  ;;  %13395 = vst [vmem:[#allocation31_spill] sm:$0xff] %v8386_v3  ;;  %v2476_v42 = vmul.f32 %v13396_v17, %v1612_v9  ;;  %v8395_v6 = vsub.f32 %v13398_v0, %v8074_v55  ;;  %v13404_v9 = vld [vmem:[#allocation164_spill] sm:$0xff] }
 0x400   :  { %v8400_v30 = vpop.permute.xlu1 %2108  ;;  %13403 = vst [vmem:[#allocation33_spill] sm:$0xff] %v8404_v40  ;;  %v1618_v61 = vmul.f32 %v8404_v40, %v8404_v40 }
 0x401   :  { %v2615_v35 = vadd.f32 %v2614_v15, %v2472_v46  ;;  %v13393_v46 = vld [vmem:[#allocation160_spill] sm:$0xff]  ;;  %13399 = vst [vmem:[#allocation32_spill] sm:$0xff] %v8395_v6 }
 0x402   :  { %v2475_v15 = vmul.f32 %v13393_v46, %v1611_v27  ;;  %v1615_v27 = vmul.f32 %v8379_v36, %v8379_v36  ;;  %13401 = vst [vmem:[#allocation195_spill] sm:$0xff] %v8400_v30  ;;  %v1617_v36 = vmul.f32 %v8395_v6, %v8395_v6  ;;  %v13412_v6 = vld [vmem:[#allocation35_spill] sm:$0xff] }
 0x403   :  { %v2616_v44 = vadd.f32 %v2615_v35, %v2473_v59  ;;  %v8391_v35 = vpop.permute.xlu0 %2103  ;;  %v8426_v45 = vsub.f32 %v13412_v6, %v8074_v55  ;;  %v13419_v6 = vld [vmem:[#allocation171_spill] sm:$0xff] }
 0x404   :  { %13397 = vst [vmem:[#allocation194_spill] sm:$0xff] %v8391_v35  ;;  %v8409_v0 = vpop.permute.xlu2 %2113 }
 0x405   :  { %v2617_v8 = vadd.f32 %v2616_v44, %v2474_v48  ;;  %v13400_v48 = vld [vmem:[#allocation163_spill] sm:$0xff]  ;;  %13405 = vst [vmem:[#allocation196_spill] sm:$0xff] %v8409_v0 }
 0x406   :  { %v2477_v44 = vmul.f32 %v13400_v48, %v1613_v39  ;;  %v2479_v39 = vmul.f32 %v13406_v28, %v1615_v27  ;;  %13413 = vst [vmem:[#allocation35_spill] sm:$0xff] %v8426_v45  ;;  %v13414_v27 = vld [vmem:[#allocation170_spill] sm:$0xff] }
 0x407   :  { %v2618_v59 = vadd.f32 %v2617_v8, %v2475_v15  ;;  %v1616_v8 = vmul.f32 %v8386_v3, %v8386_v3  ;;  %v2478_v15 = vmul.f32 %v13404_v9, %v1614_v23  ;;  %v13410_v23 = vld [vmem:[#allocation168_spill] sm:$0xff] }
 0x408   :  { %v8431_v28 = vpop.permute.xlu1 %2123 }
 0x409   :  { %v2619_v46 = vadd.f32 %v2618_v59, %v2476_v42  ;;  %v13407_v59 = vld [vmem:[#allocation34_spill] sm:$0xff]  ;;  %v2480_v3 = vmul.f32 %v13409_v34, %v1616_v8  ;;  %13415 = vst [vmem:[#allocation198_spill] sm:$0xff] %v8431_v28 }
 0x40a   :  { %v8416_v48 = vsub.f32 %v13407_v59, %v8074_v55 }
 0x40b   :  { %v2620_v17 = vadd.f32 %v2619_v46, %v2477_v44  ;;  %v2481_v46 = vmul.f32 %v13410_v23, %v1617_v36  ;;  %v8422_v9 = vpop.permute.xlu0 %2118  ;;  %v13417_v36 = vld [vmem:[#allocation36_spill] sm:$0xff] }
 0x40c   :  { %13408 = vst [vmem:[#allocation34_spill] sm:$0xff] %v8416_v48  ;;  %v8433_v8 = vpop.permute.xlu2 %2128 }
 0x40d   :  { %v2621_v42 = vadd.f32 %v2620_v17, %v2478_v15  ;;  %13411 = vst [vmem:[#allocation197_spill] sm:$0xff] %v8422_v9  ;;  %v1620_v17 = vmul.f32 %v8416_v48, %v8416_v48  ;;  %v2482_v15 = vmul.f32 %v13414_v27, %v1618_v61  ;;  %v13420_v61 = vld [vmem:[#allocation37_spill] sm:$0xff] }
 0x40e   :  { %13416 = vst [vmem:[#allocation199_spill] sm:$0xff] %v8433_v8  ;;  %v13441_v48 = vld [vmem:[#allocation177_spill] sm:$0xff] }
 0x40f   :  { %v2622_v54 = vadd.f32 %v2621_v42, %v2479_v39  ;;  %v2484_v39 = vmul.f32 %v13419_v6, %v1620_v17  ;;  %v13425_v17 = vld [vmem:[#allocation38_spill] sm:$0xff] }
 0x411   :  { %v2623_v44 = vadd.f32 %v2622_v54, %v2480_v3  ;;  %v8437_v54 = vsub.f32 %v13417_v36, %v8074_v55  ;;  %v1622_v3 = vmul.f32 %v8426_v45, %v8426_v45  ;;  %v8453_v45 = vpop.permute.xlu1 %2138 }
 0x412   :  { %13424 = vst [vmem:[#allocation201_spill] sm:$0xff] %v8453_v45 }
 0x413   :  { %v2624_v59 = vadd.f32 %v2623_v44, %v2481_v46  ;;  %13418 = vst [vmem:[#allocation36_spill] sm:$0xff] %v8437_v54  ;;  %v8445_v46 = vsub.f32 %v13420_v61, %v8074_v55  ;;  %v1624_v44 = vmul.f32 %v8437_v54, %v8437_v54  ;;  %v8451_v27 = vpop.permute.xlu0 %2133 }
 0x414   :  { %13423 = vst [vmem:[#allocation200_spill] sm:$0xff] %v8451_v27  ;;  %v8463_v6 = vpop.permute.xlu2 %2143 }
 0x415   :  { %v2625_v40 = vadd.f32 %v2624_v59, %v2482_v15  ;;  %13421 = vst [vmem:[#allocation37_spill] sm:$0xff] %v8445_v46  ;;  %v13422_v15 = vld [vmem:[#allocation173_spill] sm:$0xff] }
 0x416   :  { %v2486_v59 = vmul.f32 %v13422_v15, %v1622_v3  ;;  %13428 = vst [vmem:[#allocation202_spill] sm:$0xff] %v8463_v6 }
 0x417   :  { %v2626_v42 = vadd.f32 %v2625_v40, %v8094_v31  ;;  %v8457_v40 = vsub.f32 %v13425_v17, %v8074_v55  ;;  %v1626_v31 = vmul.f32 %v8445_v46, %v8445_v46  ;;  %v13432_v46 = vld [vmem:[#allocation40_spill] sm:$0xff] }
 0x418   :  { %v1487_v54 = vsub.f32 %v13432_v46, %v8074_v55 }
 0x419   :  { %v2627_v23 = vadd.f32 %v2626_v42, %v2484_v39  ;;  %13426 = vst [vmem:[#allocation38_spill] sm:$0xff] %v8457_v40  ;;  %v13427_v39 = vld [vmem:[#allocation174_spill] sm:$0xff] }
 0x41a   :  { %v2488_v42 = vmul.f32 %v13427_v39, %v1624_v44  ;;  %v1631_v46 = vmul.f32 %v1487_v54, %v1487_v54 }
 0x41b   :  { %v2628_v36 = vadd.f32 %v2627_v23, %v8096_v25  ;;  %v13429_v25 = vld [vmem:[#allocation39_spill] sm:$0xff]  ;;  %v8475_v39 = vpop.permute.xlu0 %2148 }
 0x41c   :  { %v8467_v23 = vsub.f32 %v13429_v25, %v8074_v55  ;;  %13433 = vst [vmem:[#allocation40_spill] sm:$0xff] %v8475_v39  ;;  %v2495_v54 = vmul.f32 %v8090_v41, %v1631_v46 }
 0x41d   :  { %v2629_v34 = vadd.f32 %v2628_v36, %v2486_v59  ;;  %v1628_v59 = vmul.f32 %v8457_v40, %v8457_v40  ;;  %v13431_v36 = vld [vmem:[#allocation175_spill] sm:$0xff] }
 0x41e   :  { %13430 = vst [vmem:[#allocation39_spill] sm:$0xff] %v8467_v23  ;;  %v2490_v17 = vmul.f32 %v13431_v36, %v1626_v31  ;;  %v8485_v31 = vpop.permute.xlu1 %2153  ;;  %v13440_v36 = vld [vmem:[#allocation43_spill] sm:$0xff] }
 0x41f   :  { %v2630_v61 = vadd.f32 %v2629_v34, %v8098_v4  ;;  %v13434_v34 = vld [vmem:[#allocation41_spill] sm:$0xff]  ;;  %13437 = vst [vmem:[#allocation203_spill] sm:$0xff] %v8485_v31 }
 0x420   :  { %v8479_v4 = vsub.f32 %v13434_v34, %v8074_v55  ;;  %v8493_v34 = vsub.f32 %v13440_v36, %v8074_v55 }
 0x421   :  { %v2631_v3 = vadd.f32 %v2630_v61, %v2488_v42  ;;  %v1630_v42 = vmul.f32 %v8467_v23, %v8467_v23  ;;  %v13436_v61 = vld [vmem:[#allocation176_spill] sm:$0xff] }
 0x422   :  { %13435 = vst [vmem:[#allocation41_spill] sm:$0xff] %v8479_v4  ;;  %v2492_v25 = vmul.f32 %v13436_v61, %v1628_v59  ;;  %v1632_v23 = vmul.f32 %v8479_v4, %v8479_v4  ;;  %v1634_v36 = vmul.f32 %v8493_v34, %v8493_v34 }
 0x423   :  { %v2632_v15 = vadd.f32 %v2631_v3, %v8100_v58  ;;  %v13438_v58 = vld [vmem:[#allocation42_spill] sm:$0xff]  ;;  %v2494_v59 = vmul.f32 %v13441_v48, %v1630_v42  ;;  %v8509_v42 = vpop.permute.xlu0 %2163 }
 0x424   :  { %v1489_v3 = vsub.f32 %v13438_v58, %v8074_v55  ;;  %v2496_v4 = vmul.f32 %v8092_v24, %v1632_v23  ;;  %v2498_v23 = vmul.f32 %v8108_v1, %v1634_v36 }
 0x425   :  { %v2633_v44 = vadd.f32 %v2632_v15, %v2490_v17  ;;  %v8489_v17 = vpop.permute.xlu2 %2158 }
 0x426   :  { %13439 = vst [vmem:[#allocation42_spill] sm:$0xff] %v8489_v17  ;;  %v1633_v49 = vmul.f32 %v1489_v3, %v1489_v3  ;;  %v8514_v46 = vpop.permute.xlu1 %2168 }
 0x427   :  { %v2634_v40 = vadd.f32 %v2633_v44, %v8102_v5  ;;  %v13442_v44 = vld [vmem:[#allocation44_spill] sm:$0xff] }
 0x428   :  { %v1491_v61 = vsub.f32 %v13442_v44, %v8074_v55  ;;  %13445 = vst [vmem:[#allocation44_spill] sm:$0xff] %v8509_v42  ;;  %v2497_v3 = vmul.f32 %v8106_v18, %v1633_v49  ;;  %v13450_v49 = vld [vmem:[#allocation49_spill] sm:$0xff] }
 0x429   :  { %v2635_v15 = vadd.f32 %v2634_v40, %v2492_v25  ;;  %v13443_v25 = vld [vmem:[#allocation45_spill] sm:$0xff] }
 0x42a   :  { %v8504_v58 = vsub.f32 %v13443_v25, %v8074_v55  ;;  %v1635_v44 = vmul.f32 %v1491_v61, %v1491_v61 }
 0x42b   :  { %v2636_v5 = vadd.f32 %v2635_v15, %v8104_v22  ;;  %v13446_v22 = vld [vmem:[#allocation46_spill] sm:$0xff] }
 0x42c   :  { %13444 = vst [vmem:[#allocation43_spill] sm:$0xff] %v8504_v58  ;;  %v1493_v15 = vsub.f32 %v13446_v22, %v8074_v55  ;;  %v1636_v25 = vmul.f32 %v8504_v58, %v8504_v58  ;;  %v13449_v22 = vld [vmem:[#allocation48_spill] sm:$0xff]  ;;  %v8538_v58 = vpop.permute.xlu0 %2178 }
 0x42d   :  { %v2637_v40 = vadd.f32 %v2636_v5, %v2494_v59  ;;  %v13447_v59 = vld [vmem:[#allocation47_spill] sm:$0xff]  ;;  %v1495_v61 = vsub.f32 %v13449_v22, %v8074_v55 }
 0x42e   :  { %v8518_v5 = vsub.f32 %v13447_v59, %v8074_v55  ;;  %v1637_v24 = vmul.f32 %v1493_v15, %v1493_v15  ;;  %v2500_v48 = vmul.f32 %v8112_v7, %v1636_v25  ;;  %13453 = vst [vmem:[#allocation47_spill] sm:$0xff] %v8538_v58 }
 0x42f   :  { %v2638_v10 = vadd.f32 %v2637_v40, %v2495_v54  ;;  %v8523_v40 = vpop.permute.xlu2 %2173  ;;  %v1639_v1 = vmul.f32 %v1495_v61, %v1495_v61 }
 0x430   :  { %13448 = vst [vmem:[#allocation45_spill] sm:$0xff] %v8518_v5  ;;  %v1638_v59 = vmul.f32 %v8518_v5, %v8518_v5  ;;  %v2501_v22 = vmul.f32 %v8122_v51, %v1637_v24  ;;  %v13458_v24 = vld [vmem:[#allocation7_spill] sm:$0xff] }
 0x431   :  { %v2639_v41 = vadd.f32 %v2638_v10, %v2496_v4  ;;  %v2499_v10 = vmul.f32 %v8110_v16, %v1635_v44  ;;  %v8530_v4 = vsub.f32 %v13450_v49, %v8074_v55  ;;  %v13454_v16 = vld [vmem:[#allocation51_spill] sm:$0xff]  ;;  %v2503_v51 = vmul.f32 %v13458_v24, %v1639_v1 }
 0x432   :  { %v8542_v44 = vsub.f32 %v13454_v16, %v8074_v55 }
 0x433   :  { %v2640_v54 = vadd.f32 %v2639_v41, %v2497_v3  ;;  %13451 = vst [vmem:[#allocation46_spill] sm:$0xff] %v8530_v4  ;;  %v13452_v3 = vld [vmem:[#allocation50_spill] sm:$0xff] }
 0x434   :  { %v1497_v41 = vsub.f32 %v13452_v3, %v8074_v55  ;;  %13455 = vst [vmem:[#allocation48_spill] sm:$0xff] %v8542_v44  ;;  %v13460_v3 = vld [vmem:[#allocation53_spill] sm:$0xff]  ;;  %v1642_v7 = vmul.f32 %v8542_v44, %v8542_v44  ;;  %v8571_v5 = vpop.permute.xlu0 %2193 }
 0x435   :  { %v2641_v18 = vadd.f32 %v2640_v54, %v2498_v23  ;;  %v1640_v23 = vmul.f32 %v8530_v4, %v8530_v4  ;;  %v2502_v54 = vmul.f32 %v8124_v11, %v1638_v59  ;;  %v8556_v16 = vsub.f32 %v13460_v3, %v8074_v55  ;;  %v13461_v59 = vld [vmem:[#allocation184_spill] sm:$0xff]  ;;  %v13462_v11 = vld [vmem:[#allocation55_spill] sm:$0xff]  ;;  %13464 = vst [vmem:[#allocation51_spill] sm:$0xff] %v8571_v5 }
 0x436   :  { %v1641_v49 = vmul.f32 %v1497_v41, %v1497_v41  ;;  %v1501_v4 = vsub.f32 %v13462_v11, %v8074_v55  ;;  %v2506_v3 = vmul.f32 %v8186_v13, %v1642_v7 }
 0x437   :  { %v2642_v36 = vadd.f32 %v2641_v18, %v2499_v10  ;;  %v8547_v10 = vpop.permute.xlu1 %2183  ;;  %v13457_v18 = vld [vmem:[#allocation52_spill] sm:$0xff]  ;;  %v1644_v24 = vmul.f32 %v8556_v16, %v8556_v16 }
 0x438   :  { %13456 = vst [vmem:[#allocation49_spill] sm:$0xff] %v8547_v10  ;;  %v1499_v61 = vsub.f32 %v13457_v18, %v8074_v55  ;;  %v2505_v41 = vmul.f32 %v8163_v43, %v1641_v49  ;;  %v1645_v11 = vmul.f32 %v1501_v4, %v1501_v4 }
 0x439   :  { %v2643_v15 = vadd.f32 %v2642_v36, %v2500_v48  ;;  %v8552_v36 = vpop.permute.xlu2 %2188  ;;  %v2508_v7 = vmul.f32 %v8204_v26, %v1644_v24 }
 0x43a   :  { %13459 = vst [vmem:[#allocation50_spill] sm:$0xff] %v8552_v36  ;;  %v1643_v18 = vmul.f32 %v1499_v61, %v1499_v61 }
 0x43b   :  { %v2644_v25 = vadd.f32 %v2643_v15, %v2501_v22  ;;  %v2504_v22 = vmul.f32 %v13461_v59, %v1640_v23  ;;  %v13465_v23 = vld [vmem:[#allocation59_spill] sm:$0xff] }
 0x43c   :  { %v2507_v61 = vmul.f32 %v8195_v12, %v1643_v18  ;;  %v2509_v12 = vmul.f32 %v8227_v63, %v1645_v11  ;;  %v13470_v18 = vld [vmem:[#allocation66_spill] sm:$0xff]  ;;  %v8600_v59 = vpop.permute.xlu0 %2208  ;;  %v13473_v63 = vld [vmem:[#allocation71_spill] sm:$0xff] }
 0x43d   :  { %v2645_v48 = vadd.f32 %v2644_v25, %v2502_v54  ;;  %v13463_v54 = vld [vmem:[#allocation57_spill] sm:$0xff]  ;;  %13472 = vst [vmem:[#allocation53_spill] sm:$0xff] %v8600_v59  ;;  %v8604_v11 = vsub.f32 %v13473_v63, %v8074_v55 }
 0x43e   :  { %v8566_v25 = vsub.f32 %v13463_v54, %v8074_v55  ;;  %v13469_v54 = vld [vmem:[#allocation63_spill] sm:$0xff] }
 0x43f   :  { %v2646_v15 = vadd.f32 %v2645_v48, %v2503_v51  ;;  %v1503_v51 = vsub.f32 %v13465_v23, %v8074_v55  ;;  %v8576_v49 = vpop.permute.xlu1 %2198  ;;  %v13467_v48 = vld [vmem:[#allocation60_spill] sm:$0xff]  ;;  %v1505_v4 = vsub.f32 %v13469_v54, %v8074_v55  ;;  %v1652_v63 = vmul.f32 %v8604_v11, %v8604_v11 }
 0x440   :  { %13466 = vst [vmem:[#allocation52_spill] sm:$0xff] %v8576_v49 }
 0x441   :  { %v2647_v1 = vadd.f32 %v2646_v15, %v2504_v22  ;;  %v8580_v22 = vsub.f32 %v13467_v48, %v8074_v55  ;;  %v1646_v15 = vmul.f32 %v8566_v25, %v8566_v25  ;;  %v1647_v23 = vmul.f32 %v1503_v51, %v1503_v51 }
 0x442   :  { %v1649_v26 = vmul.f32 %v1505_v4, %v1505_v4 }
 0x443   :  { %v2648_v44 = vadd.f32 %v2647_v1, %v2505_v41  ;;  %v8585_v1 = vpop.permute.xlu2 %2203  ;;  %v1648_v48 = vmul.f32 %v8580_v22, %v8580_v22  ;;  %v2510_v13 = vmul.f32 %v8236_v32, %v1646_v15  ;;  %v2511_v54 = vmul.f32 %v8245_v33, %v1647_v23 }
 0x444   :  { %13468 = vst [vmem:[#allocation7_spill] sm:$0xff] %v8585_v1 }
 0x445   :  { %v2649_v43 = vadd.f32 %v2648_v44, %v2506_v3  ;;  %v8592_v3 = vsub.f32 %v13470_v18, %v8074_v55 }
 0x447   :  { %v2650_v41 = vadd.f32 %v2649_v43, %v2507_v61  ;;  %v13471_v61 = vld [vmem:[#allocation69_spill] sm:$0xff] }
 0x448   :  { %v1507_v43 = vsub.f32 %v13471_v61, %v8074_v55 }
 0x449   :  { %v2651_v44 = vadd.f32 %v2650_v41, %v2508_v7  ;;  %v1650_v7 = vmul.f32 %v8592_v3, %v8592_v3  ;;  %v2512_v41 = vmul.f32 %v8268_v53, %v1648_v48 }
 0x44a   :  { %v1651_v18 = vmul.f32 %v1507_v43, %v1507_v43 }
 0x44b   :  { %v2652_v24 = vadd.f32 %v2651_v44, %v2509_v12  ;;  %v8609_v12 = vpop.permute.xlu1 %2213  ;;  %v13475_v44 = vld [vmem:[#allocation73_spill] sm:$0xff]  ;;  %v8614_v23 = vpop.permute.xlu2 %2218  ;;  %v2514_v48 = vmul.f32 %v8286_v52, %v1650_v7  ;;  %v13489_v52 = vld [vmem:[#allocation99_spill] sm:$0xff] }
 0x44c   :  { %13474 = vst [vmem:[#allocation55_spill] sm:$0xff] %v8609_v12  ;;  %v1509_v4 = vsub.f32 %v13475_v44, %v8074_v55  ;;  %v8635_v7 = vpop.permute.xlu0 %2223 }
 0x44d   :  { %v2653_v51 = vadd.f32 %v2652_v24, %v2510_v13  ;;  %v2513_v13 = vmul.f32 %v8277_v60, %v1649_v26  ;;  %13476 = vst [vmem:[#allocation57_spill] sm:$0xff] %v8614_v23  ;;  %v13477_v24 = vld [vmem:[#allocation76_spill] sm:$0xff]  ;;  %v2515_v26 = vmul.f32 %v8309_v62, %v1651_v18 }
 0x44e   :  { %v8618_v61 = vsub.f32 %v13477_v24, %v8074_v55  ;;  %v1653_v43 = vmul.f32 %v1509_v4, %v1509_v4  ;;  %v2516_v24 = vmul.f32 %v8318_v56, %v1652_v63  ;;  %13480 = vst [vmem:[#allocation59_spill] sm:$0xff] %v8635_v7 }
 0x44f   :  { %v2654_v15 = vadd.f32 %v2653_v51, %v2511_v54  ;;  %v13478_v51 = vld [vmem:[#allocation79_spill] sm:$0xff] }
 0x450   :  { %v8625_v53 = vsub.f32 %v13478_v51, %v8074_v55  ;;  %v1654_v44 = vmul.f32 %v8618_v61, %v8618_v61  ;;  %v2517_v4 = vmul.f32 %v8327_v2, %v1653_v43 }
 0x451   :  { %v2655_v33 = vadd.f32 %v2654_v15, %v2512_v41  ;;  %v13479_v41 = vld [vmem:[#allocation82_spill] sm:$0xff] }
 0x452   :  { %v8630_v15 = vsub.f32 %v13479_v41, %v8074_v55  ;;  %v1655_v62 = vmul.f32 %v8625_v53, %v8625_v53 }
 0x453   :  { %v2656_v54 = vadd.f32 %v2655_v33, %v2513_v13  ;;  %v13481_v13 = vld [vmem:[#allocation85_spill] sm:$0xff]  ;;  %v8653_v41 = vpop.permute.xlu2 %2233 }
 0x454   :  { %v8639_v33 = vsub.f32 %v13481_v13, %v8074_v55  ;;  %v1656_v63 = vmul.f32 %v8630_v15, %v8630_v15  ;;  %13484 = vst [vmem:[#allocation63_spill] sm:$0xff] %v8653_v41  ;;  %v13485_v13 = vld [vmem:[#allocation92_spill] sm:$0xff]  ;;  %v2519_v2 = vmul.f32 %v8359_v57, %v1655_v62 }
 0x455   :  { %v2657_v60 = vadd.f32 %v2656_v54, %v2514_v48  ;;  %v8644_v48 = vpop.permute.xlu1 %2228  ;;  %v13483_v54 = vld [vmem:[#allocation88_spill] sm:$0xff]  ;;  %v8657_v56 = vsub.f32 %v13485_v13, %v8074_v55  ;;  %v8671_v13 = vsub.f32 %v13489_v52, %v8074_v55 }
 0x456   :  { %13482 = vst [vmem:[#allocation60_spill] sm:$0xff] %v8644_v48  ;;  %v8648_v51 = vsub.f32 %v13483_v54, %v8074_v55 }
 0x457   :  { %v2658_v32 = vadd.f32 %v2657_v60, %v2515_v26  ;;  %v2518_v26 = vmul.f32 %v8350_v14, %v1654_v44  ;;  %13486 = vst [vmem:[#allocation66_spill] sm:$0xff] %v8657_v56  ;;  %v1659_v14 = vmul.f32 %v8657_v56, %v8657_v56 }
 0x458   :  { %v1658_v44 = vmul.f32 %v8648_v51, %v8648_v51 }
 0x459   :  { %v2659_v18 = vadd.f32 %v2658_v32, %v2516_v24  ;;  %v1657_v32 = vmul.f32 %v8639_v33, %v8639_v33  ;;  %v13487_v24 = vld [vmem:[#allocation95_spill] sm:$0xff] }
 0x45a   :  { %v8664_v54 = vsub.f32 %v13487_v24, %v8074_v55  ;;  %v13491_v24 = vld [vmem:[#allocation102_spill] sm:$0xff] }
 0x45b   :  { %v2660_v60 = vadd.f32 %v2659_v18, %v2517_v4  ;;  %v2520_v4 = vmul.f32 %v8368_v38, %v1656_v63  ;;  %v2521_v62 = vmul.f32 %v8391_v35, %v1657_v32  ;;  %v8680_v57 = vsub.f32 %v13491_v24, %v8074_v55  ;;  %v13494_v38 = vld [vmem:[#allocation105_spill] sm:$0xff]  ;;  %v8694_v24 = vpop.permute.xlu2 %2248  ;;  %v13497_v35 = vld [vmem:[#allocation62_spill] sm:$0xff] }
 0x45c   :  { %13488 = vst [vmem:[#allocation69_spill] sm:$0xff] %v8664_v54  ;;  %v1660_v63 = vmul.f32 %v8664_v54, %v8664_v54  ;;  %v8689_v56 = vsub.f32 %v13494_v38, %v8074_v55  ;;  %v1661_v32 = vmul.f32 %v8671_v13, %v8671_v13  ;;  %v8698_v54 = vsub.f32 %v13497_v35, %v8074_v55  ;;  %v13499_v38 = vld [vmem:[#allocation65_spill] sm:$0xff] }
 0x45d   :  { %v2661_v43 = vadd.f32 %v2660_v60, %v2518_v26  ;;  %v8676_v60 = vpop.permute.xlu0 %2238  ;;  %13492 = vst [vmem:[#allocation73_spill] sm:$0xff] %v8680_v57  ;;  %v8685_v52 = vpop.permute.xlu1 %2243 }
 0x45e   :  { %13490 = vst [vmem:[#allocation71_spill] sm:$0xff] %v8676_v60 }
 0x45f   :  { %v2662_v18 = vadd.f32 %v2661_v43, %v2519_v2  ;;  %v2522_v2 = vmul.f32 %v8400_v30, %v1658_v44  ;;  %13493 = vst [vmem:[#allocation76_spill] sm:$0xff] %v8685_v52  ;;  %v1662_v44 = vmul.f32 %v8680_v57, %v8680_v57  ;;  %v8705_v30 = vsub.f32 %v13499_v38, %v8074_v55  ;;  %v13504_v38 = vld [vmem:[#allocation72_spill] sm:$0xff] }
 0x460   :  { %13495 = vst [vmem:[#allocation79_spill] sm:$0xff] %v8689_v56  ;;  %v1664_v57 = vmul.f32 %v8698_v54, %v8698_v54 }
 0x461   :  { %v2663_v26 = vadd.f32 %v2662_v18, %v2520_v4  ;;  %v2523_v4 = vmul.f32 %v8409_v0, %v1659_v14  ;;  %13496 = vst [vmem:[#allocation82_spill] sm:$0xff] %v8694_v24  ;;  %v1663_v14 = vmul.f32 %v8689_v56, %v8689_v56  ;;  %v13501_v0 = vld [vmem:[#allocation68_spill] sm:$0xff] }
 0x462   :  { %13498 = vst [vmem:[#allocation85_spill] sm:$0xff] %v8698_v54  ;;  %v8712_v35 = vsub.f32 %v13501_v0, %v8074_v55 }
 0x463   :  { %v2664_v43 = vadd.f32 %v2663_v26, %v2521_v62  ;;  %v2524_v62 = vmul.f32 %v8422_v9, %v1660_v63  ;;  %13500 = vst [vmem:[#allocation88_spill] sm:$0xff] %v8705_v30  ;;  %v2526_v63 = vmul.f32 %v8433_v8, %v1662_v44  ;;  %v8721_v9 = vsub.f32 %v13504_v38, %v8074_v55  ;;  %v8735_v38 = vpop.permute.xlu2 %2263  ;;  %v13507_v8 = vld [vmem:[#allocation78_spill] sm:$0xff] }
 0x464   :  { %13502 = vst [vmem:[#allocation92_spill] sm:$0xff] %v8712_v35  ;;  %v1666_v44 = vmul.f32 %v8712_v35, %v8712_v35 }
 0x465   :  { %v2665_v18 = vadd.f32 %v2664_v43, %v2522_v2  ;;  %v2525_v2 = vmul.f32 %v8431_v28, %v1661_v32  ;;  %13505 = vst [vmem:[#allocation99_spill] sm:$0xff] %v8721_v9  ;;  %v1665_v32 = vmul.f32 %v8705_v30, %v8705_v30  ;;  %v8726_v0 = vpop.permute.xlu1 %2258  ;;  %v13506_v28 = vld [vmem:[#allocation75_spill] sm:$0xff]  ;;  %v8739_v30 = vsub.f32 %v13507_v8, %v8074_v55 }
 0x466   :  { %v8730_v54 = vsub.f32 %v13506_v28, %v8074_v55  ;;  %v13508_v28 = vld [vmem:[#allocation81_spill] sm:$0xff] }
 0x467   :  { %v2666_v26 = vadd.f32 %v2665_v18, %v2523_v4  ;;  %v8717_v18 = vpop.permute.xlu0 %2253  ;;  %v1669_v8 = vmul.f32 %v8739_v30, %v8739_v30 }
 0x468   :  { %13503 = vst [vmem:[#allocation95_spill] sm:$0xff] %v8717_v18  ;;  %v1668_v35 = vmul.f32 %v8730_v54, %v8730_v54 }
 0x469   :  { %v2667_v43 = vadd.f32 %v2666_v26, %v2524_v62  ;;  %v2527_v62 = vmul.f32 %v8451_v27, %v1663_v14  ;;  %v1667_v14 = vmul.f32 %v8721_v9, %v8721_v9  ;;  %v1526_v27 = vsub.f32 %v13508_v28, %v8074_v55 }
 0x46b   :  { %v2668_v4 = vadd.f32 %v2667_v43, %v2525_v2  ;;  %v2528_v2 = vmul.f32 %v8453_v45, %v1664_v57  ;;  %v2530_v57 = vmul.f32 %v8475_v39, %v1666_v44  ;;  %v2531_v9 = vmul.f32 %v8485_v31, %v1667_v14  ;;  %v13514_v31 = vld [vmem:[#allocation98_spill] sm:$0xff] }
 0x46c   :  { %v1670_v28 = vmul.f32 %v1526_v27, %v1526_v27  ;;  %v2533_v14 = vmul.f32 %v8509_v42, %v1669_v8 }
 0x46d   :  { %v2669_v26 = vadd.f32 %v2668_v4, %v2526_v63  ;;  %v2529_v63 = vmul.f32 %v8463_v6, %v1665_v32  ;;  %v2532_v6 = vmul.f32 %v8489_v17, %v1668_v35  ;;  %v13515_v35 = vld [vmem:[#allocation103_spill] sm:$0xff] }
 0x46f   :  { %v2670_v43 = vadd.f32 %v2669_v26, %v2527_v62  ;;  %v13509_v26 = vld [vmem:[#allocation86_spill] sm:$0xff]  ;;  %v8754_v32 = vpop.permute.xlu0 %2268 }
 0x470   :  { %v1527_v45 = vsub.f32 %v13509_v26, %v8074_v55  ;;  %13510 = vst [vmem:[#allocation102_spill] sm:$0xff] %v8754_v32 }
 0x471   :  { %v2671_v4 = vadd.f32 %v2670_v43, %v2528_v2  ;;  %v13511_v2 = vld [vmem:[#allocation90_spill] sm:$0xff] }
 0x472   :  { %v8758_v43 = vsub.f32 %v13511_v2, %v8074_v55  ;;  %v1671_v39 = vmul.f32 %v1527_v45, %v1527_v45  ;;  %v8772_v2 = vsub.f32 %v13514_v31, %v8074_v55 }
 0x473   :  { %v2672_v62 = vadd.f32 %v2671_v4, %v2529_v63  ;;  %v8761_v63 = vpop.permute.xlu1 %2273  ;;  %v13512_v4 = vld [vmem:[#allocation94_spill] sm:$0xff] }
 0x474   :  { %v8765_v26 = vsub.f32 %v13512_v4, %v8074_v55  ;;  %v1672_v27 = vmul.f32 %v8758_v43, %v8758_v43  ;;  %v8779_v4 = vsub.f32 %v13515_v35, %v8074_v55  ;;  %v1674_v42 = vmul.f32 %v8772_v2, %v8772_v2 }
 0x475   :  { %v2673_v56 = vadd.f32 %v2672_v62, %v2530_v57  ;;  %v8768_v62 = vpop.permute.xlu2 %2278 }
 0x476   :  { %13513 = vst [vmem:[#allocation105_spill] sm:$0xff] %v8768_v62  ;;  %v1673_v45 = vmul.f32 %v8765_v26, %v8765_v26 }
 0x477   :  { %v2674_v44 = vadd.f32 %v2673_v56, %v2531_v9  ;;  %v2534_v56 = vmul.f32 %v8514_v46, %v1670_v28  ;;  %13516 = vst [vmem:[#allocation62_spill] sm:$0xff] %v8779_v4  ;;  %v2536_v46 = vmul.f32 %v8538_v58, %v1672_v27  ;;  %v13523_v58 = vld [vmem:[#allocation116_spill] sm:$0xff] }
 0x479   :  { %v2675_v57 = vadd.f32 %v2674_v44, %v2532_v6  ;;  %v2535_v6 = vmul.f32 %v8523_v40, %v1671_v39  ;;  %v13517_v44 = vld [vmem:[#allocation107_spill] sm:$0xff]  ;;  %v1675_v39 = vmul.f32 %v8779_v4, %v8779_v4  ;;  %v2537_v40 = vmul.f32 %v8547_v10, %v1673_v45 }
 0x47a   :  { %v8786_v31 = vsub.f32 %v13517_v44, %v8074_v55  ;;  %v13521_v44 = vld [vmem:[#allocation113_spill] sm:$0xff]  ;;  %v8813_v4 = vsub.f32 %v13523_v58, %v8074_v55 }
 0x47b   :  { %v2676_v9 = vadd.f32 %v2675_v57, %v2533_v14  ;;  %v8791_v14 = vpop.permute.xlu0 %2283  ;;  %v13518_v57 = vld [vmem:[#allocation110_spill] sm:$0xff]  ;;  %v8804_v17 = vsub.f32 %v13521_v44, %v8074_v55  ;;  %v13525_v44 = vld [vmem:[#allocation83_spill] sm:$0xff] }
 0x47c   :  { %v8795_v35 = vsub.f32 %v13518_v57, %v8074_v55  ;;  %v1676_v27 = vmul.f32 %v8786_v31, %v8786_v31  ;;  %13524 = vst [vmem:[#allocation75_spill] sm:$0xff] %v8813_v4  ;;  %v8820_v10 = vsub.f32 %v13525_v44, %v8074_v55  ;;  %v13530_v44 = vld [vmem:[#allocation91_spill] sm:$0xff] }
 0x47d   :  { %v2677_v8 = vadd.f32 %v2676_v9, %v2534_v56  ;;  %v8800_v9 = vpop.permute.xlu1 %2288  ;;  %13522 = vst [vmem:[#allocation72_spill] sm:$0xff] %v8804_v17  ;;  %v8809_v57 = vpop.permute.xlu2 %2293 }
 0x47e   :  { %13519 = vst [vmem:[#allocation65_spill] sm:$0xff] %v8795_v35  ;;  %v1677_v45 = vmul.f32 %v8795_v35, %v8795_v35  ;;  %v1679_v35 = vmul.f32 %v8813_v4, %v8813_v4 }
 0x47f   :  { %v2678_v28 = vadd.f32 %v2677_v8, %v2535_v6  ;;  %13520 = vst [vmem:[#allocation68_spill] sm:$0xff] %v8800_v9  ;;  %v2538_v6 = vmul.f32 %v8552_v36, %v1674_v42  ;;  %v1678_v42 = vmul.f32 %v8804_v17, %v8804_v17  ;;  %v13527_v36 = vld [vmem:[#allocation87_spill] sm:$0xff] }
 0x480   :  { %13526 = vst [vmem:[#allocation78_spill] sm:$0xff] %v8820_v10  ;;  %v8827_v58 = vsub.f32 %v13527_v36, %v8074_v55 }
 0x481   :  { %v2679_v56 = vadd.f32 %v2678_v28, %v2536_v46  ;;  %v2539_v46 = vmul.f32 %v8571_v5, %v1675_v39  ;;  %v2541_v39 = vmul.f32 %v8585_v1, %v1677_v45  ;;  %v8836_v5 = vsub.f32 %v13530_v44, %v8074_v55  ;;  %v13535_v1 = vld [vmem:[#allocation100_spill] sm:$0xff] }
 0x482   :  { %13528 = vst [vmem:[#allocation81_spill] sm:$0xff] %v8827_v58  ;;  %v1681_v45 = vmul.f32 %v8827_v58, %v8827_v58 }
 0x483   :  { %v2680_v8 = vadd.f32 %v2679_v56, %v2537_v40  ;;  %v2540_v40 = vmul.f32 %v8576_v49, %v1676_v27  ;;  %13531 = vst [vmem:[#allocation90_spill] sm:$0xff] %v8836_v5  ;;  %v1680_v27 = vmul.f32 %v8820_v10, %v8820_v10  ;;  %v13532_v49 = vld [vmem:[#allocation96_spill] sm:$0xff]  ;;  %v8854_v10 = vsub.f32 %v13535_v1, %v8074_v55 }
 0x484   :  { %v8845_v4 = vsub.f32 %v13532_v49, %v8074_v55  ;;  %v13537_v49 = vld [vmem:[#allocation104_spill] sm:$0xff] }
 0x485   :  { %v2681_v28 = vadd.f32 %v2680_v8, %v2538_v6  ;;  %v8832_v8 = vpop.permute.xlu0 %2298  ;;  %v8841_v36 = vpop.permute.xlu1 %2303  ;;  %13536 = vst [vmem:[#allocation103_spill] sm:$0xff] %v8854_v10 }
 0x486   :  { %13529 = vst [vmem:[#allocation86_spill] sm:$0xff] %v8832_v8  ;;  %v8850_v44 = vpop.permute.xlu2 %2308 }
 0x487   :  { %v2682_v56 = vadd.f32 %v2681_v28, %v2539_v46  ;;  %v2542_v46 = vmul.f32 %v8600_v59, %v1678_v42  ;;  %13533 = vst [vmem:[#allocation94_spill] sm:$0xff] %v8845_v4  ;;  %v1682_v42 = vmul.f32 %v8836_v5, %v8836_v5  ;;  %v8861_v59 = vsub.f32 %v13537_v49, %v8074_v55  ;;  %v13541_v49 = vld [vmem:[#allocation111_spill] sm:$0xff] }
 0x488   :  { %13534 = vst [vmem:[#allocation98_spill] sm:$0xff] %v8850_v44  ;;  %v1684_v5 = vmul.f32 %v8854_v10, %v8854_v10 }
 0x489   :  { %v2683_v6 = vadd.f32 %v2682_v56, %v2540_v40  ;;  %v2543_v40 = vmul.f32 %v8609_v12, %v1679_v35  ;;  %13538 = vst [vmem:[#allocation107_spill] sm:$0xff] %v8861_v59  ;;  %v1683_v35 = vmul.f32 %v8845_v4, %v8845_v4  ;;  %v13539_v12 = vld [vmem:[#allocation108_spill] sm:$0xff] }
 0x48a   :  { %v8868_v1 = vsub.f32 %v13539_v12, %v8074_v55 }
 0x48b   :  { %v2684_v28 = vadd.f32 %v2683_v6, %v2541_v39  ;;  %v2544_v39 = vmul.f32 %v8614_v23, %v1680_v27  ;;  %v2546_v27 = vmul.f32 %v8644_v48, %v1682_v42  ;;  %v8877_v23 = vsub.f32 %v13541_v49, %v8074_v55  ;;  %v13544_v49 = vld [vmem:[#allocation117_spill] sm:$0xff] }
 0x48c   :  { %13540 = vst [vmem:[#allocation110_spill] sm:$0xff] %v8868_v1  ;;  %v1686_v42 = vmul.f32 %v8868_v1, %v8868_v1  ;;  %v1545_v4 = vsub.f32 %v13544_v49, %v8074_v55 }
 0x48d   :  { %v2685_v56 = vadd.f32 %v2684_v28, %v2542_v46  ;;  %v2545_v46 = vmul.f32 %v8635_v7, %v1681_v45  ;;  %v1685_v45 = vmul.f32 %v8861_v59, %v8861_v59  ;;  %v8882_v12 = vpop.permute.xlu1 %2318  ;;  %v13543_v7 = vld [vmem:[#allocation114_spill] sm:$0xff] }
 0x48e   :  { %13542 = vst [vmem:[#allocation113_spill] sm:$0xff] %v8882_v12  ;;  %v1544_v10 = vsub.f32 %v13543_v7, %v8074_v55  ;;  %v8889_v48 = vpop.permute.xlu2 %2323  ;;  %v2550_v1 = vmul.f32 %v8694_v24, %v1686_v42 }
 0x48f   :  { %v2686_v6 = vadd.f32 %v2685_v56, %v2543_v40  ;;  %v8873_v56 = vpop.permute.xlu0 %2313 }
 0x490   :  { %v1688_v59 = vmul.f32 %v1544_v10, %v1544_v10 }
 0x491   :  { %v2687_v28 = vadd.f32 %v2686_v6, %v2544_v39  ;;  %v2547_v39 = vmul.f32 %v8653_v41, %v1683_v35  ;;  %v1687_v35 = vmul.f32 %v8877_v23, %v8877_v23  ;;  %v13545_v41 = vld [vmem:[#allocation119_spill] sm:$0xff] }
 0x492   :  { %v8898_v7 = vsub.f32 %v13545_v41, %v8074_v55  ;;  %v2552_v10 = vmul.f32 %v8726_v0, %v1688_v59 }
 0x493   :  { %v2688_v40 = vadd.f32 %v2687_v28, %v2545_v46  ;;  %v2548_v46 = vmul.f32 %v8676_v60, %v1684_v5  ;;  %v1689_v60 = vmul.f32 %v1545_v4, %v1545_v4  ;;  %v2551_v49 = vmul.f32 %v8717_v18, %v1687_v35 }
 0x494   :  { %v1690_v41 = vmul.f32 %v8898_v7, %v8898_v7 }
 0x495   :  { %v2689_v6 = vadd.f32 %v2688_v40, %v2546_v27  ;;  %v2549_v27 = vmul.f32 %v8685_v52, %v1685_v45  ;;  %v13548_v45 = vld [vmem:[#allocation54_spill] sm:$0xff] }
 0x496   :  { %v2554_v59 = vmul.f32 %v8754_v32, %v1690_v41  ;;  %v13554_v41 = vld [vmem:[#allocation67_spill] sm:$0xff] }
 0x497   :  { %v2690_v28 = vadd.f32 %v2689_v6, %v2547_v39  ;;  %v13546_v39 = vld [vmem:[#allocation122_spill] sm:$0xff]  ;;  %v8904_v17 = vpop.permute.xlu0 %2328 }
 0x498   :  { %v1547_v6 = vsub.f32 %v13546_v39, %v8074_v55  ;;  %13547 = vst [vmem:[#allocation116_spill] sm:$0xff] %v8904_v17  ;;  %v13551_v39 = vld [vmem:[#allocation58_spill] sm:$0xff] }
 0x499   :  { %v2691_v40 = vadd.f32 %v2690_v28, %v2548_v46  ;;  %v8908_v46 = vsub.f32 %v13548_v45, %v8074_v55  ;;  %v8913_v28 = vpop.permute.xlu1 %2333  ;;  %v8922_v45 = vsub.f32 %v13551_v39, %v8074_v55 }
 0x49b   :  { %v2692_v5 = vadd.f32 %v2691_v40, %v2549_v27  ;;  %v13549_v27 = vld [vmem:[#allocation56_spill] sm:$0xff]  ;;  %v1691_v40 = vmul.f32 %v1547_v6, %v1547_v6  ;;  %v1692_v18 = vmul.f32 %v8908_v46, %v8908_v46 }
 0x49c   :  { %v1549_v4 = vsub.f32 %v13549_v27, %v8074_v55 }
 0x49d   :  { %v2693_v58 = vadd.f32 %v2692_v5, %v2550_v1  ;;  %v2553_v1 = vmul.f32 %v8735_v38, %v1689_v60  ;;  %v8918_v5 = vpop.permute.xlu2 %2338  ;;  %v2555_v6 = vmul.f32 %v8761_v63, %v1691_v40  ;;  %v13553_v38 = vld [vmem:[#allocation64_spill] sm:$0xff]  ;;  %v2556_v39 = vmul.f32 %v8768_v62, %v1692_v18  ;;  %v13555_v40 = vld [vmem:[#allocation70_spill] sm:$0xff] }
 0x49e   :  { %13550 = vst [vmem:[#allocation83_spill] sm:$0xff] %v8918_v5  ;;  %v1693_v27 = vmul.f32 %v1549_v4, %v1549_v4 }
 0x49f   :  { %v2694_v42 = vadd.f32 %v2693_v58, %v2551_v49  ;;  %v13552_v58 = vld [vmem:[#allocation61_spill] sm:$0xff]  ;;  %v2344_v52 = vpop.permute.xlu0 %2343 }
 0x4a0   :  { %v1551_v49 = vsub.f32 %v13552_v58, %v8074_v55  ;;  %v2557_v4 = vmul.f32 %v8791_v14, %v1693_v27 }
 0x4a1   :  { %v2695_v35 = vadd.f32 %v2694_v42, %v2552_v10  ;;  %v8932_v10 = vsub.f32 %v13553_v38, %v8074_v55  ;;  %v1694_v42 = vmul.f32 %v8922_v45, %v8922_v45  ;;  %v2349_v63 = vpop.permute.xlu1 %2348 }
 0x4a3   :  { %v2696_v0 = vadd.f32 %v2695_v35, %v2553_v1  ;;  %v1553_v1 = vsub.f32 %v13554_v41, %v8074_v55  ;;  %v1695_v35 = vmul.f32 %v1551_v49, %v1551_v49  ;;  %v2558_v38 = vmul.f32 %v8800_v9, %v1694_v42  ;;  %v13558_v42 = vld [vmem:[#allocation80_spill] sm:$0xff] }
 0x4a5   :  { %v2697_v60 = vadd.f32 %v2696_v0, %v2554_v59  ;;  %v8942_v59 = vsub.f32 %v13555_v40, %v8074_v55  ;;  %v1696_v0 = vmul.f32 %v8932_v10, %v8932_v10  ;;  %v1697_v41 = vmul.f32 %v1553_v1, %v1553_v1 }
 0x4a6   :  { %v2559_v49 = vmul.f32 %v8809_v57, %v1695_v35  ;;  %v13560_v57 = vld [vmem:[#allocation84_spill] sm:$0xff] }
 0x4a7   :  { %v2698_v24 = vadd.f32 %v2697_v60, %v2555_v6  ;;  %v2354_v6 = vpop.permute.xlu2 %2353  ;;  %v13556_v60 = vld [vmem:[#allocation74_spill] sm:$0xff]  ;;  %v2560_v40 = vmul.f32 %v8832_v8, %v1696_v0  ;;  %v8960_v9 = vpop.permute.xlu0 %2358  ;;  %v8964_v35 = vsub.f32 %v13560_v57, %v8074_v55 }
 0x4a8   :  { %v1555_v62 = vsub.f32 %v13556_v60, %v8074_v55  ;;  %v2561_v60 = vmul.f32 %v8841_v36, %v1697_v41  ;;  %13559 = vst [vmem:[#allocation87_spill] sm:$0xff] %v8960_v9 }
 0x4a9   :  { %v2699_v58 = vadd.f32 %v2698_v24, %v2556_v39  ;;  %v13557_v24 = vld [vmem:[#allocation77_spill] sm:$0xff]  ;;  %v1698_v39 = vmul.f32 %v8942_v59, %v8942_v59  ;;  %13561 = vst [vmem:[#allocation91_spill] sm:$0xff] %v8964_v35  ;;  %v1702_v57 = vmul.f32 %v8964_v35, %v8964_v35 }
 0x4aa   :  { %v8952_v27 = vsub.f32 %v13557_v24, %v8074_v55 }
 0x4ab   :  { %v2700_v18 = vadd.f32 %v2699_v58, %v2557_v4  ;;  %v1557_v4 = vsub.f32 %v13558_v42, %v8074_v55  ;;  %v1699_v58 = vmul.f32 %v1555_v62, %v1555_v62 }
 0x4ad   :  { %v2701_v14 = vadd.f32 %v2700_v18, %v2558_v38  ;;  %v1700_v38 = vmul.f32 %v8952_v27, %v8952_v27  ;;  %v2562_v18 = vmul.f32 %v8850_v44, %v1698_v39  ;;  %v1701_v62 = vmul.f32 %v1557_v4, %v1557_v4 }
 0x4ae   :  { %v2563_v36 = vmul.f32 %v8873_v56, %v1699_v58  ;;  %v13567_v58 = vld [vmem:[#allocation101_spill] sm:$0xff] }
 0x4af   :  { %v2702_v32 = vadd.f32 %v2701_v14, %v2559_v49  ;;  %v2364_v49 = vpop.permute.xlu1 %2363  ;;  %v13562_v14 = vld [vmem:[#allocation89_spill] sm:$0xff]  ;;  %v8972_v41 = vpop.permute.xlu2 %2368  ;;  %v2564_v39 = vmul.f32 %v8882_v12, %v1700_v38  ;;  %v2565_v4 = vmul.f32 %v8889_v48, %v1701_v62  ;;  %v13568_v38 = vld [vmem:[#allocation106_spill] sm:$0xff] }
 0x4b0   :  { %v1559_v24 = vsub.f32 %v13562_v14, %v8074_v55  ;;  %13563 = vst [vmem:[#allocation96_spill] sm:$0xff] %v8972_v41  ;;  %v2374_v35 = vpop.permute.xlu0 %2373  ;;  %v13570_v48 = vld [vmem:[#allocation109_spill] sm:$0xff] }
 0x4b1   :  { %v2703_v1 = vadd.f32 %v2702_v32, %v2560_v40  ;;  %v13564_v40 = vld [vmem:[#allocation93_spill] sm:$0xff]  ;;  %v8996_v62 = vsub.f32 %v13570_v48, %v8074_v55 }
 0x4b2   :  { %v8976_v42 = vsub.f32 %v13564_v40, %v8074_v55  ;;  %v1703_v14 = vmul.f32 %v1559_v24, %v1559_v24  ;;  %v2566_v40 = vmul.f32 %v8904_v17, %v1702_v57 }
 0x4b3   :  { %v2704_v0 = vadd.f32 %v2703_v1, %v2561_v60  ;;  %v13566_v1 = vld [vmem:[#allocation97_spill] sm:$0xff] }
 0x4b4   :  { %13565 = vst [vmem:[#allocation100_spill] sm:$0xff] %v8976_v42  ;;  %v1561_v44 = vsub.f32 %v13566_v1, %v8074_v55  ;;  %v2567_v1 = vmul.f32 %v8913_v28, %v1703_v14  ;;  %v13572_v28 = vld [vmem:[#allocation115_spill] sm:$0xff]  ;;  %v1708_v14 = vmul.f32 %v8996_v62, %v8996_v62 }
 0x4b5   :  { %v2705_v32 = vadd.f32 %v2704_v0, %v2562_v18  ;;  %v1562_v18 = vsub.f32 %v13567_v58, %v8074_v55  ;;  %v1704_v0 = vmul.f32 %v8976_v42, %v8976_v42 }
 0x4b7   :  { %v2706_v60 = vadd.f32 %v2705_v32, %v2563_v36  ;;  %v1563_v36 = vsub.f32 %v13568_v38, %v8074_v55  ;;  %v1705_v32 = vmul.f32 %v1561_v44, %v1561_v44  ;;  %v8992_v12 = vpop.permute.xlu1 %2378  ;;  %v2384_v57 = vpop.permute.xlu2 %2383 }
 0x4b8   :  { %13569 = vst [vmem:[#allocation104_spill] sm:$0xff] %v8992_v12  ;;  %v9009_v42 = vpop.permute.xlu0 %2388 }
 0x4b9   :  { %v2707_v56 = vadd.f32 %v2706_v60, %v2564_v39  ;;  %v1706_v39 = vmul.f32 %v1562_v18, %v1562_v18  ;;  %v2568_v60 = vmul.f32 %v8918_v5, %v1704_v0  ;;  %v1707_v17 = vmul.f32 %v1563_v36, %v1563_v36  ;;  %v13573_v18 = vld [vmem:[#allocation118_spill] sm:$0xff]  ;;  %13574 = vst [vmem:[#allocation108_spill] sm:$0xff] %v9009_v42 }
 0x4ba   :  { %v2569_v38 = vmul.f32 %v2344_v52, %v1705_v32  ;;  %v1567_v0 = vsub.f32 %v13573_v18, %v8074_v55  ;;  %v13575_v52 = vld [vmem:[#allocation120_spill] sm:$0xff] }
 0x4bb   :  { %v2708_v8 = vadd.f32 %v2707_v56, %v2565_v4  ;;  %v13571_v4 = vld [vmem:[#allocation112_spill] sm:$0xff]  ;;  %v9013_v36 = vsub.f32 %v13575_v52, %v8074_v55 }
 0x4bc   :  { %v1565_v56 = vsub.f32 %v13571_v4, %v8074_v55 }
 0x4bd   :  { %v2709_v24 = vadd.f32 %v2708_v8, %v2566_v40  ;;  %v9003_v8 = vsub.f32 %v13572_v28, %v8074_v55  ;;  %v2570_v40 = vmul.f32 %v2349_v63, %v1706_v39  ;;  %v13576_v39 = vld [vmem:[#allocation125_spill] sm:$0xff] }
 0x4be   :  { %v1569_v4 = vsub.f32 %v13576_v39, %v8074_v55 }
 0x4bf   :  { %v2710_v58 = vadd.f32 %v2709_v24, %v2567_v1  ;;  %v1709_v1 = vmul.f32 %v1565_v56, %v1565_v56  ;;  %v2571_v24 = vmul.f32 %v2354_v6, %v1707_v17  ;;  %v1710_v32 = vmul.f32 %v9003_v8, %v9003_v8  ;;  %v2394_v63 = vpop.permute.xlu1 %2393  ;;  %v9020_v6 = vpop.permute.xlu2 %2398 }
 0x4c0   :  { %13577 = vst [vmem:[#allocation111_spill] sm:$0xff] %v9020_v6 }
 0x4c1   :  { %v2711_v44 = vadd.f32 %v2710_v58, %v2568_v60  ;;  %v2572_v60 = vmul.f32 %v8960_v9, %v1708_v14  ;;  %v2573_v56 = vmul.f32 %v2364_v49, %v1709_v1  ;;  %v13581_v49 = vld [vmem:[#allocation137_spill] sm:$0xff] }
 0x4c2   :  { %v9033_v1 = vsub.f32 %v13581_v49, %v8074_v55 }
 0x4c3   :  { %v2712_v48 = vadd.f32 %v2711_v44, %v2569_v38  ;;  %v1711_v38 = vmul.f32 %v1567_v0, %v1567_v0  ;;  %v13578_v44 = vld [vmem:[#allocation129_spill] sm:$0xff] }
 0x4c4   :  { %v9024_v28 = vsub.f32 %v13578_v44, %v8074_v55  ;;  %13582 = vst [vmem:[#allocation117_spill] sm:$0xff] %v9033_v1  ;;  %v2404_v44 = vpop.permute.xlu0 %2403 }
 0x4c5   :  { %v2713_v5 = vadd.f32 %v2712_v48, %v2570_v40  ;;  %v1712_v40 = vmul.f32 %v9013_v36, %v9013_v36  ;;  %v2574_v48 = vmul.f32 %v8972_v41, %v1710_v32  ;;  %v2575_v52 = vmul.f32 %v2374_v35, %v1711_v38  ;;  %v13583_v32 = vld [vmem:[#allocation141_spill] sm:$0xff] }
 0x4c6   :  { %13579 = vst [vmem:[#allocation114_spill] sm:$0xff] %v9024_v28  ;;  %v13585_v35 = vld [vmem:[#allocation145_spill] sm:$0xff] }
 0x4c7   :  { %v2714_v58 = vadd.f32 %v2713_v5, %v2571_v24  ;;  %v13580_v5 = vld [vmem:[#allocation133_spill] sm:$0xff]  ;;  %v1713_v24 = vmul.f32 %v1569_v4, %v1569_v4  ;;  %v9040_v4 = vpop.permute.xlu1 %2408  ;;  %v9044_v38 = vsub.f32 %v13585_v35, %v8074_v55 }
 0x4c8   :  { %v1571_v18 = vsub.f32 %v13580_v5, %v8074_v55  ;;  %13584 = vst [vmem:[#allocation119_spill] sm:$0xff] %v9040_v4 }
 0x4c9   :  { %v2715_v17 = vadd.f32 %v2714_v58, %v2572_v60  ;;  %v1714_v60 = vmul.f32 %v9024_v28, %v9024_v28  ;;  %v2576_v58 = vmul.f32 %v8992_v12, %v1712_v40  ;;  %v2577_v41 = vmul.f32 %v2384_v57, %v1713_v24  ;;  %13586 = vst [vmem:[#allocation122_spill] sm:$0xff] %v9044_v38  ;;  %v13588_v24 = vld [vmem:[#allocation153_spill] sm:$0xff] }
 0x4cb   :  { %v2716_v14 = vadd.f32 %v2715_v17, %v2573_v56  ;;  %v1573_v56 = vsub.f32 %v13583_v32, %v8074_v55  ;;  %v1715_v17 = vmul.f32 %v1571_v18, %v1571_v18 }
 0x4cd   :  { %v2717_v0 = vadd.f32 %v2716_v14, %v2574_v48  ;;  %v1716_v48 = vmul.f32 %v9033_v1, %v9033_v1  ;;  %v2578_v14 = vmul.f32 %v9009_v42, %v1714_v60  ;;  %v1717_v32 = vmul.f32 %v1573_v56, %v1573_v56  ;;  %v13590_v60 = vld [vmem:[#allocation157_spill] sm:$0xff] }
 0x4ce   :  { %v2579_v18 = vmul.f32 %v2394_v63, %v1715_v17  ;;  %v13592_v63 = vld [vmem:[#allocation161_spill] sm:$0xff] }
 0x4cf   :  { %v2718_v39 = vadd.f32 %v2717_v0, %v2575_v52  ;;  %v2414_v52 = vpop.permute.xlu2 %2413  ;;  %v13587_v0 = vld [vmem:[#allocation149_spill] sm:$0xff]  ;;  %v2580_v35 = vmul.f32 %v9020_v6, %v1716_v48  ;;  %v2581_v42 = vmul.f32 %v2404_v44, %v1717_v32  ;;  %v9064_v56 = vsub.f32 %v13592_v63, %v8074_v55  ;;  %v2424_v48 = vpop.permute.xlu1 %2423 }
 0x4d0   :  { %v1575_v49 = vsub.f32 %v13587_v0, %v8074_v55  ;;  %v9060_v0 = vpop.permute.xlu0 %2418  ;;  %v13596_v32 = vld [vmem:[#allocation169_spill] sm:$0xff] }
 0x4d1   :  { %v2719_v5 = vadd.f32 %v2718_v39, %v2576_v58  ;;  %v9053_v58 = vsub.f32 %v13588_v24, %v8074_v55  ;;  %v1718_v39 = vmul.f32 %v9044_v38, %v9044_v38  ;;  %13591 = vst [vmem:[#allocation56_spill] sm:$0xff] %v9060_v0 }
 0x4d2   :  { %13593 = vst [vmem:[#allocation58_spill] sm:$0xff] %v9064_v56 }
 0x4d3   :  { %v2720_v40 = vadd.f32 %v2719_v5, %v2577_v41  ;;  %13589 = vst [vmem:[#allocation54_spill] sm:$0xff] %v9053_v58  ;;  %v1577_v41 = vsub.f32 %v13590_v60, %v8074_v55  ;;  %v1719_v5 = vmul.f32 %v1575_v49, %v1575_v49  ;;  %v1720_v17 = vmul.f32 %v9053_v58, %v9053_v58 }
 0x4d4   :  { %v1722_v60 = vmul.f32 %v9064_v56, %v9064_v56 }
 0x4d5   :  { %v2721_v57 = vadd.f32 %v2720_v40, %v2578_v14  ;;  %v2582_v14 = vmul.f32 %v9040_v4, %v1718_v39  ;;  %v1721_v24 = vmul.f32 %v1577_v41, %v1577_v41  ;;  %v2583_v49 = vmul.f32 %v2414_v52, %v1719_v5 }
 0x4d6   :  { %v2584_v63 = vmul.f32 %v9060_v0, %v1720_v17 }
 0x4d7   :  { %v2722_v12 = vadd.f32 %v2721_v57, %v2579_v18  ;;  %v13594_v18 = vld [vmem:[#allocation165_spill] sm:$0xff]  ;;  %v2585_v4 = vmul.f32 %v2424_v48, %v1721_v24  ;;  %v2439_v38 = vpop.permute.xlu1 %2438 }
 0x4d8   :  { %v1579_v57 = vsub.f32 %v13594_v18, %v8074_v55 }
 0x4d9   :  { %v2723_v9 = vadd.f32 %v2722_v12, %v2580_v35  ;;  %v9071_v12 = vpop.permute.xlu2 %2428  ;;  %v1580_v35 = vsub.f32 %v13596_v32, %v8074_v55 }
 0x4da   :  { %13595 = vst [vmem:[#allocation61_spill] sm:$0xff] %v9071_v12  ;;  %v1723_v39 = vmul.f32 %v1579_v57, %v1579_v57  ;;  %v2586_v52 = vmul.f32 %v9071_v12, %v1722_v60  ;;  %v13633_v12 = vld [vmem:[#allocation26_spill] sm:$0xff] }
 0x4db   :  { %v2724_v40 = vadd.f32 %v2723_v9, %v2581_v42  ;;  %v13597_v9 = vld [vmem:[#allocation172_spill] sm:$0xff]  ;;  %v1724_v41 = vmul.f32 %v1580_v35, %v1580_v35 }
 0x4dc   :  { %v1581_v42 = vsub.f32 %v13597_v9, %v8074_v55  ;;  %v13598_v9 = vld [vmem:[#allocation5_spill] sm:$0xff] }
 0x4dd   :  { %v2725_v44 = vadd.f32 %v2724_v40, %v2582_v14  ;;  %v2434_v14 = vpop.permute.xlu0 %2433  ;;  %v2588_v1 = vmul.f32 %v2439_v38, %v1724_v41  ;;  %v13600_v41 = vld [vmem:[#allocation182_spill] sm:$0xff] }
 0x4de   :  { %v1725_v40 = vmul.f32 %v1581_v42, %v1581_v42  ;;  %v2587_v58 = vmul.f32 %v2434_v14, %v1723_v39  ;;  %v13599_v39 = vld [vmem:[#allocation6_spill] sm:$0xff] }
 0x4df   :  { %v2726_v6 = vadd.f32 %v2725_v44, %v2583_v49 }
 0x4e1   :  { %v2727_v18 = vadd.f32 %v2726_v6, %v2584_v63  ;;  %v2444_v28 = vpop.permute.xlu2 %2443 }
 0x4e2   :  { %v2589_v17 = vmul.f32 %v2444_v28, %v1725_v40 }
 0x4e3   :  { %v2728_v5 = vadd.f32 %v2727_v18, %v2585_v4  ;;  %v6478_v4 = vld [vmem:[%s12674_s5 + $0xb8] sm:$0xff] }
 0x4e4   :  { %4699 = vmatpush.bf16.msrb.mxu3 %v6478_v4  ;;  %v13621_v4 = vld [vmem:[#allocation14_spill] sm:$0xff] }
 0x4e5   :  { %v2729_v32 = vadd.f32 %v2728_v5, %v2586_v52  ;;  %v13601_v5 = vld [vmem:[#allocation183_spill] sm:$0xff] }
 0x4e7   :  { %v2730_v56 = vadd.f32 %v2729_v32, %v2587_v58  ;;  %v13604_v32 = vld [vmem:[#allocation8_spill] sm:$0xff] }
 0x4e9   :  { %v2731_v49 = vadd.f32 %v2730_v56, %v2588_v1 }
 0x4eb   :  { %v2732_v44 = vadd.f32 %v2731_v49, %v2589_v17 }
 0x4ed   :  { %v2733_v0 = vrot.slane %v2732_v44, 4 }
 0x4ef   :  { %v2734_v55 = vadd.f32 %v2733_v0, %v2732_v44 }
 0x4f1   :  { %v2735_v57 = vrot.slane %v2734_v55, 2 }
 0x4f3   :  { %v2736_v48 = vadd.f32 %v2735_v57, %v2734_v55 }
 0x4f5   :  { %v2737_v6 = vrot.slane %v2736_v48, 1 }
 0x4f7   :  { %v2738_v24 = vadd.f32 %v2737_v6, %v2736_v48  ;;  %v13612_v48 = vld [vmem:[#allocation11_spill] sm:$0xff]  ;;  %v13614_v6 = vld [vmem:[#allocation12_spill] sm:$0xff] }
 0x4f9   :  { %v2739_v35 = vmul.f32 0.001953125, %v2738_v24  ;;  %v13616_v24 = vld [vmem:[#allocation185_spill] sm:$0xff] }
 0x4fb   :  { %v2741_v60 = vadd.f32 1e-05, %v2739_v35  ;;  %v13618_v35 = vld [vmem:[#allocation186_spill] sm:$0xff] }
 0x4fd   :  { %6720 = vrsqrt.f32 %v2741_v60  ;;  %vm2748_vm3 = vweird.f32 %v2741_v60 }
 0x503   :  { %v6721_v63 = vpop.eup %6720 }
 0x504   :  { %v2743_v38 = vmul.f32 %v6721_v63, %v2741_v60  ;;  %vm2749_vm2 = vweird.f32 %v6721_v63  ;;  %v13620_v60 = vld [vmem:[#allocation13_spill] sm:$0xff] }
 0x505   :  { %vm2750_vm4 = vmor %vm2748_vm3, %vm2749_vm2 }
 0x506   :  { %v2744_v58 = vmul.f32 %v6721_v63, %v2743_v38  ;;  %v13622_v38 = vld [vmem:[#allocation15_spill] sm:$0xff] }
 0x508   :  { %v2745_v28 = vmul.f32 0.5, %v2744_v58 }
 0x50a   :  { %v2746_v1 = vsub.f32 1.5, %v2745_v28  ;;  %v13623_v28 = vld [vmem:[#allocation16_spill] sm:$0xff] }
 0x50c   :  { %v2747_v56 = vmul.f32 %v6721_v63, %v2746_v1 }
 0x50e   :  { %v9084_v0 = vsel %vm2750_vm4, %v6721_v63, %v2747_v56  ;;  %v13624_v56 = vld [vmem:[#allocation17_spill] sm:$0xff] }
 0x50f   :  { %v9088_v42 = vmul.f32 %v9084_v0, %v13598_v9  ;;  %v9092_v18 = vmul.f32 %v9084_v0, %v13599_v39  ;;  %v9096_v52 = vmul.f32 %v9084_v0, %v13600_v41  ;;  %v9100_v14 = vmul.f32 %v9084_v0, %v13601_v5  ;;  %v13625_v39 = vld [vmem:[#allocation18_spill] sm:$0xff]  ;;  %v13626_v5 = vld [vmem:[#allocation19_spill] sm:$0xff] }
 0x510   :  { %v9104_v40 = vmul.f32 %v9084_v0, %v8140_v19  ;;  %v9108_v17 = vmul.f32 %v9084_v0, %v13604_v32  ;;  %v9112_v49 = vmul.f32 %v9084_v0, %v8158_v29  ;;  %v9116_v44 = vmul.f32 %v9084_v0, %v8167_v47 }
 0x511   :  { %13602 = vst [vmem:[#allocation64_spill] sm:$0xff] %v9100_v14  ;;  %v9120_v55 = vmul.f32 %v9084_v0, %v8174_v37  ;;  %v9124_v19 = vmul.f32 %v9084_v0, %v8181_v21  ;;  %v9128_v57 = vmul.f32 %v9084_v0, %v8190_v20  ;;  %v9132_v29 = vmul.f32 %v9084_v0, %v8199_v50  ;;  %v13654_v14 = vld [vmem:[#allocation41_spill] sm:$0xff] }
 0x512   :  { %13603 = vst [vmem:[#allocation67_spill] sm:$0xff] %v9104_v40  ;;  %v9136_v47 = vmul.f32 %v9084_v0, %v13612_v48  ;;  %v9140_v37 = vmul.f32 %v9084_v0, %v13614_v6  ;;  %v9144_v21 = vmul.f32 %v9084_v0, %v13616_v24  ;;  %v9148_v20 = vmul.f32 %v9084_v0, %v13618_v35  ;;  %v13627_v48 = vld [vmem:[#allocation20_spill] sm:$0xff]  ;;  %v13628_v24 = vld [vmem:[#allocation21_spill] sm:$0xff] }
 0x513   :  { %13605 = vst [vmem:[#allocation70_spill] sm:$0xff] %v9108_v17  ;;  %v9152_v50 = vmul.f32 %v9084_v0, %v13620_v60  ;;  %v9156_v63 = vmul.f32 %v9084_v0, %v13621_v4  ;;  %v9160_v58 = vmul.f32 %v9084_v0, %v13622_v38  ;;  %v9164_v1 = vmul.f32 %v9084_v0, %v13623_v28  ;;  %v13629_v60 = vld [vmem:[#allocation22_spill] sm:$0xff]  ;;  %v13630_v38 = vld [vmem:[#allocation23_spill] sm:$0xff]  ;;  %v13648_v17 = vld [vmem:[#allocation37_spill] sm:$0xff] }
 0x514   :  { %13606 = vst [vmem:[#allocation74_spill] sm:$0xff] %v9112_v49  ;;  %v9168_v9 = vmul.f32 %v9084_v0, %v13624_v56  ;;  %v9172_v41 = vmul.f32 %v9084_v0, %v13625_v39  ;;  %v9176_v32 = vmul.f32 %v9084_v0, %v13626_v5  ;;  %v9180_v6 = vmul.f32 %v9084_v0, %v13627_v48  ;;  %v13631_v56 = vld [vmem:[#allocation24_spill] sm:$0xff]  ;;  %v13632_v5 = vld [vmem:[#allocation25_spill] sm:$0xff] }
 0x515   :  { %13607 = vst [vmem:[#allocation77_spill] sm:$0xff] %v9116_v44  ;;  %v9184_v35 = vmul.f32 %v9084_v0, %v13628_v24  ;;  %v9188_v4 = vmul.f32 %v9084_v0, %v13629_v60  ;;  %v9192_v28 = vmul.f32 %v9084_v0, %v13630_v38  ;;  %v9196_v39 = vmul.f32 %v9084_v0, %v13631_v56  ;;  %v13644_v44 = vld [vmem:[#allocation35_spill] sm:$0xff]  ;;  %v13646_v49 = vld [vmem:[#allocation36_spill] sm:$0xff] }
 0x516   :  { %13608 = vst [vmem:[#allocation80_spill] sm:$0xff] %v9120_v55  ;;  %v9200_v48 = vmul.f32 %v9084_v0, %v13632_v5  ;;  %v9204_v24 = vmul.f32 %v9084_v0, %v13633_v12  ;;  %v13642_v55 = vld [vmem:[#allocation34_spill] sm:$0xff] }
 0x517   :  { %13609 = vst [vmem:[#allocation84_spill] sm:$0xff] %v9124_v19  ;;  %v13640_v19 = vld [vmem:[#allocation33_spill] sm:$0xff] }
 0x518   :  { %13610 = vst [vmem:[#allocation89_spill] sm:$0xff] %v9128_v57  ;;  %v13639_v57 = vld [vmem:[#allocation32_spill] sm:$0xff] }
 0x519   :  { %13611 = vst [vmem:[#allocation93_spill] sm:$0xff] %v9132_v29  ;;  %v13638_v29 = vld [vmem:[#allocation31_spill] sm:$0xff] }
 0x51a   :  { %13613 = vst [vmem:[#allocation97_spill] sm:$0xff] %v9136_v47  ;;  %v13637_v47 = vld [vmem:[#allocation30_spill] sm:$0xff]  ;;  %v9224_v12 = vmul.f32 %v9084_v0, %v13638_v29  ;;  %v9243_v29 = vmul.f32 %v9084_v0, %v13644_v44  ;;  %v9263_v44 = vmul.f32 %v9084_v0, %v13654_v14 }
 0x51b   :  { %13615 = vst [vmem:[#allocation101_spill] sm:$0xff] %v9140_v37  ;;  %v13636_v37 = vld [vmem:[#allocation29_spill] sm:$0xff]  ;;  %v9220_v5 = vmul.f32 %v9084_v0, %v13637_v47  ;;  %v6477_v47 = vld [vmem:[%s12674_s5 + $0xb0] sm:$0xff] }
 0x51c   :  { %13617 = vst [vmem:[#allocation106_spill] sm:$0xff] %v9144_v21  ;;  %v13635_v21 = vld [vmem:[#allocation28_spill] sm:$0xff]  ;;  %v9216_v56 = vmul.f32 %v9084_v0, %v13636_v37  ;;  %v9236_v37 = vmul.f32 %v9084_v0, %v13642_v55  ;;  %4700 = vmatpush.bf16.msrb.mxu3 %v6477_v47  ;;  %v9295_v47 = vmul.f32 %v9084_v0, %v8580_v22 }
 0x51d   :  { %13619 = vst [vmem:[#allocation109_spill] sm:$0xff] %v9148_v20  ;;  %v13634_v20 = vld [vmem:[#allocation27_spill] sm:$0xff]  ;;  %v9212_v38 = vmul.f32 %v9084_v0, %v13635_v21  ;;  %v9232_v21 = vmul.f32 %v9084_v0, %v13640_v19  ;;  %v9251_v19 = vmul.f32 %v9084_v0, %v13648_v17  ;;  %v9315_v22 = vmul.f32 %v9084_v0, %v8630_v15 }
 0x51e   :  { %v9208_v60 = vmul.f32 %v9084_v0, %v13634_v20  ;;  %v9228_v20 = vmul.f32 %v9084_v0, %v13639_v57  ;;  %13643 = vst [vmem:[#allocation115_spill] sm:$0xff] %v9236_v37  ;;  %v9247_v57 = vmul.f32 %v9084_v0, %v13646_v49  ;;  %v13652_v37 = vld [vmem:[#allocation39_spill] sm:$0xff]  ;;  %v9267_v49 = vmul.f32 %v9084_v0, %v8493_v34 }
 0x51f   :  { %13641 = vst [vmem:[#allocation112_spill] sm:$0xff] %v9232_v21  ;;  %v13650_v21 = vld [vmem:[#allocation38_spill] sm:$0xff]  ;;  %v9259_v40 = vmul.f32 %v9084_v0, %v13652_v37  ;;  %v9287_v34 = vmul.f32 %v9084_v0, %v8556_v16  ;;  %v9307_v16 = vmul.f32 %v9084_v0, %v8618_v61  ;;  %v9335_v15 = vmul.f32 %v9084_v0, %v8671_v13 }
 0x520   :  { %13645 = vst [vmem:[#allocation118_spill] sm:$0xff] %v9243_v29  ;;  %v9255_v55 = vmul.f32 %v9084_v0, %v13650_v21  ;;  %v13667_v29 = vld [vmem:[#allocation73_spill] sm:$0xff] }
 0x521   :  { %13647 = vst [vmem:[#allocation120_spill] sm:$0xff] %v9247_v57  ;;  %v13656_v57 = vld [vmem:[#allocation43_spill] sm:$0xff] }
 0x522   :  { %13649 = vst [vmem:[#allocation125_spill] sm:$0xff] %v9251_v19  ;;  %v9271_v17 = vmul.f32 %v9084_v0, %v13656_v57  ;;  %v13657_v19 = vld [vmem:[#allocation45_spill] sm:$0xff]  ;;  %v9291_v57 = vmul.f32 %v9084_v0, %v8566_v25  ;;  %v9311_v25 = vmul.f32 %v9084_v0, %v8625_v53 }
 0x523   :  { %13651 = vst [vmem:[#allocation129_spill] sm:$0xff] %v9255_v55  ;;  %v9275_v21 = vmul.f32 %v9084_v0, %v13657_v19  ;;  %v13658_v55 = vld [vmem:[#allocation46_spill] sm:$0xff]  ;;  %v9299_v19 = vmul.f32 %v9084_v0, %v8592_v3  ;;  %v9319_v3 = vmul.f32 %v9084_v0, %v8639_v33  ;;  %v9339_v33 = vmul.f32 %v9084_v0, %v13667_v29 }
 0x524   :  { %13653 = vst [vmem:[#allocation133_spill] sm:$0xff] %v9259_v40  ;;  %v9279_v37 = vmul.f32 %v9084_v0, %v13658_v55  ;;  %v13659_v40 = vld [vmem:[#allocation48_spill] sm:$0xff]  ;;  %v13662_v55 = vld [vmem:[#allocation66_spill] sm:$0xff] }
 0x525   :  { %13655 = vst [vmem:[#allocation137_spill] sm:$0xff] %v9263_v44  ;;  %v9283_v14 = vmul.f32 %v9084_v0, %v13659_v40  ;;  %v9303_v40 = vmul.f32 %v9084_v0, %v8604_v11  ;;  %v9323_v11 = vmul.f32 %v9084_v0, %v8648_v51  ;;  %v9327_v61 = vmul.f32 %v9084_v0, %v13662_v55  ;;  %v13664_v44 = vld [vmem:[#allocation69_spill] sm:$0xff] }
 0x526   :  { %13660 = vst [vmem:[#allocation141_spill] sm:$0xff] %v9319_v3  ;;  %v9331_v53 = vmul.f32 %v9084_v0, %v13664_v44  ;;  %v13668_v3 = vld [vmem:[#allocation79_spill] sm:$0xff] }
 0x527   :  { %13661 = vst [vmem:[#allocation145_spill] sm:$0xff] %v9323_v11  ;;  %v9343_v51 = vmul.f32 %v9084_v0, %v13668_v3  ;;  %v13669_v11 = vld [vmem:[#allocation85_spill] sm:$0xff]  ;;  %v9363_v3 = vmul.f32 %v9084_v0, %v8730_v54 }
 0x528   :  { %13663 = vst [vmem:[#allocation149_spill] sm:$0xff] %v9327_v61  ;;  %v9347_v55 = vmul.f32 %v9084_v0, %v13669_v11  ;;  %v13670_v61 = vld [vmem:[#allocation88_spill] sm:$0xff]  ;;  %v9367_v11 = vmul.f32 %v9084_v0, %v8739_v30  ;;  %v9387_v30 = vmul.f32 %v9084_v0, %v8786_v31 }
 0x529   :  { %13665 = vst [vmem:[#allocation153_spill] sm:$0xff] %v9331_v53  ;;  %v9351_v44 = vmul.f32 %v9084_v0, %v13670_v61  ;;  %v13671_v53 = vld [vmem:[#allocation92_spill] sm:$0xff]  ;;  %v9371_v61 = vmul.f32 %v9084_v0, %v8758_v43 }
 0x52a   :  { %13666 = vst [vmem:[#allocation157_spill] sm:$0xff] %v9335_v15  ;;  %v9355_v13 = vmul.f32 %v9084_v0, %v13671_v53  ;;  %v13672_v15 = vld [vmem:[#allocation99_spill] sm:$0xff]  ;;  %v9375_v53 = vmul.f32 %v9084_v0, %v8765_v26 }
 0x52b   :  { %v9359_v29 = vmul.f32 %v9084_v0, %v13672_v15  ;;  %13674 = vst [vmem:[#allocation165_spill] sm:$0xff] %v9367_v11  ;;  %v9379_v15 = vmul.f32 %v9084_v0, %v8772_v2  ;;  %v13681_v11 = vld [vmem:[#allocation65_spill] sm:$0xff] }
 0x52c   :  { %13675 = vst [vmem:[#allocation169_spill] sm:$0xff] %v9371_v61  ;;  %v9391_v43 = vmul.f32 %v9084_v0, %v13681_v11  ;;  %v13683_v61 = vld [vmem:[#allocation72_spill] sm:$0xff] }
 0x52d   :  { %13673 = vst [vmem:[#allocation161_spill] sm:$0xff] %v9359_v29  ;;  %v13678_v29 = vld [vmem:[#allocation62_spill] sm:$0xff]  ;;  %v9395_v26 = vmul.f32 %v9084_v0, %v13683_v61 }
 0x52e   :  { %13676 = vst [vmem:[#allocation172_spill] sm:$0xff] %v9375_v53  ;;  %v9383_v54 = vmul.f32 %v9084_v0, %v13678_v29  ;;  %v13684_v53 = vld [vmem:[#allocation75_spill] sm:$0xff] }
 0x52f   :  { %13677 = vst [vmem:[#allocation5_spill] sm:$0xff] %v9379_v15  ;;  %v9399_v2 = vmul.f32 %v9084_v0, %v13684_v53  ;;  %v13686_v15 = vld [vmem:[#allocation78_spill] sm:$0xff]  ;;  %v9420_v53 = vld [vmem:[%s12672_s3] ss:$0 sm:$0xff]  ;;  %s6757_s3 = smov 64  }
 0x530   :  { %13679 = vst [vmem:[#allocation6_spill] sm:$0xff] %v9383_v54  ;;  %v9403_v29 = vmul.f32 %v9084_v0, %v13686_v15  ;;  %v13688_v54 = vld [vmem:[#allocation81_spill] sm:$0xff] }
 0x531   :  { %13680 = vst [vmem:[#allocation182_spill] sm:$0xff] %v9387_v30  ;;  %v9407_v31 = vmul.f32 %v9084_v0, %v13688_v54  ;;  %v13690_v30 = vld [vmem:[#allocation90_spill] sm:$0xff] }
 0x532   :  { %13682 = vst [vmem:[#allocation183_spill] sm:$0xff] %v9391_v43  ;;  %v9411_v11 = vmul.f32 %v9084_v0, %v13690_v30  ;;  %v13691_v43 = vld [vmem:[#allocation94_spill] sm:$0xff] }
 0x533   :  { %13685 = vst [vmem:[#allocation8_spill] sm:$0xff] %v9399_v2  ;;  %v9415_v61 = vmul.f32 %v9084_v0, %v13691_v43  ;;  %v13693_v2 = vld [vmem:[#allocation103_spill] sm:$0xff]  ;;  %v9436_v43 = vmul.f32 %v9084_v0, %v8877_v23  ;;  %v9456_v23 = vmul.f32 %v9084_v0, %v8942_v59  ;;  %v9476_v59 = vmul.f32 %v9084_v0, %v9003_v8 }
 0x534   :  { %13687 = vst [vmem:[#allocation11_spill] sm:$0xff] %v9403_v29  ;;  %v9424_v15 = vmul.f32 %v9084_v0, %v13693_v2  ;;  %v13694_v29 = vld [vmem:[#allocation107_spill] sm:$0xff]  ;;  %v9444_v2 = vmul.f32 %v9084_v0, %v8908_v46  ;;  %v9496_v8 = vmul.f32 %v9420_v53, %v9152_v50  ;;  %v9516_v50 = vmul.f32 %v9420_v53, %v9172_v41 }
 0x535   :  { %13689 = vst [vmem:[#allocation12_spill] sm:$0xff] %v9407_v31  ;;  %v9428_v54 = vmul.f32 %v9084_v0, %v13694_v29  ;;  %v13695_v31 = vld [vmem:[#allocation110_spill] sm:$0xff]  ;;  %v9448_v29 = vmul.f32 %v9084_v0, %v8922_v45  ;;  %v9536_v41 = vmul.f32 %v9420_v53, %v9192_v28  ;;  %v9556_v28 = vmul.f32 %v9420_v53, %v9212_v38 }
 0x536   :  { %13692 = vst [vmem:[#allocation185_spill] sm:$0xff] %v9415_v61  ;;  %v9432_v30 = vmul.f32 %v9084_v0, %v13695_v31  ;;  %v9440_v61 = vmul.f32 %v9084_v0, %v8898_v7  ;;  %v9452_v31 = vmul.f32 %v9084_v0, %v8932_v10  ;;  %v9460_v7 = vmul.f32 %v9084_v0, %v8952_v27 }
 0x537   :  { %13697 = vst [vmem:[#allocation13_spill] sm:$0xff] %v9444_v2  ;;  %v13701_v2 = vld [vmem:[#allocation100_spill] sm:$0xff]  ;;  %v9472_v10 = vmul.f32 %v9084_v0, %v8996_v62  ;;  %v9480_v27 = vmul.f32 %v9084_v0, %v9013_v36  ;;  %v9500_v36 = vmul.f32 %v9420_v53, %v9156_v63  ;;  %v9520_v63 = vmul.f32 %v9420_v53, %v9176_v32 }
 0x538   :  { %13696 = vst [vmem:[#allocation186_spill] sm:$0xff] %v9440_v61  ;;  %v13699_v61 = vld [vmem:[#allocation91_spill] sm:$0xff]  ;;  %v9468_v45 = vmul.f32 %v9084_v0, %v13701_v2  ;;  %v9540_v32 = vmul.f32 %v9420_v53, %v9196_v39  ;;  %v9560_v39 = vmul.f32 %v9420_v53, %v9216_v56  ;;  %v9576_v38 = vmul.f32 %v9420_v53, %v9224_v12 }
 0x539   :  { %13698 = vst [vmem:[#allocation14_spill] sm:$0xff] %v9460_v7  ;;  %v9464_v46 = vmul.f32 %v9084_v0, %v13699_v61  ;;  %v13703_v7 = vld [vmem:[#allocation114_spill] sm:$0xff]  ;;  %v9580_v56 = vmul.f32 %v9420_v53, %v9228_v20 }
 0x53a   :  { %13702 = vst [vmem:[#allocation16_spill] sm:$0xff] %v9468_v45  ;;  %v9484_v61 = vmul.f32 %v9084_v0, %v13703_v7  ;;  %v13705_v45 = vld [vmem:[#allocation122_spill] sm:$0xff]  ;;  %v9504_v7 = vmul.f32 %v9420_v53, %v9160_v58  ;;  %v9524_v58 = vmul.f32 %v9420_v53, %v9180_v6  ;;  %v9544_v6 = vmul.f32 %v9420_v53, %v9200_v48 }
 0x53b   :  { %13700 = vst [vmem:[#allocation15_spill] sm:$0xff] %v9464_v46  ;;  %v13704_v46 = vld [vmem:[#allocation117_spill] sm:$0xff]  ;;  %v9492_v62 = vmul.f32 %v9084_v0, %v13705_v45  ;;  %v9512_v45 = vmul.f32 %v9420_v53, %v9168_v9  ;;  %v9532_v9 = vmul.f32 %v9420_v53, %v9188_v4  ;;  %v9552_v4 = vmul.f32 %v9420_v53, %v9208_v60 }
 0x53c   :  { %v9488_v2 = vmul.f32 %v9084_v0, %v13704_v46  ;;  %v9508_v46 = vmul.f32 %v9420_v53, %v9164_v1  ;;  %v9528_v1 = vmul.f32 %v9420_v53, %v9184_v35  ;;  %13706 = vst [vmem:[#allocation17_spill] sm:$0xff] %v9544_v6  ;;  %v9548_v35 = vmul.f32 %v9420_v53, %v9204_v24  ;;  %v13708_v6 = vld [vmem:[#allocation54_spill] sm:$0xff] }
 0x53d   :  { %v9564_v48 = vmul.f32 %v9420_v53, %v9220_v5  ;;  %v9568_v24 = vmul.f32 %v9084_v0, %v13708_v6  ;;  %13710 = vst [vmem:[#allocation19_spill] sm:$0xff] %v9576_v38  ;;  %v9584_v5 = vmul.f32 %v9420_v53, %v9088_v42  ;;  %v9588_v6 = vmul.f32 %v9420_v53, %v9092_v18  ;;  %v13713_v38 = vld [vmem:[#allocation67_spill] sm:$0xff] }
 0x53e   :  { %13707 = vst [vmem:[#allocation18_spill] sm:$0xff] %v9548_v35  ;;  %v13709_v35 = vld [vmem:[#allocation58_spill] sm:$0xff]  ;;  %v9600_v20 = vmul.f32 %v9420_v53, %v13713_v38  ;;  %v9608_v18 = vmul.f32 %v9420_v53, %v9267_v49  ;;  %v9620_v38 = vmul.f32 %v9420_v53, %v9279_v37  ;;  %v9628_v49 = vmul.f32 %v9420_v53, %v9287_v34 }
 0x53f   :  { %v9572_v60 = vmul.f32 %v9084_v0, %v13709_v35  ;;  %13711 = vst [vmem:[#allocation20_spill] sm:$0xff] %v9580_v56  ;;  %v9592_v0 = vmul.f32 %v9420_v53, %v9096_v52  ;;  %v13712_v35 = vld [vmem:[#allocation64_spill] sm:$0xff]  ;;  %v13714_v56 = vld [vmem:[#allocation70_spill] sm:$0xff]  ;;  %v9612_v52 = vmul.f32 %v9420_v53, %v9271_v17  ;;  %v9632_v17 = vmul.f32 %v9420_v53, %v9291_v57 }
 0x540   :  { %v9596_v12 = vmul.f32 %v9420_v53, %v13712_v35  ;;  %v9604_v42 = vmul.f32 %v9420_v53, %v13714_v56  ;;  %13715 = vst [vmem:[#allocation21_spill] sm:$0xff] %v9608_v18  ;;  %v9616_v35 = vmul.f32 %v9420_v53, %v9275_v21  ;;  %v9624_v56 = vmul.f32 %v9420_v53, %v9283_v14  ;;  %v13720_v18 = vld [vmem:[#allocation141_spill] sm:$0xff] }
 0x541   :  { %v9636_v21 = vmul.f32 %v9420_v53, %v9295_v47  ;;  %v9640_v37 = vmul.f32 %v9420_v53, %v9299_v19  ;;  %v9644_v14 = vmul.f32 %v9420_v53, %v9303_v40  ;;  %v9648_v34 = vmul.f32 %v9420_v53, %v9307_v16 }
 0x542   :  { %13716 = vst [vmem:[#allocation22_spill] sm:$0xff] %v9624_v56  ;;  %v9652_v57 = vmul.f32 %v9420_v53, %v9311_v25  ;;  %v9656_v47 = vmul.f32 %v9420_v53, %v9315_v22  ;;  %v9660_v19 = vmul.f32 %v9420_v53, %v13720_v18  ;;  %v13721_v56 = vld [vmem:[#allocation145_spill] sm:$0xff]  ;;  %v9680_v18 = vmul.f32 %v9420_v53, %v9339_v33 }
 0x543   :  { %13717 = vst [vmem:[#allocation23_spill] sm:$0xff] %v9644_v14  ;;  %v9664_v40 = vmul.f32 %v9420_v53, %v13721_v56  ;;  %v13722_v14 = vld [vmem:[#allocation149_spill] sm:$0xff]  ;;  %v9684_v56 = vmul.f32 %v9420_v53, %v9343_v51  ;;  %v9699_v33 = vmul.f32 %v9420_v53, %v9355_v13 }
 0x544   :  { %13718 = vst [vmem:[#allocation24_spill] sm:$0xff] %v9648_v34  ;;  %v9668_v16 = vmul.f32 %v9420_v53, %v13722_v14  ;;  %v13723_v34 = vld [vmem:[#allocation153_spill] sm:$0xff]  ;;  %v9688_v14 = vmul.f32 %v9420_v53, %v9347_v55  ;;  %v9707_v55 = vmul.f32 %v9420_v53, %v9363_v3 }
 0x545   :  { %13719 = vst [vmem:[#allocation25_spill] sm:$0xff] %v9652_v57  ;;  %v9672_v25 = vmul.f32 %v9420_v53, %v13723_v34  ;;  %v13724_v57 = vld [vmem:[#allocation157_spill] sm:$0xff]  ;;  %v9692_v34 = vmul.f32 %v9420_v53, %v9351_v44 }
 0x546   :  { %v9676_v22 = vmul.f32 %v9420_v53, %v13724_v57  ;;  %13726 = vst [vmem:[#allocation27_spill] sm:$0xff] %v9680_v18  ;;  %v6476_v57 = vld [vmem:[%s12674_s5 + $0xa8] sm:$0xff]  ;;  %v13731_v18 = vld [vmem:[#allocation161_spill] sm:$0xff] }
 0x547   :  { %13727 = vst [vmem:[#allocation28_spill] sm:$0xff] %v9684_v56  ;;  %v9703_v51 = vmul.f32 %v9420_v53, %v13731_v18  ;;  %4701 = vmatpush.bf16.msrb.mxu3 %v6476_v57  ;;  %v13750_v57 = vld [vmem:[#allocation12_spill] sm:$0xff] }
 0x548   :  { %13725 = vst [vmem:[#allocation26_spill] sm:$0xff] %v9676_v22  ;;  %v13737_v22 = vld [vmem:[#allocation172_spill] sm:$0xff] }
 0x549   :  { %13728 = vst [vmem:[#allocation29_spill] sm:$0xff] %v9688_v14  ;;  %v13734_v14 = vld [vmem:[#allocation165_spill] sm:$0xff]  ;;  %v9719_v13 = vmul.f32 %v9420_v53, %v13737_v22  ;;  %v9739_v22 = vmul.f32 %v9420_v53, %v9395_v26 }
 0x54a   :  { %13729 = vst [vmem:[#allocation30_spill] sm:$0xff] %v9692_v34  ;;  %v9711_v44 = vmul.f32 %v9420_v53, %v13734_v14  ;;  %v13736_v34 = vld [vmem:[#allocation169_spill] sm:$0xff] }
 0x54b   :  { %13730 = vst [vmem:[#allocation31_spill] sm:$0xff] %v9699_v33  ;;  %v9715_v56 = vmul.f32 %v9420_v53, %v13736_v34  ;;  %v13739_v33 = vld [vmem:[#allocation5_spill] sm:$0xff] }
 0x54c   :  { %13732 = vst [vmem:[#allocation32_spill] sm:$0xff] %v9703_v51  ;;  %v9723_v18 = vmul.f32 %v9420_v53, %v13739_v33  ;;  %v13741_v51 = vld [vmem:[#allocation6_spill] sm:$0xff] }
 0x54d   :  { %13733 = vst [vmem:[#allocation33_spill] sm:$0xff] %v9707_v55  ;;  %v9727_v3 = vmul.f32 %v9420_v53, %v13741_v51  ;;  %v13742_v55 = vld [vmem:[#allocation182_spill] sm:$0xff] }
 0x54e   :  { %13735 = vst [vmem:[#allocation34_spill] sm:$0xff] %v9711_v44  ;;  %v9731_v14 = vmul.f32 %v9420_v53, %v13742_v55  ;;  %v13743_v44 = vld [vmem:[#allocation183_spill] sm:$0xff]  ;;  %v9751_v55 = vmul.f32 %v9420_v53, %v13750_v57  ;;  %v9771_v57 = vmul.f32 %v9420_v53, %v9432_v30  ;;  %v9791_v30 = vmul.f32 %v9420_v53, %v9452_v31 }
 0x54f   :  { %13738 = vst [vmem:[#allocation35_spill] sm:$0xff] %v9719_v13  ;;  %v9735_v34 = vmul.f32 %v9420_v53, %v13743_v44  ;;  %v13746_v13 = vld [vmem:[#allocation8_spill] sm:$0xff]  ;;  %v9755_v44 = vmul.f32 %v9420_v53, %v9411_v11  ;;  %v9775_v11 = vmul.f32 %v9420_v53, %v9436_v43  ;;  %v9795_v43 = vmul.f32 %v9420_v53, %v9456_v23 }
 0x550   :  { %13740 = vst [vmem:[#allocation36_spill] sm:$0xff] %v9723_v18  ;;  %v9743_v33 = vmul.f32 %v9420_v53, %v13746_v13  ;;  %v13748_v18 = vld [vmem:[#allocation11_spill] sm:$0xff]  ;;  %v9763_v13 = vmul.f32 %v9420_v53, %v9424_v15  ;;  %v9811_v31 = vmul.f32 %v9420_v53, %v9472_v10  ;;  %v9815_v23 = vmul.f32 %v9420_v53, %v9476_v59 }
 0x551   :  { %13744 = vst [vmem:[#allocation37_spill] sm:$0xff] %v9735_v34  ;;  %v9747_v51 = vmul.f32 %v9420_v53, %v13748_v18  ;;  %v13753_v34 = vld [vmem:[#allocation185_spill] sm:$0xff]  ;;  %v9767_v18 = vmul.f32 %v9420_v53, %v9428_v54  ;;  %v9787_v54 = vmul.f32 %v9420_v53, %v9448_v29  ;;  %v9831_v10 = vmul.f32 %v9420_v53, %v9492_v62 }
 0x552   :  { %13745 = vst [vmem:[#allocation38_spill] sm:$0xff] %v9739_v22  ;;  %v9759_v26 = vmul.f32 %v9420_v53, %v13753_v34  ;;  %v9835_v59 = vmul.f32 %v9420_v53, %v9568_v24  ;;  %v13783_v24 = vld [vmem:[#allocation84_spill] sm:$0xff]  ;;  %v13797_v22 = vld [vmem:[#allocation137_spill] sm:$0xff] }
 0x553   :  { %13747 = vst [vmem:[#allocation39_spill] sm:$0xff] %v9743_v33  ;;  %v13796_v33 = vld [vmem:[#allocation133_spill] sm:$0xff] }
 0x554   :  { %13749 = vst [vmem:[#allocation41_spill] sm:$0xff] %v9747_v51  ;;  %v13795_v51 = vld [vmem:[#allocation129_spill] sm:$0xff] }
 0x555   :  { %13751 = vst [vmem:[#allocation43_spill] sm:$0xff] %v9751_v55  ;;  %v13794_v55 = vld [vmem:[#allocation125_spill] sm:$0xff] }
 0x556   :  { %13752 = vst [vmem:[#allocation45_spill] sm:$0xff] %v9755_v44  ;;  %v13759_v44 = vld [vmem:[#allocation186_spill] sm:$0xff] }
 0x557   :  { %13754 = vst [vmem:[#allocation46_spill] sm:$0xff] %v9759_v26  ;;  %v9779_v34 = vmul.f32 %v9420_v53, %v13759_v44  ;;  %v13761_v26 = vld [vmem:[#allocation13_spill] sm:$0xff] }
 0x558   :  { %13755 = vst [vmem:[#allocation48_spill] sm:$0xff] %v9763_v13  ;;  %v9783_v15 = vmul.f32 %v9420_v53, %v13761_v26  ;;  %v13793_v13 = vld [vmem:[#allocation120_spill] sm:$0xff] }
 0x559   :  { %13756 = vst [vmem:[#allocation66_spill] sm:$0xff] %v9767_v18  ;;  %v13792_v18 = vld [vmem:[#allocation118_spill] sm:$0xff] }
 0x55a   :  { %13757 = vst [vmem:[#allocation69_spill] sm:$0xff] %v9771_v57  ;;  %v13791_v57 = vld [vmem:[#allocation115_spill] sm:$0xff] }
 0x55b   :  { %13758 = vst [vmem:[#allocation73_spill] sm:$0xff] %v9775_v11  ;;  %v13766_v11 = vld [vmem:[#allocation14_spill] sm:$0xff] }
 0x55c   :  { %13760 = vst [vmem:[#allocation79_spill] sm:$0xff] %v9779_v34  ;;  %v9799_v44 = vmul.f32 %v9420_v53, %v13766_v11  ;;  %v13768_v34 = vld [vmem:[#allocation15_spill] sm:$0xff]  ;;  %v9819_v11 = vmul.f32 %v9420_v53, %v9480_v27  ;;  %v9839_v27 = vmul.f32 %v9420_v53, %v9572_v60 }
 0x55d   :  { %13762 = vst [vmem:[#allocation85_spill] sm:$0xff] %v9783_v15  ;;  %v9803_v26 = vmul.f32 %v9420_v53, %v13768_v34  ;;  %v13770_v15 = vld [vmem:[#allocation16_spill] sm:$0xff]  ;;  %v9823_v34 = vmul.f32 %v9420_v53, %v9484_v61  ;;  %v9844_v61 = vld [vmem:[%s12673_s4] ss:$0 sm:$0xff] }
 0x55e   :  { %13763 = vst [vmem:[#allocation88_spill] sm:$0xff] %v9787_v54  ;;  %v9807_v29 = vmul.f32 %v9420_v53, %v13770_v15  ;;  %v9827_v15 = vmul.f32 %v9420_v53, %v9488_v2  ;;  %v13790_v54 = vld [vmem:[#allocation112_spill] sm:$0xff] }
 0x55f   :  { %13764 = vst [vmem:[#allocation92_spill] sm:$0xff] %v9791_v30  ;;  %v13789_v30 = vld [vmem:[#allocation109_spill] sm:$0xff] }
 0x560   :  { %13765 = vst [vmem:[#allocation99_spill] sm:$0xff] %v9795_v43  ;;  %v13788_v43 = vld [vmem:[#allocation106_spill] sm:$0xff] }
 0x561   :  { %13767 = vst [vmem:[#allocation62_spill] sm:$0xff] %v9799_v44  ;;  %v13787_v44 = vld [vmem:[#allocation101_spill] sm:$0xff] }
 0x562   :  { %13769 = vst [vmem:[#allocation65_spill] sm:$0xff] %v9803_v26 }
 0x563   :  { %13771 = vst [vmem:[#allocation72_spill] sm:$0xff] %v9807_v29  ;;  %v13786_v29 = vld [vmem:[#allocation97_spill] sm:$0xff] }
 0x564   :  { %13772 = vst [vmem:[#allocation75_spill] sm:$0xff] %v9811_v31  ;;  %v2869_v26 = vmul.f32 %v9420_v53, %v13786_v29  ;;  %v2896_v29 = vmul.f32 %v9420_v53, %v13793_v13 }
 0x565   :  { %13773 = vst [vmem:[#allocation78_spill] sm:$0xff] %v9815_v23  ;;  %v13784_v23 = vld [vmem:[#allocation89_spill] sm:$0xff] }
 0x566   :  { %13774 = vst [vmem:[#allocation81_spill] sm:$0xff] %v9819_v11  ;;  %v2867_v60 = vmul.f32 %v9420_v53, %v13784_v23  ;;  %v2894_v23 = vmul.f32 %v9420_v53, %v13791_v57  ;;  %v9884_v57 = vadd.f32 %v9844_v61, %v9584_v5 }
 0x567   :  { %13775 = vst [vmem:[#allocation90_spill] sm:$0xff] %v9823_v34  ;;  %v13780_v34 = vld [vmem:[#allocation74_spill] sm:$0xff] }
 0x568   :  { %13776 = vst [vmem:[#allocation94_spill] sm:$0xff] %v9827_v15  ;;  %v2863_v2 = vmul.f32 %v9420_v53, %v13780_v34  ;;  %v13781_v15 = vld [vmem:[#allocation77_spill] sm:$0xff]  ;;  %v2870_v34 = vmul.f32 %v9420_v53, %v13787_v44  ;;  %v2897_v44 = vmul.f32 %v9420_v53, %v13794_v55  ;;  %v9892_v55 = vadd.f32 %v9844_v61, %v9592_v0 }
 0x569   :  { %13777 = vst [vmem:[#allocation103_spill] sm:$0xff] %v9831_v10  ;;  %v2864_v62 = vmul.f32 %v9420_v53, %v13781_v15  ;;  %v13782_v10 = vld [vmem:[#allocation80_spill] sm:$0xff]  ;;  %v2871_v15 = vmul.f32 %v9420_v53, %v13788_v43  ;;  %v2898_v43 = vmul.f32 %v9420_v53, %v13795_v51  ;;  %v9896_v51 = vadd.f32 %v9844_v61, %v9596_v12 }
 0x56a   :  { %13778 = vst [vmem:[#allocation107_spill] sm:$0xff] %v9835_v59  ;;  %v2865_v11 = vmul.f32 %v9420_v53, %v13782_v10  ;;  %v2866_v59 = vmul.f32 %v9420_v53, %v13783_v24  ;;  %v2872_v10 = vmul.f32 %v9420_v53, %v13789_v30  ;;  %v2893_v24 = vmul.f32 %v9420_v53, %v13790_v54 }
 0x56b   :  { %13779 = vst [vmem:[#allocation110_spill] sm:$0xff] %v9839_v27  ;;  %v13785_v27 = vld [vmem:[#allocation93_spill] sm:$0xff]  ;;  %v2899_v30 = vmul.f32 %v9420_v53, %v13796_v33  ;;  %v2900_v54 = vmul.f32 %v9420_v53, %v13797_v22  ;;  %v9900_v33 = vadd.f32 %v9844_v61, %v9600_v20  ;;  %v9907_v5 = vadd.f32 %v9844_v61, %v2863_v2 }
 0x56c   :  { %v2868_v31 = vmul.f32 %v9420_v53, %v13785_v27  ;;  %v2895_v27 = vmul.f32 %v9420_v53, %v13792_v18  ;;  %v9888_v18 = vadd.f32 %v9844_v61, %v9588_v6  ;;  %v9904_v53 = vadd.f32 %v9844_v61, %v9604_v42 }
 0x56d   :  { %v9910_v6 = vadd.f32 %v9844_v61, %v2864_v62  ;;  %v9913_v0 = vadd.f32 %v9844_v61, %v2865_v11  ;;  %v9916_v12 = vadd.f32 %v9844_v61, %v2866_v59  ;;  %v9919_v22 = vadd.f32 %v9844_v61, %v2867_v60 }
 0x56e   :  { %v9922_v20 = vadd.f32 %v9844_v61, %v2868_v31  ;;  %v9925_v42 = vadd.f32 %v9844_v61, %v2869_v26  ;;  %v9928_v13 = vadd.f32 %v9844_v61, %v2870_v34  ;;  %v9931_v2 = vadd.f32 %v9844_v61, %v2871_v15  ;;  %v13801_v34 = vld [vmem:[#allocation17_spill] sm:$0xff]  ;;  %v13802_v15 = vld [vmem:[#allocation18_spill] sm:$0xff] }
 0x56f   :  { %v9934_v11 = vadd.f32 %v9844_v61, %v2872_v10  ;;  %v9938_v59 = vadd.f32 %v9844_v61, %v9496_v8  ;;  %v9942_v31 = vadd.f32 %v9844_v61, %v9500_v36  ;;  %v9946_v26 = vadd.f32 %v9844_v61, %v9504_v7 }
 0x570   :  { %v9950_v62 = vadd.f32 %v9844_v61, %v9508_v46  ;;  %v9954_v60 = vadd.f32 %v9844_v61, %v9512_v45  ;;  %v9958_v8 = vadd.f32 %v9844_v61, %v9516_v50  ;;  %v9962_v36 = vadd.f32 %v9844_v61, %v9520_v63 }
 0x571   :  { %v9966_v7 = vadd.f32 %v9844_v61, %v9524_v58  ;;  %v9970_v46 = vadd.f32 %v9844_v61, %v9528_v1  ;;  %v9974_v45 = vadd.f32 %v9844_v61, %v9532_v9  ;;  %v9978_v50 = vadd.f32 %v9844_v61, %v9536_v41 }
 0x572   :  { %13798 = vst [vmem:[#allocation91_spill] sm:$0xff] %v9958_v8  ;;  %v9982_v63 = vadd.f32 %v9844_v61, %v9540_v32  ;;  %v9986_v58 = vadd.f32 %v9844_v61, %v13801_v34  ;;  %v9990_v1 = vadd.f32 %v9844_v61, %v13802_v15  ;;  %v9994_v9 = vadd.f32 %v9844_v61, %v9552_v4  ;;  %v13806_v34 = vld [vmem:[#allocation19_spill] sm:$0xff] }
 0x573   :  { %13799 = vst [vmem:[#allocation100_spill] sm:$0xff] %v9962_v36  ;;  %v9998_v41 = vadd.f32 %v9844_v61, %v9556_v28  ;;  %v10002_v32 = vadd.f32 %v9844_v61, %v9560_v39  ;;  %v10006_v10 = vadd.f32 %v9844_v61, %v9564_v48  ;;  %v10010_v15 = vadd.f32 %v9844_v61, %v13806_v34  ;;  %v13954_v36 = vld [vmem:[#allocation126_spill] sm:$0xff] }
 0x574   :  { %13800 = vst [vmem:[#allocation114_spill] sm:$0xff] %v9966_v7  ;;  %v10020_v28 = vadd.f32 %v9844_v61, %v2894_v23  ;;  %v10023_v39 = vadd.f32 %v9844_v61, %v2895_v27  ;;  %v10026_v48 = vadd.f32 %v9844_v61, %v2896_v29  ;;  %v10032_v34 = vadd.f32 %v9844_v61, %v2898_v43  ;;  %v13956_v7 = vld [vmem:[#allocation123_spill] sm:$0xff] }
 0x575   :  { %13803 = vst [vmem:[#allocation117_spill] sm:$0xff] %v9990_v1  ;;  %v13807_v1 = vld [vmem:[#allocation20_spill] sm:$0xff]  ;;  %v10042_v23 = vadd.f32 %v9844_v61, %v9612_v52  ;;  %v10046_v27 = vadd.f32 %v9844_v61, %v9616_v35  ;;  %v10050_v29 = vadd.f32 %v9844_v61, %v9620_v38  ;;  %v10058_v43 = vadd.f32 %v9844_v61, %v9632_v17 }
 0x576   :  { %13804 = vst [vmem:[#allocation122_spill] sm:$0xff] %v9994_v9  ;;  %v10014_v4 = vadd.f32 %v9844_v61, %v13807_v1  ;;  %v10017_v9 = vadd.f32 %v9844_v61, %v2893_v24  ;;  %v10035_v1 = vadd.f32 %v9844_v61, %v2899_v30  ;;  %v10038_v24 = vadd.f32 %v9844_v61, %v2900_v54  ;;  %v13818_v30 = vld [vmem:[#allocation24_spill] sm:$0xff]  ;;  %v13820_v54 = vld [vmem:[#allocation25_spill] sm:$0xff] }
 0x577   :  { %13805 = vst [vmem:[#allocation54_spill] sm:$0xff] %v10006_v10  ;;  %v10029_v10 = vadd.f32 %v9844_v61, %v2897_v44  ;;  %v10054_v44 = vadd.f32 %v9844_v61, %v9628_v49  ;;  %v10062_v52 = vadd.f32 %v9844_v61, %v9636_v21  ;;  %v10066_v35 = vadd.f32 %v9844_v61, %v9640_v37  ;;  %v6475_v21 = vld [vmem:[%s12674_s5 + $0xa0] sm:$0xff] }
 0x578   :  { %13808 = vst [vmem:[#allocation58_spill] sm:$0xff] %v10032_v34  ;;  %v10070_v38 = vadd.f32 %v9844_v61, %v13818_v30  ;;  %v10074_v49 = vadd.f32 %v9844_v61, %v13820_v54  ;;  %v10078_v17 = vadd.f32 %v9844_v61, %v9656_v47  ;;  %v10085_v37 = vadd.f32 %v9844_v61, %v9660_v19 }
 0x579   :  { %13809 = vst [vmem:[#allocation64_spill] sm:$0xff] %v10035_v1  ;;  %v10089_v30 = vadd.f32 %v9844_v61, %v9664_v40  ;;  %v10093_v54 = vadd.f32 %v9844_v61, %v9668_v16  ;;  %v10097_v47 = vadd.f32 %v9844_v61, %v9672_v25  ;;  %4702 = vmatpush.bf16.msrb.mxu3 %v6475_v21  ;;  %v13955_v8 = vmax.f32 %v9888_v18, 0.0 }
 0x57a   :  { %13810 = vst [vmem:[#allocation67_spill] sm:$0xff] %v10038_v24  ;;  %v10137_v21 = vadd.f32 %v9844_v61, %v9715_v56  ;;  %v13963_v18 = vmax.f32 %v9904_v53, 0.0  ;;  %v13971_v53 = vmax.f32 %v9916_v12, 0.0  ;;  %v13979_v12 = vmax.f32 %v9928_v13, 0.0 }
 0x57b   :  { %13811 = vst [vmem:[#allocation70_spill] sm:$0xff] %v10042_v23  ;;  %v13952_v23 = vld [vmem:[#allocation121_spill] sm:$0xff]  ;;  %v13987_v13 = vmax.f32 %v9942_v31, 0.0  ;;  %v6470_v31 = vld [vmem:[%s12674_s5 + $0x78] sm:$0xff] }
 0x57c   :  { %13812 = vst [vmem:[#allocation141_spill] sm:$0xff] %v10046_v27  ;;  %4650 = vmatpush.bf16.msrb.mxu2 %v6470_v31  ;;  %v14030_v31 = vld [vmem:[#allocation170_spill] sm:$0xff] }
 0x57d   :  { %13813 = vst [vmem:[#allocation145_spill] sm:$0xff] %v10050_v29 }
 0x57e   :  { %13814 = vst [vmem:[#allocation149_spill] sm:$0xff] %v10054_v44 }
 0x57f   :  { %13815 = vst [vmem:[#allocation153_spill] sm:$0xff] %v10058_v43  ;;  %v10373_v43 = vmul.f32 %v13955_v8, %v13954_v36  ;;  %v13964_v36 = vld [vmem:[#allocation130_spill] sm:$0xff] }
 0x580   :  { %13816 = vst [vmem:[#allocation157_spill] sm:$0xff] %v10062_v52 }
 0x581   :  { %13817 = vst [vmem:[#allocation161_spill] sm:$0xff] %v10066_v35  ;;  %v14003_v35 = vld [vmem:[#allocation114_spill] sm:$0xff] }
 0x582   :  { %13819 = vst [vmem:[#allocation165_spill] sm:$0xff] %v10070_v38  ;;  %v13829_v38 = vld [vmem:[#allocation27_spill] sm:$0xff] }
 0x583   :  { %13821 = vst [vmem:[#allocation169_spill] sm:$0xff] %v10074_v49  ;;  %v10105_v19 = vadd.f32 %v9844_v61, %v13829_v38 }
 0x584   :  { %13822 = vst [vmem:[#allocation172_spill] sm:$0xff] %v10078_v17  ;;  %v13827_v17 = vld [vmem:[#allocation26_spill] sm:$0xff] }
 0x585   :  { %13823 = vst [vmem:[#allocation5_spill] sm:$0xff] %v10085_v37  ;;  %v10101_v49 = vadd.f32 %v9844_v61, %v13827_v17  ;;  %v13831_v37 = vld [vmem:[#allocation28_spill] sm:$0xff] }
 0x586   :  { %13824 = vst [vmem:[#allocation6_spill] sm:$0xff] %v10089_v30  ;;  %v10109_v40 = vadd.f32 %v9844_v61, %v13831_v37  ;;  %v13833_v30 = vld [vmem:[#allocation29_spill] sm:$0xff] }
 0x587   :  { %13825 = vst [vmem:[#allocation182_spill] sm:$0xff] %v10093_v54  ;;  %v10113_v16 = vadd.f32 %v9844_v61, %v13833_v30  ;;  %v13835_v54 = vld [vmem:[#allocation30_spill] sm:$0xff] }
 0x588   :  { %13826 = vst [vmem:[#allocation183_spill] sm:$0xff] %v10097_v47  ;;  %v10117_v25 = vadd.f32 %v9844_v61, %v13835_v54  ;;  %v13837_v47 = vld [vmem:[#allocation31_spill] sm:$0xff] }
 0x589   :  { %13828 = vst [vmem:[#allocation8_spill] sm:$0xff] %v10101_v49  ;;  %v10121_v17 = vadd.f32 %v9844_v61, %v13837_v47  ;;  %v13839_v49 = vld [vmem:[#allocation32_spill] sm:$0xff]  ;;  %v13846_v54 = vld [vmem:[#allocation35_spill] sm:$0xff] }
 0x58a   :  { %13830 = vst [vmem:[#allocation11_spill] sm:$0xff] %v10105_v19  ;;  %v10125_v38 = vadd.f32 %v9844_v61, %v13839_v49  ;;  %v13841_v19 = vld [vmem:[#allocation33_spill] sm:$0xff]  ;;  %v10141_v47 = vadd.f32 %v9844_v61, %v13846_v54 }
 0x58b   :  { %13832 = vst [vmem:[#allocation12_spill] sm:$0xff] %v10109_v40  ;;  %v10129_v37 = vadd.f32 %v9844_v61, %v13841_v19  ;;  %v13843_v40 = vld [vmem:[#allocation34_spill] sm:$0xff]  ;;  %v10149_v19 = vadd.f32 %v9844_v61, %v9727_v3  ;;  %v13910_v34 = vld [vmem:[#allocation169_spill] sm:$0xff]  ;;  %v13911_v1 = vld [vmem:[#allocation172_spill] sm:$0xff] }
 0x58c   :  { %13834 = vst [vmem:[#allocation185_spill] sm:$0xff] %v10113_v16  ;;  %v10133_v30 = vadd.f32 %v9844_v61, %v13843_v40  ;;  %v10153_v40 = vadd.f32 %v9844_v61, %v9731_v14  ;;  %v13912_v24 = vld [vmem:[#allocation5_spill] sm:$0xff] }
 0x58d   :  { %13836 = vst [vmem:[#allocation186_spill] sm:$0xff] %v10117_v25  ;;  %v14004_v25 = vmax.f32 %v14003_v35, 0.0  ;;  %v14012_v35 = vmax.f32 %v9982_v63, 0.0  ;;  %v14020_v63 = vmax.f32 %v9998_v41, 0.0  ;;  %v14029_v41 = vmax.f32 %v10014_v4, 0.0  ;;  %v14036_v4 = vld [vmem:[#allocation173_spill] sm:$0xff] }
 0x58e   :  { %13838 = vst [vmem:[#allocation13_spill] sm:$0xff] %v10121_v17  ;;  %v13848_v17 = vld [vmem:[#allocation36_spill] sm:$0xff] }
 0x58f   :  { %13840 = vst [vmem:[#allocation14_spill] sm:$0xff] %v10125_v38  ;;  %v10145_v49 = vadd.f32 %v9844_v61, %v13848_v17 }
 0x590   :  { %13842 = vst [vmem:[#allocation15_spill] sm:$0xff] %v10129_v37 }
 0x591   :  { %13844 = vst [vmem:[#allocation16_spill] sm:$0xff] %v10133_v30  ;;  %v13852_v30 = vld [vmem:[#allocation37_spill] sm:$0xff] }
 0x592   :  { %13845 = vst [vmem:[#allocation74_spill] sm:$0xff] %v10137_v21  ;;  %v10157_v56 = vadd.f32 %v9844_v61, %v13852_v30  ;;  %v13854_v21 = vld [vmem:[#allocation38_spill] sm:$0xff] }
 0x593   :  { %13847 = vst [vmem:[#allocation77_spill] sm:$0xff] %v10141_v47  ;;  %v10161_v54 = vadd.f32 %v9844_v61, %v13854_v21  ;;  %v13856_v47 = vld [vmem:[#allocation39_spill] sm:$0xff] }
 0x594   :  { %13849 = vst [vmem:[#allocation80_spill] sm:$0xff] %v10145_v49  ;;  %v10165_v17 = vadd.f32 %v9844_v61, %v13856_v47  ;;  %v13858_v49 = vld [vmem:[#allocation41_spill] sm:$0xff] }
 0x595   :  { %13850 = vst [vmem:[#allocation84_spill] sm:$0xff] %v10149_v19  ;;  %v10169_v3 = vadd.f32 %v9844_v61, %v13858_v49  ;;  %v13860_v19 = vld [vmem:[#allocation43_spill] sm:$0xff] }
 0x596   :  { %13851 = vst [vmem:[#allocation89_spill] sm:$0xff] %v10153_v40  ;;  %v10173_v14 = vadd.f32 %v9844_v61, %v13860_v19  ;;  %v13862_v40 = vld [vmem:[#allocation45_spill] sm:$0xff] }
 0x597   :  { %13853 = vst [vmem:[#allocation93_spill] sm:$0xff] %v10157_v56  ;;  %v10177_v30 = vadd.f32 %v9844_v61, %v13862_v40  ;;  %v13864_v56 = vld [vmem:[#allocation46_spill] sm:$0xff] }
 0x598   :  { %13855 = vst [vmem:[#allocation97_spill] sm:$0xff] %v10161_v54  ;;  %v10181_v21 = vadd.f32 %v9844_v61, %v13864_v56  ;;  %v13866_v54 = vld [vmem:[#allocation48_spill] sm:$0xff] }
 0x599   :  { %13857 = vst [vmem:[#allocation101_spill] sm:$0xff] %v10165_v17  ;;  %v10185_v47 = vadd.f32 %v9844_v61, %v13866_v54  ;;  %v13868_v17 = vld [vmem:[#allocation66_spill] sm:$0xff] }
 0x59a   :  { %13859 = vst [vmem:[#allocation106_spill] sm:$0xff] %v10169_v3  ;;  %v10189_v49 = vadd.f32 %v9844_v61, %v13868_v17  ;;  %v13870_v3 = vld [vmem:[#allocation69_spill] sm:$0xff] }
 0x59b   :  { %13861 = vst [vmem:[#allocation109_spill] sm:$0xff] %v10173_v14  ;;  %v10193_v19 = vadd.f32 %v9844_v61, %v13870_v3  ;;  %v13872_v14 = vld [vmem:[#allocation73_spill] sm:$0xff] }
 0x59c   :  { %13863 = vst [vmem:[#allocation112_spill] sm:$0xff] %v10177_v30  ;;  %v10197_v40 = vadd.f32 %v9844_v61, %v13872_v14  ;;  %v13874_v30 = vld [vmem:[#allocation79_spill] sm:$0xff] }
 0x59d   :  { %13865 = vst [vmem:[#allocation115_spill] sm:$0xff] %v10181_v21  ;;  %v10201_v56 = vadd.f32 %v9844_v61, %v13874_v30  ;;  %v13876_v21 = vld [vmem:[#allocation85_spill] sm:$0xff] }
 0x59e   :  { %13867 = vst [vmem:[#allocation118_spill] sm:$0xff] %v10185_v47  ;;  %v10205_v54 = vadd.f32 %v9844_v61, %v13876_v21  ;;  %v13878_v47 = vld [vmem:[#allocation88_spill] sm:$0xff] }
 0x59f   :  { %13869 = vst [vmem:[#allocation120_spill] sm:$0xff] %v10189_v49  ;;  %v10209_v17 = vadd.f32 %v9844_v61, %v13878_v47  ;;  %v13880_v49 = vld [vmem:[#allocation92_spill] sm:$0xff] }
 0x5a0   :  { %13871 = vst [vmem:[#allocation125_spill] sm:$0xff] %v10193_v19  ;;  %v10213_v3 = vadd.f32 %v9844_v61, %v13880_v49  ;;  %v13882_v19 = vld [vmem:[#allocation99_spill] sm:$0xff] }
 0x5a1   :  { %13873 = vst [vmem:[#allocation129_spill] sm:$0xff] %v10197_v40  ;;  %v10217_v14 = vadd.f32 %v9844_v61, %v13882_v19  ;;  %v13884_v40 = vld [vmem:[#allocation62_spill] sm:$0xff] }
 0x5a2   :  { %13875 = vst [vmem:[#allocation133_spill] sm:$0xff] %v10201_v56  ;;  %v10221_v30 = vadd.f32 %v9844_v61, %v13884_v40  ;;  %v13886_v56 = vld [vmem:[#allocation65_spill] sm:$0xff] }
 0x5a3   :  { %13877 = vst [vmem:[#allocation137_spill] sm:$0xff] %v10205_v54  ;;  %v10225_v21 = vadd.f32 %v9844_v61, %v13886_v56  ;;  %v13888_v54 = vld [vmem:[#allocation72_spill] sm:$0xff] }
 0x5a4   :  { %13879 = vst [vmem:[#allocation17_spill] sm:$0xff] %v10209_v17  ;;  %v10229_v47 = vadd.f32 %v9844_v61, %v13888_v54  ;;  %v13890_v17 = vld [vmem:[#allocation75_spill] sm:$0xff] }
 0x5a5   :  { %13881 = vst [vmem:[#allocation18_spill] sm:$0xff] %v10213_v3  ;;  %v10233_v49 = vadd.f32 %v9844_v61, %v13890_v17  ;;  %v13892_v3 = vld [vmem:[#allocation78_spill] sm:$0xff] }
 0x5a6   :  { %13883 = vst [vmem:[#allocation19_spill] sm:$0xff] %v10217_v14  ;;  %v10237_v19 = vadd.f32 %v9844_v61, %v13892_v3  ;;  %v13894_v14 = vld [vmem:[#allocation81_spill] sm:$0xff] }
 0x5a7   :  { %13885 = vst [vmem:[#allocation20_spill] sm:$0xff] %v10221_v30  ;;  %v10241_v40 = vadd.f32 %v9844_v61, %v13894_v14  ;;  %v13896_v30 = vld [vmem:[#allocation90_spill] sm:$0xff] }
 0x5a8   :  { %13887 = vst [vmem:[#allocation24_spill] sm:$0xff] %v10225_v21  ;;  %v10245_v56 = vadd.f32 %v9844_v61, %v13896_v30  ;;  %v13898_v21 = vld [vmem:[#allocation94_spill] sm:$0xff]  ;;  %v13953_v30 = vmax.f32 %v9884_v57, 0.0  ;;  %v13961_v57 = vmax.f32 %v9900_v33, 0.0  ;;  %v13969_v33 = vmax.f32 %v9913_v0, 0.0 }
 0x5a9   :  { %13889 = vst [vmem:[#allocation25_spill] sm:$0xff] %v10229_v47  ;;  %v10249_v54 = vadd.f32 %v9844_v61, %v13898_v21  ;;  %v13900_v47 = vld [vmem:[#allocation103_spill] sm:$0xff]  ;;  %v13906_v21 = vld [vmem:[#allocation117_spill] sm:$0xff]  ;;  %v13977_v0 = vmax.f32 %v9925_v42, 0.0  ;;  %v13985_v42 = vmax.f32 %v9938_v59, 0.0  ;;  %v6462_v59 = vld [vmem:[%s12674_s5 + $0x38] sm:$0xff] }
 0x5aa   :  { %13891 = vst [vmem:[#allocation26_spill] sm:$0xff] %v10233_v49  ;;  %v10253_v17 = vadd.f32 %v9844_v61, %v13900_v47  ;;  %v13902_v49 = vld [vmem:[#allocation107_spill] sm:$0xff]  ;;  %v13908_v47 = vld [vmem:[#allocation54_spill] sm:$0xff]  ;;  %4601 = vmatpush.bf16.msrb.mxu1 %v6462_v59  ;;  %v14021_v59 = vld [vmem:[#allocation164_spill] sm:$0xff] }
 0x5ab   :  { %13893 = vst [vmem:[#allocation27_spill] sm:$0xff] %v10237_v19  ;;  %v10257_v3 = vadd.f32 %v9844_v61, %v13902_v49  ;;  %v13904_v19 = vld [vmem:[#allocation110_spill] sm:$0xff] }
 0x5ac   :  { %13895 = vst [vmem:[#allocation28_spill] sm:$0xff] %v10241_v40  ;;  %v10261_v14 = vadd.f32 %v9844_v61, %v13904_v19  ;;  %v13907_v40 = vld [vmem:[#allocation122_spill] sm:$0xff]  ;;  %v13959_v61 = vmax.f32 %v9896_v51, 0.0  ;;  %v13960_v19 = vld [vmem:[#allocation124_spill] sm:$0xff]  ;;  %v13967_v51 = vmax.f32 %v9910_v6, 0.0  ;;  %v13975_v6 = vmax.f32 %v9922_v20, 0.0 }
 0x5ad   :  { %13897 = vst [vmem:[#allocation29_spill] sm:$0xff] %v10245_v56  ;;  %v13909_v56 = vld [vmem:[#allocation165_spill] sm:$0xff]  ;;  %v13941_v37 = vld [vmem:[#allocation19_spill] sm:$0xff]  ;;  %v13983_v20 = vmax.f32 %v9934_v11, 0.0  ;;  %v13992_v11 = vmax.f32 %v9950_v62, 0.0 }
 0x5ae   :  { %13899 = vst [vmem:[#allocation30_spill] sm:$0xff] %v10249_v54  ;;  %v6474_v54 = vld [vmem:[%s12674_s5 + $0x98] sm:$0xff]  ;;  %v13999_v62 = vld [vmem:[#allocation151_spill] sm:$0xff] }
 0x5af   :  { %13901 = vst [vmem:[#allocation31_spill] sm:$0xff] %v10253_v17  ;;  %4703 = vmatpush.bf16.msrb.mxu3 %v6474_v54  ;;  %v13943_v27 = vld [vmem:[#allocation24_spill] sm:$0xff]  ;;  %v10368_v54 = vmul.f32 %v13953_v30, %v13952_v23  ;;  %v13957_v17 = vmax.f32 %v9892_v55, 0.0  ;;  %v10388_v23 = vmul.f32 %v13961_v57, %v13960_v19  ;;  %v13965_v55 = vmax.f32 %v9907_v5, 0.0  ;;  %v13970_v57 = vld [vmem:[#allocation134_spill] sm:$0xff] }
 0x5b0   :  { %13903 = vst [vmem:[#allocation32_spill] sm:$0xff] %v10257_v3  ;;  %v13944_v29 = vld [vmem:[#allocation25_spill] sm:$0xff]  ;;  %v13958_v3 = vld [vmem:[#allocation127_spill] sm:$0xff]  ;;  %v13962_v30 = vld [vmem:[#allocation128_spill] sm:$0xff]  ;;  %v13973_v5 = vmax.f32 %v9919_v22, 0.0  ;;  %v13981_v22 = vmax.f32 %v9931_v2, 0.0 }
 0x5b1   :  { %13905 = vst [vmem:[#allocation33_spill] sm:$0xff] %v10261_v14  ;;  %v13945_v44 = vld [vmem:[#allocation26_spill] sm:$0xff]  ;;  %v10378_v49 = vmul.f32 %v13957_v17, %v13956_v7  ;;  %v10383_v38 = vmul.f32 %v13959_v61, %v13958_v3  ;;  %v10393_v8 = vmul.f32 %v13963_v18, %v13962_v30  ;;  %v10398_v7 = vmul.f32 %v13965_v55, %v13964_v36  ;;  %v13966_v17 = vld [vmem:[#allocation131_spill] sm:$0xff]  ;;  %v13968_v61 = vld [vmem:[#allocation132_spill] sm:$0xff] }
 0x5b2   :  { %v10403_v3 = vmul.f32 %v13967_v51, %v13966_v17  ;;  %v10408_v19 = vmul.f32 %v13969_v33, %v13968_v61  ;;  %v10413_v30 = vmul.f32 %v13971_v53, %v13970_v57  ;;  %v13972_v18 = vld [vmem:[#allocation135_spill] sm:$0xff]  ;;  %v13974_v55 = vld [vmem:[#allocation136_spill] sm:$0xff]  ;;  %v13976_v51 = vld [vmem:[#allocation138_spill] sm:$0xff]  ;;  %v13990_v2 = vmax.f32 %v9946_v26, 0.0 }
 0x5b3   :  { %v13947_v52 = vld [vmem:[#allocation28_spill] sm:$0xff]  ;;  %v10418_v36 = vmul.f32 %v13973_v5, %v13972_v18  ;;  %v10423_v17 = vmul.f32 %v13975_v6, %v13974_v55  ;;  %v10428_v61 = vmul.f32 %v13977_v0, %v13976_v51  ;;  %v13978_v33 = vld [vmem:[#allocation139_spill] sm:$0xff]  ;;  %v13982_v5 = vld [vmem:[#allocation142_spill] sm:$0xff] }
 0x5b4   :  { %v10433_v57 = vmul.f32 %v13979_v12, %v13978_v33  ;;  %v13980_v53 = vld [vmem:[#allocation140_spill] sm:$0xff]  ;;  %v10443_v55 = vmul.f32 %v13983_v20, %v13982_v5  ;;  %v13984_v6 = vld [vmem:[#allocation143_spill] sm:$0xff]  ;;  %v13989_v12 = vld [vmem:[#allocation146_spill] sm:$0xff] }
 0x5b5   :  { %v10438_v18 = vmul.f32 %v13981_v22, %v13980_v53  ;;  %v10448_v51 = vmul.f32 %v13985_v42, %v13984_v6  ;;  %v13986_v0 = vld [vmem:[#allocation144_spill] sm:$0xff]  ;;  %v10458_v53 = vmul.f32 %v13990_v2, %v13989_v12  ;;  %v13991_v22 = vld [vmem:[#allocation147_spill] sm:$0xff]  ;;  %v13995_v6 = vmax.f32 %v9954_v60, 0.0  ;;  %v13996_v26 = vld [vmem:[#allocation150_spill] sm:$0xff] }
 0x5b6   :  { %v10453_v33 = vmul.f32 %v13987_v13, %v13986_v0  ;;  %v10463_v5 = vmul.f32 %v13992_v11, %v13991_v22  ;;  %v13994_v20 = vld [vmem:[#allocation148_spill] sm:$0xff]  ;;  %v13997_v0 = vld [vmem:[#allocation91_spill] sm:$0xff]  ;;  %v14006_v60 = vmax.f32 %v9970_v46, 0.0  ;;  %v14014_v46 = vmax.f32 %v9986_v58, 0.0 }
 0x5b7   :  { %v10474_v42 = vmul.f32 %v13995_v6, %v13994_v20  ;;  %v13998_v13 = vmax.f32 %v13997_v0, 0.0  ;;  %v14000_v2 = vld [vmem:[#allocation100_spill] sm:$0xff]  ;;  %v14007_v6 = vld [vmem:[#allocation155_spill] sm:$0xff]  ;;  %v14008_v0 = vmax.f32 %v9974_v45, 0.0  ;;  %v14016_v45 = vmax.f32 %v13906_v21, 0.0 }
 0x5b8   :  { %13988 = vst [vmem:[#allocation34_spill] sm:$0xff] %v10453_v33  ;;  %v14001_v22 = vmax.f32 %v14000_v2, 0.0  ;;  %v14002_v14 = vld [vmem:[#allocation152_spill] sm:$0xff]  ;;  %v14010_v2 = vmax.f32 %v9978_v50, 0.0  ;;  %v14018_v50 = vmax.f32 %v13907_v40, 0.0  ;;  %v14022_v58 = vmax.f32 %v10002_v32, 0.0 }
 0x5b9   :  { %13993 = vst [vmem:[#allocation35_spill] sm:$0xff] %v10463_v5  ;;  %v10479_v12 = vmul.f32 %v13998_v13, %v13996_v26  ;;  %v10489_v16 = vmul.f32 %v14004_v25, %v14002_v14  ;;  %v14005_v5 = vld [vmem:[#allocation154_spill] sm:$0xff]  ;;  %v10499_v26 = vmul.f32 %v14008_v0, %v14007_v6  ;;  %v14009_v13 = vld [vmem:[#allocation156_spill] sm:$0xff]  ;;  %v14013_v14 = vld [vmem:[#allocation159_spill] sm:$0xff]  ;;  %v14024_v21 = vmax.f32 %v13908_v47, 0.0 }
 0x5ba   :  { %v10484_v11 = vmul.f32 %v14001_v22, %v13999_v62  ;;  %v10494_v20 = vmul.f32 %v14006_v60, %v14005_v5  ;;  %v10504_v62 = vmul.f32 %v14010_v2, %v14009_v13  ;;  %v14011_v22 = vld [vmem:[#allocation158_spill] sm:$0xff]  ;;  %v10514_v5 = vmul.f32 %v14014_v46, %v14013_v14  ;;  %v14015_v60 = vld [vmem:[#allocation160_spill] sm:$0xff]  ;;  %v14019_v2 = vld [vmem:[#allocation163_spill] sm:$0xff] }
 0x5bb   :  { %v10509_v25 = vmul.f32 %v14012_v35, %v14011_v22  ;;  %v10519_v6 = vmul.f32 %v14016_v45, %v14015_v60  ;;  %v14017_v0 = vld [vmem:[#allocation162_spill] sm:$0xff]  ;;  %v10529_v22 = vmul.f32 %v14020_v63, %v14019_v2  ;;  %v10534_v35 = vmul.f32 %v14022_v58, %v14021_v59  ;;  %v14025_v60 = vld [vmem:[#allocation167_spill] sm:$0xff] }
 0x5bc   :  { %v10524_v13 = vmul.f32 %v14018_v50, %v14017_v0  ;;  %v14023_v14 = vld [vmem:[#allocation166_spill] sm:$0xff]  ;;  %v14026_v40 = vmax.f32 %v10010_v15, 0.0  ;;  %v14028_v0 = vld [vmem:[#allocation168_spill] sm:$0xff]  ;;  %v6461_v32 = vld [vmem:[%s12674_s5 + $0x30] sm:$0xff]  ;;  %v14031_v2 = vmax.f32 %v10017_v9, 0.0  ;;  %v14034_v59 = vmax.f32 %v10020_v28, 0.0 }
 0x5bd   :  { %v10539_v46 = vmul.f32 %v14024_v21, %v14023_v14  ;;  %v10549_v50 = vmul.f32 %v14029_v41, %v14028_v0  ;;  %v6469_v47 = vld [vmem:[%s12674_s5 + $0x70] sm:$0xff]  ;;  %v14037_v14 = vmax.f32 %v10023_v39, 0.0  ;;  %v14043_v9 = vmax.f32 %v10029_v10, 0.0  ;;  %4602 = vmatpush.bf16.msrb.mxu1 %v6461_v32  ;;  %v14058_v10 = vld [vmem:[#allocation70_spill] sm:$0xff]  ;;  %v14071_v32 = vld [vmem:[#allocation192_spill] sm:$0xff] }
 0x5be   :  { %v10544_v45 = vmul.f32 %v14026_v40, %v14025_v60  ;;  %v10560_v63 = vmul.f32 %v14031_v2, %v14030_v31  ;;  %v14033_v15 = vld [vmem:[#allocation171_spill] sm:$0xff]  ;;  %v14039_v60 = vld [vmem:[#allocation174_spill] sm:$0xff]  ;;  %v14040_v40 = vmax.f32 %v10026_v48, 0.0  ;;  %v14045_v2 = vld [vmem:[#allocation176_spill] sm:$0xff]  ;;  %4651 = vmatpush.bf16.msrb.mxu2 %v6469_v47  ;;  %v14141_v33 = vpack.c.bf16 %v10383_v38, %v10383_v38 }
 0x5bf   :  { %v10565_v58 = vmul.f32 %v14034_v59, %v14033_v15  ;;  %v10570_v21 = vmul.f32 %v14037_v14, %v14036_v4  ;;  %v14042_v41 = vld [vmem:[#allocation175_spill] sm:$0xff]  ;;  %v14049_v59 = vld [vmem:[#allocation177_spill] sm:$0xff]  ;;  %v14053_v14 = vld [vmem:[#allocation178_spill] sm:$0xff]  ;;  %v14145_v38 = vpack.c.bf16 %v10398_v7, %v10398_v7  ;;  %v14153_v7 = vpack.c.bf16 %v10423_v17, %v10423_v17 }
 0x5c0   :  { %14027 = vst [vmem:[#allocation36_spill] sm:$0xff] %v10544_v45  ;;  %v10575_v0 = vmul.f32 %v14040_v40, %v14039_v60  ;;  %v10580_v31 = vmul.f32 %v14043_v9, %v14042_v41  ;;  %v14057_v40 = vld [vmem:[#allocation180_spill] sm:$0xff]  ;;  %v14059_v41 = vmax.f32 %v14058_v10, 0.0  ;;  %v14074_v10 = vld [vmem:[#allocation193_spill] sm:$0xff]  ;;  %v14084_v47 = vld [vmem:[#allocation198_spill] sm:$0xff]  ;;  %v14137_v45 = vpack.c.bf16 %v10368_v54, %v10368_v54 }
 0x5c1   :  { %14032 = vst [vmem:[#allocation37_spill] sm:$0xff] %v10560_v63  ;;  %v14046_v63 = vld [vmem:[#allocation58_spill] sm:$0xff]  ;;  %v14159_v17 = vpack.c.bf16 %v10458_v53, %v10458_v53 }
 0x5c2   :  { %14035 = vst [vmem:[#allocation38_spill] sm:$0xff] %v10565_v58  ;;  %v14047_v28 = vmax.f32 %v14046_v63, 0.0  ;;  %v14050_v58 = vld [vmem:[#allocation64_spill] sm:$0xff]  ;;  %v10600_v9 = vmul.f32 %v14059_v41, %v14057_v40  ;;  %v14061_v63 = vld [vmem:[#allocation141_spill] sm:$0xff] }
 0x5c3   :  { %14038 = vst [vmem:[#allocation39_spill] sm:$0xff] %v10570_v21  ;;  %v14051_v39 = vmax.f32 %v14050_v58, 0.0  ;;  %v14054_v21 = vld [vmem:[#allocation67_spill] sm:$0xff]  ;;  %v14065_v58 = vld [vmem:[#allocation145_spill] sm:$0xff] }
 0x5c4   :  { %14041 = vst [vmem:[#allocation41_spill] sm:$0xff] %v10575_v0  ;;  %v10585_v15 = vmul.f32 %v14047_v28, %v14045_v2  ;;  %v14055_v48 = vmax.f32 %v14054_v21, 0.0  ;;  %v14062_v2 = vmax.f32 %v14061_v63, 0.0  ;;  %v14069_v21 = vmax.f32 %v13909_v56, 0.0  ;;  %v14077_v63 = vld [vmem:[#allocation194_spill] sm:$0xff] }
 0x5c5   :  { %14044 = vst [vmem:[#allocation43_spill] sm:$0xff] %v10580_v31  ;;  %v10590_v4 = vmul.f32 %v14051_v39, %v14049_v59  ;;  %v14060_v31 = vld [vmem:[#allocation181_spill] sm:$0xff]  ;;  %v14066_v59 = vmax.f32 %v14065_v58, 0.0  ;;  %v14080_v58 = vld [vmem:[#allocation196_spill] sm:$0xff]  ;;  %v14081_v56 = vld [vmem:[#allocation182_spill] sm:$0xff] }
 0x5c6   :  { %14048 = vst [vmem:[#allocation45_spill] sm:$0xff] %v10585_v15  ;;  %v10595_v60 = vmul.f32 %v14055_v48, %v14053_v14  ;;  %v10605_v28 = vmul.f32 %v14062_v2, %v14060_v31  ;;  %v14064_v15 = vld [vmem:[#allocation184_spill] sm:$0xff]  ;;  %v14072_v48 = vmax.f32 %v13910_v34, 0.0  ;;  %v14075_v31 = vmax.f32 %v13911_v1, 0.0  ;;  %v6460_v34 = vld [vmem:[%s12674_s5 + $0x28] sm:$0xff] }
 0x5c7   :  { %14052 = vst [vmem:[#allocation46_spill] sm:$0xff] %v10590_v4  ;;  %v10610_v39 = vmul.f32 %v14066_v59, %v14064_v15  ;;  %v14068_v4 = vld [vmem:[#allocation191_spill] sm:$0xff]  ;;  %v14078_v15 = vmax.f32 %v13912_v24, 0.0  ;;  %v6468_v1 = vld [vmem:[%s12674_s5 + $0x68] sm:$0xff]  ;;  %v14088_v24 = vld [vmem:[#allocation200_spill] sm:$0xff]  ;;  %4603 = vmatpush.bf16.msrb.mxu1 %v6460_v34 }
 0x5c8   :  { %14056 = vst [vmem:[#allocation48_spill] sm:$0xff] %v10595_v60  ;;  %v10615_v14 = vmul.f32 %v14069_v21, %v14068_v4  ;;  %v10620_v40 = vmul.f32 %v14072_v48, %v14071_v32  ;;  %v10625_v41 = vmul.f32 %v14075_v31, %v14074_v10  ;;  %v14082_v4 = vmax.f32 %v14081_v56, 0.0  ;;  %v14085_v21 = vld [vmem:[#allocation8_spill] sm:$0xff]  ;;  %4652 = vmatpush.bf16.msrb.mxu2 %v6468_v1  ;;  %v6467_v1 = vld [vmem:[%s12674_s5 + $0x60] sm:$0xff] }
 0x5c9   :  { %14063 = vst [vmem:[#allocation66_spill] sm:$0xff] %v10605_v28  ;;  %v10630_v2 = vmul.f32 %v14078_v15, %v14077_v63  ;;  %v14086_v32 = vmax.f32 %v14085_v21, 0.0  ;;  %v14089_v10 = vld [vmem:[#allocation12_spill] sm:$0xff]  ;;  %v14092_v15 = vld [vmem:[#allocation102_spill] sm:$0xff]  ;;  %v14138_v28 = vpack.c.bf16 %v10373_v43, %v10373_v43  ;;  %v14142_v60 = vpack.c.bf16 %v10388_v23, %v10388_v23  ;;  %v6463_v43 = vld [vmem:[%s12674_s5 + $0x40] sm:$0xff] }
 0x5ca   :  { %14067 = vst [vmem:[#allocation69_spill] sm:$0xff] %v10610_v39  ;;  %v10635_v59 = vmul.f32 %v14082_v4, %v14080_v58  ;;  %v14090_v31 = vmax.f32 %v14089_v10, 0.0  ;;  %v14093_v58 = vld [vmem:[#allocation133_spill] sm:$0xff]  ;;  %v14121_v34 = vld [vmem:[#allocation104_spill] sm:$0xff]  ;;  %v14147_v23 = vpack.c.bf16 %v10403_v3, %v10403_v3  ;;  %v14154_v3 = vpack.c.bf16 %v10428_v61, %v10428_v61 }
 0x5cb   :  { %14070 = vst [vmem:[#allocation73_spill] sm:$0xff] %v10615_v14  ;;  %v10646_v48 = vmul.f32 %v14086_v32, %v14084_v47  ;;  %v14094_v56 = vmax.f32 %v14093_v58, 0.0  ;;  %v14099_v14 = vld [vmem:[#allocation68_spill] sm:$0xff]  ;;  %v14100_v39 = vld [vmem:[#allocation17_spill] sm:$0xff]  ;;  %v14102_v32 = vld [vmem:[#allocation86_spill] sm:$0xff]  ;;  %v14106_v58 = vmax.f32 %v13941_v37, 0.0  ;;  %v3404_v0 = vunpack.c.l.b16 %v14138_v28 }
 0x5cc   :  { %14073 = vst [vmem:[#allocation79_spill] sm:$0xff] %v10620_v40  ;;  %v10651_v63 = vmul.f32 %v14090_v31, %v14088_v24  ;;  %v14101_v21 = vmax.f32 %v14100_v39, 0.0  ;;  %v14105_v31 = vld [vmem:[#allocation98_spill] sm:$0xff]  ;;  %v14111_v39 = vmax.f32 %v13943_v27, 0.0  ;;  %v14115_v37 = vmax.f32 %v13945_v44, 0.0  ;;  %4653 = vmatpush.bf16.msrb.mxu2 %v6467_v1  ;;  %v6466_v1 = vld [vmem:[%s12674_s5 + $0x58] sm:$0xff] }
 0x5cd   :  { %14076 = vst [vmem:[#allocation85_spill] sm:$0xff] %v10625_v41  ;;  %v10656_v4 = vmul.f32 %v14094_v56, %v14092_v15  ;;  %v10676_v15 = vmul.f32 %v14106_v58, %v14105_v31  ;;  %v14107_v56 = vld [vmem:[#allocation113_spill] sm:$0xff]  ;;  %v14117_v58 = vld [vmem:[#allocation96_spill] sm:$0xff]  ;;  %v14122_v27 = vmax.f32 %v13947_v52, 0.0  ;;  %v14128_v44 = vld [vmem:[#allocation43_spill] sm:$0xff]  ;;  %v10859_v52 = vunpack.c.l.b16 %v14137_v45 }
 0x5ce   :  { %14079 = vst [vmem:[#allocation88_spill] sm:$0xff] %v10630_v2  ;;  %v14097_v2 = vld [vmem:[#allocation137_spill] sm:$0xff]  ;;  %v10666_v47 = vmul.f32 %v14101_v21, %v14099_v14  ;;  %v14112_v21 = vld [vmem:[#allocation83_spill] sm:$0xff]  ;;  %v10875_v54 = vunpack.c.l.b16 %v14142_v60  ;;  %v3410_v60 = vunpack.c.l.b16 %v14147_v23  ;;  %v10913_v23 = vunpack.c.l.b16 %v14154_v3 }
 0x5cf   :  { %14083 = vst [vmem:[#allocation92_spill] sm:$0xff] %v10635_v59  ;;  %v14096_v59 = vld [vmem:[#allocation105_spill] sm:$0xff]  ;;  %v14098_v41 = vmax.f32 %v14097_v2, 0.0  ;;  %v10929_v61 = vunpack.c.l.b16 %v14159_v17  ;;  %v14163_v3 = vpack.c.bf16 %v10474_v42, %v10474_v42  ;;  %v6494_v42 = vld [vmem:[%s12674_s5 + $0x138] sm:$0xff] }
 0x5d0   :  { %14087 = vst [vmem:[#allocation99_spill] sm:$0xff] %v10646_v48  ;;  %v14103_v48 = vld [vmem:[#allocation18_spill] sm:$0xff]  ;;  %4654 = vmatpush.bf16.msrb.mxu2 %v6466_v1  ;;  %v6465_v1 = vld [vmem:[%s12674_s5 + $0x50] sm:$0xff]  ;;  %v6455_v45 = vld [vmem:[%s12674_s5] sm:$0xff] }
 0x5d1   :  { %14091 = vst [vmem:[#allocation62_spill] sm:$0xff] %v10651_v63  ;;  %v10661_v40 = vmul.f32 %v14098_v41, %v14096_v59  ;;  %v14104_v10 = vmax.f32 %v14103_v48, 0.0  ;;  %v14110_v59 = vld [vmem:[#allocation116_spill] sm:$0xff]  ;;  %v14113_v48 = vmax.f32 %v13944_v29, 0.0  ;;  %v3406_v63 = vunpack.c.l.b16 %v14141_v33 }
 0x5d2   :  { %14095 = vst [vmem:[#allocation65_spill] sm:$0xff] %v10656_v4  ;;  %v14108_v4 = vld [vmem:[#allocation20_spill] sm:$0xff]  ;;  %v10686_v14 = vmul.f32 %v14111_v39, %v14110_v59  ;;  %v10706_v59 = vmul.f32 %v14122_v27, %v14121_v34  ;;  %v6457_v27 = vld [vmem:[%s12674_s5 + $0x10] sm:$0xff]  ;;  %v14132_v39 = vld [vmem:[#allocation73_spill] sm:$0xff]  ;;  %v10889_v33 = vunpack.c.l.b16 %v14145_v38  ;;  %v3414_v38 = vunpack.c.l.b16 %v14153_v7 }
 0x5d3   :  { %v10671_v24 = vmul.f32 %v14104_v10, %v14102_v32  ;;  %v14109_v2 = vmax.f32 %v14108_v4, 0.0  ;;  %v10691_v32 = vmul.f32 %v14113_v48, %v14112_v21  ;;  %v14114_v10 = vld [vmem:[#allocation87_spill] sm:$0xff]  ;;  %v6459_v21 = vld [vmem:[%s12674_s5 + $0x20] sm:$0xff]  ;;  %v6456_v34 = vld [vmem:[%s12674_s5 + $0x8] sm:$0xff]  ;;  %14143 = vst [vmem:[#allocation90_spill] sm:$0xff] %v10875_v54 }
 0x5d4   :  { %v10696_v31 = vmul.f32 %v14115_v37, %v14114_v10  ;;  %v14118_v4 = vld [vmem:[#allocation27_spill] sm:$0xff]  ;;  %14123 = vst [vmem:[#allocation78_spill] sm:$0xff] %v10706_v59  ;;  %4604 = vmatpush.bf16.msrb.mxu1 %v6459_v21  ;;  %v6458_v37 = vld [vmem:[%s12674_s5 + $0x18] sm:$0xff]  ;;  %v14125_v10 = vld [vmem:[#allocation37_spill] sm:$0xff]  ;;  %4655 = vmatpush.bf16.msrb.mxu2 %v6465_v1 }
 0x5d5   :  { %v10681_v41 = vmul.f32 %v14109_v2, %v14107_v56  ;;  %v14119_v56 = vmax.f32 %v14118_v4, 0.0  ;;  %v14126_v21 = vld [vmem:[#allocation38_spill] sm:$0xff]  ;;  %v14127_v4 = vld [vmem:[#allocation39_spill] sm:$0xff]  ;;  %14146 = vst [vmem:[#allocation94_spill] sm:$0xff] %v10889_v33 }
 0x5d6   :  { %14116 = vst [vmem:[#allocation72_spill] sm:$0xff] %v10696_v31  ;;  %v14133_v29 = vld [vmem:[#allocation79_spill] sm:$0xff]  ;;  %v6464_v1 = vld [vmem:[%s12674_s5 + $0x48] sm:$0xff] }
 0x5d7   :  { %v10701_v2 = vmul.f32 %v14119_v56, %v14117_v58  ;;  %v14124_v58 = vld [vmem:[#allocation35_spill] sm:$0xff]  ;;  %v14135_v56 = vld [vmem:[#allocation88_spill] sm:$0xff]  ;;  %14155 = vst [vmem:[#allocation110_spill] sm:$0xff] %v10913_v23 }
 0x5d8   :  { %4605 = vmatpush.bf16.msrb.mxu1 %v6458_v37  ;;  %4656 = vmatpush.bf16.msrb.mxu2 %v6464_v1  ;;  %v14148_v1 = vpack.c.bf16 %v10408_v19, %v10408_v19  ;;  %v6473_v19 = vld [vmem:[%s12674_s5 + $0x90] sm:$0xff]  ;;  %14160 = vst [vmem:[#allocation122_spill] sm:$0xff] %v10929_v61 }
 0x5d9   :  { %14120 = vst [vmem:[#allocation75_spill] sm:$0xff] %v10701_v2  ;;  %v14136_v37 = vld [vmem:[#allocation65_spill] sm:$0xff]  ;;  %v14150_v2 = vpack.c.bf16 %v10413_v30, %v10413_v30  ;;  %v14156_v30 = vpack.c.bf16 %v10433_v57, %v10433_v57  ;;  %4704 = vmatpush.bf16.msrb.mxu3 %v6473_v19 }
 0x5db   :  { %v3412_v31 = vunpack.c.l.b16 %v14150_v2  ;;  %v14157_v2 = vpack.c.bf16 %v10438_v18, %v10438_v18  ;;  %v10940_v18 = vunpack.c.l.b16 %v14163_v3  ;;  %v14171_v3 = vpack.c.bf16 %v10499_v26, %v10499_v26 }
 0x5dc   :  { %4606 = vmatpush.bf16.msrb.mxu1 %v6457_v27  ;;  %v14134_v27 = vld [vmem:[#allocation85_spill] sm:$0xff]  ;;  %4657 = vmatpush.bf16.msrb.mxu2 %v6463_v43 }
 0x5dd   :  { %14164 = vst [vmem:[#allocation54_spill] sm:$0xff] %v10940_v18 }
 0x5e0   :  { %4607 = vmatpush.bf16.msrb.mxu1 %v6456_v34  ;;  %v14139_v34 = vpack.c.bf16 %v10378_v49, %v10378_v49  ;;  %v14144_v49 = vpack.c.bf16 %v10393_v8, %v10393_v8  ;;  %v14151_v8 = vpack.c.bf16 %v10418_v36, %v10418_v36  ;;  %v3416_v36 = vunpack.c.l.b16 %v14156_v30  ;;  %4797 = vmatpush.bf16.msra.mxu2 %v6494_v42 }
 0x5e1   :  { %v14165_v30 = vpack.c.bf16 %v10479_v12, %v10479_v12  ;;  %v14169_v12 = vpack.c.bf16 %v10494_v20, %v10494_v20  ;;  %v14174_v20 = vpack.c.bf16 %v10509_v25, %v10509_v25 }
 0x5e2   :  { %v10867_v48 = vunpack.c.l.b16 %v14139_v34  ;;  %v3408_v28 = vunpack.c.l.b16 %v14144_v49  ;;  %v10897_v34 = vunpack.c.l.b16 %v14148_v1  ;;  %v10905_v49 = vunpack.c.l.b16 %v14151_v8 }
 0x5e3   :  { %v10924_v1 = vunpack.c.l.b16 %v14157_v2  ;;  %v14161_v8 = vpack.c.bf16 %v14124_v58, %v14124_v58  ;;  %v3422_v53 = vunpack.c.l.b16 %v14165_v30  ;;  %v14166_v2 = vpack.c.bf16 %v10484_v11, %v10484_v11 }
 0x5e4   :  { %14140 = vst [vmem:[#allocation81_spill] sm:$0xff] %v10867_v48  ;;  %4608 = vmatpush.bf16.msrb.mxu1 %v6455_v45  ;;  %v14162_v45 = vpack.c.bf16 %v10443_v55, %v10443_v55  ;;  %v6472_v55 = vld [vmem:[%s12674_s5 + $0x88] sm:$0xff]  ;;  %v14168_v58 = vpack.c.bf16 %v10489_v16, %v10489_v16  ;;  %v3435_v11 = vpack.c.b16 %v3404_v0, %v10859_v52  ;;  %v3426_v30 = vunpack.c.l.b16 %v14171_v3 }
 0x5e5   :  { %14149 = vst [vmem:[#allocation103_spill] sm:$0xff] %v10897_v34  ;;  %v3420_v7 = vunpack.c.l.b16 %v14161_v8  ;;  %v10948_v17 = vunpack.c.l.b16 %v14166_v2  ;;  %v10962_v8 = vunpack.c.l.b16 %v14169_v12  ;;  %v3436_v19 = vpack.c.b16 %v3406_v63, %v10867_v48  ;;  %4705 = vmatpush.bf16.msrb.mxu3 %v6472_v55 }
 0x5e6   :  { %14152 = vst [vmem:[#allocation107_spill] sm:$0xff] %v10905_v49  ;;  %v3418_v57 = vunpack.c.l.b16 %v14162_v45  ;;  %v3424_v43 = vunpack.c.l.b16 %v14168_v58  ;;  %v6486_v45 = vld [vmem:[%s12674_s5 + $0xf8] sm:$0xff]  ;;  %v14172_v16 = vpack.c.bf16 %v10504_v62, %v10504_v62  ;;  %v3428_v58 = vunpack.c.l.b16 %v14174_v20 }
 0x5e7   :  { %14158 = vst [vmem:[#allocation117_spill] sm:$0xff] %v10924_v1  ;;  %v14175_v0 = vpack.c.bf16 %v10514_v5, %v10514_v5  ;;  %v14177_v12 = vpack.c.bf16 %v10519_v6, %v10519_v6  ;;  %v14178_v3 = vpack.c.bf16 %v10524_v13, %v10524_v13  ;;  %v10997_v25 = vpack.c.b16 %v3420_v7, %v10929_v61  ;;  %v6471_v7 = vld [vmem:[%s12674_s5 + $0x80] sm:$0xff] }
 0x5e8   :  { %14167 = vst [vmem:[#allocation165_spill] sm:$0xff] %v10948_v17  ;;  %v10975_v2 = vunpack.c.l.b16 %v14172_v16  ;;  %v10994_v16 = vpack.c.b16 %v3408_v28, %v10875_v54  ;;  %4748 = vmatpush.bf16.msra.mxu1 %v6486_v45  ;;  %v14181_v5 = vpack.c.bf16 %v10529_v22, %v10529_v22  ;;  %v14182_v6 = vpack.c.bf16 %v10534_v35, %v10534_v35 }
 0x5e9   :  { %14170 = vst [vmem:[#allocation169_spill] sm:$0xff] %v10962_v8  ;;  %v10983_v63 = vunpack.c.l.b16 %v14175_v0  ;;  %v3430_v26 = vunpack.c.l.b16 %v14177_v12  ;;  %v10991_v62 = vunpack.c.l.b16 %v14178_v3  ;;  %v14184_v13 = vpack.c.bf16 %v10539_v46, %v10539_v46  ;;  %v6502_v46 = vld [vmem:[%s12674_s5 + $0x178] sm:$0xff]  ;;  %4706 = vmatpush.bf16.msrb.mxu3 %v6471_v7 }
 0x5ea   :  { %14173 = vst [vmem:[#allocation172_spill] sm:$0xff] %v10975_v2  ;;  %v3432_v42 = vunpack.c.l.b16 %v14181_v5  ;;  %v11005_v20 = vunpack.c.l.b16 %v14182_v6  ;;  %v11011_v28 = vpack.c.b16 %v3410_v60, %v10889_v33  ;;  %v11019_v45 = vpack.c.b16 %v3412_v31, %v10897_v34 }
 0x5eb   :  { %14176 = vst [vmem:[#allocation5_spill] sm:$0xff] %v10983_v63  ;;  %v3434_v0 = vunpack.c.l.b16 %v14184_v13  ;;  %v3454_v35 = vshll.u32 %v3435_v11, 16  ;;  %v3461_v12 = vshll.u32 %v3436_v19, 16  ;;  %v11025_v60 = vpack.c.b16 %v3414_v38, %v10905_v49 }
 0x5ec   :  { %14179 = vst [vmem:[#allocation19_spill] sm:$0xff] %v10991_v62  ;;  %v11028_v55 = vpack.c.b16 %v3416_v36, %v10913_v23  ;;  %v11031_v3 = vpack.c.b16 %v3418_v57, %v10924_v1  ;;  %v11034_v5 = vpack.c.b16 %v3422_v53, %v10940_v18  ;;  %v11037_v31 = vpack.c.b16 %v3424_v43, %v10948_v17 }
 0x5ed   :  { %14180 = vst [vmem:[#allocation24_spill] sm:$0xff] %v10997_v25  ;;  %v11040_v6 = vpack.c.b16 %v3426_v30, %v10962_v8  ;;  %v11043_v13 = vpack.c.b16 %v3428_v58, %v10975_v2  ;;  %v3468_v38 = vshll.u32 %v10994_v16, 16  ;;  %v11047_v36 = vpack.c.b16 %v3430_v26, %v10983_v63  ;;  %4846 = vmatpush.bf16.msra.mxu3 %v6502_v46 }
 0x5ee   :  { %14183 = vst [vmem:[#allocation25_spill] sm:$0xff] %v11005_v20  ;;  %v11050_v57 = vpack.c.b16 %v3432_v42, %v10991_v62  ;;  %v11053_v53 = vpack.c.b16 %v3434_v0, %v11005_v20  ;;  %v3475_v43 = vshll.u32 %v11011_v28, 16  ;;  %v3452_v22 = vshrl.u32 %v3435_v11, 16 }
 0x5ef   :  { %14185 = vst [vmem:[#allocation26_spill] sm:$0xff] %v11034_v5  ;;  %v3456_v30 = vrot.slane %v3454_v35, 1  ;;  %v3463_v8 = vrot.slane %v3461_v12, 1  ;;  %v3482_v58 = vshll.u32 %v11019_v45, 16  ;;  %v3459_v2 = vshrl.u32 %v3436_v19, 16 }
 0x5f0   :  { %14186 = vst [vmem:[#allocation28_spill] sm:$0xff] %v11037_v31  ;;  %v3489_v42 = vshll.u32 %v11025_v60, 16  ;;  %v11060_v62 = vrot.slane %v3468_v38, 1  ;;  %v3496_v20 = vshll.u32 %v11028_v55, 16  ;;  %v3503_v11 = vshll.u32 %v11031_v3, 16 }
 0x5f1   :  { %v11065_v7 = vrot.slane %v3475_v43, 1  ;;  %v3510_v19 = vshll.u32 %v10997_v25, 16  ;;  %v3517_v12 = vshll.u32 %v11034_v5, 16  ;;  %v11070_v46 = vor.u32 %v3456_v30, %v3452_v22  ;;  %v14197_v25 = vld [vmem:[#allocation36_spill] sm:$0xff] }
 0x5f2   :  { %v11072_v26 = vor.u32 %v3463_v8, %v3459_v2  ;;  %v11074_v38 = vrot.slane %v3482_v58, 1  ;;  %v11077_v17 = vrot.slane %v3489_v42, 1  ;;  %v11082_v59 = vrot.slane %v3496_v20, 1  ;;  %v6493_v20 = vld [vmem:[%s12674_s5 + $0x130] sm:$0xff] }
 0x5f3   :  { %v11084_v18 = vrot.slane %v3503_v11, 1  ;;  %v3524_v8 = vshll.u32 %v11037_v31, 16  ;;  %v11088_v2 = vrot.slane %v3510_v19, 1  ;;  %v11090_v30 = vrot.slane %v3517_v12, 1  ;;  %4798 = vmatpush.bf16.msra.mxu2 %v6493_v20 }
 0x5f4   :  { %v3531_v58 = vshll.u32 %v11040_v6, 16  ;;  %v14189_v42 = vpack.c.bf16 %v14132_v39, %v14132_v39  ;;  %v3538_v11 = vshll.u32 %v11043_v13, 16  ;;  %v3545_v22 = vshll.u32 %v11047_v36, 16  ;;  %v6501_v39 = vld [vmem:[%s12674_s5 + $0x170] sm:$0xff] }
 0x5f5   :  { %14187 = vst [vmem:[#allocation121_spill] sm:$0xff] %v11088_v2  ;;  %v14190_v19 = vpack.c.bf16 %v14133_v29, %v14133_v29  ;;  %v14191_v35 = vpack.c.bf16 %v14134_v27, %v14134_v27  ;;  %v3552_v0 = vshll.u32 %v11050_v57, 16  ;;  %v14192_v31 = vpack.c.bf16 %v14135_v56, %v14135_v56  ;;  %4847 = vmatpush.bf16.msra.mxu3 %v6501_v39 }
 0x5f6   :  { %14188 = vst [vmem:[#allocation126_spill] sm:$0xff] %v11090_v30  ;;  %v11096_v43 = vunpack.c.l.b16 %v14189_v42  ;;  %v6485_v42 = vld [vmem:[%s12674_s5 + $0xf0] sm:$0xff]  ;;  %v3559_v61 = vshll.u32 %v11053_v53, 16  ;;  %v14198_v1 = vpack.c.bf16 %v14197_v25, %v14197_v25  ;;  %v11156_v39 = vrot.slane %v3531_v58, 1 }
 0x5f7   :  { %v3596_v12 = vunpack.c.l.b16 %v14190_v19  ;;  %v11109_v63 = vunpack.c.l.b16 %v14191_v35  ;;  %v3598_v29 = vunpack.c.l.b16 %v14192_v31  ;;  %v14193_v19 = vpack.c.bf16 %v10448_v51, %v10448_v51  ;;  %v14195_v35 = vld [vmem:[#allocation34_spill] sm:$0xff]  ;;  %4749 = vmatpush.bf16.msra.mxu1 %v6485_v42 }
 0x5f8   :  { %v14196_v30 = vpack.c.bf16 %v14195_v35, %v14195_v35  ;;  %v11136_v56 = vunpack.c.l.b16 %v14198_v1  ;;  %v14200_v51 = vpack.c.bf16 %v10549_v50, %v10549_v50  ;;  %v11167_v1 = vrot.slane %v3559_v61, 1 }
 0x5f9   :  { %v11124_v27 = vunpack.c.l.b16 %v14193_v19  ;;  %v11131_v2 = vpack.c.b16 %v3596_v12, %v11096_v43  ;;  %v11141_v19 = vrot.slane %v3524_v8, 1  ;;  %v11145_v20 = vpack.c.b16 %v3598_v29, %v11109_v63 }
 0x5fa   :  { %v3760_v5 = vunpack.c.l.b16 %v14196_v30  ;;  %14199 = vst [vmem:[#allocation127_spill] sm:$0xff] %v11136_v56  ;;  %v3762_v31 = vunpack.c.l.b16 %v14200_v51  ;;  %v11158_v8 = vrot.slane %v3538_v11, 1  ;;  %v11162_v51 = vrot.slane %v3545_v22, 1 }
 0x5fb   :  { %14194 = vst [vmem:[#allocation123_spill] sm:$0xff] %v11124_v27  ;;  %v3646_v35 = vshll.u32 %v11131_v2, 16  ;;  %v3653_v29 = vshll.u32 %v11145_v20, 16  ;;  %v14203_v58 = vpack.c.bf16 %v14125_v10, %v14125_v10  ;;  %v3814_v11 = vunpack.c.l.b16 %v11070_v46 }
 0x5fc   :  { %v11148_v12 = vpack.c.b16 %v3760_v5, %v11124_v27  ;;  %v11154_v50 = vpack.c.b16 %v3762_v31, %v11136_v56  ;;  %v11164_v5 = vrot.slane %v3552_v0, 1  ;;  %v14204_v42 = vpack.c.bf16 %v14136_v37, %v14136_v37  ;;  %v14223_v0 = vld [vmem:[#allocation45_spill] sm:$0xff]  ;;  %v14228_v27 = vld [vmem:[#allocation46_spill] sm:$0xff] }
 0x5fd   :  { %v3813_v31 = vunpack.c.l.b16 %v14203_v58  ;;  %v11179_v22 = vrot.slane %v3646_v35, 1  ;;  %v14206_v61 = vpack.c.bf16 %v14126_v21, %v14126_v21  ;;  %v3818_v30 = vunpack.c.l.b16 %v11072_v26 }
 0x5fe   :  { %14201 = vst [vmem:[#allocation124_spill] sm:$0xff] %v11148_v12  ;;  %v11177_v56 = vunpack.c.l.b16 %v14204_v42  ;;  %v11188_v10 = vrot.slane %v3653_v29, 1  ;;  %v14208_v46 = vpack.c.bf16 %v10661_v40, %v10661_v40  ;;  %v14210_v37 = vpack.c.bf16 %v14127_v4, %v14127_v4  ;;  %v14233_v12 = vld [vmem:[#allocation48_spill] sm:$0xff] }
 0x5ff   :  { %14202 = vst [vmem:[#allocation128_spill] sm:$0xff] %v11154_v50  ;;  %v11185_v25 = vunpack.c.l.b16 %v14206_v61  ;;  %v14212_v42 = vpack.c.bf16 %v10666_v47, %v10666_v47  ;;  %v14214_v61 = vld [vmem:[#allocation41_spill] sm:$0xff]  ;;  %v14217_v40 = vpack.c.bf16 %v10671_v24, %v10671_v24  ;;  %v14219_v4 = vpack.c.bf16 %v14128_v44, %v14128_v44 }
 0x600   :  { %14205 = vst [vmem:[#allocation130_spill] sm:$0xff] %v11177_v56  ;;  %v11193_v58 = vunpack.c.l.b16 %v14208_v46  ;;  %v11198_v35 = vunpack.c.l.b16 %v14210_v37  ;;  %v14215_v26 = vpack.c.bf16 %v14214_v61, %v14214_v61  ;;  %v14221_v47 = vpack.c.bf16 %v10676_v15, %v10676_v15  ;;  %v14320_v56 = vld [vmem:[#allocation186_spill] sm:$0xff] }
 0x601   :  { %14207 = vst [vmem:[#allocation131_spill] sm:$0xff] %v11185_v25  ;;  %v11203_v21 = vunpack.c.l.b16 %v14212_v42  ;;  %v11213_v46 = vunpack.c.l.b16 %v14217_v40  ;;  %v11218_v37 = vunpack.c.l.b16 %v14219_v4  ;;  %v14224_v61 = vpack.c.bf16 %v14223_v0, %v14223_v0 }
 0x602   :  { %14209 = vst [vmem:[#allocation132_spill] sm:$0xff] %v11193_v58  ;;  %v11208_v29 = vunpack.c.l.b16 %v14215_v26  ;;  %v11223_v42 = vunpack.c.l.b16 %v14221_v47  ;;  %v14226_v24 = vpack.c.bf16 %v10681_v41, %v10681_v41  ;;  %v14229_v44 = vpack.c.bf16 %v14228_v27, %v14228_v27 }
 0x603   :  { %14211 = vst [vmem:[#allocation134_spill] sm:$0xff] %v11198_v35  ;;  %v11228_v26 = vunpack.c.l.b16 %v14224_v61  ;;  %v14231_v15 = vpack.c.bf16 %v10686_v14, %v10686_v14  ;;  %v14234_v0 = vpack.c.bf16 %v14233_v12, %v14233_v12  ;;  %v14236_v41 = vpack.c.bf16 %v10691_v32, %v10691_v32  ;;  %v14240_v32 = vld [vmem:[#allocation72_spill] sm:$0xff] }
 0x604   :  { %14213 = vst [vmem:[#allocation135_spill] sm:$0xff] %v11203_v21  ;;  %v11233_v40 = vunpack.c.l.b16 %v14226_v24  ;;  %v11238_v4 = vunpack.c.l.b16 %v14229_v44  ;;  %v14238_v27 = vpack.c.bf16 %v10600_v9, %v10600_v9  ;;  %v4025_v12 = vpack.c.b16 %v10867_v48, %v10859_v52  ;;  %v14243_v9 = vld [vmem:[#allocation66_spill] sm:$0xff]  ;;  %v14280_v48 = vld [vmem:[#allocation149_spill] sm:$0xff] }
 0x605   :  { %14216 = vst [vmem:[#allocation136_spill] sm:$0xff] %v11208_v29  ;;  %v11243_v47 = vunpack.c.l.b16 %v14231_v15  ;;  %v11248_v61 = vunpack.c.l.b16 %v14234_v0  ;;  %v11253_v24 = vunpack.c.l.b16 %v14236_v41  ;;  %v4026_v0 = vpack.c.b16 %v11185_v25, %v3813_v31  ;;  %v14248_v31 = vld [vmem:[#allocation75_spill] sm:$0xff] }
 0x606   :  { %14218 = vst [vmem:[#allocation138_spill] sm:$0xff] %v11213_v46  ;;  %v11258_v44 = vunpack.c.l.b16 %v14238_v27  ;;  %v4027_v50 = vpack.c.b16 %v3818_v30, %v3814_v11  ;;  %v14241_v41 = vpack.c.bf16 %v14240_v32, %v14240_v32  ;;  %v14244_v27 = vpack.c.bf16 %v14243_v9, %v14243_v9  ;;  %4609 = vmatmul.bf16.vlgmr.msrb.gmra.mxu1 %v4025_v12 }
 0x607   :  { %14220 = vst [vmem:[#allocation139_spill] sm:$0xff] %v11218_v37  ;;  %v14245_v14 = vshrl.u32 %v10994_v16, 16  ;;  %v14249_v11 = vpack.c.bf16 %v14248_v31, %v14248_v31  ;;  %4658 = vmatmul.bf16.vlgmr.msrb.gmra.mxu2 %v4026_v0  ;;  %v6492_v16 = vld [vmem:[%s12674_s5 + $0x128] sm:$0xff]  ;;  %v14255_v12 = vshrl.u32 %v11025_v60, 16  ;;  %v14256_v60 = vshrl.u32 %v11028_v55, 16 }
 0x608   :  { %14222 = vst [vmem:[#allocation140_spill] sm:$0xff] %v11223_v42  ;;  %4707 = vmatmul.bf16.vlgmr.msrb.gmra.mxu3 %v4027_v50  ;;  %4799 = vmatpush.bf16.msra.mxu2 %v6492_v16  ;;  %v14265_v50 = vld [vmem:[#allocation121_spill] sm:$0xff] }
 0x609   :  { %14225 = vst [vmem:[#allocation142_spill] sm:$0xff] %v11228_v26  ;;  %v3471_v15 = vor.u32 %v11060_v62, %v14245_v14  ;;  %v11288_v32 = vunpack.c.l.b16 %v14249_v11  ;;  %v11311_v0 = vor.u32 %v11077_v17, %v14255_v12  ;;  %v11326_v17 = vor.u32 %v11082_v59, %v14256_v60  ;;  %v14260_v12 = vld [vmem:[#allocation62_spill] sm:$0xff]  ;;  %v14263_v60 = vld [vmem:[#allocation24_spill] sm:$0xff] }
 0x60a   :  { %14227 = vst [vmem:[#allocation143_spill] sm:$0xff] %v11233_v40  ;;  %v14261_v16 = vpack.c.bf16 %v14260_v12, %v14260_v12 }
 0x60b   :  { %14230 = vst [vmem:[#allocation144_spill] sm:$0xff] %v11238_v4 }
 0x60c   :  { %14232 = vst [vmem:[#allocation146_spill] sm:$0xff] %v11243_v47  ;;  %v14246_v47 = vshrl.u32 %v11011_v28, 16  ;;  %v14253_v28 = vshrl.u32 %v11019_v45, 16  ;;  %v6484_v45 = vld [vmem:[%s12674_s5 + $0xe8] sm:$0xff]  ;;  %v11340_v55 = vunpack.c.l.b16 %v14261_v16 }
 0x60d   :  { %14235 = vst [vmem:[#allocation147_spill] sm:$0xff] %v11248_v61  ;;  %4750 = vmatpush.bf16.msra.mxu1 %v6484_v45  ;;  %v14268_v16 = vld [vmem:[#allocation26_spill] sm:$0xff] }
 0x60e   :  { %14237 = vst [vmem:[#allocation148_spill] sm:$0xff] %v11253_v24  ;;  %v11270_v24 = vunpack.c.l.b16 %v14241_v41  ;;  %v11283_v52 = vor.u32 %v11065_v7, %v14246_v47  ;;  %v14251_v41 = vld [vmem:[#allocation69_spill] sm:$0xff]  ;;  %v11303_v7 = vor.u32 %v11074_v38, %v14253_v28  ;;  %v14267_v47 = vld [vmem:[#allocation54_spill] sm:$0xff]  ;;  %v14269_v62 = vshrl.u32 %v14268_v16, 16 }
 0x60f   :  { %14239 = vst [vmem:[#allocation150_spill] sm:$0xff] %v11258_v44  ;;  %v11275_v44 = vunpack.c.l.b16 %v14244_v27  ;;  %v14252_v25 = vpack.c.bf16 %v14251_v41, %v14251_v41  ;;  %v6500_v27 = vld [vmem:[%s12674_s5 + $0x168] sm:$0xff]  ;;  %v14275_v16 = vshrl.u32 %v11040_v6, 16 }
 0x610   :  { %14242 = vst [vmem:[#allocation91_spill] sm:$0xff] %v11270_v24  ;;  %v13106_v14 = vunpack.c.l.b16 %v11283_v52  ;;  %4848 = vmatpush.bf16.msra.mxu3 %v6500_v27  ;;  %v14270_v28 = vld [vmem:[#allocation126_spill] sm:$0xff]  ;;  %v14278_v27 = vunpack.c.l.b16 %v11311_v0 }
 0x611   :  { %14247 = vst [vmem:[#allocation151_spill] sm:$0xff] %v11283_v52  ;;  %v11293_v9 = vunpack.c.l.b16 %v14252_v25  ;;  %v3822_v25 = vunpack.c.l.b16 %v3471_v15  ;;  %v14257_v15 = vshrl.u32 %v11031_v3, 16  ;;  %v14262_v3 = vld [vmem:[#allocation117_spill] sm:$0xff]  ;;  %v11357_v41 = vor.u32 %v14270_v28, %v14269_v62 }
 0x612   :  { %14250 = vst [vmem:[#allocation100_spill] sm:$0xff] %v11288_v32  ;;  %v11375_v62 = vor.u32 %v11156_v39, %v14275_v16  ;;  %v14277_v28 = vunpack.c.l.b16 %v11303_v7  ;;  %v14283_v39 = vld [vmem:[#allocation153_spill] sm:$0xff] }
 0x613   :  { %14254 = vst [vmem:[#allocation152_spill] sm:$0xff] %v11303_v7  ;;  %v11331_v31 = vor.u32 %v11084_v18, %v14257_v15  ;;  %v11333_v11 = vpack.c.b16 %v3822_v25, %v3818_v30  ;;  %v4036_v59 = vpack.c.b16 %v13106_v14, %v3822_v25  ;;  %v14264_v15 = vshrl.u32 %v14263_v60, 16  ;;  %v11362_v25 = vld [vmem:[%s12673_s4] ss:$0 sm:$0xff]  ;;  %v14271_v14 = vld [vmem:[#allocation22_spill] sm:$0xff]  ;;  %v14272_v30 = vld [vmem:[#allocation28_spill] sm:$0xff] }
 0x614   :  { %v3011_v60 = vadd.f32 %v11362_v25, %v14271_v14  ;;  %v14273_v18 = vshrl.u32 %v14272_v30, 16  ;;  %14276 = vst [vmem:[#allocation156_spill] sm:$0xff] %v11375_v62  ;;  %v13110_v14 = vunpack.c.l.b16 %v11357_v41  ;;  %v14281_v30 = vmax.f32 %v14280_v48, 0.0 }
 0x615   :  { %14258 = vst [vmem:[#allocation114_spill] sm:$0xff] %v11331_v31  ;;  %v3513_v38 = vor.u32 %v14265_v50, %v14264_v15  ;;  %v14284_v16 = vmax.f32 %v14283_v39, 0.0  ;;  %v14285_v7 = vshrl.u32 %v11043_v13, 16  ;;  %v14288_v39 = vunpack.c.l.b16 %v11326_v17 }
 0x616   :  { %14259 = vst [vmem:[#allocation154_spill] sm:$0xff] %v11333_v11  ;;  %v11370_v12 = vor.u32 %v11141_v19, %v14273_v18  ;;  %v11381_v11 = vpack.c.b16 %v14278_v27, %v14277_v28  ;;  %v3113_v50 = vmax.f32 %v3011_v60, 0.0  ;;  %v14282_v18 = vld [vmem:[#allocation187_spill] sm:$0xff]  ;;  %v14286_v28 = vld [vmem:[#allocation9_spill] sm:$0xff] }
 0x617   :  { %v3848_v15 = vunpack.c.l.b16 %v3513_v38  ;;  %v14279_v38 = vld [vmem:[#allocation10_spill] sm:$0xff]  ;;  %v3217_v45 = vmul.f32 %v14284_v16, %v14282_v18  ;;  %v11395_v27 = vor.u32 %v11158_v8, %v14285_v7  ;;  %v14289_v18 = vunpack.c.l.b16 %v11331_v31  ;;  %v14291_v16 = vld [vmem:[#allocation188_spill] sm:$0xff]  ;;  %v14295_v31 = vld [vmem:[#allocation161_spill] sm:$0xff] }
 0x618   :  { %14274 = vst [vmem:[#allocation155_spill] sm:$0xff] %v11370_v12  ;;  %v3216_v52 = vmul.f32 %v14281_v30, %v14279_v38  ;;  %v13114_v19 = vunpack.c.l.b16 %v11370_v12  ;;  %v3215_v48 = vmul.f32 %v3113_v50, %v14286_v28  ;;  %v14287_v30 = vshrl.u32 %v11047_v36, 16  ;;  %v14292_v28 = vld [vmem:[#allocation157_spill] sm:$0xff]  ;;  %4712 = vmatmul.bf16.gmra.mxu3 %v4036_v59 }
 0x619   :  { %v11399_v60 = vpack.c.b16 %v13110_v14, %v3848_v15  ;;  %v11411_v13 = vpack.c.b16 %v14289_v18, %v14288_v39  ;;  %v14290_v8 = vunpack.c.l.b16 %v11375_v62  ;;  %v3319_v15 = vpack.c.bf16 %v3217_v45, %v3217_v45  ;;  %v14294_v18 = vld [vmem:[#allocation189_spill] sm:$0xff] }
 0x61a   :  { %v3318_v38 = vpack.c.bf16 %v3216_v52, %v3216_v52  ;;  %v11405_v6 = vor.u32 %v11162_v51, %v14287_v30  ;;  %v13118_v52 = vunpack.c.l.b16 %v11395_v27  ;;  %v3317_v50 = vpack.c.bf16 %v3215_v48, %v3215_v48  ;;  %v14317_v59 = vld [vmem:[#allocation185_spill] sm:$0xff] }
 0x61b   :  { %v11417_v7 = vpack.c.b16 %v14290_v8, %v13114_v19  ;;  %v14293_v30 = vmax.f32 %v14292_v28, 0.0  ;;  %v11426_v39 = vunpack.c.l.b16 %v3319_v15  ;;  %v14296_v12 = vmax.f32 %v14295_v31, 0.0 }
 0x61c   :  { %v11420_v36 = vunpack.c.l.b16 %v3318_v38  ;;  %v13117_v51 = vunpack.c.l.b16 %v11405_v6  ;;  %v14297_v8 = vshrl.u32 %v11050_v57, 16  ;;  %v14298_v48 = vshrl.u32 %v11053_v53, 16  ;;  %v6483_v57 = vld [vmem:[%s12674_s5 + $0xe0] sm:$0xff] }
 0x61d   :  { %v3218_v14 = vmul.f32 %v14293_v30, %v14291_v16  ;;  %v3219_v62 = vmul.f32 %v14296_v12, %v14294_v18  ;;  %v11441_v19 = vunpack.c.l.b16 %v3317_v50  ;;  %v14300_v18 = vpack.c.b16 %v10889_v33, %v10875_v54  ;;  %v14306_v50 = vld [vmem:[#allocation197_spill] sm:$0xff]  ;;  %4751 = vmatpush.bf16.msra.mxu1 %v6483_v57  ;;  %v14319_v54 = vld [vmem:[#allocation202_spill] sm:$0xff] }
 0x61e   :  { %v11434_v45 = vor.u32 %v11164_v5, %v14297_v8  ;;  %v11439_v38 = vor.u32 %v11167_v1, %v14298_v48  ;;  %v11447_v15 = vpack.c.b16 %v13117_v51, %v13118_v52  ;;  %v6491_v8 = vld [vmem:[%s12674_s5 + $0x120] sm:$0xff]  ;;  %v14309_v51 = vld [vmem:[#allocation92_spill] sm:$0xff]  ;;  %v14321_v52 = vmax.f32 %v14320_v56, 0.0 }
 0x61f   :  { %v3320_v31 = vpack.c.bf16 %v3218_v14, %v3218_v14  ;;  %v3321_v12 = vpack.c.bf16 %v3219_v62, %v3219_v62  ;;  %v14299_v14 = vshrl.u32 %v11131_v2, 16  ;;  %4614 = vmatmul.bf16.gmra.mxu1 %v14300_v18  ;;  %v14301_v62 = vpack.c.b16 %v11208_v29, %v11198_v35  ;;  %v14304_v18 = vld [vmem:[#allocation6_spill] sm:$0xff]  ;;  %4800 = vmatpush.bf16.msra.mxu2 %v6491_v8  ;;  %v14312_v29 = vld [vmem:[#allocation11_spill] sm:$0xff] }
 0x620   :  { %v13116_v53 = vunpack.c.l.b16 %v11434_v45  ;;  %v13115_v1 = vunpack.c.l.b16 %v11439_v38  ;;  %v14305_v28 = vmax.f32 %v14304_v18, 0.0 }
 0x621   :  { %v11457_v16 = vunpack.c.l.b16 %v3320_v31  ;;  %v3649_v30 = vor.u32 %v11179_v22, %v14299_v14  ;;  %4663 = vmatmul.bf16.gmra.mxu2 %v14301_v62  ;;  %v11473_v48 = vunpack.c.l.b16 %v3321_v12  ;;  %v14302_v22 = vshrl.u32 %v11145_v20, 16  ;;  %v14303_v14 = vld [vmem:[#allocation195_spill] sm:$0xff]  ;;  %v6499_v12 = vld [vmem:[%s12674_s5 + $0x160] sm:$0xff] }
 0x622   :  { %v11479_v2 = vpack.c.b16 %v13115_v1, %v13116_v53  ;;  %v3225_v62 = vmul.f32 %v14305_v28, %v14303_v14  ;;  %v14307_v1 = vld [vmem:[#allocation183_spill] sm:$0xff]  ;;  %4849 = vmatpush.bf16.msra.mxu3 %v6499_v12  ;;  %v3232_v12 = vmul.f32 %v14321_v52, %v14319_v54  ;;  %v14330_v52 = vld [vmem:[#allocation42_spill] sm:$0xff] }
 0x623   :  { %v3656_v31 = vor.u32 %v11188_v10, %v14302_v22  ;;  %v3816_v5 = vunpack.c.l.b16 %v3649_v30  ;;  %v14308_v53 = vmax.f32 %v14307_v1, 0.0  ;;  %v3328_v10 = vpack.c.bf16 %v14309_v51, %v14309_v51  ;;  %v14310_v22 = vld [vmem:[#allocation99_spill] sm:$0xff] }
 0x624   :  { %v3330_v28 = vpack.c.bf16 %v14310_v22, %v14310_v22  ;;  %v3327_v18 = vpack.c.bf16 %v3225_v62, %v3225_v62  ;;  %v14313_v51 = vmax.f32 %v14312_v29, 0.0  ;;  %v14316_v22 = vld [vmem:[#allocation201_spill] sm:$0xff]  ;;  %v14323_v29 = vld [vmem:[#allocation40_spill] sm:$0xff] }
 0x625   :  { %v3227_v20 = vmul.f32 %v14308_v53, %v14306_v50  ;;  %v3820_v14 = vunpack.c.l.b16 %v3656_v31  ;;  %v3600_v1 = vunpack.c.l.b16 %v3328_v10  ;;  %v14311_v50 = vld [vmem:[#allocation199_spill] sm:$0xff]  ;;  %v14318_v31 = vmax.f32 %v14317_v59, 0.0 }
 0x626   :  { %v3602_v53 = vunpack.c.l.b16 %v3330_v28  ;;  %v3229_v33 = vmul.f32 %v14313_v51, %v14311_v50  ;;  %v11509_v8 = vunpack.c.l.b16 %v3327_v18  ;;  %v14324_v28 = vld [vmem:[#allocation13_spill] sm:$0xff]  ;;  %v3334_v51 = vpack.c.bf16 %v3232_v12, %v3232_v12  ;;  %v14326_v59 = vld [vmem:[#allocation203_spill] sm:$0xff] }
 0x627   :  { %v3329_v30 = vpack.c.bf16 %v3227_v20, %v3227_v20  ;;  %v11507_v35 = vpack.c.b16 %v3820_v14, %v3816_v5  ;;  %v3231_v62 = vmul.f32 %v14318_v31, %v14316_v22  ;;  %v14325_v5 = vmax.f32 %v14324_v28, 0.0  ;;  %v14327_v22 = vld [vmem:[#allocation14_spill] sm:$0xff] }
 0x628   :  { %14315 = vst [vmem:[#allocation159_spill] sm:$0xff] %v11509_v8  ;;  %v3331_v20 = vpack.c.bf16 %v3229_v33, %v3229_v33  ;;  %v3629_v18 = vpack.c.b16 %v3600_v1, %v11509_v8  ;;  %v14328_v31 = vmax.f32 %v14327_v22, 0.0  ;;  %v14334_v22 = vld [vmem:[#allocation16_spill] sm:$0xff]  ;;  %4717 = vmatmul.bf16.gmra.mxu3 %v11381_v11 }
 0x629   :  { %14314 = vst [vmem:[#allocation158_spill] sm:$0xff] %v11507_v35  ;;  %v11517_v57 = vunpack.c.l.b16 %v3329_v30  ;;  %v3233_v14 = vmul.f32 %v14325_v5, %v14323_v29  ;;  %v3333_v50 = vpack.c.bf16 %v3231_v62, %v3231_v62  ;;  %v14331_v30 = vld [vmem:[#allocation15_spill] sm:$0xff]  ;;  %v3606_v62 = vunpack.c.l.b16 %v3334_v51 }
 0x62a   :  { %v3234_v21 = vmul.f32 %v14328_v31, %v14326_v59  ;;  %v11531_v56 = vunpack.c.l.b16 %v3331_v20  ;;  %v14332_v10 = vmax.f32 %v14331_v30, 0.0  ;;  %v3658_v29 = vshrl.u32 %v3629_v18, 16 }
 0x62b   :  { %14322 = vst [vmem:[#allocation160_spill] sm:$0xff] %v11517_v57  ;;  %v3630_v54 = vpack.c.b16 %v3602_v53, %v11517_v57  ;;  %v3660_v5 = vshll.u32 %v3629_v18, 16  ;;  %v11536_v1 = vunpack.c.l.b16 %v3333_v50  ;;  %v14333_v53 = vld [vmem:[#allocation44_spill] sm:$0xff]  ;;  %v14335_v31 = vmax.f32 %v14334_v22, 0.0 }
 0x62c   :  { %14329 = vst [vmem:[#allocation162_spill] sm:$0xff] %v11531_v56  ;;  %v3235_v28 = vmul.f32 %v14332_v10, %v14330_v52  ;;  %v3631_v59 = vpack.c.b16 %v11340_v55, %v11531_v56  ;;  %v3335_v52 = vpack.c.bf16 %v3233_v14, %v3233_v14  ;;  %v3336_v51 = vpack.c.bf16 %v3234_v21, %v3234_v21  ;;  %v14336_v56 = vld [vmem:[#allocation146_spill] sm:$0xff] }
 0x62d   :  { %v3665_v12 = vshrl.u32 %v3630_v54, 16  ;;  %v3667_v42 = vshll.u32 %v3630_v54, 16  ;;  %v3236_v33 = vmul.f32 %v14335_v31, %v14333_v53  ;;  %v3662_v20 = vrot.slane %v3660_v5, 1 }
 0x62e   :  { %v3632_v40 = vpack.c.b16 %v3606_v62, %v11536_v1  ;;  %v3672_v50 = vshrl.u32 %v3631_v59, 16  ;;  %v3674_v30 = vshll.u32 %v3631_v59, 16  ;;  %v3337_v57 = vpack.c.bf16 %v3235_v28, %v3235_v28  ;;  %v14337_v59 = vld [vmem:[#allocation148_spill] sm:$0xff] }
 0x62f   :  { %v3669_v18 = vrot.slane %v3667_v42, 1  ;;  %v3663_v46 = vor.u32 %v3662_v20, %v3658_v29  ;;  %v3338_v58 = vpack.c.bf16 %v3236_v33, %v3236_v33  ;;  %v11546_v22 = vunpack.c.l.b16 %v3335_v52  ;;  %v14338_v29 = vld [vmem:[#allocation78_spill] sm:$0xff]  ;;  %v6482_v20 = vld [vmem:[%s12674_s5 + $0xd8] sm:$0xff] }
 0x630   :  { %v3679_v54 = vshrl.u32 %v3632_v40, 16  ;;  %v3681_v8 = vshll.u32 %v3632_v40, 16  ;;  %v3676_v35 = vrot.slane %v3674_v30, 1  ;;  %v3608_v62 = vunpack.c.l.b16 %v3336_v51  ;;  %v14342_v30 = vld [vmem:[#allocation47_spill] sm:$0xff]  ;;  %v14343_v51 = vld [vmem:[#allocation74_spill] sm:$0xff]  ;;  %4752 = vmatpush.bf16.msra.mxu1 %v6482_v20 }
 0x631   :  { %v3670_v55 = vor.u32 %v3669_v18, %v3665_v12  ;;  %v3824_v5 = vunpack.c.l.b16 %v3663_v46  ;;  %v11548_v31 = vunpack.c.l.b16 %v3337_v57  ;;  %v3610_v42 = vunpack.c.l.b16 %v3338_v58  ;;  %v6490_v58 = vld [vmem:[%s12674_s5 + $0x118] sm:$0xff] }
 0x632   :  { %v3683_v53 = vrot.slane %v3681_v8, 1  ;;  %v3677_v14 = vor.u32 %v3676_v35, %v3672_v50  ;;  %v14339_v40 = vpack.c.bf16 %v14338_v29, %v14338_v29  ;;  %v14340_v33 = vpack.c.b16 %v10905_v49, %v10897_v34  ;;  %v6498_v12 = vld [vmem:[%s12674_s5 + $0x158] sm:$0xff]  ;;  %4801 = vmatpush.bf16.msra.mxu2 %v6490_v58  ;;  %v14345_v29 = vld [vmem:[#allocation49_spill] sm:$0xff] }
 0x633   :  { %v3828_v10 = vunpack.c.l.b16 %v3670_v55  ;;  %v14341_v46 = vpack.c.b16 %v11228_v26, %v11218_v37  ;;  %v3633_v8 = vpack.c.b16 %v3608_v62, %v11546_v22  ;;  %v3634_v50 = vpack.c.b16 %v3610_v42, %v11548_v31  ;;  %4850 = vmatpush.bf16.msra.mxu3 %v6498_v12  ;;  %v14351_v26 = vld [vmem:[#allocation51_spill] sm:$0xff]  ;;  %v14352_v49 = vld [vmem:[#allocation84_spill] sm:$0xff]  ;;  %v14365_v12 = vld [vmem:[#allocation101_spill] sm:$0xff] }
 0x634   :  { %v11555_v28 = vunpack.c.l.b16 %v14339_v40  ;;  %4619 = vmatmul.bf16.gmra.mxu1 %v14340_v33  ;;  %v3684_v35 = vor.u32 %v3683_v53, %v3679_v54  ;;  %v3832_v18 = vunpack.c.l.b16 %v3677_v14  ;;  %v14344_v54 = vmax.f32 %v14343_v51, 0.0  ;;  %v14346_v40 = vld [vmem:[#allocation77_spill] sm:$0xff]  ;;  %v14349_v14 = vld [vmem:[#allocation80_spill] sm:$0xff] }
 0x635   :  { %4668 = vmatmul.bf16.gmra.mxu2 %v14341_v46  ;;  %v11576_v52 = vpack.c.b16 %v3828_v10, %v3824_v5  ;;  %v3686_v11 = vshrl.u32 %v3633_v8, 16  ;;  %v3688_v62 = vshll.u32 %v3633_v8, 16  ;;  %v14347_v33 = vmax.f32 %v14346_v40, 0.0  ;;  %v14348_v5 = vld [vmem:[#allocation50_spill] sm:$0xff] }
 0x636   :  { %v3237_v55 = vmul.f32 %v14344_v54, %v14342_v30  ;;  %v3836_v53 = vunpack.c.l.b16 %v3684_v35  ;;  %v3693_v21 = vshrl.u32 %v3634_v50, 16  ;;  %v3695_v10 = vshll.u32 %v3634_v50, 16 }
 0x637   :  { %v3238_v46 = vmul.f32 %v14347_v33, %v14345_v29  ;;  %v14350_v57 = vmax.f32 %v14349_v14, 0.0  ;;  %v14353_v51 = vmax.f32 %v14352_v49, 0.0  ;;  %v3690_v35 = vrot.slane %v3688_v62, 1  ;;  %v14359_v62 = vld [vmem:[#allocation93_spill] sm:$0xff] }
 0x638   :  { %v11591_v58 = vpack.c.b16 %v3836_v53, %v3832_v18  ;;  %v3339_v8 = vpack.c.bf16 %v3237_v55, %v3237_v55  ;;  %v3697_v37 = vrot.slane %v3695_v10, 1  ;;  %v14358_v55 = vld [vmem:[#allocation7_spill] sm:$0xff]  ;;  %v14366_v34 = vmax.f32 %v14365_v12, 0.0  ;;  %4722 = vmatmul.bf16.gmra.mxu3 %v11411_v13 }
 0x639   :  { %v3239_v42 = vmul.f32 %v14350_v57, %v14348_v5  ;;  %v3240_v30 = vmul.f32 %v14353_v51, %v14351_v26  ;;  %v3340_v54 = vpack.c.bf16 %v3238_v46, %v3238_v46  ;;  %v3691_v20 = vor.u32 %v3690_v35, %v3686_v11  ;;  %v14355_v57 = vld [vmem:[#allocation52_spill] sm:$0xff]  ;;  %v14356_v5 = vld [vmem:[#allocation89_spill] sm:$0xff] }
 0x63a   :  { %v11595_v50 = vunpack.c.l.b16 %v3339_v8  ;;  %v14357_v14 = vmax.f32 %v14356_v5, 0.0  ;;  %v3698_v26 = vor.u32 %v3697_v37, %v3693_v21  ;;  %v14360_v46 = vmax.f32 %v14359_v62, 0.0  ;;  %v14362_v11 = vld [vmem:[#allocation97_spill] sm:$0xff] }
 0x63b   :  { %v3341_v40 = vpack.c.bf16 %v3239_v42, %v3239_v42  ;;  %v3342_v29 = vpack.c.bf16 %v3240_v30, %v3240_v30  ;;  %v3612_v33 = vunpack.c.l.b16 %v3340_v54  ;;  %v3840_v42 = vunpack.c.l.b16 %v3691_v20  ;;  %v14361_v30 = vld [vmem:[#allocation53_spill] sm:$0xff]  ;;  %v14364_v54 = vld [vmem:[#allocation55_spill] sm:$0xff] }
 0x63c   :  { %14354 = vst [vmem:[#allocation163_spill] sm:$0xff] %v11595_v50  ;;  %v3241_v49 = vmul.f32 %v14357_v14, %v14355_v57  ;;  %v3242_v10 = vmul.f32 %v14360_v46, %v14358_v55  ;;  %v14363_v35 = vmax.f32 %v14362_v11, 0.0  ;;  %v3244_v5 = vmul.f32 %v14366_v34, %v14364_v54  ;;  %v14367_v54 = vld [vmem:[#allocation108_spill] sm:$0xff]  ;;  %v14368_v21 = vld [vmem:[#allocation29_spill] sm:$0xff] }
 0x63d   :  { %v11600_v18 = vunpack.c.l.b16 %v3341_v40  ;;  %v3614_v53 = vunpack.c.l.b16 %v3342_v29  ;;  %v3635_v51 = vpack.c.b16 %v3612_v33, %v11595_v50  ;;  %v3844_v57 = vunpack.c.l.b16 %v3698_v26 }
 0x63e   :  { %v3243_v8 = vmul.f32 %v14363_v35, %v14361_v30  ;;  %v3343_v40 = vpack.c.bf16 %v3241_v49, %v3241_v49  ;;  %v3344_v20 = vpack.c.bf16 %v3242_v10, %v3242_v10  ;;  %v3346_v30 = vpack.c.bf16 %v3244_v5, %v3244_v5  ;;  %v14371_v10 = vld [vmem:[#allocation106_spill] sm:$0xff] }
 0x63f   :  { %v3636_v37 = vpack.c.b16 %v3614_v53, %v11600_v18  ;;  %v3700_v29 = vshrl.u32 %v3635_v51, 16  ;;  %v3702_v14 = vshll.u32 %v3635_v51, 16  ;;  %v11615_v33 = vpack.c.b16 %v3844_v57, %v3840_v42  ;;  %v14370_v51 = vld [vmem:[#allocation57_spill] sm:$0xff] }
 0x640   :  { %v3345_v55 = vpack.c.bf16 %v3243_v8, %v3243_v8  ;;  %v11617_v35 = vunpack.c.l.b16 %v3343_v40  ;;  %v3616_v34 = vunpack.c.l.b16 %v3344_v20  ;;  %v3618_v53 = vunpack.c.l.b16 %v3346_v30  ;;  %v14373_v40 = vld [vmem:[#allocation59_spill] sm:$0xff] }
 0x641   :  { %v3707_v62 = vshrl.u32 %v3636_v37, 16  ;;  %v3709_v46 = vshll.u32 %v3636_v37, 16  ;;  %v3704_v11 = vrot.slane %v3702_v14, 1  ;;  %v14369_v49 = vmax.f32 %v14368_v21, 0.0  ;;  %v14374_v14 = vld [vmem:[#allocation109_spill] sm:$0xff]  ;;  %v14376_v21 = vld [vmem:[#allocation60_spill] sm:$0xff] }
 0x642   :  { %v11619_v12 = vunpack.c.l.b16 %v3345_v55  ;;  %v14372_v8 = vmax.f32 %v14371_v10, 0.0  ;;  %v3637_v37 = vpack.c.b16 %v3616_v34, %v11617_v35  ;;  %v14375_v20 = vmax.f32 %v14374_v14, 0.0  ;;  %v6489_v34 = vld [vmem:[%s12674_s5 + $0x110] sm:$0xff] }
 0x643   :  { %v3711_v26 = vrot.slane %v3709_v46, 1  ;;  %v3264_v24 = vmul.f32 %v14369_v49, %v14367_v54  ;;  %v3705_v57 = vor.u32 %v3704_v11, %v3700_v29  ;;  %v14377_v54 = vld [vmem:[#allocation112_spill] sm:$0xff]  ;;  %v14379_v29 = vpack.c.b16 %v14262_v3, %v10913_v23  ;;  %v6481_v14 = vld [vmem:[%s12674_s5 + $0xd0] sm:$0xff]  ;;  %4802 = vmatpush.bf16.msra.mxu2 %v6489_v34 }
 0x644   :  { %v3245_v42 = vmul.f32 %v14372_v8, %v14370_v51  ;;  %v3246_v55 = vmul.f32 %v14375_v20, %v14373_v40  ;;  %v3638_v30 = vpack.c.b16 %v3618_v53, %v11619_v12  ;;  %v14378_v49 = vmax.f32 %v14377_v54, 0.0  ;;  %v14382_v51 = vld [vmem:[#allocation115_spill] sm:$0xff]  ;;  %4753 = vmatpush.bf16.msra.mxu1 %v6481_v14 }
 0x645   :  { %v3712_v46 = vor.u32 %v3711_v26, %v3707_v62  ;;  %v3366_v32 = vpack.c.bf16 %v3264_v24, %v3264_v24  ;;  %4624 = vmatmul.bf16.gmra.mxu1 %v14379_v29  ;;  %v14380_v11 = vpack.c.b16 %v11248_v61, %v11238_v4  ;;  %v3850_v62 = vunpack.c.l.b16 %v3705_v57  ;;  %v14381_v24 = vld [vmem:[#allocation63_spill] sm:$0xff] }
 0x646   :  { %v3247_v50 = vmul.f32 %v14378_v49, %v14376_v21  ;;  %v3714_v26 = vshrl.u32 %v3637_v37, 16  ;;  %v3716_v53 = vshll.u32 %v3637_v37, 16  ;;  %v14383_v10 = vmax.f32 %v14382_v51, 0.0  ;;  %v6497_v40 = vld [vmem:[%s12674_s5 + $0x150] sm:$0xff] }
 0x647   :  { %4673 = vmatmul.bf16.gmra.mxu2 %v14380_v11  ;;  %v3854_v20 = vunpack.c.l.b16 %v3712_v46  ;;  %v11656_v21 = vunpack.c.l.b16 %v3366_v32  ;;  %v3721_v57 = vshrl.u32 %v3638_v30, 16  ;;  %v3723_v54 = vshll.u32 %v3638_v30, 16  ;;  %4851 = vmatpush.bf16.msra.mxu3 %v6497_v40  ;;  %v14389_v40 = vld [vmem:[#allocation119_spill] sm:$0xff] }
 0x648   :  { %v3248_v8 = vmul.f32 %v14383_v10, %v14381_v24  ;;  %v3718_v37 = vrot.slane %v3716_v53, 1  ;;  %v3347_v49 = vpack.c.bf16 %v3245_v42, %v3245_v42  ;;  %v3348_v29 = vpack.c.bf16 %v3246_v55, %v3246_v55  ;;  %v14386_v42 = vld [vmem:[#allocation111_spill] sm:$0xff]  ;;  %v14387_v55 = vld [vmem:[#allocation30_spill] sm:$0xff]  ;;  %4727 = vmatmul.bf16.gmra.mxu3 %v11399_v60 }
 0x649   :  { %v3349_v11 = vpack.c.bf16 %v3247_v50, %v3247_v50  ;;  %v11658_v13 = vpack.c.b16 %v3854_v20, %v3850_v62  ;;  %v3725_v51 = vrot.slane %v3723_v54, 1  ;;  %v14388_v50 = vmax.f32 %v14387_v55, 0.0  ;;  %v14390_v62 = vld [vmem:[#allocation31_spill] sm:$0xff] }
 0x64a   :  { %v3350_v10 = vpack.c.bf16 %v3248_v8, %v3248_v8  ;;  %v3719_v5 = vor.u32 %v3718_v37, %v3714_v26  ;;  %v11662_v46 = vunpack.c.l.b16 %v3347_v49  ;;  %v3620_v32 = vunpack.c.l.b16 %v3348_v29  ;;  %v14392_v8 = vld [vmem:[#allocation71_spill] sm:$0xff]  ;;  %v14393_v37 = vld [vmem:[#allocation118_spill] sm:$0xff] }
 0x64b   :  { %v11664_v61 = vunpack.c.l.b16 %v3349_v11  ;;  %v3726_v30 = vor.u32 %v3725_v51, %v3721_v57  ;;  %v3265_v53 = vmul.f32 %v14388_v50, %v14386_v42  ;;  %v14391_v14 = vmax.f32 %v14390_v62, 0.0  ;;  %v14395_v50 = vld [vmem:[#allocation76_spill] sm:$0xff] }
 0x64c   :  { %14384 = vst [vmem:[#allocation164_spill] sm:$0xff] %v11662_v46  ;;  %v3622_v34 = vunpack.c.l.b16 %v3350_v10  ;;  %v3858_v3 = vunpack.c.l.b16 %v3719_v5  ;;  %v3639_v54 = vpack.c.b16 %v3620_v32, %v11662_v46  ;;  %v14394_v49 = vmax.f32 %v14393_v37, 0.0  ;;  %v14396_v62 = vld [vmem:[#allocation120_spill] sm:$0xff]  ;;  %v14399_v32 = vld [vmem:[#allocation125_spill] sm:$0xff] }
 0x64d   :  { %14385 = vst [vmem:[#allocation166_spill] sm:$0xff] %v11664_v61  ;;  %v3266_v20 = vmul.f32 %v14391_v14, %v14389_v40  ;;  %v3862_v57 = vunpack.c.l.b16 %v3726_v30  ;;  %v3367_v51 = vpack.c.bf16 %v3265_v53, %v3265_v53  ;;  %v14397_v40 = vmax.f32 %v14396_v62, 0.0  ;;  %v14398_v14 = vld [vmem:[#allocation82_spill] sm:$0xff]  ;;  %v14404_v37 = vld [vmem:[#allocation129_spill] sm:$0xff] }
 0x64e   :  { %v3249_v29 = vmul.f32 %v14394_v49, %v14392_v8  ;;  %v3640_v11 = vpack.c.b16 %v3622_v34, %v11664_v61  ;;  %v3728_v42 = vshrl.u32 %v3639_v54, 16  ;;  %v3730_v55 = vshll.u32 %v3639_v54, 16 }
 0x64f   :  { %v3368_v10 = vpack.c.bf16 %v3266_v20, %v3266_v20  ;;  %v3250_v5 = vmul.f32 %v14397_v40, %v14395_v50  ;;  %v14400_v24 = vmax.f32 %v14399_v32, 0.0  ;;  %v11685_v26 = vpack.c.b16 %v3862_v57, %v3858_v3  ;;  %v14403_v20 = vld [vmem:[#allocation95_spill] sm:$0xff]  ;;  %v14407_v3 = vld [vmem:[#allocation32_spill] sm:$0xff]  ;;  %v14412_v50 = vld [vmem:[#allocation150_spill] sm:$0xff] }
 0x650   :  { %v11687_v23 = vunpack.c.l.b16 %v3367_v51  ;;  %v3735_v30 = vshrl.u32 %v3640_v11, 16  ;;  %v3732_v34 = vrot.slane %v3730_v55, 1  ;;  %v3737_v53 = vshll.u32 %v3640_v11, 16 }
 0x651   :  { %v3251_v4 = vmul.f32 %v14400_v24, %v14398_v14  ;;  %14401 = vst [vmem:[#allocation167_spill] sm:$0xff] %v11685_v26  ;;  %v11689_v8 = vunpack.c.l.b16 %v3368_v10  ;;  %v14405_v54 = vmax.f32 %v14404_v37, 0.0  ;;  %v3351_v46 = vpack.c.bf16 %v3249_v29, %v3249_v29  ;;  %v14406_v24 = vld [vmem:[#allocation56_spill] sm:$0xff]  ;;  %v14409_v37 = vld [vmem:[#allocation61_spill] sm:$0xff] }
 0x652   :  { %14402 = vst [vmem:[#allocation168_spill] sm:$0xff] %v11687_v23  ;;  %v3352_v62 = vpack.c.bf16 %v3250_v5, %v3250_v5  ;;  %v14408_v57 = vmax.f32 %v14407_v3, 0.0  ;;  %v3733_v14 = vor.u32 %v3732_v34, %v3728_v42  ;;  %v3739_v10 = vrot.slane %v3737_v53, 1 }
 0x653   :  { %v3252_v49 = vmul.f32 %v14405_v54, %v14403_v20  ;;  %v3353_v40 = vpack.c.bf16 %v3251_v4, %v3251_v4  ;;  %v11699_v61 = vunpack.c.l.b16 %v3351_v46  ;;  %v14410_v20 = vld [vmem:[#allocation33_spill] sm:$0xff]  ;;  %v4062_v4 = vpack.c.b16 %v11275_v44, %v14412_v50 }
 0x654   :  { %v3267_v51 = vmul.f32 %v14408_v57, %v14406_v24  ;;  %v3624_v11 = vunpack.c.l.b16 %v3352_v62  ;;  %v14411_v29 = vmax.f32 %v14410_v20, 0.0  ;;  %v3740_v5 = vor.u32 %v3739_v10, %v3735_v30  ;;  %v6488_v30 = vld [vmem:[%s12674_s5 + $0x108] sm:$0xff]  ;;  %v14418_v10 = vld [vmem:[#allocation152_spill] sm:$0xff] }
 0x655   :  { %v3354_v32 = vpack.c.bf16 %v3252_v49, %v3252_v49  ;;  %v11701_v55 = vunpack.c.l.b16 %v3353_v40  ;;  %v3866_v23 = vunpack.c.l.b16 %v3733_v14  ;;  %v14413_v49 = vld [vmem:[#allocation23_spill] sm:$0xff]  ;;  %v14414_v40 = vld [vmem:[#allocation122_spill] sm:$0xff]  ;;  %4803 = vmatpush.bf16.msra.mxu2 %v6488_v30 }
 0x656   :  { %v3268_v54 = vmul.f32 %v14411_v29, %v14409_v37  ;;  %v3369_v26 = vpack.c.bf16 %v3267_v51, %v3267_v51  ;;  %v3641_v42 = vpack.c.b16 %v3624_v11, %v11699_v61  ;;  %v3016_v62 = vadd.f32 %v11362_v25, %v14413_v49  ;;  %v14416_v51 = vld [vmem:[#allocation151_spill] sm:$0xff]  ;;  %v14420_v11 = vld [vmem:[#allocation128_spill] sm:$0xff]  ;;  %v6496_v20 = vld [vmem:[%s12674_s5 + $0x148] sm:$0xff] }
 0x657   :  { %v3626_v3 = vunpack.c.l.b16 %v3354_v32  ;;  %v14415_v24 = vpack.c.b16 %v14267_v47, %v14414_v40  ;;  %4678 = vmatmul.bf16.gmra.mxu2 %v4062_v4  ;;  %v3870_v50 = vunpack.c.l.b16 %v3740_v5  ;;  %v14417_v14 = vunpack.c.l.b16 %v14416_v51  ;;  %v6480_v29 = vld [vmem:[%s12674_s5 + $0xc8] sm:$0xff]  ;;  %4852 = vmatpush.bf16.msra.mxu3 %v6496_v20  ;;  %v14424_v20 = vld [vmem:[#allocation155_spill] sm:$0xff] }
 0x658   :  { %v3370_v34 = vpack.c.bf16 %v3268_v54, %v3268_v54  ;;  %v11711_v53 = vunpack.c.l.b16 %v3369_v26  ;;  %v14419_v26 = vunpack.c.l.b16 %v14418_v10  ;;  %v3775_v37 = vshll.u32 %v14420_v11, 16  ;;  %4754 = vmatpush.bf16.msra.mxu1 %v6480_v29  ;;  %4732 = vmatmul.bf16.gmra.mxu3 %v11417_v7  ;;  %v6518_v7 = vld [vmem:[%s12674_s5 + $0x1f8] sm:$0xff] }
 0x659   :  { %4629 = vmatmul.bf16.gmra.mxu1 %v14415_v24  ;;  %v3642_v57 = vpack.c.b16 %v3626_v3, %v11701_v55  ;;  %v3744_v4 = vshll.u32 %v3641_v42, 16  ;;  %v11738_v5 = vpack.c.b16 %v3870_v50, %v3866_v23  ;;  %v3742_v49 = vshrl.u32 %v3641_v42, 16 }
 0x65a   :  { %v11726_v32 = vpack.c.b16 %v14419_v26, %v14417_v14  ;;  %v11736_v54 = vunpack.c.l.b16 %v3370_v34  ;;  %v14421_v24 = vunpack.c.l.b16 %v11311_v0  ;;  %v14422_v51 = vunpack.c.l.b16 %v11326_v17  ;;  %v14426_v0 = vld [vmem:[#allocation156_spill] sm:$0xff] }
 0x65b   :  { %v3751_v3 = vshll.u32 %v3642_v57, 16  ;;  %v3746_v40 = vrot.slane %v3744_v4, 1  ;;  %v3118_v34 = vmax.f32 %v3016_v62, 0.0  ;;  %v3749_v10 = vshrl.u32 %v3642_v57, 16 }
 0x65c   :  { %v11746_v14 = vpack.c.b16 %v14422_v51, %v14421_v24  ;;  %v3777_v30 = vrot.slane %v3775_v37, 1  ;;  %v14423_v50 = vunpack.c.l.b16 %v11357_v41  ;;  %v14425_v29 = vunpack.c.l.b16 %v14424_v20  ;;  %v14431_v51 = vld [vmem:[#allocation190_spill] sm:$0xff] }
 0x65d   :  { %v3753_v26 = vrot.slane %v3751_v3, 1  ;;  %v3747_v23 = vor.u32 %v3746_v40, %v3742_v49  ;;  %v4077_v42 = vpack.c.b16 %v11420_v36, %v11441_v19  ;;  %v14427_v4 = vunpack.c.l.b16 %v14426_v0  ;;  %v14433_v0 = vld [vmem:[#allocation165_spill] sm:$0xff] }
 0x65e   :  { %v11752_v46 = vpack.c.b16 %v14425_v29, %v14423_v50  ;;  %v14428_v17 = vunpack.c.l.b16 %v11395_v27  ;;  %v3773_v62 = vshrl.u32 %v14420_v11, 16  ;;  %v4086_v41 = vpack.c.b16 %v11457_v16, %v11426_v39 }
 0x65f   :  { %v3754_v60 = vor.u32 %v3753_v26, %v3749_v10  ;;  %v3874_v57 = vunpack.c.l.b16 %v3747_v23  ;;  %v14429_v37 = vunpack.c.l.b16 %v11405_v6  ;;  %v14430_v3 = vunpack.c.l.b16 %v11434_v45  ;;  %v14434_v6 = vld [vmem:[#allocation169_spill] sm:$0xff] }
 0x660   :  { %v11760_v24 = vpack.c.b16 %v14428_v17, %v14427_v4  ;;  %v3220_v10 = vmul.f32 %v3118_v34, %v14431_v51  ;;  %v3778_v26 = vor.u32 %v3777_v30, %v3773_v62  ;;  %v14432_v11 = vunpack.c.l.b16 %v11439_v38  ;;  %v6487_v34 = vld [vmem:[%s12674_s5 + $0x100] sm:$0xff]  ;;  %v14436_v17 = vld [vmem:[#allocation172_spill] sm:$0xff]  ;;  %v14439_v51 = vld [vmem:[#allocation19_spill] sm:$0xff] }
 0x661   :  { %v11769_v49 = vpack.c.b16 %v14430_v3, %v14429_v37  ;;  %v3878_v40 = vunpack.c.l.b16 %v3754_v60  ;;  %v4070_v4 = vpack.c.b16 %v14434_v6, %v14433_v0  ;;  %v14435_v60 = vpack.c.b16 %v11441_v19, %v11293_v9  ;;  %v6495_v38 = vld [vmem:[%s12674_s5 + $0x140] sm:$0xff]  ;;  %4804 = vmatpush.bf16.msra.mxu2 %v6487_v34  ;;  %v6526_v3 = vld [vmem:[%s12674_s5 + $0x238] sm:$0xff]  ;;  %v14444_v34 = vld [vmem:[#allocation130_spill] sm:$0xff] }
 0x662   :  { %v3322_v27 = vpack.c.bf16 %v3220_v10, %v3220_v10  ;;  %v3880_v20 = vunpack.c.l.b16 %v3778_v26  ;;  %v6479_v30 = vld [vmem:[%s12674_s5 + $0xc0] sm:$0xff]  ;;  %4853 = vmatpush.bf16.msra.mxu3 %v6495_v38  ;;  %v14438_v37 = vpack.c.b16 %v11426_v39, %v11420_v36 }
 0x663   :  { %v11772_v50 = vpack.c.b16 %v3878_v40, %v3874_v57  ;;  %4755 = vmatpush.bf16.msra.mxu1 %v6479_v30  ;;  %v14437_v62 = vld [vmem:[#allocation5_spill] sm:$0xff]  ;;  %v6510_v40 = vld [vmem:[%s12674_s5 + $0x1b8] sm:$0xff]  ;;  %v14446_v30 = vld [vmem:[#allocation158_spill] sm:$0xff] }
 0x664   :  { %v11774_v29 = vunpack.c.l.b16 %v3322_v27  ;;  %v11778_v23 = vpack.c.b16 %v3880_v20, %v14432_v11  ;;  %v4079_v57 = vpack.c.b16 %v14437_v62, %v14436_v17  ;;  %v14440_v10 = vld [vmem:[#allocation25_spill] sm:$0xff]  ;;  %v6517_v27 = vld [vmem:[%s12674_s5 + $0x1f0] sm:$0xff]  ;;  %v4085_v19 = vpack.c.b16 %v14439_v51, %v14437_v62 }
 0x665   :  { %4944 = vmatpush.bf16.msrb.mxu2 %v6518_v7  ;;  %v4088_v26 = vpack.c.b16 %v14440_v10, %v14439_v51  ;;  %v6525_v20 = vld [vmem:[%s12674_s5 + $0x230] sm:$0xff] }
 0x666   :  { %v4095_v45 = vpack.c.b16 %v11774_v29, %v11473_v48  ;;  %4993 = vmatpush.bf16.msrb.mxu3 %v6526_v3  ;;  %v6509_v11 = vld [vmem:[%s12674_s5 + $0x1b0] sm:$0xff]  ;;  %v6694_v29 = vld [vmem:[%s12669_s0 + $0x1b4] sm:$0xf0]  }
 0x667   :  { %4683 = vmatmul.bf16.gmra.mxu2 %v14435_v60  ;;  %4895 = vmatpush.bf16.msrb.mxu1 %v6510_v40  ;;  %v14442_v60 = vpack.c.b16 %v11109_v63, %v11096_v43  ;;  %v6516_v40 = vld [vmem:[%s12674_s5 + $0x1e8] sm:$0xff] }
 0x668   :  { %4737 = vmatmul.bf16.gmra.mxu3 %v11447_v15  ;;  %v14441_v15 = vpack.c.b16 %v11473_v48, %v11457_v16  ;;  %v6657_v48 = vld [vmem:[%s12669_s0 + $0x1b0] sm:$0xf]  }
 0x669   :  { %4634 = vmatmul.bf16.gmra.mxu1 %v4070_v4  ;;  %4945 = vmatpush.bf16.msrb.mxu2 %v6517_v27 }
 0x66a   :  { %4994 = vmatpush.bf16.msrb.mxu3 %v6525_v20  ;;  %v6508_v20 = vld [vmem:[%s12674_s5 + $0x1a8] sm:$0xff] }
 0x66b   :  { %4896 = vmatpush.bf16.msrb.mxu1 %v6509_v11 }
 0x66d   :  { %4946 = vmatpush.bf16.msrb.mxu2 %v6516_v40 }
 0x66f   :  { %4897 = vmatpush.bf16.msrb.mxu1 %v6508_v20 }
 0x677   :  { %4688 = vmatmul.bf16.gmra.mxu2 %v14438_v37 }
 0x678   :  { %4742 = vmatmul.bf16.gmra.mxu3 %v11479_v2  ;;  %v14443_v2 = vld [vmem:[#allocation132_spill] sm:$0xff] }
 0x679   :  { %4639 = vmatmul.bf16.gmra.mxu1 %v4079_v57  ;;  %v14445_v38 = vpack.c.b16 %v14443_v2, %v14444_v34  ;;  %v14448_v2 = vld [vmem:[#allocation159_spill] sm:$0xff] }
 0x683   :  { %v4610_v4 = vpop.f32.mrf.mxu1 }
 0x687   :  { %4693 = vmatmul.bf16.gmra.mxu2 %v14441_v15 }
 0x688   :  { %4854 = vmatmul.bf16.vlgmr.msra.gmra.mxu3 %v14446_v30  ;;  %v14451_v30 = vld [vmem:[#allocation135_spill] sm:$0xff] }
 0x689   :  { %4644 = vmatmul.bf16.gmra.mxu1 %v4088_v26  ;;  %v6524_v26 = vld [vmem:[%s12674_s5 + $0x228] sm:$0xff] }
 0x68a   :  { %v4659_v57 = vpop.f32.mrf.mxu2  ;;  %4995 = vmatpush.bf16.msrb.mxu3 %v6524_v26  ;;  %v6515_v26 = vld [vmem:[%s12674_s5 + $0x1e0] sm:$0xff] }
 0x68b   :  { %v4660_v37 = vadd.f32 %v4659_v57, %v4610_v4  ;;  %v4708_v7 = vpop.f32.mrf.mxu3  ;;  %v4612_v3 = vpop.f32.mrf.mxu1  ;;  %4947 = vmatpush.bf16.msrb.mxu2 %v6515_v26 }
 0x68d   :  { %v11840_v63 = vadd.f32 %v4708_v7, %v4660_v37 }
 0x692   :  { %v4661_v43 = vpop.f32.mrf.mxu2 }
 0x693   :  { %v4662_v15 = vadd.f32 %v4661_v43, %v4612_v3  ;;  %v4710_v27 = vpop.f32.mrf.mxu3  ;;  %v6523_v43 = vld [vmem:[%s12674_s5 + $0x220] sm:$0xff] }
 0x694   :  { %4996 = vmatpush.bf16.msrb.mxu3 %v6523_v43  ;;  %v6514_v43 = vld [vmem:[%s12674_s5 + $0x1d8] sm:$0xff] }
 0x695   :  { %v11845_v4 = vadd.f32 %v4710_v27, %v4662_v15  ;;  %4948 = vmatpush.bf16.msrb.mxu2 %v6514_v43 }
 0x697   :  { %4805 = vmatmul.bf16.vlgmr.msra.gmra.mxu2 %v14445_v38  ;;  %v14450_v38 = vld [vmem:[#allocation138_spill] sm:$0xff] }
 0x698   :  { %v14452_v57 = vpack.c.b16 %v14450_v38, %v14451_v30  ;;  %4859 = vmatmul.bf16.gmra.mxu3 %v11576_v52  ;;  %v6507_v52 = vld [vmem:[%s12674_s5 + $0x1a0] sm:$0xff]  ;;  %v14455_v30 = vld [vmem:[#allocation143_spill] sm:$0xff] }
 0x699   :  { %4756 = vmatmul.bf16.vlgmr.msra.gmra.mxu1 %v14442_v60  ;;  %v14447_v60 = vld [vmem:[#allocation160_spill] sm:$0xff] }
 0x69a   :  { %v14449_v34 = vpack.c.b16 %v14447_v60, %v14448_v2  ;;  %4898 = vmatpush.bf16.msrb.mxu1 %v6507_v52 }
 0x69b   :  { %v4713_v3 = vpop.f32.mrf.mxu3 }
 0x69c   :  { %v4615_v11 = vpop.f32.mrf.mxu1 }
 0x6a3   :  { %v4715_v60 = vpop.f32.mrf.mxu3 }
 0x6a4   :  { %v4664_v37 = vpop.f32.mrf.mxu2  ;;  %v4617_v40 = vpop.f32.mrf.mxu1 }
 0x6a5   :  { %v4665_v7 = vadd.f32 %v4664_v37, %v4615_v11 }
 0x6a7   :  { %4810 = vmatmul.bf16.gmra.mxu2 %v14452_v57  ;;  %v11860_v15 = vadd.f32 %v4713_v3, %v4665_v7  ;;  %v14456_v57 = vld [vmem:[#allocation140_spill] sm:$0xff] }
 0x6a8   :  { %v14457_v37 = vpack.c.b16 %v14455_v30, %v14456_v57  ;;  %4864 = vmatmul.bf16.gmra.mxu3 %v11591_v58  ;;  %v6506_v58 = vld [vmem:[%s12674_s5 + $0x198] sm:$0xff]  ;;  %v14459_v30 = vpack.c.b16 %v14337_v59, %v14336_v56 }
 0x6a9   :  { %4761 = vmatmul.bf16.gmra.mxu1 %v14449_v34  ;;  %v14453_v34 = vld [vmem:[#allocation162_spill] sm:$0xff] }
 0x6aa   :  { %v14454_v38 = vpack.c.b16 %v11536_v1, %v14453_v34  ;;  %4899 = vmatpush.bf16.msrb.mxu1 %v6506_v58  ;;  %v14463_v58 = vld [vmem:[#allocation91_spill] sm:$0xff] }
 0x6ac   :  { %v4666_v27 = vpop.f32.mrf.mxu2 }
 0x6ad   :  { %v4667_v20 = vadd.f32 %v4666_v27, %v4617_v40  ;;  %v4718_v40 = vpop.f32.mrf.mxu3  ;;  %v6522_v27 = vld [vmem:[%s12674_s5 + $0x218] sm:$0xff] }
 0x6ae   :  { %4997 = vmatpush.bf16.msrb.mxu3 %v6522_v27 }
 0x6af   :  { %v11865_v2 = vadd.f32 %v4715_v60, %v4667_v20 }
 0x6b1   :  { %v4620_v11 = vpop.f32.mrf.mxu1 }
 0x6b5   :  { %v4720_v52 = vpop.f32.mrf.mxu3 }
 0x6b7   :  { %4815 = vmatmul.bf16.gmra.mxu2 %v14457_v37 }
 0x6b8   :  { %v4669_v7 = vpop.f32.mrf.mxu2  ;;  %4869 = vmatmul.bf16.gmra.mxu3 %v11615_v33  ;;  %v6505_v33 = vld [vmem:[%s12674_s5 + $0x190] sm:$0xff] }
 0x6b9   :  { %4766 = vmatmul.bf16.gmra.mxu1 %v14454_v38  ;;  %v4670_v3 = vadd.f32 %v4669_v7, %v4620_v11  ;;  %v4622_v26 = vpop.f32.mrf.mxu1  ;;  %v14458_v38 = vpack.c.b16 %v11548_v31, %v11546_v22 }
 0x6ba   :  { %4900 = vmatpush.bf16.msrb.mxu1 %v6505_v33  ;;  %v14465_v33 = vpack.c.b16 %v11619_v12, %v11617_v35 }
 0x6bb   :  { %v11880_v1 = vadd.f32 %v4718_v40, %v4670_v3  ;;  %v6513_v40 = vld [vmem:[%s12674_s5 + $0x1d0] sm:$0xff] }
 0x6bc   :  { %4949 = vmatpush.bf16.msrb.mxu2 %v6513_v40 }
 0x6bd   :  { %v4723_v7 = vpop.f32.mrf.mxu3 }
 0x6c0   :  { %v4671_v20 = vpop.f32.mrf.mxu2 }
 0x6c1   :  { %v4672_v60 = vadd.f32 %v4671_v20, %v4622_v26  ;;  %v6521_v26 = vld [vmem:[%s12674_s5 + $0x210] sm:$0xff] }
 0x6c2   :  { %v4625_v11 = vpop.f32.mrf.mxu1  ;;  %4998 = vmatpush.bf16.msrb.mxu3 %v6521_v26  ;;  %v14460_v20 = vld [vmem:[#allocation163_spill] sm:$0xff] }
 0x6c3   :  { %v11885_v34 = vadd.f32 %v4720_v52, %v4672_v60  ;;  %v14461_v60 = vpack.c.b16 %v11600_v18, %v14460_v20  ;;  %v14462_v52 = vld [vmem:[#allocation100_spill] sm:$0xff]  ;;  %v14467_v20 = vld [vmem:[#allocation167_spill] sm:$0xff] }
 0x6c5   :  { %v4725_v59 = vpop.f32.mrf.mxu3 }
 0x6c7   :  { %4820 = vmatmul.bf16.gmra.mxu2 %v14459_v30 }
 0x6c8   :  { %4874 = vmatmul.bf16.gmra.mxu3 %v11658_v13  ;;  %v6504_v13 = vld [vmem:[%s12674_s5 + $0x188] sm:$0xff] }
 0x6c9   :  { %4771 = vmatmul.bf16.gmra.mxu1 %v14458_v38 }
 0x6ca   :  { %v4674_v57 = vpop.f32.mrf.mxu2  ;;  %v4627_v3 = vpop.f32.mrf.mxu1  ;;  %4901 = vmatpush.bf16.msrb.mxu1 %v6504_v13 }
 0x6cb   :  { %v4675_v37 = vadd.f32 %v4674_v57, %v4625_v11  ;;  %v14464_v11 = vpack.c.b16 %v14462_v52, %v14463_v58 }
 0x6cd   :  { %v11900_v22 = vadd.f32 %v4723_v7, %v4675_v37  ;;  %v4728_v57 = vpop.f32.mrf.mxu3  ;;  %v6512_v7 = vld [vmem:[%s12674_s5 + $0x1c8] sm:$0xff] }
 0x6ce   :  { %4950 = vmatpush.bf16.msrb.mxu2 %v6512_v7 }
 0x6d2   :  { %v4676_v56 = vpop.f32.mrf.mxu2 }
 0x6d3   :  { %v4677_v31 = vadd.f32 %v4676_v56, %v4627_v3  ;;  %v6520_v3 = vld [vmem:[%s12674_s5 + $0x208] sm:$0xff] }
 0x6d4   :  { %4999 = vmatpush.bf16.msrb.mxu3 %v6520_v3  ;;  %v14468_v3 = vld [vmem:[#allocation166_spill] sm:$0xff] }
 0x6d5   :  { %v11905_v27 = vadd.f32 %v4725_v59, %v4677_v31  ;;  %v4730_v56 = vpop.f32.mrf.mxu3 }
 0x6d6   :  { %v4630_v43 = vpop.f32.mrf.mxu1 }
 0x6d7   :  { %4825 = vmatmul.bf16.gmra.mxu2 %v14464_v11 }
 0x6d8   :  { %4879 = vmatmul.bf16.gmra.mxu3 %v14467_v20 }
 0x6d9   :  { %4776 = vmatmul.bf16.gmra.mxu1 %v14461_v60 }
 0x6da   :  { %v4679_v38 = vpop.f32.mrf.mxu2 }
 0x6db   :  { %v4680_v30 = vadd.f32 %v4679_v38, %v4630_v43  ;;  %v14466_v43 = vpack.c.b16 %v11656_v21, %v11555_v28  ;;  %v6511_v38 = vld [vmem:[%s12674_s5 + $0x1c0] sm:$0xff] }
 0x6dc   :  { %4951 = vmatpush.bf16.msrb.mxu2 %v6511_v38 }
 0x6dd   :  { %v11920_v18 = vadd.f32 %v4728_v57, %v4680_v30  ;;  %v4733_v58 = vpop.f32.mrf.mxu3  ;;  %v6519_v30 = vld [vmem:[%s12674_s5 + $0x200] sm:$0xff] }
 0x6de   :  { %v4632_v37 = vpop.f32.mrf.mxu1  ;;  %5000 = vmatpush.bf16.msrb.mxu3 %v6519_v30  ;;  %v6503_v57 = vld [vmem:[%s12674_s5 + $0x180] sm:$0xff] }
 0x6df   :  { %4902 = vmatpush.bf16.msrb.mxu1 %v6503_v57 }
 0x6e2   :  { %v4681_v40 = vpop.f32.mrf.mxu2 }
 0x6e3   :  { %v4682_v26 = vadd.f32 %v4681_v40, %v4632_v37  ;;  %v14469_v40 = vld [vmem:[#allocation164_spill] sm:$0xff] }
 0x6e5   :  { %v11925_v59 = vadd.f32 %v4730_v56, %v4682_v26  ;;  %v4735_v21 = vpop.f32.mrf.mxu3  ;;  %v14470_v26 = vpack.c.b16 %v14468_v3, %v14469_v40  ;;  %v14471_v56 = vld [vmem:[#allocation168_spill] sm:$0xff] }
 0x6e6   :  { %v4635_v31 = vpop.f32.mrf.mxu1  ;;  %v14472_v13 = vpack.c.b16 %v11689_v8, %v14471_v56  ;;  %v14474_v8 = vpack.c.b16 %v11736_v54, %v11711_v53  ;;  %v14478_v54 = vld [vmem:[#allocation134_spill] sm:$0xff] }
 0x6e7   :  { %4830 = vmatmul.bf16.gmra.mxu2 %v14466_v43 }
 0x6e8   :  { %4884 = vmatmul.bf16.gmra.mxu3 %v11738_v5 }
 0x6e9   :  { %4781 = vmatmul.bf16.gmra.mxu1 %v14465_v33 }
 0x6ea   :  { %v4684_v60 = vpop.f32.mrf.mxu2 }
 0x6eb   :  { %v4685_v52 = vadd.f32 %v4684_v60, %v4635_v31 }
 0x6ed   :  { %v11940_v35 = vadd.f32 %v4733_v58, %v4685_v52  ;;  %v4738_v43 = vpop.f32.mrf.mxu3 }
 0x6ee   :  { %v4637_v11 = vpop.f32.mrf.mxu1 }
 0x6f2   :  { %v4686_v28 = vpop.f32.mrf.mxu2 }
 0x6f3   :  { %v4687_v12 = vadd.f32 %v4686_v28, %v4637_v11  ;;  %v14473_v28 = vpack.c.b16 %v11701_v55, %v11699_v61  ;;  %v14475_v55 = vld [vmem:[#allocation90_spill] sm:$0xff] }
 0x6f5   :  { %v11945_v7 = vadd.f32 %v4735_v21, %v4687_v12  ;;  %v4740_v11 = vpop.f32.mrf.mxu3 }
 0x6f6   :  { %v4640_v37 = vpop.f32.mrf.mxu1 }
 0x6f7   :  { %4835 = vmatmul.bf16.gmra.mxu2 %v14472_v13 }
 0x6f8   :  { %4889 = vmatmul.bf16.gmra.mxu3 %v11772_v50  ;;  %v14479_v50 = vld [vmem:[#allocation131_spill] sm:$0xff] }
 0x6f9   :  { %4786 = vmatmul.bf16.gmra.mxu1 %v14470_v26 }
 0x6fa   :  { %v4689_v31 = vpop.f32.mrf.mxu2 }
 0x6fb   :  { %v4690_v33 = vadd.f32 %v4689_v31, %v4640_v37  ;;  %v14476_v31 = vld [vmem:[#allocation81_spill] sm:$0xff] }
 0x6fc   :  { %v14477_v53 = vpack.c.b16 %v14475_v55, %v14476_v31 }
 0x6fd   :  { %v11954_v60 = vadd.f32 %v4738_v43, %v4690_v33  ;;  %v4743_v21 = vpop.f32.mrf.mxu3  ;;  %v14480_v33 = vpack.c.b16 %v14478_v54, %v14479_v50  ;;  %v14481_v43 = vld [vmem:[#allocation154_spill] sm:$0xff] }
 0x6fe   :  { %v4642_v20 = vpop.f32.mrf.mxu1 }
 0x702   :  { %v4691_v52 = vpop.f32.mrf.mxu2 }
 0x703   :  { %v4692_v58 = vadd.f32 %v4691_v52, %v4642_v20 }
 0x705   :  { %v11956_v30 = vadd.f32 %v4740_v11, %v4692_v58  ;;  %v4745_v26 = vpop.f32.mrf.mxu3 }
 0x706   :  { %v4645_v38 = vpop.f32.mrf.mxu1 }
 0x707   :  { %4840 = vmatmul.bf16.gmra.mxu2 %v14474_v8 }
 0x708   :  { %5001 = vmatmul.bf16.vlgmr.msrb.gmra.mxu3 %v14481_v43 }
 0x709   :  { %4791 = vmatmul.bf16.gmra.mxu1 %v14473_v28 }
 0x70a   :  { %v4694_v5 = vpop.f32.mrf.mxu2 }
 0x70b   :  { %v4695_v12 = vadd.f32 %v4694_v5, %v4645_v38 }
 0x70d   :  { %v11965_v37 = vadd.f32 %v4743_v21, %v4695_v12  ;;  %v4855_v58 = vpop.f32.mrf.mxu3 }
 0x70e   :  { %v4647_v57 = vpop.f32.mrf.mxu1 }
 0x712   :  { %v4696_v3 = vpop.f32.mrf.mxu2 }
 0x713   :  { %v4697_v40 = vadd.f32 %v4696_v3, %v4647_v57  ;;  %v14482_v57 = vld [vmem:[#allocation94_spill] sm:$0xff]  ;;  %v14483_v3 = vld [vmem:[#allocation103_spill] sm:$0xff] }
 0x715   :  { %v11968_v61 = vadd.f32 %v4745_v26, %v4697_v40  ;;  %v4857_v5 = vpop.f32.mrf.mxu3  ;;  %v4040_v40 = vpack.c.b16 %v14483_v3, %v14482_v57  ;;  %v14484_v26 = vld [vmem:[#allocation136_spill] sm:$0xff] }
 0x716   :  { %v4757_v56 = vpop.f32.mrf.mxu1 }
 0x717   :  { %v4758_v13 = vadd.f32 %v4757_v56, %v11840_v63  ;;  %4952 = vmatmul.bf16.vlgmr.msrb.gmra.mxu2 %v14480_v33  ;;  %v14485_v56 = vld [vmem:[#allocation139_spill] sm:$0xff] }
 0x718   :  { %v4041_v55 = vpack.c.b16 %v14485_v56, %v14484_v26  ;;  %5006 = vmatmul.bf16.gmra.mxu3 %v11726_v32  ;;  %v14488_v32 = vld [vmem:[#allocation110_spill] sm:$0xff] }
 0x719   :  { %4903 = vmatmul.bf16.vlgmr.msrb.gmra.mxu1 %v14477_v53 }
 0x71a   :  { %v4806_v20 = vpop.f32.mrf.mxu2 }
 0x71b   :  { %v4807_v52 = vadd.f32 %v4806_v20, %v4758_v13 }
 0x71d   :  { %v11978_v28 = vadd.f32 %v4855_v58, %v4807_v52  ;;  %v4860_v53 = vpop.f32.mrf.mxu3 }
 0x71e   :  { %v4759_v11 = vpop.f32.mrf.mxu1 }
 0x71f   :  { %v4760_v38 = vadd.f32 %v4759_v11, %v11845_v4 }
 0x722   :  { %v4808_v63 = vpop.f32.mrf.mxu2 }
 0x723   :  { %v4809_v8 = vadd.f32 %v4808_v63, %v4760_v38 }
 0x725   :  { %v11985_v31 = vadd.f32 %v4857_v5, %v4809_v8  ;;  %v4862_v58 = vpop.f32.mrf.mxu3  ;;  %v14487_v8 = vld [vmem:[#allocation107_spill] sm:$0xff] }
 0x726   :  { %v4762_v12 = vpop.f32.mrf.mxu1  ;;  %v4049_v5 = vpack.c.b16 %v14488_v32, %v14487_v8  ;;  %v14493_v32 = vld [vmem:[#allocation117_spill] sm:$0xff] }
 0x727   :  { %v4763_v21 = vadd.f32 %v4762_v12, %v11860_v15  ;;  %4957 = vmatmul.bf16.gmra.mxu2 %v4041_v55  ;;  %v14486_v15 = vld [vmem:[#allocation21_spill] sm:$0xff]  ;;  %v14489_v12 = vld [vmem:[#allocation142_spill] sm:$0xff] }
 0x728   :  { %v3007_v43 = vadd.f32 %v11362_v25, %v14486_v15  ;;  %5011 = vmatmul.bf16.gmra.mxu3 %v11746_v14  ;;  %v14492_v25 = vld [vmem:[#allocation179_spill] sm:$0xff] }
 0x729   :  { %4908 = vmatmul.bf16.gmra.mxu1 %v4040_v40 }
 0x72a   :  { %v4811_v4 = vpop.f32.mrf.mxu2  ;;  %v3109_v11 = vmax.f32 %v3007_v43, 0.0 }
 0x72b   :  { %v4812_v13 = vadd.f32 %v4811_v4, %v4763_v21  ;;  %v14490_v21 = vld [vmem:[#allocation144_spill] sm:$0xff] }
 0x72c   :  { %v4050_v57 = vpack.c.b16 %v14490_v21, %v14489_v12  ;;  %v3211_v26 = vmul.f32 %v3109_v11, %v14492_v25  ;;  %v14495_v12 = vld [vmem:[#allocation147_spill] sm:$0xff] }
 0x72d   :  { %v11989_v33 = vadd.f32 %v4860_v53, %v4812_v13 }
 0x72e   :  { %v4764_v54 = vpop.f32.mrf.mxu1 }
 0x72f   :  { %v4765_v50 = vadd.f32 %v4764_v54, %v11865_v2  ;;  %v14491_v2 = vld [vmem:[#allocation124_spill] sm:$0xff]  ;;  %v3313_v54 = vpack.c.bf16 %v3211_v26, %v3211_v26 }
 0x730   :  { %v3768_v40 = vshll.u32 %v14491_v2, 16  ;;  %v3766_v13 = vshrl.u32 %v14491_v2, 16  ;;  %v14496_v2 = vld [vmem:[#allocation114_spill] sm:$0xff] }
 0x732   :  { %v4813_v20 = vpop.f32.mrf.mxu2  ;;  %v3770_v56 = vrot.slane %v3768_v40, 1 }
 0x733   :  { %v4814_v52 = vadd.f32 %v4813_v20, %v4765_v50  ;;  %v3845_v20 = vunpack.c.l.b16 %v3313_v54 }
 0x734   :  { %v3771_v43 = vor.u32 %v3770_v56, %v3766_v13 }
 0x735   :  { %v11998_v3 = vadd.f32 %v4862_v58, %v4814_v52  ;;  %v4059_v21 = vpack.c.b16 %v3845_v20, %v14495_v12  ;;  %v4068_v20 = vpack.c.b16 %v11293_v9, %v11275_v44  ;;  %v4076_v9 = vpack.c.b16 %v14436_v17, %v14434_v6 }
 0x736   :  { %v4767_v38 = vpop.f32.mrf.mxu1  ;;  %v3846_v58 = vunpack.c.l.b16 %v3771_v43  ;;  %v4067_v43 = vpack.c.b16 %v14433_v0, %v14267_v47 }
 0x737   :  { %v4768_v63 = vadd.f32 %v4767_v38, %v11880_v1  ;;  %4962 = vmatmul.bf16.gmra.mxu2 %v4050_v57  ;;  %v4865_v1 = vpop.f32.mrf.mxu3 }
 0x739   :  { %4913 = vmatmul.bf16.gmra.mxu1 %v4049_v5 }
 0x73a   :  { %v4816_v55 = vpop.f32.mrf.mxu2 }
 0x73b   :  { %v4817_v4 = vadd.f32 %v4816_v55, %v4768_v63  ;;  %v14494_v63 = vld [vmem:[#allocation123_spill] sm:$0xff] }
 0x73c   :  { %v4058_v5 = vpack.c.b16 %v14494_v63, %v14493_v32 }
 0x73d   :  { %v12005_v15 = vadd.f32 %v4865_v1, %v4817_v4 }
 0x73e   :  { %v4769_v53 = vpop.f32.mrf.mxu1 }
 0x73f   :  { %v4770_v50 = vadd.f32 %v4769_v53, %v11885_v34  ;;  %v4867_v14 = vpop.f32.mrf.mxu3  ;;  %v14497_v34 = vunpack.c.l.b16 %v14496_v2 }
 0x741   :  { %v4060_v40 = vpack.c.b16 %v3846_v58, %v14497_v34 }
 0x742   :  { %v4818_v52 = vpop.f32.mrf.mxu2 }
 0x743   :  { %v4819_v38 = vadd.f32 %v4818_v52, %v4770_v50  ;;  %5016 = vmatmul.bf16.gmra.mxu3 %v4060_v40 }
 0x745   :  { %v12011_v57 = vadd.f32 %v4867_v14, %v4819_v38 }
 0x746   :  { %v4772_v8 = vpop.f32.mrf.mxu1 }
 0x747   :  { %v4773_v11 = vadd.f32 %v4772_v8, %v11900_v22  ;;  %4967 = vmatmul.bf16.gmra.mxu2 %v4059_v21  ;;  %v4870_v56 = vpop.f32.mrf.mxu3 }
 0x749   :  { %4918 = vmatmul.bf16.gmra.mxu1 %v4058_v5 }
 0x74a   :  { %v4821_v25 = vpop.f32.mrf.mxu2 }
 0x74b   :  { %v4822_v26 = vadd.f32 %v4821_v25, %v4773_v11 }
 0x74d   :  { %v12016_v22 = vadd.f32 %v4870_v56, %v4822_v26 }
 0x74e   :  { %v4774_v55 = vpop.f32.mrf.mxu1 }
 0x74f   :  { %v4775_v4 = vadd.f32 %v4774_v55, %v11905_v27  ;;  %v4872_v53 = vpop.f32.mrf.mxu3 }
 0x752   :  { %v4823_v1 = vpop.f32.mrf.mxu2 }
 0x753   :  { %v4824_v13 = vadd.f32 %v4823_v1, %v4775_v4  ;;  %5021 = vmatmul.bf16.gmra.mxu3 %v11752_v46  ;;  %v14498_v1 = vld [vmem:[#allocation127_spill] sm:$0xff] }
 0x754   :  { %v4094_v39 = vpack.c.b16 %v14498_v1, %v14440_v10 }
 0x755   :  { %v12023_v52 = vadd.f32 %v4872_v53, %v4824_v13  ;;  %v5465_v13 = vld [vmem:[%s12680_s11] sm:$0x3] }
 0x756   :  { %v4777_v54 = vpop.f32.mrf.mxu1  ;;  %v5499_v53 = vsel %vm915_vm0, %v5465_v13, 0 }
 0x757   :  { %v4778_v50 = vadd.f32 %v4777_v54, %v11920_v18  ;;  %4972 = vmatmul.bf16.gmra.mxu2 %v4068_v20  ;;  %v4875_v38 = vpop.f32.mrf.mxu3 }
 0x758   :  { %5508 = vmatpush.bf16.msra.mxu2 %v5499_v53 }
 0x759   :  { %4923 = vmatmul.bf16.gmra.mxu1 %v4067_v43  ;;  %v6658_v43 = vor.u32 %v6694_v29, %v6657_v48 }
 0x75a   :  { %v4826_v27 = vpop.f32.mrf.mxu2 }
 0x75b   :  { %v4827_v58 = vadd.f32 %v4826_v27, %v4778_v50 }
 0x75d   :  { %v12026_v8 = vadd.f32 %v4875_v38, %v4827_v58 }
 0x75e   :  { %v4779_v14 = vpop.f32.mrf.mxu1 }
 0x75f   :  { %v4780_v18 = vadd.f32 %v4779_v14, %v11925_v59  ;;  %v4877_v47 = vpop.f32.mrf.mxu3 }
 0x762   :  { %v4828_v11 = vpop.f32.mrf.mxu2 }
 0x763   :  { %v4829_v32 = vadd.f32 %v4828_v11, %v4780_v18  ;;  %5026 = vmatmul.bf16.gmra.mxu3 %v11760_v24 }
 0x765   :  { %v12032_v63 = vadd.f32 %v4877_v47, %v4829_v32  ;;  %v6695_v47 = vld [vmem:[%s12669_s0 + $0x1c4] sm:$0xf0]  }
 0x766   :  { %v4782_v0 = vpop.f32.mrf.mxu1 }
 0x767   :  { %v4783_v44 = vadd.f32 %v4782_v0, %v11940_v35  ;;  %4977 = vmatmul.bf16.gmra.mxu2 %v4077_v42  ;;  %v4880_v5 = vpop.f32.mrf.mxu3 }
 0x769   :  { %4928 = vmatmul.bf16.gmra.mxu1 %v4076_v9 }
 0x76a   :  { %v4831_v46 = vpop.f32.mrf.mxu2 }
 0x76b   :  { %v4832_v59 = vadd.f32 %v4831_v46, %v4783_v44 }
 0x76d   :  { %v12038_v21 = vadd.f32 %v4880_v5, %v4832_v59 }
 0x76e   :  { %v4784_v12 = vpop.f32.mrf.mxu1 }
 0x76f   :  { %v4785_v35 = vadd.f32 %v4784_v12, %v11945_v7  ;;  %v4882_v6 = vpop.f32.mrf.mxu3 }
 0x772   :  { %v4833_v2 = vpop.f32.mrf.mxu2 }
 0x773   :  { %v4834_v34 = vadd.f32 %v4833_v2, %v4785_v35  ;;  %5031 = vmatmul.bf16.gmra.mxu3 %v11769_v49 }
 0x775   :  { %v12044_v36 = vadd.f32 %v4882_v6, %v4834_v34 }
 0x776   :  { %v4787_v17 = vpop.f32.mrf.mxu1 }
 0x777   :  { %v4788_v40 = vadd.f32 %v4787_v17, %v11954_v60  ;;  %4982 = vmatmul.bf16.gmra.mxu2 %v4086_v41  ;;  %v4885_v7 = vpop.f32.mrf.mxu3 }
 0x779   :  { %4933 = vmatmul.bf16.gmra.mxu1 %v4085_v19  ;;  %v6665_v19 = vld [vmem:[%s12669_s0 + $0x1d0] sm:$0xf]  }
 0x77a   :  { %v4836_v42 = vpop.f32.mrf.mxu2 }
 0x77b   :  { %v4837_v24 = vadd.f32 %v4836_v42, %v4788_v40 }
 0x77d   :  { %v12050_v26 = vadd.f32 %v4885_v7, %v4837_v24 }
 0x77e   :  { %v4789_v25 = vpop.f32.mrf.mxu1 }
 0x77f   :  { %v4790_v60 = vadd.f32 %v4789_v25, %v11956_v30  ;;  %v4887_v62 = vpop.f32.mrf.mxu3 }
 0x782   :  { %v4838_v56 = vpop.f32.mrf.mxu2 }
 0x783   :  { %v4839_v55 = vadd.f32 %v4838_v56, %v4790_v60  ;;  %5036 = vmatmul.bf16.gmra.mxu3 %v11778_v23 }
 0x785   :  { %v12056_v16 = vadd.f32 %v4887_v62, %v4839_v55 }
 0x786   :  { %v4792_v51 = vpop.f32.mrf.mxu1 }
 0x787   :  { %v4793_v4 = vadd.f32 %v4792_v51, %v11965_v37  ;;  %4987 = vmatmul.bf16.gmra.mxu2 %v4095_v45  ;;  %v4890_v30 = vpop.f32.mrf.mxu3 }
 0x789   :  { %4938 = vmatmul.bf16.gmra.mxu1 %v4094_v39 }
 0x78a   :  { %v4841_v41 = vpop.f32.mrf.mxu2 }
 0x78b   :  { %v4842_v49 = vadd.f32 %v4841_v41, %v4793_v4 }
 0x78d   :  { %v12066_v10 = vadd.f32 %v4890_v30, %v4842_v49  ;;  %v6669_v30 = vld [vmem:[%s12669_s0 + $0x1e0] sm:$0xf]  }
 0x78e   :  { %v4794_v37 = vpop.f32.mrf.mxu1 }
 0x78f   :  { %v4795_v23 = vadd.f32 %v4794_v37, %v11968_v61  ;;  %v4892_v50 = vpop.f32.mrf.mxu3  ;;  %v6661_v61 = vld [vmem:[%s12669_s0 + $0x1c0] sm:$0xf]  }
 0x790   :  { %v6662_v46 = vor.u32 %v6695_v47, %v6661_v61 }
 0x792   :  { %v4843_v45 = vpop.f32.mrf.mxu2 }
 0x793   :  { %v4844_v54 = vadd.f32 %v4843_v45, %v4795_v23 }
 0x795   :  { %v12076_v58 = vadd.f32 %v4892_v50, %v4844_v54 }
 0x796   :  { %v4904_v20 = vpop.f32.mrf.mxu1 }
 0x797   :  { %v4905_v27 = vadd.f32 %v4904_v20, %v11978_v28  ;;  %6391 = vmatmul.msk.bf16.vlgmr.msra.gmra.mxu2 %vm698_vm1, %v6658_v43  ;;  %v5002_v18 = vpop.f32.mrf.mxu3 }
 0x79a   :  { %v4953_v38 = vpop.f32.mrf.mxu2 }
 0x79b   :  { %v4954_v14 = vadd.f32 %v4953_v38, %v4905_v27 }
 0x79d   :  { %v12079_v32 = vadd.f32 %v5002_v18, %v4954_v14  ;;  %v6673_v18 = vld [vmem:[%s12669_s0 + $0x1f8] sm:$0xf]  }
 0x79e   :  { %v4906_v11 = vpop.f32.mrf.mxu1 }
 0x79f   :  { %v4907_v28 = vadd.f32 %v4906_v11, %v11985_v31  ;;  %v5004_v9 = vpop.f32.mrf.mxu3  ;;  %v6698_v11 = vld [vmem:[%s12669_s0 + $0x1fc] sm:$0xf0]  }
 0x7a2   :  { %v4955_v0 = vpop.f32.mrf.mxu2 }
 0x7a3   :  { %v4956_v44 = vadd.f32 %v4955_v0, %v4907_v28  ;;  %v6674_v0 = vor.u32 %v6698_v11, %v6673_v18 }
 0x7a5   :  { %v12089_v12 = vadd.f32 %v5004_v9, %v4956_v44 }
 0x7a6   :  { %v4909_v59 = vpop.f32.mrf.mxu1 }
 0x7a7   :  { %v4910_v5 = vadd.f32 %v4909_v59, %v11989_v33  ;;  %v5042_v35 = vadd.f32 %v12089_v12, %v12079_v32  ;;  %6392 = vmatmul.msk.bf16.gmra.mxu2 %vm698_vm1, %v6662_v46  ;;  %v5007_v6 = vpop.f32.mrf.mxu3  ;;  %v6696_v33 = vld [vmem:[%s12669_s0 + $0x1d4] sm:$0xf0]  }
 0x7a8   :  { %v6666_v60 = vor.u32 %v6696_v33, %v6665_v19 }
 0x7aa   :  { %v4958_v2 = vpop.f32.mrf.mxu2 }
 0x7ab   :  { %v4959_v34 = vadd.f32 %v4958_v2, %v4910_v5 }
 0x7ad   :  { %v12094_v40 = vadd.f32 %v5007_v6, %v4959_v34 }
 0x7ae   :  { %v4911_v17 = vpop.f32.mrf.mxu1 }
 0x7af   :  { %v5043_v31 = vadd.f32 %v5042_v35, %v12094_v40  ;;  %v4912_v42 = vadd.f32 %v4911_v17, %v11998_v3  ;;  %v5009_v25 = vpop.f32.mrf.mxu3 }
 0x7b2   :  { %v4960_v24 = vpop.f32.mrf.mxu2 }
 0x7b3   :  { %v4961_v7 = vadd.f32 %v4960_v24, %v4912_v42 }
 0x7b5   :  { %v12105_v62 = vadd.f32 %v5009_v25, %v4961_v7 }
 0x7b6   :  { %v4914_v56 = vpop.f32.mrf.mxu1 }
 0x7b7   :  { %v4915_v55 = vadd.f32 %v4914_v56, %v12005_v15  ;;  %v5044_v51 = vadd.f32 %v5043_v31, %v12105_v62  ;;  %6393 = vmatmul.msk.bf16.gmra.mxu2 %vm698_vm1, %v6666_v60  ;;  %v5012_v39 = vpop.f32.mrf.mxu3  ;;  %v6697_v15 = vld [vmem:[%s12669_s0 + $0x1e4] sm:$0xf0]  }
 0x7b8   :  { %v6670_v29 = vor.u32 %v6697_v15, %v6669_v30  ;;  %v6677_v31 = vld [vmem:[%s12669_s0 + $0x208] sm:$0xf]   ;;  %v6681_v30 = vld [vmem:[%s12669_s0 + $0x218] sm:$0xf]   ;;  %v6700_v15 = vld [vmem:[%s12669_s0 + $0x21c] sm:$0xf0]  }
 0x7ba   :  { %v4963_v4 = vpop.f32.mrf.mxu2 }
 0x7bb   :  { %v4964_v1 = vadd.f32 %v4963_v4, %v4915_v55 }
 0x7bd   :  { %v12109_v49 = vadd.f32 %v5012_v39, %v4964_v1 }
 0x7be   :  { %v4916_v41 = vpop.f32.mrf.mxu1 }
 0x7bf   :  { %v5045_v3 = vadd.f32 %v5044_v51, %v12109_v49  ;;  %v4917_v13 = vadd.f32 %v4916_v41, %v12011_v57  ;;  %v5014_v48 = vpop.f32.mrf.mxu3 }
 0x7c2   :  { %v4965_v37 = vpop.f32.mrf.mxu2 }
 0x7c3   :  { %v4966_v53 = vadd.f32 %v4965_v37, %v4917_v13 }
 0x7c5   :  { %v12119_v45 = vadd.f32 %v5014_v48, %v4966_v53  ;;  %v6682_v48 = vor.u32 %v6700_v15, %v6681_v30 }
 0x7c6   :  { %v4919_v23 = vpop.f32.mrf.mxu1 }
 0x7c7   :  { %v5046_v54 = vadd.f32 %v5045_v3, %v12119_v45  ;;  %6394 = vmatmul.msk.bf16.gmra.mxu2 %vm698_vm1, %v6670_v29  ;;  %v4920_v50 = vadd.f32 %v4919_v23, %v12016_v22  ;;  %v5017_v27 = vpop.f32.mrf.mxu3 }
 0x7ca   :  { %v4968_v43 = vpop.f32.mrf.mxu2 }
 0x7cb   :  { %v4969_v20 = vadd.f32 %v4968_v43, %v4920_v50 }
 0x7cd   :  { %v12124_v14 = vadd.f32 %v5017_v27, %v4969_v20 }
 0x7ce   :  { %v4921_v38 = vpop.f32.mrf.mxu1 }
 0x7cf   :  { %v5047_v57 = vadd.f32 %v5046_v54, %v12124_v14  ;;  %v4922_v61 = vadd.f32 %v4921_v38, %v12023_v52  ;;  %v5019_v28 = vpop.f32.mrf.mxu3  ;;  %v6534_v52 = vld [vmem:[%s12677_s8 + $0x38] sm:$0xff] }
 0x7d0   :  { %5273 = vmatpush.bf16.msra.mxu1 %v6534_v52 }
 0x7d2   :  { %v4970_v47 = vpop.f32.mrf.mxu2 }
 0x7d3   :  { %v4971_v22 = vadd.f32 %v4970_v47, %v4922_v61 }
 0x7d5   :  { %v12134_v9 = vadd.f32 %v5019_v28, %v4971_v22 }
 0x7d6   :  { %v4924_v44 = vpop.f32.mrf.mxu1 }
 0x7d7   :  { %v5048_v46 = vadd.f32 %v5047_v57, %v12134_v9  ;;  %6395 = vmatmul.msk.bf16.gmra.mxu2 %vm698_vm1, %v6674_v0  ;;  %v4925_v59 = vadd.f32 %v4924_v44, %v12026_v8  ;;  %v5022_v2 = vpop.f32.mrf.mxu3  ;;  %v6699_v8 = vld [vmem:[%s12669_s0 + $0x20c] sm:$0xf0]  }
 0x7d8   :  { %v6678_v7 = vor.u32 %v6699_v8, %v6677_v31 }
 0x7da   :  { %v4973_v5 = vpop.f32.mrf.mxu2 }
 0x7db   :  { %v4974_v35 = vadd.f32 %v4973_v5, %v4925_v59 }
 0x7dd   :  { %v12139_v6 = vadd.f32 %v5022_v2, %v4974_v35 }
 0x7de   :  { %v4926_v34 = vpop.f32.mrf.mxu1 }
 0x7df   :  { %v5049_v17 = vadd.f32 %v5048_v46, %v12139_v6  ;;  %v4927_v19 = vadd.f32 %v4926_v34, %v12032_v63  ;;  %v5024_v24 = vpop.f32.mrf.mxu3  ;;  %v6533_v63 = vld [vmem:[%s12677_s8 + $0x30] sm:$0xff] }
 0x7e0   :  { %5274 = vmatpush.bf16.msra.mxu1 %v6533_v63 }
 0x7e2   :  { %v4975_v33 = vpop.f32.mrf.mxu2 }
 0x7e3   :  { %v4976_v42 = vadd.f32 %v4975_v33, %v4927_v19 }
 0x7e5   :  { %v12152_v60 = vadd.f32 %v5024_v24, %v4976_v42 }
 0x7e6   :  { %v4929_v25 = vpop.f32.mrf.mxu1 }
 0x7e7   :  { %v5050_v56 = vadd.f32 %v5049_v17, %v12152_v60  ;;  %6396 = vmatmul.msk.bf16.gmra.mxu2 %vm698_vm1, %v6678_v7  ;;  %v4930_v55 = vadd.f32 %v4929_v25, %v12038_v21  ;;  %v5027_v1 = vpop.f32.mrf.mxu3 }
 0x7ea   :  { %v4978_v51 = vpop.f32.mrf.mxu2 }
 0x7eb   :  { %v4979_v4 = vadd.f32 %v4978_v51, %v4930_v55 }
 0x7ed   :  { %v5028_v41 = vadd.f32 %v5027_v1, %v4979_v4 }
 0x7ee   :  { %v4931_v39 = vpop.f32.mrf.mxu1 }
 0x7ef   :  { %v5051_v3 = vadd.f32 %v5050_v56, %v5028_v41  ;;  %v4932_v21 = vadd.f32 %v4931_v39, %v12044_v36  ;;  %v5029_v53 = vpop.f32.mrf.mxu3 }
 0x7f2   :  { %v4980_v13 = vpop.f32.mrf.mxu2 }
 0x7f3   :  { %v4981_v37 = vadd.f32 %v4980_v13, %v4932_v21 }
 0x7f5   :  { %v5030_v23 = vadd.f32 %v5029_v53, %v4981_v37 }
 0x7f6   :  { %v4934_v29 = vpop.f32.mrf.mxu1 }
 0x7f7   :  { %v5052_v54 = vadd.f32 %v5051_v3, %v5030_v23  ;;  %6397 = vmatmul.msk.bf16.gmra.mxu2 %vm698_vm1, %v6682_v48  ;;  %v4935_v50 = vadd.f32 %v4934_v29, %v12050_v26  ;;  %v5032_v27 = vpop.f32.mrf.mxu3 }
 0x7fa   :  { %v4983_v43 = vpop.f32.mrf.mxu2 }
 0x7fb   :  { %v4984_v20 = vadd.f32 %v4983_v43, %v4935_v50 }
 0x7fd   :  { %v5033_v57 = vadd.f32 %v5032_v27, %v4984_v20 }
 0x7fe   :  { %v4936_v38 = vpop.f32.mrf.mxu1 }
 0x7ff   :  { %v5053_v18 = vadd.f32 %v5052_v54, %v5033_v57  ;;  %v4937_v11 = vadd.f32 %v4936_v38, %v12056_v16  ;;  %v5034_v47 = vpop.f32.mrf.mxu3 }
 0x802   :  { %v4985_v36 = vpop.f32.mrf.mxu2 }
 0x803   :  { %v4986_v61 = vadd.f32 %v4985_v36, %v4937_v11 }
 0x805   :  { %v5035_v28 = vadd.f32 %v5034_v47, %v4986_v61 }
 0x806   :  { %v4939_v22 = vpop.f32.mrf.mxu1 }
 0x807   :  { %v5054_v0 = vadd.f32 %v5053_v18, %v5035_v28  ;;  %v4940_v44 = vadd.f32 %v4939_v22, %v12066_v10  ;;  %v5037_v5 = vpop.f32.mrf.mxu3 }
 0x80a   :  { %v4988_v46 = vpop.f32.mrf.mxu2 }
 0x80b   :  { %v4989_v59 = vadd.f32 %v4988_v46, %v4940_v44 }
 0x80d   :  { %v5038_v26 = vadd.f32 %v5037_v5, %v4989_v59  ;;  %v6685_v59 = vld [vmem:[%s12669_s0 + $0x228] sm:$0xf]   ;;  %v6701_v5 = vld [vmem:[%s12669_s0 + $0x22c] sm:$0xf0]  }
 0x80e   :  { %v4941_v35 = vpop.f32.mrf.mxu1 }
 0x80f   :  { %v5055_v2 = vadd.f32 %v5054_v0, %v5038_v26  ;;  %v4942_v34 = vadd.f32 %v4941_v35, %v12076_v58  ;;  %v5039_v31 = vpop.f32.mrf.mxu3  ;;  %v6686_v35 = vor.u32 %v6701_v5, %v6685_v59 }
 0x811   :  { %6398 = vmatmul.msk.bf16.gmra.mxu2 %vm698_vm1, %v6686_v35 }
 0x812   :  { %v4990_v52 = vpop.f32.mrf.mxu2 }
 0x813   :  { %v4991_v17 = vadd.f32 %v4990_v52, %v4942_v34 }
 0x815   :  { %v5040_v16 = vadd.f32 %v5039_v31, %v4991_v17  ;;  %v6532_v17 = vld [vmem:[%s12677_s8 + $0x28] sm:$0xff] }
 0x816   :  { %5275 = vmatpush.bf16.msra.mxu1 %v6532_v17 }
 0x817   :  { %v5056_v8 = vadd.f32 %v5055_v2, %v5040_v16 }
 0x819   :  { %v5057_v19 = vrot.slane %v5056_v8, 4 }
 0x81b   :  { %v5058_v33 = vadd.f32 %v5057_v19, %v5056_v8 }
 0x81d   :  { %v5059_v42 = vrot.slane %v5058_v33, 2 }
 0x81f   :  { %v5060_v24 = vadd.f32 %v5059_v42, %v5058_v33  ;;  %v6530_v33 = vld [vmem:[%s12677_s8 + $0x18] sm:$0xff] }
 0x821   :  { %v5061_v7 = vrot.slane %v5060_v24, 1 }
 0x823   :  { %v5062_v25 = vadd.f32 %v5061_v7, %v5060_v24  ;;  %v6529_v7 = vld [vmem:[%s12677_s8 + $0x10] sm:$0xff] }
 0x825   :  { %v5063_v10 = vmul.f32 0.0078125, %v5062_v25  ;;  %v6528_v25 = vld [vmem:[%s12677_s8 + $0x8] sm:$0xff] }
 0x827   :  { %v12173_v56 = vsub.f32 %v12079_v32, %v5063_v10  ;;  %v12176_v55 = vsub.f32 %v12089_v12, %v5063_v10  ;;  %v12179_v58 = vsub.f32 %v12094_v40, %v5063_v10  ;;  %v12182_v51 = vsub.f32 %v12105_v62, %v5063_v10 }
 0x828   :  { %v12185_v4 = vsub.f32 %v12109_v49, %v5063_v10  ;;  %v12188_v1 = vsub.f32 %v12119_v45, %v5063_v10  ;;  %v12191_v39 = vsub.f32 %v12124_v14, %v5063_v10  ;;  %v12194_v32 = vsub.f32 %v12134_v9, %v5063_v10 }
 0x829   :  { %v12197_v12 = vsub.f32 %v12139_v6, %v5063_v10  ;;  %v12200_v40 = vsub.f32 %v12152_v60, %v5063_v10  ;;  %v12202_v62 = vsub.f32 %v5028_v41, %v5063_v10  ;;  %v12204_v63 = vsub.f32 %v5030_v23, %v5063_v10 }
 0x82a   :  { %v12206_v49 = vsub.f32 %v5033_v57, %v5063_v10  ;;  %v12208_v45 = vsub.f32 %v5035_v28, %v5063_v10  ;;  %v12210_v3 = vsub.f32 %v5038_v26, %v5063_v10  ;;  %v12212_v14 = vsub.f32 %v5040_v16, %v5063_v10  ;;  %v6531_v16 = vld [vmem:[%s12677_s8 + $0x20] sm:$0xff] }
 0x82b   :  { %v5080_v9 = vmul.f32 %v12173_v56, %v12173_v56  ;;  %v5081_v6 = vmul.f32 %v12176_v55, %v12176_v55  ;;  %v5082_v60 = vmul.f32 %v12179_v58, %v12179_v58  ;;  %v5083_v30 = vmul.f32 %v12182_v51, %v12182_v51  ;;  %5276 = vmatpush.bf16.msra.mxu1 %v6531_v16 }
 0x82c   :  { %v5084_v21 = vmul.f32 %v12185_v4, %v12185_v4  ;;  %v5085_v37 = vmul.f32 %v12188_v1, %v12188_v1  ;;  %v5086_v48 = vmul.f32 %v12191_v39, %v12191_v39  ;;  %v5087_v23 = vmul.f32 %v12194_v32, %v12194_v32 }
 0x82d   :  { %v5096_v41 = vadd.f32 %v5081_v6, %v5080_v9  ;;  %v5088_v50 = vmul.f32 %v12197_v12, %v12197_v12  ;;  %v5089_v20 = vmul.f32 %v12200_v40, %v12200_v40  ;;  %v5090_v38 = vmul.f32 %v12202_v62, %v12202_v62 }
 0x82e   :  { %v5091_v18 = vmul.f32 %v12204_v63, %v12204_v63  ;;  %v5092_v36 = vmul.f32 %v12206_v49, %v12206_v49  ;;  %v5093_v47 = vmul.f32 %v12208_v45, %v12208_v45  ;;  %v5094_v28 = vmul.f32 %v12210_v3, %v12210_v3 }
 0x82f   :  { %v5097_v15 = vadd.f32 %v5096_v41, %v5082_v60  ;;  %v5095_v44 = vmul.f32 %v12212_v14, %v12212_v14  ;;  %5277 = vmatpush.bf16.msra.mxu1 %v6530_v33 }
 0x831   :  { %v5098_v13 = vadd.f32 %v5097_v15, %v5083_v30  ;;  %v6527_v30 = vld [vmem:[%s12677_s8] sm:$0xff] }
 0x833   :  { %v5099_v53 = vadd.f32 %v5098_v13, %v5084_v21  ;;  %5278 = vmatpush.bf16.msra.mxu1 %v6529_v7  ;;  %v12274_v21 = vld [vmem:[%s12675_s6] ss:$0 sm:$0xff] }
 0x835   :  { %v5100_v29 = vadd.f32 %v5099_v53, %v5085_v37 }
 0x837   :  { %v5101_v54 = vadd.f32 %v5100_v29, %v5086_v48  ;;  %5279 = vmatpush.bf16.msra.mxu1 %v6528_v25 }
 0x839   :  { %v5102_v43 = vadd.f32 %v5101_v54, %v5087_v23  ;;  %v12290_v23 = vld [vmem:[%s12676_s7] ss:$0 sm:$0xff] }
 0x83b   :  { %v5103_v27 = vadd.f32 %v5102_v43, %v5088_v50  ;;  %5280 = vmatpush.bf16.msra.mxu1 %v6527_v30 }
 0x83d   :  { %v5104_v57 = vadd.f32 %v5103_v27, %v5089_v20 }
 0x83f   :  { %v5105_v11 = vadd.f32 %v5104_v57, %v5090_v38 }
 0x841   :  { %v5106_v61 = vadd.f32 %v5105_v11, %v5091_v18 }
 0x843   :  { %v5107_v22 = vadd.f32 %v5106_v61, %v5092_v36 }
 0x845   :  { %v5108_v0 = vadd.f32 %v5107_v22, %v5093_v47 }
 0x847   :  { %v5109_v46 = vadd.f32 %v5108_v0, %v5094_v28 }
 0x849   :  { %v5110_v26 = vadd.f32 %v5109_v46, %v5095_v44 }
 0x84b   :  { %v5111_v2 = vrot.slane %v5110_v26, 4 }
 0x84d   :  { %v5112_v34 = vadd.f32 %v5111_v2, %v5110_v26  ;;  %v12312_v26 = vpop.f32.mrf.mxu2 }
 0x84f   :  { %v5113_v52 = vrot.slane %v5112_v34, 2 }
 0x851   :  { %v5114_v31 = vadd.f32 %v5113_v52, %v5112_v34 }
 0x853   :  { %v5115_v8 = vrot.slane %v5114_v31, 1 }
 0x855   :  { %v5116_v19 = vadd.f32 %v5115_v8, %v5114_v31 }
 0x857   :  { %v5117_v42 = vmul.f32 0.0078125, %v5116_v19 }
 0x859   :  { %v5119_v24 = vadd.f32 1e-05, %v5117_v42 }
 0x85b   :  { %6722 = vrsqrt.f32 %v5119_v24  ;;  %vm5126_vm6 = vweird.f32 %v5119_v24 }
 0x861   :  { %v6723_v10 = vpop.eup %6722 }
 0x862   :  { %v5121_v9 = vmul.f32 %v6723_v10, %v5119_v24  ;;  %vm5127_vm5 = vweird.f32 %v6723_v10 }
 0x863   :  { %vm5128_vm7 = vmor %vm5126_vm6, %vm5127_vm5 }
 0x864   :  { %v5122_v6 = vmul.f32 %v6723_v10, %v5121_v9 }
 0x866   :  { %v5123_v60 = vmul.f32 0.5, %v5122_v6 }
 0x868   :  { %v5124_v41 = vsub.f32 1.5, %v5123_v60 }
 0x86a   :  { %v5125_v15 = vmul.f32 %v6723_v10, %v5124_v41 }
 0x86c   :  { %v12276_v13 = vsel %vm5128_vm7, %v6723_v10, %v5125_v15 }
 0x86d   :  { %v5145_v37 = vmul.f32 %v12276_v13, %v12212_v14  ;;  %v5130_v48 = vmul.f32 %v12276_v13, %v12173_v56  ;;  %v5131_v29 = vmul.f32 %v12276_v13, %v12176_v55  ;;  %v5132_v56 = vmul.f32 %v12276_v13, %v12179_v58 }
 0x86e   :  { %v5133_v55 = vmul.f32 %v12276_v13, %v12182_v51  ;;  %v5134_v28 = vmul.f32 %v12276_v13, %v12185_v4  ;;  %v5135_v58 = vmul.f32 %v12276_v13, %v12188_v1  ;;  %v5136_v2 = vmul.f32 %v12276_v13, %v12191_v39 }
 0x86f   :  { %v12281_v53 = vmul.f32 %v12274_v21, %v5145_v37  ;;  %v5149_v54 = vmul.f32 %v12274_v21, %v5130_v48  ;;  %v5150_v50 = vmul.f32 %v12274_v21, %v5131_v29  ;;  %v5151_v57 = vmul.f32 %v12274_v21, %v5132_v56  ;;  %v5512_v29 = vpop.f32.mrf.mxu2 }
 0x870   :  { %v5152_v18 = vmul.f32 %v12274_v21, %v5133_v55  ;;  %v5153_v51 = vmul.f32 %v12274_v21, %v5134_v28  ;;  %v5154_v0 = vmul.f32 %v12274_v21, %v5135_v58  ;;  %v5137_v4 = vmul.f32 %v12276_v13, %v12194_v32 }
 0x871   :  { %v5169_v14 = vadd.f32 %v12290_v23, %v5149_v54  ;;  %v5170_v43 = vadd.f32 %v12290_v23, %v5150_v50  ;;  %v5171_v11 = vadd.f32 %v12290_v23, %v5151_v57  ;;  %v5138_v1 = vmul.f32 %v12276_v13, %v12197_v12 }
 0x872   :  { %v5172_v36 = vadd.f32 %v12290_v23, %v5152_v18  ;;  %v5173_v44 = vadd.f32 %v12290_v23, %v5153_v51  ;;  %v5174_v46 = vadd.f32 %v12290_v23, %v5154_v0  ;;  %v5139_v34 = vmul.f32 %v12276_v13, %v12200_v40 }
 0x873   :  { %v5185_v20 = vmax.f32 %v5169_v14, 0.0  ;;  %v5186_v27 = vmax.f32 %v5170_v43, 0.0  ;;  %v5187_v61 = vmax.f32 %v5171_v11, 0.0  ;;  %v5140_v52 = vmul.f32 %v12276_v13, %v12202_v62 }
 0x874   :  { %v5188_v47 = vmax.f32 %v5172_v36, 0.0  ;;  %v5189_v59 = vmax.f32 %v5173_v44, 0.0  ;;  %v5190_v5 = vmax.f32 %v5174_v46, 0.0  ;;  %v5141_v17 = vmul.f32 %v12276_v13, %v12204_v63 }
 0x875   :  { %v5201_v38 = vpack.c.bf16 %v5186_v27, %v5185_v20  ;;  %v5142_v31 = vmul.f32 %v12276_v13, %v12206_v49  ;;  %v5143_v39 = vmul.f32 %v12276_v13, %v12208_v45  ;;  %v5155_v32 = vmul.f32 %v12274_v21, %v5136_v2 }
 0x876   :  { %v5202_v22 = vpack.c.bf16 %v5188_v47, %v5187_v61  ;;  %v5203_v35 = vpack.c.bf16 %v5190_v5, %v5189_v59  ;;  %v5156_v12 = vmul.f32 %v12274_v21, %v5137_v4  ;;  %v5157_v16 = vmul.f32 %v12274_v21, %v5138_v1 }
 0x877   :  { %5281 = vmatmul.bf16.vlgmr.msra.gmra.mxu1 %v5201_v38  ;;  %v5158_v40 = vmul.f32 %v12274_v21, %v5139_v34  ;;  %v5159_v8 = vmul.f32 %v12274_v21, %v5140_v52  ;;  %v5160_v62 = vmul.f32 %v12274_v21, %v5141_v17  ;;  %v5161_v63 = vmul.f32 %v12274_v21, %v5142_v31  ;;  %v5515_v11 = vpop.f32.mrf.mxu2 }
 0x878   :  { %v5162_v19 = vmul.f32 %v12274_v21, %v5143_v39  ;;  %v5177_v49 = vadd.f32 %v12290_v23, %v5157_v16  ;;  %v5175_v25 = vadd.f32 %v12290_v23, %v5155_v32  ;;  %v5176_v6 = vadd.f32 %v12290_v23, %v5156_v12 }
 0x879   :  { %v5178_v45 = vadd.f32 %v12290_v23, %v5158_v40  ;;  %v5179_v33 = vadd.f32 %v12290_v23, %v5159_v8  ;;  %v5180_v42 = vadd.f32 %v12290_v23, %v5160_v62  ;;  %v5181_v24 = vadd.f32 %v12290_v23, %v5161_v63 }
 0x87a   :  { %v5182_v7 = vadd.f32 %v12290_v23, %v5162_v19  ;;  %v5193_v10 = vmax.f32 %v5177_v49, 0.0  ;;  %v5144_v48 = vmul.f32 %v12276_v13, %v12210_v3  ;;  %v5184_v50 = vadd.f32 %v12290_v23, %v12281_v53 }
 0x87b   :  { %v5194_v9 = vmax.f32 %v5178_v45, 0.0  ;;  %v5195_v60 = vmax.f32 %v5179_v33, 0.0  ;;  %v5196_v41 = vmax.f32 %v5180_v42, 0.0  ;;  %v5197_v30 = vmax.f32 %v5181_v24, 0.0 }
 0x87c   :  { %v5198_v37 = vmax.f32 %v5182_v7, 0.0  ;;  %v5163_v43 = vmul.f32 %v12274_v21, %v5144_v48  ;;  %v5191_v20 = vmax.f32 %v5175_v25, 0.0  ;;  %v5192_v27 = vmax.f32 %v5176_v6, 0.0 }
 0x87d   :  { %v5205_v15 = vpack.c.bf16 %v5194_v9, %v5193_v10  ;;  %v5206_v54 = vpack.c.bf16 %v5196_v41, %v5195_v60  ;;  %v5200_v56 = vmax.f32 %v5184_v50, 0.0 }
 0x87e   :  { %v5207_v14 = vpack.c.bf16 %v5198_v37, %v5197_v30  ;;  %v5183_v38 = vadd.f32 %v12290_v23, %v5163_v43  ;;  %v5204_v57 = vpack.c.bf16 %v5192_v27, %v5191_v20  ;;  %v5550_v23 = vadd.f32 %v5512_v29, %v12312_v26 }
 0x87f   :  { %v5517_v36 = vpop.f32.mrf.mxu2 }
 0x880   :  { %v5199_v55 = vmax.f32 %v5183_v38, 0.0  ;;  %v5551_v28 = vadd.f32 %v5550_v23, %v5515_v11 }
 0x882   :  { %v5208_v18 = vpack.c.bf16 %v5200_v56, %v5199_v55  ;;  %v5552_v58 = vadd.f32 %v5551_v28, %v5517_v36 }
 0x887   :  { %5286 = vmatmul.bf16.gmra.mxu1 %v5202_v22  ;;  %v5520_v3 = vpop.f32.mrf.mxu2 }
 0x888   :  { %v5553_v51 = vadd.f32 %v5552_v58, %v5520_v3 }
 0x88f   :  { %v5522_v13 = vpop.f32.mrf.mxu2 }
 0x890   :  { %v5554_v44 = vadd.f32 %v5553_v51, %v5522_v13 }
 0x897   :  { %5291 = vmatmul.bf16.gmra.mxu1 %v5203_v35  ;;  %v5525_v61 = vpop.f32.mrf.mxu2 }
 0x898   :  { %v5555_v46 = vadd.f32 %v5554_v44, %v5525_v61 }
 0x89f   :  { %v5527_v53 = vpop.f32.mrf.mxu2 }
 0x8a0   :  { %v5556_v5 = vadd.f32 %v5555_v46, %v5527_v53 }
 0x8a7   :  { %5296 = vmatmul.bf16.gmra.mxu1 %v5204_v57  ;;  %v12352_v47 = vpop.f32.mrf.mxu2 }
 0x8a8   :  { %v5557_v2 = vadd.f32 %v5556_v5, %v12352_v47 }
 0x8af   :  { %v12354_v21 = vpop.f32.mrf.mxu2 }
 0x8b0   :  { %v5558_v4 = vadd.f32 %v5557_v2, %v12354_v21 }
 0x8b7   :  { %5301 = vmatmul.bf16.gmra.mxu1 %v5205_v15  ;;  %v12357_v22 = vpop.f32.mrf.mxu2 }
 0x8b8   :  { %v5559_v52 = vadd.f32 %v5558_v4, %v12357_v22 }
 0x8bf   :  { %v12359_v0 = vpop.f32.mrf.mxu2 }
 0x8c0   :  { %v5560_v17 = vadd.f32 %v5559_v52, %v12359_v0 }
 0x8c7   :  { %5306 = vmatmul.bf16.gmra.mxu1 %v5206_v54  ;;  %v12361_v59 = vpop.f32.mrf.mxu2 }
 0x8c8   :  { %v5561_v32 = vadd.f32 %v5560_v17, %v12361_v59 }
 0x8cf   :  { %v12367_v1 = vpop.f32.mrf.mxu2 }
 0x8d0   :  { %v5562_v12 = vadd.f32 %v5561_v32, %v12367_v1 }
 0x8d7   :  { %5311 = vmatmul.bf16.gmra.mxu1 %v5207_v14  ;;  %v12375_v39 = vpop.f32.mrf.mxu2 }
 0x8d8   :  { %v5563_v40 = vadd.f32 %v5562_v12, %v12375_v39 }
 0x8df   :  { %v12382_v8 = vpop.f32.mrf.mxu2 }
 0x8e0   :  { %v5564_v62 = vadd.f32 %v5563_v40, %v12382_v8 }
 0x8e2   :  { %v5565_v19 = vrot.slane %v5564_v62, 4 }
 0x8e4   :  { %v5566_v49 = vadd.f32 %v5565_v19, %v5564_v62 }
 0x8e6   :  { %v5567_v33 = vrot.slane %v5566_v49, 2 }
 0x8e7   :  { %5316 = vmatmul.bf16.gmra.mxu1 %v5208_v18 }
 0x8e8   :  { %v5568_v42 = vadd.f32 %v5567_v33, %v5566_v49 }
 0x8ea   :  { %v5569_v7 = vrot.slane %v5568_v42, 1 }
 0x8ec   :  { %v5570_v25 = vadd.f32 %v5569_v7, %v5568_v42 }
 0x8ee   :  { %v5571_v9 = vmul.f32 0.0078125, %v5570_v25 }
 0x8f0   :  { %v12394_v6 = vsub.f32 %v12312_v26, %v5571_v9  ;;  %v12396_v60 = vsub.f32 %v5512_v29, %v5571_v9  ;;  %v12400_v30 = vsub.f32 %v5515_v11, %v5571_v9  ;;  %v12406_v48 = vsub.f32 %v5517_v36, %v5571_v9 }
 0x8f1   :  { %v12412_v29 = vsub.f32 %v5520_v3, %v5571_v9  ;;  %v12416_v20 = vsub.f32 %v5522_v13, %v5571_v9  ;;  %v12422_v55 = vsub.f32 %v5525_v61, %v5571_v9  ;;  %v12426_v11 = vsub.f32 %v5527_v53, %v5571_v9 }
 0x8f2   :  { %v5588_v15 = vmul.f32 %v12394_v6, %v12394_v6  ;;  %v5589_v37 = vmul.f32 %v12396_v60, %v12396_v60  ;;  %v5590_v54 = vmul.f32 %v12400_v30, %v12400_v30  ;;  %v5591_v14 = vmul.f32 %v12406_v48, %v12406_v48 }
 0x8f3   :  { %v5592_v27 = vmul.f32 %v12412_v29, %v12412_v29  ;;  %v5593_v57 = vmul.f32 %v12416_v20, %v12416_v20  ;;  %v5594_v36 = vmul.f32 %v12422_v55, %v12422_v55  ;;  %v12433_v23 = vsub.f32 %v12352_v47, %v5571_v9 }
 0x8f4   :  { %v12363_v35 = vpop.f32.mrf.mxu1  ;;  %v5604_v50 = vadd.f32 %v5589_v37, %v5588_v15  ;;  %v5595_v28 = vmul.f32 %v12426_v11, %v12426_v11  ;;  %v12440_v51 = vsub.f32 %v12354_v21, %v5571_v9  ;;  %v12449_v2 = vsub.f32 %v12357_v22, %v5571_v9 }
 0x8f5   :  { %v5596_v53 = vmul.f32 %v12433_v23, %v12433_v23  ;;  %v12456_v32 = vsub.f32 %v12359_v0, %v5571_v9  ;;  %v12465_v49 = vsub.f32 %v12361_v59, %v5571_v9  ;;  %v12472_v25 = vsub.f32 %v12367_v1, %v5571_v9 }
 0x8f6   :  { %v5605_v43 = vadd.f32 %v5604_v50, %v5590_v54  ;;  %v5597_v4 = vmul.f32 %v12440_v51, %v12440_v51  ;;  %v5598_v12 = vmul.f32 %v12449_v2, %v12449_v2 }
 0x8f7   :  { %v5599_v33 = vmul.f32 %v12456_v32, %v12456_v32  ;;  %v5600_v15 = vmul.f32 %v12465_v49, %v12465_v49 }
 0x8f8   :  { %v5606_v38 = vadd.f32 %v5605_v43, %v5591_v14  ;;  %v12481_v14 = vsub.f32 %v12375_v39, %v5571_v9  ;;  %v5601_v43 = vmul.f32 %v12472_v25, %v12472_v25 }
 0x8fa   :  { %v5607_v18 = vadd.f32 %v5606_v38, %v5592_v27 }
 0x8fc   :  { %v12369_v34 = vpop.f32.mrf.mxu1  ;;  %v5608_v3 = vadd.f32 %v5607_v18, %v5593_v57  ;;  %v12488_v57 = vsub.f32 %v12382_v8, %v5571_v9  ;;  %v5602_v18 = vmul.f32 %v12481_v14, %v12481_v14 }
 0x8fd   :  { %v5322_v58 = vadd.f32 %v12369_v34, %v12363_v35 }
 0x8fe   :  { %v5609_v61 = vadd.f32 %v5608_v3, %v5594_v36 }
 0x900   :  { %v5610_v44 = vadd.f32 %v5609_v61, %v5595_v28  ;;  %v5603_v61 = vmul.f32 %v12488_v57, %v12488_v57 }
 0x902   :  { %v5611_v52 = vadd.f32 %v5610_v44, %v5596_v53 }
 0x904   :  { %v12373_v31 = vpop.f32.mrf.mxu1  ;;  %v5612_v40 = vadd.f32 %v5611_v52, %v5597_v4 }
 0x905   :  { %v5323_v46 = vadd.f32 %v5322_v58, %v12373_v31 }
 0x906   :  { %v5613_v42 = vadd.f32 %v5612_v40, %v5598_v12 }
 0x908   :  { %v5614_v37 = vadd.f32 %v5613_v42, %v5599_v33 }
 0x90a   :  { %v5615_v27 = vadd.f32 %v5614_v37, %v5600_v15 }
 0x90c   :  { %v12379_v16 = vpop.f32.mrf.mxu1  ;;  %v5616_v36 = vadd.f32 %v5615_v27, %v5601_v43 }
 0x90d   :  { %v5324_v47 = vadd.f32 %v5323_v46, %v12379_v16 }
 0x90e   :  { %v5617_v58 = vadd.f32 %v5616_v36, %v5602_v18 }
 0x910   :  { %v5618_v46 = vadd.f32 %v5617_v58, %v5603_v61 }
 0x912   :  { %v5619_v52 = vrot.slane %v5618_v46, 4 }
 0x914   :  { %v12385_v63 = vpop.f32.mrf.mxu1 }
 0x915   :  { %v5325_v21 = vadd.f32 %v5324_v47, %v12385_v63 }
 0x91c   :  { %v12387_v45 = vpop.f32.mrf.mxu1 }
 0x91d   :  { %v5326_v17 = vadd.f32 %v5325_v21, %v12387_v45  ;;  %v5620_v21 = vadd.f32 %v5619_v52, %v5618_v46 }
 0x924   :  { %v12389_v24 = vpop.f32.mrf.mxu1 }
 0x925   :  { %v5327_v62 = vadd.f32 %v5326_v17, %v12389_v24 }
 0x92c   :  { %v12391_v10 = vpop.f32.mrf.mxu1 }
 0x92d   :  { %v5328_v22 = vadd.f32 %v5327_v62, %v12391_v10  ;;  %v5621_v62 = vrot.slane %v5620_v21, 2 }
 0x934   :  { %v12398_v41 = vpop.f32.mrf.mxu1 }
 0x935   :  { %v5329_v0 = vadd.f32 %v5328_v22, %v12398_v41 }
 0x93c   :  { %v12410_v26 = vpop.f32.mrf.mxu1 }
 0x93d   :  { %v5330_v7 = vadd.f32 %v5329_v0, %v12410_v26  ;;  %v5622_v0 = vadd.f32 %v5621_v62, %v5620_v21 }
 0x93f   :  { %v5623_v37 = vrot.slane %v5622_v0, 1 }
 0x941   :  { %v5624_v27 = vadd.f32 %v5623_v37, %v5622_v0 }
 0x944   :  { %v12420_v56 = vpop.f32.mrf.mxu1 }
 0x945   :  { %v5331_v54 = vadd.f32 %v5330_v7, %v12420_v56 }
 0x94c   :  { %v12430_v13 = vpop.f32.mrf.mxu1 }
 0x94d   :  { %v5332_v59 = vadd.f32 %v5331_v54, %v12430_v13 }
 0x954   :  { %v12445_v5 = vpop.f32.mrf.mxu1 }
 0x955   :  { %v5333_v1 = vadd.f32 %v5332_v59, %v12445_v5 }
 0x95c   :  { %v12461_v19 = vpop.f32.mrf.mxu1 }
 0x95d   :  { %v5334_v38 = vadd.f32 %v5333_v1, %v12461_v19 }
 0x964   :  { %v12477_v50 = vpop.f32.mrf.mxu1 }
 0x965   :  { %v5335_v3 = vadd.f32 %v5334_v38, %v12477_v50 }
 0x96c   :  { %v5319_v28 = vpop.f32.mrf.mxu1 }
 0x96d   :  { %v5336_v39 = vadd.f32 %v5335_v3, %v5319_v28  ;;  %v5625_v3 = vmul.f32 0.0078125, %v5624_v27 }
 0x96f   :  { %v5337_v53 = vrot.slane %v5336_v39, 4 }
 0x971   :  { %v5338_v44 = vadd.f32 %v5337_v53, %v5336_v39 }
 0x973   :  { %v5339_v47 = vrot.slane %v5338_v44, 2 }
 0x975   :  { %v5340_v4 = vadd.f32 %v5339_v47, %v5338_v44  ;;  %v5627_v44 = vadd.f32 1e-05, %v5625_v3 }
 0x977   :  { %v5341_v8 = vrot.slane %v5340_v4, 1  ;;  %6724 = vrsqrt.f32 %v5627_v44  ;;  %vm5634_vm8 = vweird.f32 %v5627_v44 }
 0x979   :  { %v5342_v9 = vadd.f32 %v5341_v8, %v5340_v4 }
 0x97b   :  { %v5343_v17 = vmul.f32 0.0078125, %v5342_v9 }
 0x97d   :  { %v12496_v12 = vsub.f32 %v12363_v35, %v5343_v17  ;;  %v12499_v40 = vsub.f32 %v12369_v34, %v5343_v17  ;;  %v12502_v22 = vsub.f32 %v12373_v31, %v5343_v17  ;;  %v12509_v7 = vsub.f32 %v12379_v16, %v5343_v17 }
 0x97e   :  { %v12512_v35 = vsub.f32 %v12385_v63, %v5343_v17  ;;  %v12517_v31 = vsub.f32 %v12387_v45, %v5343_v17  ;;  %v12522_v43 = vsub.f32 %v12389_v24, %v5343_v17  ;;  %v12527_v1 = vsub.f32 %v12391_v10, %v5343_v17 }
 0x97f   :  { %v5360_v33 = vmul.f32 %v12496_v12, %v12496_v12  ;;  %v5361_v42 = vmul.f32 %v12499_v40, %v12499_v40  ;;  %v5362_v34 = vmul.f32 %v12502_v22, %v12502_v22  ;;  %v5363_v54 = vmul.f32 %v12509_v7, %v12509_v7 }
 0x980   :  { %v5364_v16 = vmul.f32 %v12512_v35, %v12512_v35  ;;  %v5365_v38 = vmul.f32 %v12517_v31, %v12517_v31  ;;  %v12532_v18 = vsub.f32 %v12398_v41, %v5343_v17  ;;  %v5366_v36 = vmul.f32 %v12522_v43, %v12522_v43 }
 0x981   :  { %v5376_v15 = vadd.f32 %v5361_v42, %v5360_v33  ;;  %v12537_v39 = vsub.f32 %v12410_v26, %v5343_v17  ;;  %v5367_v61 = vmul.f32 %v12527_v1, %v12527_v1  ;;  %v12542_v58 = vsub.f32 %v12420_v56, %v5343_v17 }
 0x982   :  { %v5368_v53 = vmul.f32 %v12532_v18, %v12532_v18  ;;  %v12547_v46 = vsub.f32 %v12430_v13, %v5343_v17  ;;  %v12552_v4 = vsub.f32 %v12445_v5, %v5343_v17  ;;  %v12557_v8 = vsub.f32 %v12461_v19, %v5343_v17 }
 0x983   :  { %v5377_v59 = vadd.f32 %v5376_v15, %v5362_v34  ;;  %v5369_v47 = vmul.f32 %v12537_v39, %v12537_v39  ;;  %v5370_v52 = vmul.f32 %v12542_v58, %v12542_v58  ;;  %v12562_v21 = vsub.f32 %v12477_v50, %v5343_v17  ;;  %v6725_v34 = vpop.eup %6724 }
 0x984   :  { %v5371_v9 = vmul.f32 %v12547_v46, %v12547_v46  ;;  %v5372_v62 = vmul.f32 %v12552_v4, %v12552_v4  ;;  %v12566_v33 = vsub.f32 %v5319_v28, %v5343_v17  ;;  %v5373_v42 = vmul.f32 %v12557_v8, %v12557_v8 }
 0x985   :  { %v5378_v63 = vadd.f32 %v5377_v59, %v5363_v54  ;;  %v5374_v19 = vmul.f32 %v12562_v21, %v12562_v21  ;;  %v5629_v54 = vmul.f32 %v6725_v34, %v5627_v44  ;;  %vm5635_vm9 = vweird.f32 %v6725_v34 }
 0x986   :  { %v5375_v37 = vmul.f32 %v12566_v33, %v12566_v33  ;;  %vm5636_vm10 = vmor %vm5634_vm8, %vm5635_vm9 }
 0x987   :  { %v5379_v45 = vadd.f32 %v5378_v63, %v5364_v16  ;;  %v5630_v63 = vmul.f32 %v6725_v34, %v5629_v54 }
 0x989   :  { %v5380_v24 = vadd.f32 %v5379_v45, %v5365_v38  ;;  %v5631_v17 = vmul.f32 0.5, %v5630_v63 }
 0x98b   :  { %v5381_v10 = vadd.f32 %v5380_v24, %v5366_v36  ;;  %v5632_v36 = vsub.f32 1.5, %v5631_v17 }
 0x98d   :  { %v5382_v41 = vadd.f32 %v5381_v10, %v5367_v61  ;;  %v5633_v61 = vmul.f32 %v6725_v34, %v5632_v36 }
 0x98f   :  { %v5383_v26 = vadd.f32 %v5382_v41, %v5368_v53  ;;  %v5637_v53 = vsel %vm5636_vm10, %v6725_v34, %v5633_v61 }
 0x990   :  { %v5638_v41 = vmul.f32 %v5637_v53, %v12394_v6  ;;  %v5642_v44 = vmul.f32 %v5637_v53, %v12412_v29  ;;  %v5646_v6 = vmul.f32 %v5637_v53, %v12433_v23  ;;  %v5652_v29 = vmul.f32 %v5637_v53, %v12481_v14  ;;  %v6717_v23 = vld [vmem:[%s12682_s13] ss:$0 sm:$0xff] }
 0x991   :  { %v5384_v56 = vadd.f32 %v5383_v26, %v5369_v47  ;;  %v5639_v47 = vmul.f32 %v5637_v53, %v12396_v60  ;;  %v5640_v26 = vmul.f32 %v5637_v53, %v12400_v30  ;;  %v5647_v60 = vmul.f32 %v5637_v53, %v12440_v51 }
 0x992   :  { %v5648_v30 = vmul.f32 %v5637_v53, %v12449_v2 }
 0x993   :  { %v5385_v13 = vadd.f32 %v5384_v56, %v5370_v52  ;;  %v5641_v52 = vmul.f32 %v5637_v53, %v12406_v48  ;;  %v6716_v56 = vld [vmem:[%s12681_s12] ss:$0 sm:$0xff]  ;;  %v5649_v48 = vmul.f32 %v5637_v53, %v12456_v32 }
 0x994   :  { %v5657_v34 = vmul.f32 %v6716_v56, %v5638_v41  ;;  %v5661_v2 = vmul.f32 %v6716_v56, %v5642_v44  ;;  %v5667_v54 = vmul.f32 %v6716_v56, %v5648_v30  ;;  %v5671_v63 = vmul.f32 %v6716_v56, %v5652_v29 }
 0x995   :  { %v5386_v5 = vadd.f32 %v5385_v13, %v5371_v9  ;;  %v5643_v9 = vmul.f32 %v5637_v53, %v12416_v20  ;;  %v5644_v13 = vmul.f32 %v5637_v53, %v12422_v55  ;;  %v5653_v55 = vmul.f32 %v5637_v53, %v12488_v57 }
 0x996   :  { %v5660_v51 = vmul.f32 %v6716_v56, %v5641_v52  ;;  %v5668_v14 = vmul.f32 %v6716_v56, %v5649_v48  ;;  %v12616_v52 = vadd.f32 %v6717_v23, %v5667_v54 }
 0x997   :  { %v5387_v0 = vadd.f32 %v5386_v5, %v5372_v62  ;;  %v5645_v62 = vmul.f32 %v5637_v53, %v12426_v11  ;;  %v5658_v11 = vmul.f32 %v6716_v56, %v5639_v47 }
 0x998   :  { %v12602_v36 = vadd.f32 %v6717_v23, %v5660_v51 }
 0x999   :  { %v5388_v15 = vadd.f32 %v5387_v0, %v5373_v42  ;;  %v5650_v42 = vmul.f32 %v5637_v53, %v12465_v49  ;;  %v5651_v0 = vmul.f32 %v5637_v53, %v12472_v25  ;;  %v5664_v49 = vmul.f32 %v6716_v56, %v5645_v62 }
 0x99a   :  { %v5666_v25 = vmul.f32 %v6716_v56, %v5647_v60  ;;  %v12598_v17 = vadd.f32 %v6717_v23, %v5658_v11 }
 0x99b   :  { %v5389_v50 = vadd.f32 %v5388_v15, %v5374_v19  ;;  %v5659_v19 = vmul.f32 %v6716_v56, %v5640_v26  ;;  %v5662_v15 = vmul.f32 %v6716_v56, %v5643_v9  ;;  %v5670_v57 = vmul.f32 %v6716_v56, %v5651_v0 }
 0x99c   :  { %v12610_v53 = vadd.f32 %v6717_v23, %v5664_v49  ;;  %v12614_v26 = vadd.f32 %v6717_v23, %v5666_v25 }
 0x99d   :  { %v5390_v59 = vadd.f32 %v5389_v50, %v5375_v37  ;;  %v5663_v37 = vmul.f32 %v6716_v56, %v5644_v13  ;;  %v5665_v50 = vmul.f32 %v6716_v56, %v5646_v6  ;;  %v12622_v9 = vadd.f32 %v6717_v23, %v5670_v57 }
 0x99e   :  { %v12626_v6 = vadd.f32 %v6717_v23, %v5671_v63 }
 0x99f   :  { %v5391_v16 = vrot.slane %v5390_v59, 4  ;;  %v12608_v61 = vadd.f32 %v6717_v23, %v5663_v37  ;;  %v12612_v41 = vadd.f32 %v6717_v23, %v5665_v50 }
 0x9a1   :  { %v5392_v27 = vadd.f32 %v5391_v16, %v5390_v59  ;;  %v5669_v59 = vmul.f32 %v6716_v56, %v5650_v42  ;;  %v6718_v42 = vld [vmem:[%s12678_s9] ss:$0 sm:$0xff] }
 0x9a3   :  { %v5393_v28 = vrot.slane %v5392_v27, 2  ;;  %v12620_v44 = vadd.f32 %v6717_v23, %v5669_v59 }
 0x9a5   :  { %v5394_v38 = vadd.f32 %v5393_v28, %v5392_v27  ;;  %v5672_v27 = vmul.f32 %v6716_v56, %v5653_v55  ;;  %v12596_v28 = vadd.f32 %v6717_v23, %v5657_v34  ;;  %v12618_v56 = vadd.f32 %v6717_v23, %v5668_v14 }
 0x9a7   :  { %v5395_v45 = vrot.slane %v5394_v38, 1  ;;  %v12624_v13 = vadd.f32 %v6717_v23, %v5672_v27 }
 0x9a9   :  { %v5396_v24 = vadd.f32 %v5395_v45, %v5394_v38  ;;  %v12600_v38 = vadd.f32 %v6717_v23, %v5659_v19 }
 0x9ab   :  { %v5397_v3 = vmul.f32 0.0078125, %v5396_v24  ;;  %v12604_v24 = vadd.f32 %v6717_v23, %v5661_v2 }
 0x9ad   :  { %v5399_v10 = vadd.f32 1e-05, %v5397_v3  ;;  %v12606_v3 = vadd.f32 %v6717_v23, %v5662_v15 }
 0x9af   :  { %6726 = vrsqrt.f32 %v5399_v10  ;;  %vm5406_vm12 = vweird.f32 %v5399_v10 }
 0x9b5   :  { %v6727_v5 = vpop.eup %6726 }
 0x9b6   :  { %v5401_v20 = vmul.f32 %v6727_v5, %v5399_v10  ;;  %vm5407_vm11 = vweird.f32 %v6727_v5 }
 0x9b7   :  { %vm5408_vm13 = vmor %vm5406_vm12, %vm5407_vm11 }
 0x9b8   :  { %v5402_v32 = vmul.f32 %v6727_v5, %v5401_v20 }
 0x9ba   :  { %v5403_v16 = vmul.f32 0.5, %v5402_v32 }
 0x9bc   :  { %v5404_v45 = vsub.f32 1.5, %v5403_v16 }
 0x9be   :  { %v5405_v47 = vmul.f32 %v6727_v5, %v5404_v45 }
 0x9c0   :  { %v5409_v62 = vsel %vm5408_vm13, %v6727_v5, %v5405_v47 }
 0x9c1   :  { %v5410_v60 = vmul.f32 %v5409_v62, %v12496_v12  ;;  %v5411_v10 = vmul.f32 %v5409_v62, %v12499_v40  ;;  %v5412_v30 = vmul.f32 %v5409_v62, %v12502_v22  ;;  %v5413_v48 = vmul.f32 %v5409_v62, %v12509_v7 }
 0x9c2   :  { %v5414_v0 = vmul.f32 %v5409_v62, %v12512_v35  ;;  %v5415_v29 = vmul.f32 %v5409_v62, %v12517_v31  ;;  %v5416_v5 = vmul.f32 %v5409_v62, %v12522_v43  ;;  %v5417_v20 = vmul.f32 %v5409_v62, %v12527_v1 }
 0x9c3   :  { %v5418_v12 = vmul.f32 %v5409_v62, %v12532_v18  ;;  %v5419_v40 = vmul.f32 %v5409_v62, %v12537_v39  ;;  %v5420_v22 = vmul.f32 %v5409_v62, %v12542_v58  ;;  %v5421_v7 = vmul.f32 %v5409_v62, %v12547_v46  ;;  %v6719_v18 = vld [vmem:[%s12679_s10] ss:$0 sm:$0xff]  ;;  %s6756_s10 = smov [#allocation2]  }
 0x9c4   :  { %v5422_v55 = vmul.f32 %v5409_v62, %v12552_v4  ;;  %v5423_v34 = vmul.f32 %v5409_v62, %v12557_v8  ;;  %v5424_v35 = vmul.f32 %v5409_v62, %v12562_v21  ;;  %v5425_v31 = vmul.f32 %v5409_v62, %v12566_v33  ;;  %s5761_s22 = sshll.u32 %s6756_s10, 4  ;;  %s5762_s22 = int_to_ptr.vmem [resolvable:$true] %s5761_s22 }
 0x9c5   :  { %v5429_v11 = vmul.f32 %v6718_v42, %v5410_v60  ;;  %v5430_v43 = vmul.f32 %v6718_v42, %v5411_v10  ;;  %v5431_v19 = vmul.f32 %v6718_v42, %v5412_v30  ;;  %v5432_v1 = vmul.f32 %v6718_v42, %v5413_v48 }
 0x9c6   :  { %v5433_v39 = vmul.f32 %v6718_v42, %v5414_v0  ;;  %v5434_v58 = vmul.f32 %v6718_v42, %v5415_v29  ;;  %v5435_v23 = vmul.f32 %v6718_v42, %v5416_v5  ;;  %v5436_v46 = vmul.f32 %v6718_v42, %v5417_v20 }
 0x9c7   :  { %v5437_v51 = vmul.f32 %v6718_v42, %v5418_v12  ;;  %v5438_v4 = vmul.f32 %v6718_v42, %v5419_v40  ;;  %v5439_v2 = vmul.f32 %v6718_v42, %v5420_v22  ;;  %v5440_v8 = vmul.f32 %v6718_v42, %v5421_v7 }
 0x9c8   :  { %v5441_v15 = vmul.f32 %v6718_v42, %v5422_v55  ;;  %v5442_v21 = vmul.f32 %v6718_v42, %v5423_v34  ;;  %v5443_v32 = vmul.f32 %v6718_v42, %v5424_v35  ;;  %v5444_v33 = vmul.f32 %v6718_v42, %v5425_v31 }
 0x9c9   :  { %v5449_v37 = vadd.f32 %v6719_v18, %v5429_v11  ;;  %v5450_v49 = vadd.f32 %v6719_v18, %v5430_v43  ;;  %v5451_v50 = vadd.f32 %v6719_v18, %v5431_v19  ;;  %v5452_v25 = vadd.f32 %v6719_v18, %v5432_v1 }
 0x9ca   :  { %v5453_v54 = vadd.f32 %v6719_v18, %v5433_v39  ;;  %v5454_v14 = vadd.f32 %v6719_v18, %v5434_v58  ;;  %v5455_v59 = vadd.f32 %v6719_v18, %v5435_v23  ;;  %v5456_v16 = vadd.f32 %v6719_v18, %v5436_v46 }
 0x9cb   :  { %v5457_v57 = vadd.f32 %v6719_v18, %v5437_v51  ;;  %v5458_v63 = vadd.f32 %v6719_v18, %v5438_v4  ;;  %v5459_v27 = vadd.f32 %v6719_v18, %v5439_v2  ;;  %v5460_v45 = vadd.f32 %v6719_v18, %v5440_v8 }
 0x9cc   :  { %v5461_v47 = vadd.f32 %v6719_v18, %v5441_v15  ;;  %v5462_v62 = vadd.f32 %v6719_v18, %v5442_v21  ;;  %v5463_v60 = vadd.f32 %v6719_v18, %v5443_v32  ;;  %v5464_v10 = vadd.f32 %v6719_v18, %v5444_v33 }
 0x9cd   :  { %v5693_v30 = vadd.f32 %v12596_v28, %v5449_v37  ;;  %v5694_v48 = vadd.f32 %v12598_v17, %v5450_v49  ;;  %v5695_v42 = vadd.f32 %v12600_v38, %v5451_v50  ;;  %v5696_v0 = vadd.f32 %v12602_v36, %v5452_v25 }
 0x9ce   :  { %v5697_v29 = vadd.f32 %v12604_v24, %v5453_v54  ;;  %v5698_v5 = vadd.f32 %v12606_v3, %v5454_v14  ;;  %v5699_v20 = vadd.f32 %v12608_v61, %v5455_v59  ;;  %v5700_v12 = vadd.f32 %v12610_v53, %v5456_v16 }
 0x9cf   :  { %v5701_v40 = vadd.f32 %v12612_v41, %v5457_v57  ;;  %v5702_v22 = vadd.f32 %v12614_v26, %v5458_v63  ;;  %v5703_v28 = vadd.f32 %v12616_v52, %v5459_v27  ;;  %v5704_v17 = vadd.f32 %v12618_v56, %v5460_v45 }
 0x9d0   :  { %v5705_v38 = vadd.f32 %v12620_v44, %v5461_v47  ;;  %v5706_v36 = vadd.f32 %v12622_v9, %v5462_v62  ;;  %v5707_v24 = vadd.f32 %v12626_v6, %v5463_v60  ;;  %v5708_v3 = vadd.f32 %v12624_v13, %v5464_v10 }
 0x9d1   :  { %v5711_v7 = vmax.f32 %v5695_v42, 0.0  ;;  %v5712_v61 = vmax.f32 %v5696_v0, 0.0  ;;  %v5713_v55 = vmax.f32 %v5697_v29, 0.0  ;;  %v5714_v53 = vmax.f32 %v5698_v5, 0.0 }
 0x9d2   :  { %v5715_v34 = vmax.f32 %v5699_v20, 0.0  ;;  %v5716_v41 = vmax.f32 %v5700_v12, 0.0  ;;  %v5717_v35 = vmax.f32 %v5701_v40, 0.0  ;;  %v5718_v26 = vmax.f32 %v5702_v22, 0.0 }
 0x9d3   :  { %v5719_v31 = vmax.f32 %v5703_v28, 0.0  ;;  %v5720_v52 = vmax.f32 %v5704_v17, 0.0  ;;  %v5721_v11 = vmax.f32 %v5705_v38, 0.0  ;;  %v5722_v56 = vmax.f32 %v5706_v36, 0.0 }
 0x9d4   :  { %v5723_v43 = vmax.f32 %v5707_v24, 0.0  ;;  %v5724_v44 = vmax.f32 %v5708_v3, 0.0  ;;  %v6612_v19 = vpack.c.bf16 %v5714_v53, %v5713_v55  ;;  %v6617_v9 = vpack.c.bf16 %v5716_v41, %v5715_v34 }
 0x9d5   :  { %v6622_v1 = vpack.c.bf16 %v5718_v26, %v5717_v35  ;;  %v6627_v6 = vpack.c.bf16 %v5720_v52, %v5719_v31  ;;  %v6632_v18 = vpack.c.bf16 %v5722_v56, %v5721_v11  ;;  %v5709_v13 = vmax.f32 %v5693_v30, 0.0 }
 0x9d6   :  { %6688 = vst [vmem:[#allocation2 + $0x10] sm:$0xff] %v6612_v19   ;;  %v6637_v39 = vpack.c.bf16 %v5724_v44, %v5723_v43  ;;  %v5710_v58 = vmax.f32 %v5694_v48, 0.0  ;;  %v6607_v23 = vpack.c.bf16 %v5712_v61, %v5711_v7 }
 0x9d7   :  { %6689 = vst [vmem:[#allocation2 + $0x18] sm:$0xff] %v6617_v9  }
 0x9d8   :  { %6690 = vst [vmem:[#allocation2 + $0x20] sm:$0xff] %v6622_v1   ;;  %v6602_v46 = vpack.c.bf16 %v5710_v58, %v5709_v13 }
 0x9d9   :  { %6691 = vst [vmem:[#allocation2 + $0x28] sm:$0xff] %v6627_v6  }
 0x9da   :  { %6692 = vst [vmem:[#allocation2 + $0x30] sm:$0xff] %v6632_v18  }
 0x9db   :  { %6693 = vst [vmem:[#allocation2 + $0x38] sm:$0xff] %v6637_v39  }
 0x9dc   :  { %6603 = vst [vmem:[#allocation2] sm:$0xff] %v6602_v46  }
 0x9dd   :  { %6687 = vst [vmem:[#allocation2 + $0x8] sm:$0xff] %v6607_v23  }
 0x9de   :  { %5769 = dma.vmem_to_hbm [thread:$0]  %s5762_s22, 1024, %s5764_s25, [#allocation3], %s6757_s3, %s6757_s3, %s6758_s26  }
 0x9df   :  { %6753 = dma.done.wait [#allocation3], 1024  }
 0x9e0   :  { %6754 = vsyncadd [#allocation3], 4294966272 }
 0x9e1   :  { %5774 = vsyncpa [#allocation3], 1 }

</bundles_post_ra>
